<compile_context>
chip_gen: v7x
topology: tpu7x:2x2x1
jax: 0.10.0
libtpu: 0.0.40
codegen_flags: <defaults>
</compile_context>

<pallas_src>
import jax
import jax.numpy as jnp
from jax.experimental import pallas as pl
from jax.experimental.pallas import tpu as pltpu

# ------------------------- problem sizes (small, ViT-block-consistent) ----------
B, Hs, Ws = 2, 8, 8          # batch, spatial grid
N = Hs * Ws                  # tokens = 64
C = 64                       # embedding dim
NUM_HEADS = 4
HEAD_DIM = C // NUM_HEADS    # 16
G = NUM_HEADS * B            # flattened (head, batch) axis = 8
MLP_HIDDEN = int(4.0 * C)    # mlp_ratio = 4.0
SCALE = HEAD_DIM ** (-0.5)
EPS = 1e-5                   # nn.LayerNorm default eps
MATMUL_DTYPE = jnp.bfloat16  # MXU operand dtype (f32 accumulation); jnp.float32 for exact f32
_INV_SQRT2 = 0.7071067811865476

# Abramowitz-Stegun 7.1.26 erf coefficients (max abs error 1.5e-7)
_ERF_P = 0.3275911
_ERF_A1 = 0.254829592
_ERF_A2 = -0.284496736
_ERF_A3 = 1.421413741
_ERF_A4 = -1.453152027
_ERF_A5 = 1.061405429


def _layernorm(x, gamma, beta):
    mu = jnp.mean(x, axis=-1, keepdims=True)
    var = jnp.mean(jnp.square(x - mu), axis=-1, keepdims=True)
    return (x - mu) * jax.lax.rsqrt(var + EPS) * gamma + beta


def _erf_poly(x):
    sgn = jnp.where(x >= 0.0, 1.0, -1.0)
    ax = jnp.abs(x)
    t = 1.0 / (1.0 + _ERF_P * ax)
    poly = ((((_ERF_A5 * t + _ERF_A4) * t + _ERF_A3) * t + _ERF_A2) * t + _ERF_A1) * t
    return sgn * (1.0 - poly * jnp.exp(-ax * ax))


def _gelu_exact(x):
    # nn.GELU default = exact erf GELU (erf via A&S polynomial, |err| < 1.5e-7)
    return 0.5 * x * (1.0 + _erf_poly(x * _INV_SQRT2))


def block_kernel(x_ref, g1_ref, b1_ref, wq_ref, wk_ref, wv_ref, wproj_ref, bproj_ref,
                 g2_ref, b2_ref, w1_ref, bf1_ref, w2_ref, bf2_ref, o_ref):
    x = x_ref[...].astype(jnp.float32)                       # (B*N, C)

    # ---------------- x + attn(norm1(x)) ----------------
    xn = _layernorm(x, g1_ref[...], b1_ref[...])             # (B*N, C), f32
    xn_b = xn.astype(MATMUL_DTYPE)                           # single hoisted cast
    # head-major replication of the LN'd activations (leading-dim broadcast only, no lane slicing)
    xn_rep = jnp.broadcast_to(
        xn_b.reshape(1, B, N, C), (NUM_HEADS, B, N, C)).reshape(G, N, C)

    # Batched QKV projections: one dot_general each, head index on the leading (batch) axis.
    q = jnp.einsum("gnc,gcd->gnd", xn_rep, wq_ref[...],
                   preferred_element_type=jnp.float32)       # (G, N, D); scale folded into wq
    k = jnp.einsum("gnc,gcd->gnd", xn_rep, wk_ref[...],
                   preferred_element_type=jnp.float32)       # (G, N, D)
    v = jnp.einsum("gnc,gcd->gnd", xn_rep, wv_ref[...],
                   preferred_element_type=jnp.float32)       # (G, N, D)

    # Scores + softmax for all (head, batch) pairs at once.
    s = jnp.einsum("gnd,gmd->gnm", q.astype(MATMUL_DTYPE), k.astype(MATMUL_DTYPE),
                   preferred_element_type=jnp.float32)       # (G, N, N)
    s = s - jnp.max(s, axis=-1, keepdims=True)
    p = jnp.exp(s)
    p = p * pl.reciprocal(jnp.sum(p, axis=-1, keepdims=True), approx=True)  # softmax(dim=-1)

    # Reassociated projection: (p @ (v_h @ Wproj_h)); both matmuls are 64-lane-dense outputs.
    vproj = jnp.einsum("gmd,gdc->gmc", v.astype(MATMUL_DTYPE), wproj_ref[...],
                       preferred_element_type=jnp.float32)   # (G, N, C)
    o = jnp.einsum("gnm,gmc->gnc", p.astype(MATMUL_DTYPE), vproj.astype(MATMUL_DTYPE),
                   preferred_element_type=jnp.float32)       # (G, N, C)

    # Head reduction: leading-axis split + 3 VPU adds (no concat / relayout / K=16 matmul).
    o4 = o.reshape(NUM_HEADS, B, N, C)
    attn = o4[0]
    for h in range(1, NUM_HEADS):
        attn = attn + o4[h]
    attn = attn.reshape(B * N, C)

    x = x + (attn + bproj_ref[...])                          # DropPath(0) == identity

    # ---------------- x + mlp(norm2(x)) ----------------
    xn2 = _layernorm(x, g2_ref[...], b2_ref[...])
    h1 = jnp.dot(xn2.astype(MATMUL_DTYPE), w1_ref[...],
                 preferred_element_type=jnp.float32) + bf1_ref[...]
    h1 = _gelu_exact(h1)
    h2 = jnp.dot(h1.astype(MATMUL_DTYPE), w2_ref[...],
                 preferred_element_type=jnp.float32) + bf2_ref[...]
    o_ref[...] = (x + h2).astype(o_ref.dtype)


def prepare_params(params):
    """One-time constant weight transforms (done once, not per call):
       - fold the attention softmax scale into the Q weights
       - reshape QKV / proj weights to head-major (G, C, D) / (G, D, C), replicated over batch,
         so all head indexing in the kernel is on leading axes
       - cast matmul weight matrices to the MXU operand dtype (LN params / biases stay f32)."""
    wqkv = params["wqkv"]                                    # (C, 3C), f32
    wq = wqkv[:, :C] * SCALE                                 # fold softmax scale into Q
    wk = wqkv[:, C:2 * C]
    wv = wqkv[:, 2 * C:]

    def head_major(w):                                       # (C, C) -> (H, C, D) -> (G, C, D)
        w_hcd = w.reshape(C, NUM_HEADS, HEAD_DIM).transpose(1, 0, 2)
        return jnp.broadcast_to(w_hcd[:, None], (NUM_HEADS, B, C, HEAD_DIM)).reshape(
            G, C, HEAD_DIM).astype(MATMUL_DTYPE)

    wproj_hdc = params["wproj"].reshape(NUM_HEADS, HEAD_DIM, C)   # rows are (head, dim) ordered
    wproj_g = jnp.broadcast_to(wproj_hdc[:, None], (NUM_HEADS, B, HEAD_DIM, C)).reshape(
        G, HEAD_DIM, C).astype(MATMUL_DTYPE)

    return {
        "g1": params["g1"], "b1": params["b1"],
        "g2": params["g2"], "b2": params["b2"],
        "wq": head_major(wq), "wk": head_major(wk), "wv": head_major(wv),
        "wproj": wproj_g,
        "bproj": params["bproj"],
        "w1": params["w1"].astype(MATMUL_DTYPE),
        "bf1": params["bf1"],
        "w2": params["w2"].astype(MATMUL_DTYPE),
        "bf2": params["bf2"],
    }


def vit_block(x, prepared):
    """x: (B, N, C) float32. prepared: output of prepare_params()."""
    ordered = [prepared[k] for k in (
        "g1", "b1", "wq", "wk", "wv", "wproj", "bproj",
        "g2", "b2", "w1", "bf1", "w2", "bf2")]
    x2 = x.reshape(B * N, C)   # M = 128 fills the MXU sublane dim; single kernel invocation

    def full_spec(shape):
        zeros = (0,) * len(shape)
        return pl.BlockSpec(shape, lambda i, _z=zeros: _z)

    out = pl.pallas_call(
        block_kernel,
        out_shape=jax.ShapeDtypeStruct((B * N, C), x.dtype),
        grid_spec=pltpu.PrefetchScalarGridSpec(
            num_scalar_prefetch=0,
            grid=(1,),          # whole problem in one step (see v7x note in header)
            in_specs=[full_spec(x2.shape)] + [full_spec(p.shape) for p in ordered],
            out_specs=full_spec((B * N, C)),
        ),
        compiler_params=pltpu.CompilerParams(dimension_semantics=("arbitrary",)),
    )(x2, *ordered)
    return out.reshape(B, N, C)


def ref_block(x, params):
    """Plain-JAX reference mirroring the PyTorch Block.forward semantics (f32, unscaled weights)."""
    g1, b1 = params["g1"][0], params["b1"][0]
    g2, b2 = params["g2"][0], params["b2"][0]
    xn = _layernorm(x, g1, b1)
    qkv = jnp.einsum("bnc,cd->bnd", xn, params["wqkv"],
                     precision=jax.lax.Precision.HIGHEST)
    q = qkv[..., :C].reshape(B, N, NUM_HEADS, HEAD_DIM).transpose(0, 2, 1, 3)
    k = qkv[..., C:2 * C].reshape(B, N, NUM_HEADS, HEAD_DIM).transpose(0, 2, 1, 3)
    v = qkv[..., 2 * C:].reshape(B, N, NUM_HEADS, HEAD_DIM).transpose(0, 2, 1, 3)
    attn = jnp.einsum("bhnd,bhmd->bhnm", q * SCALE, k,
                      precision=jax.lax.Precision.HIGHEST)
    attn = jax.nn.softmax(attn, axis=-1)
    out = jnp.einsum("bhnm,bhmd->bhnd", attn, v,
                     precision=jax.lax.Precision.HIGHEST)
    out = out.transpose(0, 2, 1, 3).reshape(B, N, C)
    out = jnp.einsum("bnc,cd->bnd", out, params["wproj"],
                     precision=jax.lax.Precision.HIGHEST) + params["bproj"][0]
    x = x + out
    xn2 = _layernorm(x, g2, b2)
    h1 = jnp.einsum("bnc,ch->bnh", xn2, params["w1"],
                    precision=jax.lax.Precision.HIGHEST) + params["bf1"][0]
    h1 = jax.nn.gelu(h1, approximate=False)
    h2 = jnp.einsum("bnh,hc->bnc", h1, params["w2"],
                    precision=jax.lax.Precision.HIGHEST) + params["bf2"][0]
    return x + h2


if __name__ == "__main__":
    key = jax.random.PRNGKey(0)
    ks = jax.random.split(key, 12)

    x = jax.random.normal(ks[0], (B, N, C), jnp.float32)

    params = {
        # LayerNorm affine params (stored as (1, dim) for lane layout)
        "g1": (1.0 + 0.02 * jax.random.normal(ks[1], (1, C), jnp.float32)),
        "b1": 0.02 * jax.random.normal(ks[2], (1, C), jnp.float32),
        "g2": (1.0 + 0.02 * jax.random.normal(ks[3], (1, C), jnp.float32)),
        "b2": 0.02 * jax.random.normal(ks[4], (1, C), jnp.float32),
        # Attention weights, pre-transposed to (in, out) so the math is x @ W
        "wqkv": 0.02 * jax.random.normal(ks[5], (C, 3 * C), jnp.float32),   # qkv_bias=False
        "wproj": 0.02 * jax.random.normal(ks[6], (C, C), jnp.float32),
        "bproj": 0.02 * jax.random.normal(ks[7], (1, C), jnp.float32),
        # MLP
        "w1": 0.02 * jax.random.normal(ks[8], (C, MLP_HIDDEN), jnp.float32),
        "bf1": 0.02 * jax.random.normal(ks[9], (1, MLP_HIDDEN), jnp.float32),
        "w2": 0.02 * jax.random.normal(ks[10], (MLP_HIDDEN, C), jnp.float32),
        "bf2": 0.02 * jax.random.normal(ks[11], (1, C), jnp.float32),
    }

    prepared = prepare_params(params)      # one-time constant transform (scale fold + head-major + bf16)
    y = jax.block_until_ready(vit_block(x, prepared))

    y_ref = jax.block_until_ready(ref_block(x, params))
    assert y.shape == (B, N, C)
    # tolerance accounts for bf16 MXU operands (f32 accumulation) + approx softmax reciprocal
    err = float(jnp.max(jnp.abs(y - y_ref)))
    assert err < 1e-2, f"mismatch vs. JAX reference, max abs err = {err}"

    print("KERNEL_OK")
</pallas_src>

<mosaic_0001>
module attributes {stable_mosaic.version = 11 : i64} {
  func.func @block_kernel(%arg0: i32, %arg1: memref<128x64xf32, #tpu.memory_space<vmem>>, %arg2: memref<1x64xf32, #tpu.memory_space<vmem>>, %arg3: memref<1x64xf32, #tpu.memory_space<vmem>>, %arg4: memref<8x64x16xbf16, #tpu.memory_space<vmem>>, %arg5: memref<8x64x16xbf16, #tpu.memory_space<vmem>>, %arg6: memref<8x64x16xbf16, #tpu.memory_space<vmem>>, %arg7: memref<8x16x64xbf16, #tpu.memory_space<vmem>>, %arg8: memref<1x64xf32, #tpu.memory_space<vmem>>, %arg9: memref<1x64xf32, #tpu.memory_space<vmem>>, %arg10: memref<1x64xf32, #tpu.memory_space<vmem>>, %arg11: memref<64x256xbf16, #tpu.memory_space<vmem>>, %arg12: memref<1x256xf32, #tpu.memory_space<vmem>>, %arg13: memref<256x64xbf16, #tpu.memory_space<vmem>>, %arg14: memref<1x64xf32, #tpu.memory_space<vmem>>, %arg15: memref<128x64xf32, #tpu.memory_space<vmem>>) attributes {dimension_semantics = [#tpu.dimension_semantics<arbitrary>], iteration_bounds = array<i64: 1>, scalar_prefetch = 0 : i64, scratch_operands = 0 : i64, tpu.core_type = #tpu.core_type<tc>, window_params = [{pipeline_mode = #tpu.pipeline_mode<synchronous>, transform_indices = @transform_0, window_bounds = array<i64: 128, 64>}, {pipeline_mode = #tpu.pipeline_mode<synchronous>, transform_indices = @transform_1, window_bounds = array<i64: 1, 64>}, {pipeline_mode = #tpu.pipeline_mode<synchronous>, transform_indices = @transform_2, window_bounds = array<i64: 1, 64>}, {pipeline_mode = #tpu.pipeline_mode<synchronous>, transform_indices = @transform_3, window_bounds = array<i64: 8, 64, 16>}, {pipeline_mode = #tpu.pipeline_mode<synchronous>, transform_indices = @transform_4, window_bounds = array<i64: 8, 64, 16>}, {pipeline_mode = #tpu.pipeline_mode<synchronous>, transform_indices = @transform_5, window_bounds = array<i64: 8, 64, 16>}, {pipeline_mode = #tpu.pipeline_mode<synchronous>, transform_indices = @transform_6, window_bounds = array<i64: 8, 16, 64>}, {pipeline_mode = #tpu.pipeline_mode<synchronous>, transform_indices = @transform_7, window_bounds = array<i64: 1, 64>}, {pipeline_mode = #tpu.pipeline_mode<synchronous>, transform_indices = @transform_8, window_bounds = array<i64: 1, 64>}, {pipeline_mode = #tpu.pipeline_mode<synchronous>, transform_indices = @transform_9, window_bounds = array<i64: 1, 64>}, {pipeline_mode = #tpu.pipeline_mode<synchronous>, transform_indices = @transform_10, window_bounds = array<i64: 64, 256>}, {pipeline_mode = #tpu.pipeline_mode<synchronous>, transform_indices = @transform_11, window_bounds = array<i64: 1, 256>}, {pipeline_mode = #tpu.pipeline_mode<synchronous>, transform_indices = @transform_12, window_bounds = array<i64: 256, 64>}, {pipeline_mode = #tpu.pipeline_mode<synchronous>, transform_indices = @transform_13, window_bounds = array<i64: 1, 64>}, {pipeline_mode = #tpu.pipeline_mode<synchronous>, transform_indices = @transform_14, window_bounds = array<i64: 128, 64>}]} {
    %c0 = arith.constant 0 : index
    %c0_0 = arith.constant 0 : index
    %0 = vector.load %arg1[%c0, %c0_0] : memref<128x64xf32, #tpu.memory_space<vmem>>, vector<128x64xf32>
    %c0_1 = arith.constant 0 : index
    %c0_2 = arith.constant 0 : index
    %1 = vector.load %arg2[%c0_1, %c0_2] : memref<1x64xf32, #tpu.memory_space<vmem>>, vector<1x64xf32>
    %c0_3 = arith.constant 0 : index
    %c0_4 = arith.constant 0 : index
    %2 = vector.load %arg3[%c0_3, %c0_4] : memref<1x64xf32, #tpu.memory_space<vmem>>, vector<1x64xf32>
    %cst = arith.constant dense<0.000000e+00> : vector<128xf32>
    %3 = vector.multi_reduction <add>, %0, %cst [1] : vector<128x64xf32> to vector<128xf32>
    %4 = vector.shape_cast %3 : vector<128xf32> to vector<128x1xf32>
    %cst_5 = arith.constant 6.400000e+01 : f32
    %5 = vector.broadcast %cst_5 : f32 to vector<128x1xf32>
    %6 = arith.divf %4, %5 : vector<128x1xf32>
    %7 = vector.broadcast %6 : vector<128x1xf32> to vector<128x64xf32>
    %8 = arith.subf %0, %7 : vector<128x64xf32>
    %9 = arith.mulf %8, %8 : vector<128x64xf32>
    %cst_6 = arith.constant dense<0.000000e+00> : vector<128xf32>
    %10 = vector.multi_reduction <add>, %9, %cst_6 [1] : vector<128x64xf32> to vector<128xf32>
    %11 = vector.shape_cast %10 : vector<128xf32> to vector<128x1xf32>
    %cst_7 = arith.constant 6.400000e+01 : f32
    %12 = vector.broadcast %cst_7 : f32 to vector<128x1xf32>
    %13 = arith.divf %11, %12 : vector<128x1xf32>
    %14 = vector.broadcast %6 : vector<128x1xf32> to vector<128x64xf32>
    %15 = arith.subf %0, %14 : vector<128x64xf32>
    %cst_8 = arith.constant 9.99999974E-6 : f32
    %16 = vector.broadcast %cst_8 : f32 to vector<128x1xf32>
    %17 = arith.addf %13, %16 : vector<128x1xf32>
    %18 = math.rsqrt %17 : vector<128x1xf32>
    %19 = vector.broadcast %18 : vector<128x1xf32> to vector<128x64xf32>
    %20 = arith.mulf %15, %19 : vector<128x64xf32>
    %21 = vector.broadcast %1 : vector<1x64xf32> to vector<128x64xf32>
    %22 = arith.mulf %20, %21 : vector<128x64xf32>
    %23 = vector.broadcast %2 : vector<1x64xf32> to vector<128x64xf32>
    %24 = arith.addf %22, %23 : vector<128x64xf32>
    %25 = arith.truncf %24 : vector<128x64xf32> to vector<128x64xbf16>
    %26 = vector.shape_cast %25 : vector<128x64xbf16> to vector<1x2x64x64xbf16>
    %27 = vector.shape_cast %26 : vector<1x2x64x64xbf16> to vector<1x2x64x64xbf16>
    %28 = vector.broadcast %27 : vector<1x2x64x64xbf16> to vector<4x2x64x64xbf16>
    %29 = vector.shape_cast %28 : vector<4x2x64x64xbf16> to vector<8x64x64xbf16>
    %c0_9 = arith.constant 0 : index
    %c0_10 = arith.constant 0 : index
    %c0_11 = arith.constant 0 : index
    %30 = vector.load %arg4[%c0_9, %c0_10, %c0_11] : memref<8x64x16xbf16, #tpu.memory_space<vmem>>, vector<8x64x16xbf16>
    "tpu.trace_start"() <{level = 10 : i32, message = "gnc,gcd->gnd"}> : () -> ()
    %cst_12 = arith.constant dense<0.000000e+00> : vector<8x64x16xf32>
    %31 = tpu.matmul %29, %30, %cst_12 {dimension_numbers = #tpu.dot_dimension_numbers<[2], [1], [1], [2], [0, 0, 0, 1, 1, 2], [0], [0]>} : vector<8x64x64xbf16>, vector<8x64x16xbf16>, vector<8x64x16xf32> -> vector<8x64x16xf32>
    "tpu.trace_stop"() : () -> ()
    %c0_13 = arith.constant 0 : index
    %c0_14 = arith.constant 0 : index
    %c0_15 = arith.constant 0 : index
    %32 = vector.load %arg5[%c0_13, %c0_14, %c0_15] : memref<8x64x16xbf16, #tpu.memory_space<vmem>>, vector<8x64x16xbf16>
    "tpu.trace_start"() <{level = 10 : i32, message = "gnc,gcd->gnd"}> : () -> ()
    %cst_16 = arith.constant dense<0.000000e+00> : vector<8x64x16xf32>
    %33 = tpu.matmul %29, %32, %cst_16 {dimension_numbers = #tpu.dot_dimension_numbers<[2], [1], [1], [2], [0, 0, 0, 1, 1, 2], [0], [0]>} : vector<8x64x64xbf16>, vector<8x64x16xbf16>, vector<8x64x16xf32> -> vector<8x64x16xf32>
    "tpu.trace_stop"() : () -> ()
    %c0_17 = arith.constant 0 : index
    %c0_18 = arith.constant 0 : index
    %c0_19 = arith.constant 0 : index
    %34 = vector.load %arg6[%c0_17, %c0_18, %c0_19] : memref<8x64x16xbf16, #tpu.memory_space<vmem>>, vector<8x64x16xbf16>
    "tpu.trace_start"() <{level = 10 : i32, message = "gnc,gcd->gnd"}> : () -> ()
    %cst_20 = arith.constant dense<0.000000e+00> : vector<8x64x16xf32>
    %35 = tpu.matmul %29, %34, %cst_20 {dimension_numbers = #tpu.dot_dimension_numbers<[2], [1], [1], [2], [0, 0, 0, 1, 1, 2], [0], [0]>} : vector<8x64x64xbf16>, vector<8x64x16xbf16>, vector<8x64x16xf32> -> vector<8x64x16xf32>
    "tpu.trace_stop"() : () -> ()
    %36 = arith.truncf %31 : vector<8x64x16xf32> to vector<8x64x16xbf16>
    %37 = arith.truncf %33 : vector<8x64x16xf32> to vector<8x64x16xbf16>
    "tpu.trace_start"() <{level = 10 : i32, message = "gnd,gmd->gnm"}> : () -> ()
    %cst_21 = arith.constant dense<0.000000e+00> : vector<8x64x64xf32>
    %38 = tpu.matmul %36, %37, %cst_21 {dimension_numbers = #tpu.dot_dimension_numbers<[2], [2], [1], [1], [0, 0, 0, 1, 1, 1], [0], [0]>} : vector<8x64x16xbf16>, vector<8x64x16xbf16>, vector<8x64x64xf32> -> vector<8x64x64xf32>
    "tpu.trace_stop"() : () -> ()
    %cst_22 = arith.constant dense<0xFF800000> : vector<8x64xf32>
    %39 = vector.multi_reduction <maximumf>, %38, %cst_22 [2] : vector<8x64x64xf32> to vector<8x64xf32>
    %40 = vector.shape_cast %39 : vector<8x64xf32> to vector<8x64x1xf32>
    %41 = vector.broadcast %40 : vector<8x64x1xf32> to vector<8x64x64xf32>
    %42 = arith.subf %38, %41 : vector<8x64x64xf32>
    %43 = math.exp %42 : vector<8x64x64xf32>
    %cst_23 = arith.constant dense<0.000000e+00> : vector<8x64xf32>
    %44 = vector.multi_reduction <add>, %43, %cst_23 [2] : vector<8x64x64xf32> to vector<8x64xf32>
    %45 = vector.shape_cast %44 : vector<8x64xf32> to vector<8x64x1xf32>
    %46 = tpu.reciprocal %45 {approx = true} : vector<8x64x1xf32> -> vector<8x64x1xf32>
    %47 = vector.broadcast %46 : vector<8x64x1xf32> to vector<8x64x64xf32>
    %48 = arith.mulf %43, %47 : vector<8x64x64xf32>
    %49 = arith.truncf %35 : vector<8x64x16xf32> to vector<8x64x16xbf16>
    %c0_24 = arith.constant 0 : index
    %c0_25 = arith.constant 0 : index
    %c0_26 = arith.constant 0 : index
    %50 = vector.load %arg7[%c0_24, %c0_25, %c0_26] : memref<8x16x64xbf16, #tpu.memory_space<vmem>>, vector<8x16x64xbf16>
    "tpu.trace_start"() <{level = 10 : i32, message = "gmd,gdc->gmc"}> : () -> ()
    %cst_27 = arith.constant dense<0.000000e+00> : vector<8x64x64xf32>
    %51 = tpu.matmul %49, %50, %cst_27 {dimension_numbers = #tpu.dot_dimension_numbers<[2], [1], [1], [2], [0, 0, 0, 1, 1, 2], [0], [0]>} : vector<8x64x16xbf16>, vector<8x16x64xbf16>, vector<8x64x64xf32> -> vector<8x64x64xf32>
    "tpu.trace_stop"() : () -> ()
    %52 = arith.truncf %48 : vector<8x64x64xf32> to vector<8x64x64xbf16>
    %53 = arith.truncf %51 : vector<8x64x64xf32> to vector<8x64x64xbf16>
    "tpu.trace_start"() <{level = 10 : i32, message = "gnm,gmc->gnc"}> : () -> ()
    %cst_28 = arith.constant dense<0.000000e+00> : vector<8x64x64xf32>
    %54 = tpu.matmul %52, %53, %cst_28 {dimension_numbers = #tpu.dot_dimension_numbers<[2], [1], [1], [2], [0, 0, 0, 1, 1, 2], [0], [0]>} : vector<8x64x64xbf16>, vector<8x64x64xbf16>, vector<8x64x64xf32> -> vector<8x64x64xf32>
    "tpu.trace_stop"() : () -> ()
    %55 = vector.shape_cast %54 : vector<8x64x64xf32> to vector<4x2x64x64xf32>
    %56 = vector.extract_strided_slice %55 {offsets = [0, 0, 0, 0], sizes = [1, 2, 64, 64], strides = [1, 1, 1, 1]} : vector<4x2x64x64xf32> to vector<1x2x64x64xf32>
    %57 = vector.shape_cast %56 : vector<1x2x64x64xf32> to vector<2x64x64xf32>
    %58 = vector.extract_strided_slice %55 {offsets = [1, 0, 0, 0], sizes = [1, 2, 64, 64], strides = [1, 1, 1, 1]} : vector<4x2x64x64xf32> to vector<1x2x64x64xf32>
    %59 = vector.shape_cast %58 : vector<1x2x64x64xf32> to vector<2x64x64xf32>
    %60 = arith.addf %57, %59 : vector<2x64x64xf32>
    %61 = vector.extract_strided_slice %55 {offsets = [2, 0, 0, 0], sizes = [1, 2, 64, 64], strides = [1, 1, 1, 1]} : vector<4x2x64x64xf32> to vector<1x2x64x64xf32>
    %62 = vector.shape_cast %61 : vector<1x2x64x64xf32> to vector<2x64x64xf32>
    %63 = arith.addf %60, %62 : vector<2x64x64xf32>
    %64 = vector.extract_strided_slice %55 {offsets = [3, 0, 0, 0], sizes = [1, 2, 64, 64], strides = [1, 1, 1, 1]} : vector<4x2x64x64xf32> to vector<1x2x64x64xf32>
    %65 = vector.shape_cast %64 : vector<1x2x64x64xf32> to vector<2x64x64xf32>
    %66 = arith.addf %63, %65 : vector<2x64x64xf32>
    %67 = vector.shape_cast %66 : vector<2x64x64xf32> to vector<128x64xf32>
    %c0_29 = arith.constant 0 : index
    %c0_30 = arith.constant 0 : index
    %68 = vector.load %arg8[%c0_29, %c0_30] : memref<1x64xf32, #tpu.memory_space<vmem>>, vector<1x64xf32>
    %69 = vector.broadcast %68 : vector<1x64xf32> to vector<128x64xf32>
    %70 = arith.addf %67, %69 : vector<128x64xf32>
    %71 = arith.addf %0, %70 : vector<128x64xf32>
    %c0_31 = arith.constant 0 : index
    %c0_32 = arith.constant 0 : index
    %72 = vector.load %arg9[%c0_31, %c0_32] : memref<1x64xf32, #tpu.memory_space<vmem>>, vector<1x64xf32>
    %c0_33 = arith.constant 0 : index
    %c0_34 = arith.constant 0 : index
    %73 = vector.load %arg10[%c0_33, %c0_34] : memref<1x64xf32, #tpu.memory_space<vmem>>, vector<1x64xf32>
    %cst_35 = arith.constant dense<0.000000e+00> : vector<128xf32>
    %74 = vector.multi_reduction <add>, %71, %cst_35 [1] : vector<128x64xf32> to vector<128xf32>
    %75 = vector.shape_cast %74 : vector<128xf32> to vector<128x1xf32>
    %cst_36 = arith.constant 6.400000e+01 : f32
    %76 = vector.broadcast %cst_36 : f32 to vector<128x1xf32>
    %77 = arith.divf %75, %76 : vector<128x1xf32>
    %78 = vector.broadcast %77 : vector<128x1xf32> to vector<128x64xf32>
    %79 = arith.subf %71, %78 : vector<128x64xf32>
    %80 = arith.mulf %79, %79 : vector<128x64xf32>
    %cst_37 = arith.constant dense<0.000000e+00> : vector<128xf32>
    %81 = vector.multi_reduction <add>, %80, %cst_37 [1] : vector<128x64xf32> to vector<128xf32>
    %82 = vector.shape_cast %81 : vector<128xf32> to vector<128x1xf32>
    %cst_38 = arith.constant 6.400000e+01 : f32
    %83 = vector.broadcast %cst_38 : f32 to vector<128x1xf32>
    %84 = arith.divf %82, %83 : vector<128x1xf32>
    %85 = vector.broadcast %77 : vector<128x1xf32> to vector<128x64xf32>
    %86 = arith.subf %71, %85 : vector<128x64xf32>
    %cst_39 = arith.constant 9.99999974E-6 : f32
    %87 = vector.broadcast %cst_39 : f32 to vector<128x1xf32>
    %88 = arith.addf %84, %87 : vector<128x1xf32>
    %89 = math.rsqrt %88 : vector<128x1xf32>
    %90 = vector.broadcast %89 : vector<128x1xf32> to vector<128x64xf32>
    %91 = arith.mulf %86, %90 : vector<128x64xf32>
    %92 = vector.broadcast %72 : vector<1x64xf32> to vector<128x64xf32>
    %93 = arith.mulf %91, %92 : vector<128x64xf32>
    %94 = vector.broadcast %73 : vector<1x64xf32> to vector<128x64xf32>
    %95 = arith.addf %93, %94 : vector<128x64xf32>
    %96 = arith.truncf %95 : vector<128x64xf32> to vector<128x64xbf16>
    %c0_40 = arith.constant 0 : index
    %c0_41 = arith.constant 0 : index
    %97 = vector.load %arg11[%c0_40, %c0_41] : memref<64x256xbf16, #tpu.memory_space<vmem>>, vector<64x256xbf16>
    %cst_42 = arith.constant dense<0.000000e+00> : vector<128x256xf32>
    %98 = tpu.matmul %96, %97, %cst_42 {dimension_numbers = #tpu.dot_dimension_numbers<[1], [0], [0], [1], [0, 0, 1, 1], [], []>} : vector<128x64xbf16>, vector<64x256xbf16>, vector<128x256xf32> -> vector<128x256xf32>
    %c0_43 = arith.constant 0 : index
    %c0_44 = arith.constant 0 : index
    %99 = vector.load %arg12[%c0_43, %c0_44] : memref<1x256xf32, #tpu.memory_space<vmem>>, vector<1x256xf32>
    %100 = vector.broadcast %99 : vector<1x256xf32> to vector<128x256xf32>
    %101 = arith.addf %98, %100 : vector<128x256xf32>
    %cst_45 = arith.constant 5.000000e-01 : f32
    %102 = vector.broadcast %cst_45 : f32 to vector<128x256xf32>
    %103 = arith.mulf %102, %101 : vector<128x256xf32>
    %cst_46 = arith.constant 0.707106769 : f32
    %104 = vector.broadcast %cst_46 : f32 to vector<128x256xf32>
    %105 = arith.mulf %101, %104 : vector<128x256xf32>
    %cst_47 = arith.constant 0.000000e+00 : f32
    %106 = vector.broadcast %cst_47 : f32 to vector<128x256xf32>
    %107 = arith.cmpf oge, %105, %106 : vector<128x256xf32>
    %cst_48 = arith.constant 1.000000e+00 : f32
    %cst_49 = arith.constant -1.000000e+00 : f32
    %108 = vector.broadcast %cst_48 : f32 to vector<128x256xf32>
    %109 = vector.broadcast %cst_49 : f32 to vector<128x256xf32>
    %110 = arith.select %107, %108, %109 : vector<128x256xi1>, vector<128x256xf32>
    %111 = math.absf %105 : vector<128x256xf32>
    %cst_50 = arith.constant 0.327591091 : f32
    %112 = vector.broadcast %cst_50 : f32 to vector<128x256xf32>
    %113 = arith.mulf %112, %111 : vector<128x256xf32>
    %cst_51 = arith.constant 1.000000e+00 : f32
    %114 = vector.broadcast %cst_51 : f32 to vector<128x256xf32>
    %115 = arith.addf %114, %113 : vector<128x256xf32>
    %cst_52 = arith.constant 1.000000e+00 : f32
    %116 = vector.broadcast %cst_52 : f32 to vector<128x256xf32>
    %117 = arith.divf %116, %115 : vector<128x256xf32>
    %cst_53 = arith.constant 1.06140542 : f32
    %118 = vector.broadcast %cst_53 : f32 to vector<128x256xf32>
    %119 = arith.mulf %118, %117 : vector<128x256xf32>
    %cst_54 = arith.constant -1.45315206 : f32
    %120 = vector.broadcast %cst_54 : f32 to vector<128x256xf32>
    %121 = arith.addf %119, %120 : vector<128x256xf32>
    %122 = arith.mulf %121, %117 : vector<128x256xf32>
    %cst_55 = arith.constant 1.42141378 : f32
    %123 = vector.broadcast %cst_55 : f32 to vector<128x256xf32>
    %124 = arith.addf %122, %123 : vector<128x256xf32>
    %125 = arith.mulf %124, %117 : vector<128x256xf32>
    %cst_56 = arith.constant -0.284496725 : f32
    %126 = vector.broadcast %cst_56 : f32 to vector<128x256xf32>
    %127 = arith.addf %125, %126 : vector<128x256xf32>
    %128 = arith.mulf %127, %117 : vector<128x256xf32>
    %cst_57 = arith.constant 0.254829586 : f32
    %129 = vector.broadcast %cst_57 : f32 to vector<128x256xf32>
    %130 = arith.addf %128, %129 : vector<128x256xf32>
    %131 = arith.mulf %130, %117 : vector<128x256xf32>
    %cst_58 = arith.constant 0.000000e+00 : f32
    %132 = vector.broadcast %cst_58 : f32 to vector<128x256xf32>
    %133 = arith.subf %132, %111 : vector<128x256xf32>
    %134 = arith.mulf %133, %111 : vector<128x256xf32>
    %135 = math.exp %134 : vector<128x256xf32>
    %136 = arith.mulf %131, %135 : vector<128x256xf32>
    %cst_59 = arith.constant 1.000000e+00 : f32
    %137 = vector.broadcast %cst_59 : f32 to vector<128x256xf32>
    %138 = arith.subf %137, %136 : vector<128x256xf32>
    %139 = arith.mulf %110, %138 : vector<128x256xf32>
    %cst_60 = arith.constant 1.000000e+00 : f32
    %140 = vector.broadcast %cst_60 : f32 to vector<128x256xf32>
    %141 = arith.addf %140, %139 : vector<128x256xf32>
    %142 = arith.mulf %103, %141 : vector<128x256xf32>
    %143 = arith.truncf %142 : vector<128x256xf32> to vector<128x256xbf16>
    %c0_61 = arith.constant 0 : index
    %c0_62 = arith.constant 0 : index
    %144 = vector.load %arg13[%c0_61, %c0_62] : memref<256x64xbf16, #tpu.memory_space<vmem>>, vector<256x64xbf16>
    %cst_63 = arith.constant dense<0.000000e+00> : vector<128x64xf32>
    %145 = tpu.matmul %143, %144, %cst_63 {dimension_numbers = #tpu.dot_dimension_numbers<[1], [0], [0], [1], [0, 0, 1, 1], [], []>} : vector<128x256xbf16>, vector<256x64xbf16>, vector<128x64xf32> -> vector<128x64xf32>
    %c0_64 = arith.constant 0 : index
    %c0_65 = arith.constant 0 : index
    %146 = vector.load %arg14[%c0_64, %c0_65] : memref<1x64xf32, #tpu.memory_space<vmem>>, vector<1x64xf32>
    %147 = vector.broadcast %146 : vector<1x64xf32> to vector<128x64xf32>
    %148 = arith.addf %145, %147 : vector<128x64xf32>
    %149 = arith.addf %71, %148 : vector<128x64xf32>
    %c0_66 = arith.constant 0 : index
    %c0_67 = arith.constant 0 : index
    %150 = vector.load %arg15[%c0_66, %c0_67] : memref<128x64xf32, #tpu.memory_space<vmem>>, vector<128x64xf32>
    tpu.vector_store %arg15[%c0_66, %c0_67], %149 {strides = array<i32>} : memref<128x64xf32, #tpu.memory_space<vmem>>, vector<128x64xf32>,
    return
  }
  func.func @transform_0(%arg0: i32) -> (i32, i32) {
    %c0_i32 = arith.constant 0 : i32
    %c0_i32_0 = arith.constant 0 : i32
    %c0_i32_1 = arith.constant 0 : i32
    return %c0_i32, %c0_i32_0 : i32, i32
  }
  func.func @transform_1(%arg0: i32) -> (i32, i32) {
    %c0_i32 = arith.constant 0 : i32
    %c0_i32_0 = arith.constant 0 : i32
    %c0_i32_1 = arith.constant 0 : i32
    return %c0_i32, %c0_i32_0 : i32, i32
  }
  func.func @transform_2(%arg0: i32) -> (i32, i32) {
    %c0_i32 = arith.constant 0 : i32
    %c0_i32_0 = arith.constant 0 : i32
    %c0_i32_1 = arith.constant 0 : i32
    return %c0_i32, %c0_i32_0 : i32, i32
  }
  func.func @transform_3(%arg0: i32) -> (i32, i32, i32) {
    %c0_i32 = arith.constant 0 : i32
    %c0_i32_0 = arith.constant 0 : i32
    %c0_i32_1 = arith.constant 0 : i32
    %c0_i32_2 = arith.constant 0 : i32
    return %c0_i32, %c0_i32_0, %c0_i32_1 : i32, i32, i32
  }
  func.func @transform_4(%arg0: i32) -> (i32, i32, i32) {
    %c0_i32 = arith.constant 0 : i32
    %c0_i32_0 = arith.constant 0 : i32
    %c0_i32_1 = arith.constant 0 : i32
    %c0_i32_2 = arith.constant 0 : i32
    return %c0_i32, %c0_i32_0, %c0_i32_1 : i32, i32, i32
  }
  func.func @transform_5(%arg0: i32) -> (i32, i32, i32) {
    %c0_i32 = arith.constant 0 : i32
    %c0_i32_0 = arith.constant 0 : i32
    %c0_i32_1 = arith.constant 0 : i32
    %c0_i32_2 = arith.constant 0 : i32
    return %c0_i32, %c0_i32_0, %c0_i32_1 : i32, i32, i32
  }
  func.func @transform_6(%arg0: i32) -> (i32, i32, i32) {
    %c0_i32 = arith.constant 0 : i32
    %c0_i32_0 = arith.constant 0 : i32
    %c0_i32_1 = arith.constant 0 : i32
    %c0_i32_2 = arith.constant 0 : i32
    return %c0_i32, %c0_i32_0, %c0_i32_1 : i32, i32, i32
  }
  func.func @transform_7(%arg0: i32) -> (i32, i32) {
    %c0_i32 = arith.constant 0 : i32
    %c0_i32_0 = arith.constant 0 : i32
    %c0_i32_1 = arith.constant 0 : i32
    return %c0_i32, %c0_i32_0 : i32, i32
  }
  func.func @transform_8(%arg0: i32) -> (i32, i32) {
    %c0_i32 = arith.constant 0 : i32
    %c0_i32_0 = arith.constant 0 : i32
    %c0_i32_1 = arith.constant 0 : i32
    return %c0_i32, %c0_i32_0 : i32, i32
  }
  func.func @transform_9(%arg0: i32) -> (i32, i32) {
    %c0_i32 = arith.constant 0 : i32
    %c0_i32_0 = arith.constant 0 : i32
    %c0_i32_1 = arith.constant 0 : i32
    return %c0_i32, %c0_i32_0 : i32, i32
  }
  func.func @transform_10(%arg0: i32) -> (i32, i32) {
    %c0_i32 = arith.constant 0 : i32
    %c0_i32_0 = arith.constant 0 : i32
    %c0_i32_1 = arith.constant 0 : i32
    return %c0_i32, %c0_i32_0 : i32, i32
  }
  func.func @transform_11(%arg0: i32) -> (i32, i32) {
    %c0_i32 = arith.constant 0 : i32
    %c0_i32_0 = arith.constant 0 : i32
    %c0_i32_1 = arith.constant 0 : i32
    return %c0_i32, %c0_i32_0 : i32, i32
  }
  func.func @transform_12(%arg0: i32) -> (i32, i32) {
    %c0_i32 = arith.constant 0 : i32
    %c0_i32_0 = arith.constant 0 : i32
    %c0_i32_1 = arith.constant 0 : i32
    return %c0_i32, %c0_i32_0 : i32, i32
  }
  func.func @transform_13(%arg0: i32) -> (i32, i32) {
    %c0_i32 = arith.constant 0 : i32
    %c0_i32_0 = arith.constant 0 : i32
    %c0_i32_1 = arith.constant 0 : i32
    return %c0_i32, %c0_i32_0 : i32, i32
  }
  func.func @transform_14(%arg0: i32) -> (i32, i32) {
    %c0_i32 = arith.constant 0 : i32
    %c0_i32_0 = arith.constant 0 : i32
    %c0_i32_1 = arith.constant 0 : i32
    return %c0_i32, %c0_i32_0 : i32, i32
  }
}

</mosaic_0001>

<bundles_post_ra>
// kernel: tpu_custom_call.1
= control target key start
LH: loop header
LB: loop body
LE: loop exit
PB: predicated region body
PF: predicated region fallthrough
CT: control target
= control target key end

     0   :  { %vm66_vm0 = vcmask 523264   ;;  %vm2744_vm1 = vcmask 130048   ;;  %s13279_s0 = inlined_call_operand.vmem [shape: f32[128,64], index: 0, kind: input, shape index: {}]   ;;  %s13280_s3 = inlined_call_operand.vmem [shape: bf16[8,64,16], index: 3, kind: input, shape index: {}]   ;;  %s13281_s4 = inlined_call_operand.vmem [shape: bf16[8,64,16], index: 4, kind: input, shape index: {}]   ;;  %s13282_s1 = inlined_call_operand.vmem [shape: f32[1,64], index: 1, kind: input, shape index: {}]   ;;  %s13283_s5 = inlined_call_operand.vmem [shape: bf16[8,64,16], index: 5, kind: input, shape index: {}]   ;;  %s13284_s2 = inlined_call_operand.vmem [shape: f32[1,64], index: 2, kind: input, shape index: {}]   ;;  %s13285_s6 = inlined_call_operand.vmem [shape: bf16[8,16,64], index: 6, kind: input, shape index: {}]   ;;  %s13286_s7 = inlined_call_operand.vmem [shape: f32[1,64], index: 7, kind: input, shape index: {}]   ;;  %s13287_s10 = inlined_call_operand.vmem [shape: bf16[64,256], index: 10, kind: input, shape index: {}]   ;;  %s13288_s8 = inlined_call_operand.vmem [shape: f32[1,64], index: 8, kind: input, shape index: {}]   ;;  %s13289_s9 = inlined_call_operand.vmem [shape: f32[1,64], index: 9, kind: input, shape index: {}]   ;;  %s13290_s12 = inlined_call_operand.vmem [shape: bf16[256,64], index: 12, kind: input, shape index: {}]   ;;  %s13291_s11 = inlined_call_operand.vmem [shape: f32[1,256], index: 11, kind: input, shape index: {}]   ;;  %s13292_s13 = inlined_call_operand.vmem [shape: f32[1,64], index: 13, kind: input, shape index: {}]   ;;  %s13293_s14 = inlined_call_operand.vmem [shape: f32[128,64], index: 14, kind: output, shape index: {}]  }
   0x1   :  { %v48_v0 = vld [vmem:[%s13279_s0] sm:$0xff]  ;;  %v50_v1 = vld [vmem:[%s13279_s0 + $0x10] sm:$0xff]  ;;  %v49_v2 = vld [vmem:[%s13279_s0 + $0x8] sm:$0xff] }
   0x2   :  { %v67_v3 = vsel %vm66_vm0, %v48_v0, 0.0  ;;  %v73_v4 = vsel %vm66_vm0, %v50_v1, 0.0  ;;  %v51_v5 = vld [vmem:[%s13279_s0 + $0x18] sm:$0xff]  ;;  %v70_v6 = vsel %vm66_vm0, %v49_v2, 0.0  ;;  %v52_v8 = vld [vmem:[%s13279_s0 + $0x20] sm:$0xff]  ;;  %v53_v9 = vld [vmem:[%s13279_s0 + $0x28] sm:$0xff] }
   0x3   :  { %68 = vadd.xlane.f32.xlu0 %v67_v3  ;;  %74 = vadd.xlane.f32.xlu1 %v73_v4  ;;  %v76_v7 = vsel %vm66_vm0, %v51_v5, 0.0  ;;  %v79_v10 = vsel %vm66_vm0, %v52_v8, 0.0  ;;  %v82_v11 = vsel %vm66_vm0, %v53_v9, 0.0  ;;  %v9509_v12 = vld [vmem:[%s13279_s0 + $0x30] sm:$0xff]  ;;  %v9514_v13 = vld [vmem:[%s13279_s0 + $0x38] sm:$0xff]  ;;  %v9523_v16 = vld [vmem:[%s13279_s0 + $0x40] sm:$0xff] }
   0x4   :  { %v85_v14 = vsel %vm66_vm0, %v9509_v12, 0.0  ;;  %v88_v15 = vsel %vm66_vm0, %v9514_v13, 0.0  ;;  %v9528_v17 = vld [vmem:[%s13279_s0 + $0x48] sm:$0xff]  ;;  %v91_v18 = vsel %vm66_vm0, %v9523_v16, 0.0  ;;  %v9537_v20 = vld [vmem:[%s13279_s0 + $0x50] sm:$0xff]  ;;  %v9542_v21 = vld [vmem:[%s13279_s0 + $0x58] sm:$0xff] }
   0x5   :  { %v94_v19 = vsel %vm66_vm0, %v9528_v17, 0.0  ;;  %v97_v22 = vsel %vm66_vm0, %v9537_v20, 0.0  ;;  %v100_v23 = vsel %vm66_vm0, %v9542_v21, 0.0  ;;  %v9551_v24 = vld [vmem:[%s13279_s0 + $0x60] sm:$0xff]  ;;  %v9556_v25 = vld [vmem:[%s13279_s0 + $0x68] sm:$0xff]  ;;  %v9565_v28 = vld [vmem:[%s13279_s0 + $0x70] sm:$0xff] }
   0x6   :  { %v103_v26 = vsel %vm66_vm0, %v9551_v24, 0.0  ;;  %v106_v27 = vsel %vm66_vm0, %v9556_v25, 0.0  ;;  %v9570_v29 = vld [vmem:[%s13279_s0 + $0x78] sm:$0xff]  ;;  %v109_v30 = vsel %vm66_vm0, %v9565_v28, 0.0 }
   0x7   :  { %71 = vadd.xlane.f32.xlu0 %v70_v6  ;;  %77 = vadd.xlane.f32.xlu1 %v76_v7  ;;  %v112_v31 = vsel %vm66_vm0, %v9570_v29, 0.0 }
   0xb   :  { %80 = vadd.xlane.f32.xlu0 %v79_v10  ;;  %83 = vadd.xlane.f32.xlu1 %v82_v11 }
   0xf   :  { %86 = vadd.xlane.f32.xlu0 %v85_v14  ;;  %89 = vadd.xlane.f32.xlu1 %v88_v15 }
  0x13   :  { %92 = vadd.xlane.f32.xlu0 %v91_v18  ;;  %95 = vadd.xlane.f32.xlu1 %v94_v19 }
  0x17   :  { %98 = vadd.xlane.f32.xlu0 %v97_v22  ;;  %101 = vadd.xlane.f32.xlu1 %v100_v23 }
  0x1b   :  { %104 = vadd.xlane.f32.xlu0 %v103_v26  ;;  %107 = vadd.xlane.f32.xlu1 %v106_v27 }
  0x1f   :  { %110 = vadd.xlane.f32.xlu0 %v109_v30  ;;  %113 = vadd.xlane.f32.xlu1 %v112_v31 }
  0x90   :  { %v69_v32 = vpop.xlane.xlu0 %68  ;;  %v75_v33 = vpop.xlane.xlu1 %74 }
  0x91   :  { %v116_v34 = vmul.f32 0.015625, %v69_v32  ;;  %v118_v35 = vmul.f32 0.015625, %v75_v33 }
  0x93   :  { %v9576_v36 = vsub.f32 %v48_v0, %v116_v34  ;;  %v9578_v37 = vsub.f32 %v50_v1, %v118_v35 }
  0x94   :  { %v72_v38 = vpop.xlane.xlu0 %71  ;;  %v78_v39 = vpop.xlane.xlu1 %77 }
  0x95   :  { %v117_v40 = vmul.f32 0.015625, %v72_v38  ;;  %v119_v41 = vmul.f32 0.015625, %v78_v39  ;;  %v148_v42 = vmul.f32 %v9576_v36, %v9576_v36  ;;  %v150_v43 = vmul.f32 %v9578_v37, %v9578_v37 }
  0x97   :  { %v9584_v44 = vsub.f32 %v49_v2, %v117_v40  ;;  %v9586_v45 = vsub.f32 %v51_v5, %v119_v41  ;;  %v164_v46 = vsel %vm66_vm0, %v148_v42, 0.0  ;;  %v170_v49 = vsel %vm66_vm0, %v150_v43, 0.0 }
  0x98   :  { %165 = vadd.xlane.f32.xlu0 %v164_v46  ;;  %v81_v47 = vpop.xlane.xlu0 %80  ;;  %v84_v48 = vpop.xlane.xlu1 %83 }
  0x99   :  { %v120_v50 = vmul.f32 0.015625, %v81_v47  ;;  %v121_v51 = vmul.f32 0.015625, %v84_v48  ;;  %v149_v52 = vmul.f32 %v9584_v44, %v9584_v44  ;;  %v151_v53 = vmul.f32 %v9586_v45, %v9586_v45 }
  0x9b   :  { %v9594_v54 = vsub.f32 %v52_v8, %v120_v50  ;;  %v9596_v55 = vsub.f32 %v53_v9, %v121_v51  ;;  %v167_v56 = vsel %vm66_vm0, %v149_v52, 0.0  ;;  %v173_v59 = vsel %vm66_vm0, %v151_v53, 0.0  ;;  %v8810_v53 = vld [vmem:[%s13280_s3 + $0x8] sm:$0xff]  }
  0x9c   :  { %171 = vadd.xlane.f32.xlu0 %v170_v49  ;;  %168 = vadd.xlane.f32.xlu1 %v167_v56  ;;  %v87_v57 = vpop.xlane.xlu0 %86  ;;  %v90_v58 = vpop.xlane.xlu1 %89  ;;  %v8811_v56 = vld [vmem:[%s13280_s3 + $0x10] sm:$0xff]  }
  0x9d   :  { %v122_v60 = vmul.f32 0.015625, %v87_v57  ;;  %v123_v61 = vmul.f32 0.015625, %v90_v58  ;;  %v152_v62 = vmul.f32 %v9594_v54, %v9594_v54  ;;  %v153_v63 = vmul.f32 %v9596_v55, %v9596_v55  ;;  %v8812_v57 = vld [vmem:[%s13280_s3 + $0x18] sm:$0xff]   ;;  %v8813_v58 = vld [vmem:[%s13280_s3 + $0x20] sm:$0xff]  }
  0x9e   :  { %8021 = vmatprep.subr.bf16.mxu1 %v8813_v58 }
  0x9f   :  { %v9605_v0 = vsub.f32 %v9509_v12, %v122_v60  ;;  %v9608_v1 = vsub.f32 %v9514_v13, %v123_v61  ;;  %v176_v2 = vsel %vm66_vm0, %v152_v62, 0.0  ;;  %v179_v5 = vsel %vm66_vm0, %v153_v63, 0.0  ;;  %8022 = vmatpush3.bf16.msra.mxu1 %v8813_v58  ;;  %v8815_v60 = vld [vmem:[%s13280_s3 + $0x28] sm:$0xff]   ;;  %v8817_v61 = vld [vmem:[%s13280_s3 + $0x30] sm:$0xff]   ;;  %v8819_v62 = vld [vmem:[%s13280_s3 + $0x38] sm:$0xff]  }
  0xa0   :  { %174 = vadd.xlane.f32.xlu1 %v173_v59  ;;  %177 = vadd.xlane.f32.xlu0 %v176_v2  ;;  %v93_v3 = vpop.xlane.xlu0 %92  ;;  %v96_v4 = vpop.xlane.xlu1 %95  ;;  %v9684_v59 = vld [vmem:[%s13280_s3 + $0x40] sm:$0xff]  }
  0xa1   :  { %v124_v6 = vmul.f32 0.015625, %v93_v3  ;;  %v125_v7 = vmul.f32 0.015625, %v96_v4  ;;  %v154_v8 = vmul.f32 %v9605_v0, %v9605_v0  ;;  %v155_v9 = vmul.f32 %v9608_v1, %v9608_v1  ;;  %8023 = vmatprep.subr.bf16.mxu1 %v8815_v60  ;;  %v9699_v63 = vld [vmem:[%s13280_s3 + $0x60] sm:$0xff]  }
  0xa3   :  { %v9617_v10 = vsub.f32 %v9523_v16, %v124_v6  ;;  %v9620_v11 = vsub.f32 %v9528_v17, %v125_v7  ;;  %v182_v12 = vsel %vm66_vm0, %v154_v8, 0.0  ;;  %v185_v15 = vsel %vm66_vm0, %v155_v9, 0.0  ;;  %8024 = vmatpush3.bf16.msra.mxu1 %v8815_v60 }
  0xa4   :  { %180 = vadd.xlane.f32.xlu1 %v179_v5  ;;  %183 = vadd.xlane.f32.xlu0 %v182_v12  ;;  %v99_v13 = vpop.xlane.xlu0 %98  ;;  %v102_v14 = vpop.xlane.xlu1 %101 }
  0xa5   :  { %v126_v18 = vmul.f32 0.015625, %v99_v13  ;;  %v127_v19 = vmul.f32 0.015625, %v102_v14  ;;  %v156_v22 = vmul.f32 %v9617_v10, %v9617_v10  ;;  %v157_v16 = vmul.f32 %v9620_v11, %v9620_v11  ;;  %8025 = vmatprep.subr.bf16.mxu1 %v8817_v61 }
  0xa7   :  { %v9629_v23 = vsub.f32 %v9537_v20, %v126_v18  ;;  %v9632_v17 = vsub.f32 %v9542_v21, %v127_v19  ;;  %v188_v26 = vsel %vm66_vm0, %v156_v22, 0.0  ;;  %v191_v31 = vsel %vm66_vm0, %v157_v16, 0.0  ;;  %8026 = vmatpush3.bf16.msra.mxu1 %v8817_v61 }
  0xa8   :  { %186 = vadd.xlane.f32.xlu1 %v185_v15  ;;  %189 = vadd.xlane.f32.xlu0 %v188_v26  ;;  %v105_v27 = vpop.xlane.xlu0 %104  ;;  %v108_v30 = vpop.xlane.xlu1 %107 }
  0xa9   :  { %v128_v32 = vmul.f32 0.015625, %v105_v27  ;;  %v129_v33 = vmul.f32 0.015625, %v108_v30  ;;  %v158_v34 = vmul.f32 %v9629_v23, %v9629_v23  ;;  %v159_v20 = vmul.f32 %v9632_v17, %v9632_v17  ;;  %8027 = vmatprep.subr.bf16.mxu1 %v8819_v62 }
  0xab   :  { %v9641_v35 = vsub.f32 %v9551_v24, %v128_v32  ;;  %v9644_v21 = vsub.f32 %v9556_v25, %v129_v33  ;;  %v194_v38 = vsel %vm66_vm0, %v158_v34, 0.0  ;;  %v197_v41 = vsel %vm66_vm0, %v159_v20, 0.0  ;;  %8028 = vmatpush3.bf16.msra.mxu1 %v8819_v62 }
  0xac   :  { %192 = vadd.xlane.f32.xlu1 %v191_v31  ;;  %195 = vadd.xlane.f32.xlu0 %v194_v38  ;;  %v111_v39 = vpop.xlane.xlu0 %110  ;;  %v114_v40 = vpop.xlane.xlu1 %113 }
  0xad   :  { %v130_v42 = vmul.f32 0.015625, %v111_v39  ;;  %v131_v43 = vmul.f32 0.015625, %v114_v40  ;;  %v160_v46 = vmul.f32 %v9641_v35, %v9641_v35  ;;  %v161_v24 = vmul.f32 %v9644_v21, %v9644_v21  ;;  %8053 = vmatprep.subr.bf16.mxu1 %v9699_v63  ;;  %v9706_v39 = vld [vmem:[%s13282_s1] ss:$0 sm:$0xff] }
  0xaf   :  { %v9653_v47 = vsub.f32 %v9565_v28, %v130_v42  ;;  %v9656_v25 = vsub.f32 %v9570_v29, %v131_v43  ;;  %v200_v48 = vsel %vm66_vm0, %v160_v46, 0.0  ;;  %v203_v49 = vsel %vm66_vm0, %v161_v24, 0.0  ;;  %v8809_v29 = vld [vmem:[%s13280_s3] sm:$0xff]  }
  0xb0   :  { %198 = vadd.xlane.f32.xlu1 %v197_v41  ;;  %201 = vadd.xlane.f32.xlu0 %v200_v48  ;;  %v9711_v43 = vld [vmem:[%s13284_s2] ss:$0 sm:$0xff] }
  0xb1   :  { %v162_v50 = vmul.f32 %v9653_v47, %v9653_v47  ;;  %v163_v51 = vmul.f32 %v9656_v25, %v9656_v25  ;;  %8005 = vmatprep.subr.bf16.mxu0 %v8809_v29 }
  0xb2   :  { %8006 = vmatpush3.bf16.msra.mxu0 %v8809_v29 }
  0xb3   :  { %v206_v52 = vsel %vm66_vm0, %v162_v50, 0.0  ;;  %v209_v28 = vsel %vm66_vm0, %v163_v51, 0.0  ;;  %8007 = vmatprep.subr.bf16.mxu0 %v8810_v53 }
  0xb4   :  { %204 = vadd.xlane.f32.xlu1 %v203_v49  ;;  %207 = vadd.xlane.f32.xlu0 %v206_v52 }
  0xb6   :  { %8008 = vmatpush3.bf16.msra.mxu0 %v8810_v53 }
  0xb7   :  { %8009 = vmatprep.subr.bf16.mxu0 %v8811_v56 }
  0xb8   :  { %210 = vadd.xlane.f32.xlu1 %v209_v28 }
  0xba   :  { %8010 = vmatpush3.bf16.msra.mxu0 %v8811_v56 }
  0xbb   :  { %8011 = vmatprep.subr.bf16.mxu0 %v8812_v57 }
  0xbe   :  { %8012 = vmatpush3.bf16.msra.mxu0 %v8812_v57 }
  0xbf   :  { %8037 = vmatprep.subr.bf16.mxu0 %v9684_v59 }
 0x125   :  { %v166_v2 = vpop.xlane.xlu0 %165 }
 0x126   :  { %v212_v3 = vmul.f32 0.015625, %v166_v2 }
 0x128   :  { %v228_v4 = vadd.f32 1e-05, %v212_v3 }
 0x129   :  { %v169_v5 = vpop.xlane.xlu1 %168  ;;  %v172_v6 = vpop.xlane.xlu0 %171 }
 0x12a   :  { %8941 = vrsqrt.f32 %v228_v4  ;;  %v213_v7 = vmul.f32 0.015625, %v169_v5  ;;  %v214_v8 = vmul.f32 0.015625, %v172_v6 }
 0x12c   :  { %v229_v9 = vadd.f32 1e-05, %v213_v7  ;;  %v230_v12 = vadd.f32 1e-05, %v214_v8 }
 0x12d   :  { %v175_v13 = vpop.xlane.xlu1 %174  ;;  %v178_v14 = vpop.xlane.xlu0 %177 }
 0x12e   :  { %8943 = vrsqrt.f32 %v229_v9  ;;  %v215_v15 = vmul.f32 0.015625, %v175_v13  ;;  %v216_v18 = vmul.f32 0.015625, %v178_v14 }
 0x12f   :  { %8945 = vrsqrt.f32 %v230_v12 }
 0x130   :  { %v231_v19 = vadd.f32 1e-05, %v215_v15  ;;  %v232_v22 = vadd.f32 1e-05, %v216_v18 }
 0x131   :  { %v181_v16 = vpop.xlane.xlu1 %180  ;;  %v184_v26 = vpop.xlane.xlu0 %183 }
 0x132   :  { %8947 = vrsqrt.f32 %v231_v19  ;;  %v217_v27 = vmul.f32 0.015625, %v181_v16  ;;  %v218_v30 = vmul.f32 0.015625, %v184_v26 }
 0x133   :  { %8949 = vrsqrt.f32 %v232_v22 }
 0x134   :  { %v8942_v31 = vpop.eup %8941  ;;  %v233_v32 = vadd.f32 1e-05, %v217_v27  ;;  %v234_v33 = vadd.f32 1e-05, %v218_v30 }
 0x135   :  { %v260_v34 = vmul.f32 %v8942_v31, %v9576_v36  ;;  %v187_v20 = vpop.xlane.xlu1 %186  ;;  %v190_v38 = vpop.xlane.xlu0 %189 }
 0x136   :  { %8951 = vrsqrt.f32 %v233_v32  ;;  %v219_v40 = vmul.f32 0.015625, %v187_v20  ;;  %v220_v41 = vmul.f32 0.015625, %v190_v38 }
 0x137   :  { %8953 = vrsqrt.f32 %v234_v33  ;;  %v282_v48 = vmul.f32 %v9706_v39, %v260_v34 }
 0x138   :  { %v8944_v42 = vpop.eup %8943  ;;  %v235_v46 = vadd.f32 1e-05, %v219_v40  ;;  %v236_v24 = vadd.f32 1e-05, %v220_v41 }
 0x139   :  { %v8946_v36 = vpop.eup %8945  ;;  %v261_v49 = vmul.f32 %v8944_v42, %v9584_v44  ;;  %v193_v50 = vpop.xlane.xlu1 %192  ;;  %v304_v61 = vadd.f32 %v9711_v43, %v282_v48 }
 0x13a   :  { %v196_v51 = vpop.xlane.xlu0 %195  ;;  %v262_v52 = vmul.f32 %v8946_v36, %v9578_v37  ;;  %8955 = vrsqrt.f32 %v235_v46  ;;  %v221_v28 = vmul.f32 0.015625, %v193_v50  ;;  %v8818_v36 = vld [vmem:[%s13280_s3 + $0x50] sm:$0xff]  }
 0x13b   :  { %v222_v29 = vmul.f32 0.015625, %v196_v51  ;;  %v283_v53 = vmul.f32 %v9706_v39, %v261_v49  ;;  %8957 = vrsqrt.f32 %v236_v24 }
 0x13c   :  { %v8948_v56 = vpop.eup %8947  ;;  %v237_v57 = vadd.f32 1e-05, %v221_v28  ;;  %v284_v44 = vmul.f32 %v9706_v39, %v262_v52 }
 0x13d   :  { %v238_v58 = vadd.f32 1e-05, %v222_v29  ;;  %v8950_v60 = vpop.eup %8949  ;;  %v305_v62 = vadd.f32 %v9711_v43, %v283_v53  ;;  %v263_v2 = vmul.f32 %v8948_v56, %v9586_v45  ;;  %v199_v3 = vpop.xlane.xlu1 %198  ;;  %v8820_v29 = vld [vmem:[%s13280_s3 + $0x58] sm:$0xff]  }
 0x13e   :  { %v202_v37 = vpop.xlane.xlu0 %201  ;;  %v264_v4 = vmul.f32 %v8950_v60, %v9594_v54  ;;  %8959 = vrsqrt.f32 %v237_v57  ;;  %v223_v5 = vmul.f32 0.015625, %v199_v3  ;;  %v306_v15 = vadd.f32 %v9711_v43, %v284_v44 }
 0x13f   :  { %v9722_v6 = vpack.c.bf16 %v305_v62, %v304_v61  ;;  %v285_v7 = vmul.f32 %v9706_v39, %v263_v2  ;;  %8961 = vrsqrt.f32 %v238_v58  ;;  %v224_v8 = vmul.f32 0.015625, %v202_v37 }
 0x140   :  { %v8952_v9 = vpop.eup %8951  ;;  %v286_v12 = vmul.f32 %v9706_v39, %v264_v4  ;;  %v239_v13 = vadd.f32 1e-05, %v223_v5 }
 0x141   :  { %v8954_v14 = vpop.eup %8953  ;;  %v307_v45 = vadd.f32 %v9711_v43, %v285_v7  ;;  %v265_v18 = vmul.f32 %v8952_v9, %v9596_v55  ;;  %v240_v54 = vadd.f32 1e-05, %v224_v8  ;;  %v205_v19 = vpop.xlane.xlu1 %204  ;;  %8013 = vmatprep.mubr.msk.bf16.mxu0 %vm66_vm0, %v9722_v6  ;;  %v8816_v55 = vld [vmem:[%s13280_s3 + $0x48] sm:$0xff]  }
 0x142   :  { %v208_v22 = vpop.xlane.xlu0 %207  ;;  %v266_v16 = vmul.f32 %v8954_v14, %v9605_v0  ;;  %8963 = vrsqrt.f32 %v239_v13  ;;  %v225_v26 = vmul.f32 0.015625, %v205_v19  ;;  %v308_v33 = vadd.f32 %v9711_v43, %v286_v12  ;;  %v8823_v14 = vld [vmem:[%s13280_s3 + $0x68] sm:$0xff]  }
 0x143   :  { %v9732_v27 = vpack.c.bf16 %v307_v45, %v306_v15  ;;  %v287_v30 = vmul.f32 %v9706_v39, %v265_v18  ;;  %8965 = vrsqrt.f32 %v240_v54  ;;  %v226_v31 = vmul.f32 0.015625, %v208_v22 }
 0x144   :  { %v8956_v32 = vpop.eup %8955  ;;  %v241_v34 = vadd.f32 1e-05, %v225_v26  ;;  %v288_v0 = vmul.f32 %v9706_v39, %v266_v16  ;;  %v8826_v16 = vld [vmem:[%s13280_s3 + $0x90] sm:$0xff]  }
 0x145   :  { %v8958_v20 = vpop.eup %8957  ;;  %v309_v38 = vadd.f32 %v9711_v43, %v287_v30  ;;  %v267_v40 = vmul.f32 %v8956_v32, %v9608_v1  ;;  %v242_v41 = vadd.f32 1e-05, %v226_v31  ;;  %v211_v42 = vpop.xlane.xlu1 %210  ;;  %8014 = vmatmul.mubr.msk.bf16.vlgmr.msra.gmra.mrb[0].mxu0 %vm66_vm0, %v9732_v27  ;;  %v8827_v30 = vld [vmem:[%s13280_s3 + $0x78] sm:$0xff]   ;;  %v8831_v32 = vld [vmem:[%s13280_s3 + $0xa8] sm:$0xff]  }
 0x146   :  { %v268_v46 = vmul.f32 %v8958_v20, %v9617_v10  ;;  %8967 = vrsqrt.f32 %v241_v34  ;;  %v227_v24 = vmul.f32 0.015625, %v211_v42  ;;  %8038 = vmatpush3.bf16.msra.mxu0 %v9684_v59  ;;  %v310_v52 = vadd.f32 %v9711_v43, %v288_v0  ;;  %v8828_v31 = vld [vmem:[%s13280_s3 + $0x98] sm:$0xff]   ;;  %v8833_v34 = vld [vmem:[%s13280_s3 + $0xb0] sm:$0xff]   ;;  %v8839_v42 = vld [vmem:[%s13280_s3 + $0xe8] sm:$0xff]  }
 0x147   :  { %v9749_v48 = vpack.c.bf16 %v309_v38, %v308_v33  ;;  %v289_v49 = vmul.f32 %v9706_v39, %v267_v40  ;;  %8969 = vrsqrt.f32 %v242_v41  ;;  %8039 = vmatprep.subr.bf16.mxu0 %v8816_v55  ;;  %v8832_v33 = vld [vmem:[%s13280_s3 + $0xc8] sm:$0xff]   ;;  %v8834_v20 = vld [vmem:[%s13280_s3 + $0xd0] sm:$0xff]   ;;  %v8835_v38 = vld [vmem:[%s13280_s3 + $0xb8] sm:$0xff]  }
 0x148   :  { %v8960_v1 = vpop.eup %8959  ;;  %v243_v50 = vadd.f32 1e-05, %v227_v24  ;;  %v290_v28 = vmul.f32 %v9706_v39, %v268_v46  ;;  %v8836_v0 = vld [vmem:[%s13280_s3 + $0xd8] sm:$0xff]   ;;  %v8837_v40 = vld [vmem:[%s13280_s3 + $0xe0] sm:$0xff]   ;;  %v8840_v46 = vld [vmem:[%s13281_s4 + $0x8] sm:$0xff]  }
 0x149   :  { %v8962_v51 = vpop.eup %8961  ;;  %v311_v10 = vadd.f32 %v9711_v43, %v289_v49  ;;  %v269_v59 = vmul.f32 %v8960_v1, %v9620_v11  ;;  %8017 = vmatprep.mubr.msk.bf16.mxu0 %vm66_vm0, %v9749_v48  ;;  %v8838_v41 = vld [vmem:[%s13281_s4] sm:$0xff]   ;;  %v8841_v24 = vld [vmem:[%s13280_s3 + $0xf0] sm:$0xff]   ;;  %v8843_v49 = vld [vmem:[%s13280_s3 + $0xf8] sm:$0xff]  }
 0x14a   :  { %v270_v53 = vmul.f32 %v8962_v51, %v9629_v23  ;;  %8971 = vrsqrt.f32 %v243_v50  ;;  %8040 = vmatpush3.bf16.msra.mxu0 %v8816_v55  ;;  %v312_v11 = vadd.f32 %v9711_v43, %v290_v28  ;;  %v8822_v23 = vld [vmem:[%s13280_s3 + $0x80] sm:$0xff]   ;;  %v8844_v1 = vld [vmem:[%s13281_s4 + $0x18] sm:$0xff]   ;;  %v8849_v28 = vld [vmem:[%s13281_s4 + $0x30] sm:$0xff]  }
 0x14b   :  { %v9762_v56 = vpack.c.bf16 %v311_v10, %v310_v52  ;;  %v291_v57 = vmul.f32 %v9706_v39, %v269_v59  ;;  %8041 = vmatprep.subr.bf16.mxu0 %v8818_v36  ;;  %v8830_v55 = vld [vmem:[%s13280_s3 + $0xc0] sm:$0xff]   ;;  %v8847_v52 = vld [vmem:[%s13281_s4 + $0x28] sm:$0xff]   ;;  %v8850_v59 = vld [vmem:[%s13281_s4 + $0x50] sm:$0xff]  }
 0x14c   :  { %v8964_v58 = vpop.eup %8963  ;;  %v292_v62 = vmul.f32 %v9706_v39, %v270_v53  ;;  %v8845_v50 = vld [vmem:[%s13281_s4 + $0x20] sm:$0xff]   ;;  %v8848_v10 = vld [vmem:[%s13281_s4 + $0x48] sm:$0xff]   ;;  %v8852_v53 = vld [vmem:[%s13281_s4 + $0x58] sm:$0xff]  }
 0x14d   :  { %v8966_v60 = vpop.eup %8965  ;;  %v313_v61 = vadd.f32 %v9711_v43, %v291_v57  ;;  %v271_v44 = vmul.f32 %v8964_v58, %v9632_v17  ;;  %8018 = vmatmul.mubr.msk.bf16.gmra.mrb[4].mxu0 %vm66_vm0, %v9762_v56  ;;  %v8846_v51 = vld [vmem:[%s13281_s4 + $0x40] sm:$0xff]  }
 0x14e   :  { %v272_v2 = vmul.f32 %v8966_v60, %v9641_v35  ;;  %8042 = vmatpush3.bf16.msra.mxu0 %v8818_v36  ;;  %8045 = vmatprep.mubr.msk.bf16.mxu0 %vm66_vm0, %v9722_v6  ;;  %v314_v7 = vadd.f32 %v9711_v43, %v292_v62  ;;  %v8842_v36 = vld [vmem:[%s13281_s4 + $0x10] sm:$0xff]   ;;  %v8853_v57 = vld [vmem:[%s13281_s4 + $0x60] sm:$0xff]   ;;  %v8855_v60 = vld [vmem:[%s13281_s4 + $0x68] sm:$0xff]  }
 0x14f   :  { %v9777_v3 = vpack.c.bf16 %v313_v61, %v312_v11  ;;  %v293_v37 = vmul.f32 %v9706_v39, %v271_v44  ;;  %8043 = vmatprep.subr.bf16.mxu0 %v8820_v29  ;;  %v8854_v58 = vld [vmem:[%s13281_s4 + $0x80] sm:$0xff]   ;;  %v8856_v11 = vld [vmem:[%s13281_s4 + $0x88] sm:$0xff]   ;;  %v8857_v61 = vld [vmem:[%s13281_s4 + $0x70] sm:$0xff]  }
 0x150   :  { %v8968_v4 = vpop.eup %8967  ;;  %v294_v17 = vmul.f32 %v9706_v39, %v272_v2  ;;  %v8858_v62 = vld [vmem:[%s13281_s4 + $0x90] sm:$0xff]   ;;  %v8859_v44 = vld [vmem:[%s13281_s4 + $0x78] sm:$0xff]   ;;  %v8861_v2 = vld [vmem:[%s13281_s4 + $0xa0] sm:$0xff]  }
 0x151   :  { %v8970_v5 = vpop.eup %8969  ;;  %v315_v8 = vadd.f32 %v9711_v43, %v293_v37  ;;  %v273_v9 = vmul.f32 %v8968_v4, %v9644_v21  ;;  %8029 = vmatprep.mubr.msk.bf16.mxu1 %vm66_vm0, %v9777_v3  ;;  %v8824_v21 = vld [vmem:[%s13280_s3 + $0x88] sm:$0xff]   ;;  %v8862_v37 = vld [vmem:[%s13281_s4 + $0xc0] sm:$0xff]  }
 0x152   :  { %v274_v35 = vmul.f32 %v8970_v5, %v9653_v47  ;;  %8044 = vmatpush3.bf16.msra.mxu0 %v8820_v29  ;;  %v316_v45 = vadd.f32 %v9711_v43, %v294_v17  ;;  %v8851_v29 = vld [vmem:[%s13281_s4 + $0x38] sm:$0xff]   ;;  %v8863_v4 = vld [vmem:[%s13281_s4 + $0xa8] sm:$0xff]   ;;  %v8865_v5 = vld [vmem:[%s13281_s4 + $0xb0] sm:$0xff]  }
 0x153   :  { %v9787_v12 = vpack.c.bf16 %v315_v8, %v314_v7  ;;  %v295_v13 = vmul.f32 %v9706_v39, %v273_v9  ;;  %8069 = vmatprep.subr.bf16.mxu0 %v8822_v23  ;;  %v8864_v17 = vld [vmem:[%s13281_s4 + $0xc8] sm:$0xff]   ;;  %v8866_v7 = vld [vmem:[%s13281_s4 + $0xd0] sm:$0xff]   ;;  %v8867_v8 = vld [vmem:[%s13281_s4 + $0xb8] sm:$0xff]  }
 0x154   :  { %v8972_v15 = vpop.eup %8971  ;;  %v296_v47 = vmul.f32 %v9706_v39, %v274_v35  ;;  %v8868_v9 = vld [vmem:[%s13281_s4 + $0xd8] sm:$0xff]   ;;  %v8869_v35 = vld [vmem:[%s13281_s4 + $0xe0] sm:$0xff]  }
 0x155   :  { %v317_v18 = vadd.f32 %v9711_v43, %v295_v13  ;;  %v275_v54 = vmul.f32 %v8972_v15, %v9656_v25  ;;  %8030 = vmatmul.mubr.msk.bf16.vlgmr.msra.gmra.mrb[0].mxu1 %vm66_vm0, %v9787_v12  ;;  %8046 = vmatmul.mubr.msk.bf16.vlgmr.msra.gmra.mrb[8].mxu0 %vm66_vm0, %v9732_v27  ;;  %v8825_v25 = vld [vmem:[%s13280_s3 + $0x70] sm:$0xff]   ;;  %v8870_v13 = vld [vmem:[%s13283_s5] sm:$0xff]   ;;  %v8872_v15 = vld [vmem:[%s13283_s5 + $0x8] sm:$0xff]  }
 0x156   :  { %8054 = vmatpush3.bf16.msra.mxu1 %v9699_v63  ;;  %8049 = vmatprep.mubr.msk.bf16.mxu0 %vm66_vm0, %v9749_v48  ;;  %v318_v63 = vadd.f32 %v9711_v43, %v296_v47  ;;  %v8876_v47 = vld [vmem:[%s13283_s5 + $0x18] sm:$0xff]  }
 0x157   :  { %v9807_v19 = vpack.c.bf16 %v317_v18, %v316_v45  ;;  %v297_v22 = vmul.f32 %v9706_v39, %v275_v54  ;;  %8070 = vmatpush3.bf16.msra.mxu0 %v8822_v23  ;;  %8055 = vmatprep.subr.bf16.mxu1 %v8823_v14  ;;  %v8860_v23 = vld [vmem:[%s13281_s4 + $0x98] sm:$0xff]   ;;  %v8873_v45 = vld [vmem:[%s13281_s4 + $0xf0] sm:$0xff]   ;;  %v8877_v54 = vld [vmem:[%s13283_s5 + $0x20] sm:$0xff]  }
 0x158   :  { %8071 = vmatprep.subr.bf16.mxu0 %v8824_v21  ;;  %v8875_v18 = vld [vmem:[%s13281_s4 + $0xf8] sm:$0xff]  }
 0x159   :  { %v319_v26 = vadd.f32 %v9711_v43, %v297_v22  ;;  %8033 = vmatprep.mubr.msk.bf16.mxu1 %vm66_vm0, %v9807_v19  ;;  %v8829_v43 = vld [vmem:[%s13280_s3 + $0xa0] sm:$0xff]  }
 0x15a   :  { %8056 = vmatpush3.bf16.msra.mxu1 %v8823_v14  ;;  %v8871_v14 = vld [vmem:[%s13281_s4 + $0xe8] sm:$0xff]   ;;  %v8878_v22 = vld [vmem:[%s13283_s5 + $0x40] sm:$0xff]  }
 0x15b   :  { %v9820_v39 = vpack.c.bf16 %v319_v26, %v318_v63  ;;  %8072 = vmatpush3.bf16.msra.mxu0 %v8824_v21  ;;  %8057 = vmatprep.subr.bf16.mxu1 %v8825_v25  ;;  %v8874_v21 = vld [vmem:[%s13283_s5 + $0x10] sm:$0xff]  }
 0x15c   :  { %8073 = vmatprep.subr.bf16.mxu0 %v8826_v16  ;;  %v8881_v63 = vld [vmem:[%s13283_s5 + $0x30] sm:$0xff]  }
 0x15d   :  { %8034 = vmatmul.mubr.msk.bf16.gmra.mrb[4].mxu1 %vm66_vm0, %v9820_v39  ;;  %8050 = vmatmul.mubr.msk.bf16.gmra.mrb[12].mxu0 %vm66_vm0, %v9762_v56  ;;  %v8882_v26 = vld [vmem:[%s13283_s5 + $0x50] sm:$0xff]  }
 0x15e   :  { %8058 = vmatpush3.bf16.msra.mxu1 %v8825_v25  ;;  %8061 = vmatprep.mubr.msk.bf16.mxu1 %vm66_vm0, %v9777_v3  ;;  %v8879_v25 = vld [vmem:[%s13283_s5 + $0x28] sm:$0xff]  }
 0x15f   :  { %8074 = vmatpush3.bf16.msra.mxu0 %v8826_v16  ;;  %8077 = vmatprep.mubr.msk.bf16.mxu0 %vm66_vm0, %v9722_v6  ;;  %v8880_v16 = vld [vmem:[%s13283_s5 + $0x48] sm:$0xff]  }
 0x160   :  { %8059 = vmatprep.subr.bf16.mxu1 %v8827_v30  ;;  %8075 = vmatprep.subr.bf16.mxu0 %v8828_v31 }
 0x162   :  { %8060 = vmatpush3.bf16.msra.mxu1 %v8827_v30  ;;  %v8883_v30 = vld [vmem:[%s13283_s5 + $0x38] sm:$0xff]  }
 0x163   :  { %8076 = vmatpush3.bf16.msra.mxu0 %v8828_v31  ;;  %8085 = vmatprep.subr.bf16.mxu1 %v8829_v43  ;;  %v8884_v31 = vld [vmem:[%s13283_s5 + $0x58] sm:$0xff]  }
 0x164   :  { %8101 = vmatprep.subr.bf16.mxu0 %v8830_v55 }
 0x165   :  { %8062 = vmatmul.mubr.msk.bf16.vlgmr.msra.gmra.mrb[8].mxu1 %vm66_vm0, %v9787_v12 }
 0x166   :  { %8078 = vmatmul.mubr.msk.bf16.vlgmr.msra.gmra.mrb[16].mxu0 %vm66_vm0, %v9732_v27  ;;  %8086 = vmatpush3.bf16.msra.mxu1 %v8829_v43  ;;  %v8885_v43 = vld [vmem:[%s13283_s5 + $0x60] sm:$0xff]  }
 0x167   :  { %8065 = vmatprep.mubr.msk.bf16.mxu1 %vm66_vm0, %v9807_v19  ;;  %8081 = vmatprep.mubr.msk.bf16.mxu0 %vm66_vm0, %v9749_v48 }
 0x168   :  { %8102 = vmatpush3.bf16.msra.mxu0 %v8830_v55  ;;  %8087 = vmatprep.subr.bf16.mxu1 %v8831_v32  ;;  %v8886_v55 = vld [vmem:[%s13283_s5 + $0x80] sm:$0xff]  }
 0x169   :  { %8103 = vmatprep.subr.bf16.mxu0 %v8832_v33 }
 0x16a   :  { %8088 = vmatpush3.bf16.msra.mxu1 %v8831_v32  ;;  %v8887_v32 = vld [vmem:[%s13283_s5 + $0x68] sm:$0xff]  }
 0x16b   :  { %8089 = vmatprep.subr.bf16.mxu1 %v8833_v34 }
 0x16c   :  { %8104 = vmatpush3.bf16.msra.mxu0 %v8832_v33  ;;  %v8888_v33 = vld [vmem:[%s13283_s5 + $0x88] sm:$0xff]  }
 0x16d   :  { %8066 = vmatmul.mubr.msk.bf16.gmra.mrb[12].mxu1 %vm66_vm0, %v9820_v39  ;;  %8105 = vmatprep.subr.bf16.mxu0 %v8834_v20 }
 0x16e   :  { %8082 = vmatmul.mubr.msk.bf16.gmra.mrb[20].mxu0 %vm66_vm0, %v9762_v56  ;;  %8090 = vmatpush3.bf16.msra.mxu1 %v8833_v34  ;;  %v8889_v34 = vld [vmem:[%s13283_s5 + $0x70] sm:$0xff]  }
 0x16f   :  { %8093 = vmatprep.mubr.msk.bf16.mxu1 %vm66_vm0, %v9777_v3  ;;  %8109 = vmatprep.mubr.msk.bf16.mxu0 %vm66_vm0, %v9722_v6 }
 0x170   :  { %8106 = vmatpush3.bf16.msra.mxu0 %v8834_v20  ;;  %8091 = vmatprep.subr.bf16.mxu1 %v8835_v38  ;;  %v8890_v20 = vld [vmem:[%s13283_s5 + $0x90] sm:$0xff]  }
 0x171   :  { %8107 = vmatprep.subr.bf16.mxu0 %v8836_v0 }
 0x172   :  { %8092 = vmatpush3.bf16.msra.mxu1 %v8835_v38  ;;  %v8891_v38 = vld [vmem:[%s13283_s5 + $0x78] sm:$0xff]  }
 0x173   :  { %8117 = vmatprep.subr.bf16.mxu1 %v8837_v40 }
 0x174   :  { %8108 = vmatpush3.bf16.msra.mxu0 %v8836_v0  ;;  %v8892_v0 = vld [vmem:[%s13283_s5 + $0x98] sm:$0xff]  }
 0x175   :  { %8094 = vmatmul.mubr.msk.bf16.vlgmr.msra.gmra.mrb[16].mxu1 %vm66_vm0, %v9787_v12  ;;  %8133 = vmatprep.subr.bf16.mxu0 %v8838_v41 }
 0x176   :  { %8118 = vmatpush3.bf16.msra.mxu1 %v8837_v40  ;;  %8097 = vmatprep.mubr.msk.bf16.mxu1 %vm66_vm0, %v9807_v19  ;;  %v8893_v40 = vld [vmem:[%s13283_s5 + $0xa0] sm:$0xff]  }
 0x177   :  { %8110 = vmatmul.mubr.msk.bf16.vlgmr.msra.gmra.mrb[24].mxu0 %vm66_vm0, %v9732_v27  ;;  %8119 = vmatprep.subr.bf16.mxu1 %v8839_v42 }
 0x178   :  { %8113 = vmatprep.mubr.msk.bf16.mxu0 %vm66_vm0, %v9749_v48  ;;  %8134 = vmatpush3.bf16.msra.mxu0 %v8838_v41  ;;  %v8894_v41 = vld [vmem:[%s13283_s5 + $0xc0] sm:$0xff]  }
 0x179   :  { %8135 = vmatprep.subr.bf16.mxu0 %v8840_v46 }
 0x17a   :  { %8120 = vmatpush3.bf16.msra.mxu1 %v8839_v42  ;;  %v8895_v42 = vld [vmem:[%s13283_s5 + $0xa8] sm:$0xff]  }
 0x17b   :  { %8121 = vmatprep.subr.bf16.mxu1 %v8841_v24 }
 0x17c   :  { %8136 = vmatpush3.bf16.msra.mxu0 %v8840_v46  ;;  %v8896_v46 = vld [vmem:[%s13283_s5 + $0xc8] sm:$0xff]  }
 0x17d   :  { %8098 = vmatmul.mubr.msk.bf16.gmra.mrb[20].mxu1 %vm66_vm0, %v9820_v39  ;;  %8137 = vmatprep.subr.bf16.mxu0 %v8842_v36 }
 0x17e   :  { %8122 = vmatpush3.bf16.msra.mxu1 %v8841_v24  ;;  %8125 = vmatprep.mubr.msk.bf16.mxu1 %vm66_vm0, %v9777_v3  ;;  %v8897_v24 = vld [vmem:[%s13283_s5 + $0xb0] sm:$0xff]  }
 0x17f   :  { %8114 = vmatmul.mubr.msk.bf16.gmra.mrb[28].mxu0 %vm66_vm0, %v9762_v56  ;;  %8123 = vmatprep.subr.bf16.mxu1 %v8843_v49 }
 0x180   :  { %8138 = vmatpush3.bf16.msra.mxu0 %v8842_v36  ;;  %8141 = vmatprep.mubr.msk.bf16.mxu0 %vm66_vm0, %v9722_v6  ;;  %v8898_v36 = vld [vmem:[%s13283_s5 + $0xd0] sm:$0xff]  }
 0x181   :  { %8139 = vmatprep.subr.bf16.mxu0 %v8844_v1 }
 0x182   :  { %8124 = vmatpush3.bf16.msra.mxu1 %v8843_v49  ;;  %v8899_v49 = vld [vmem:[%s13283_s5 + $0xb8] sm:$0xff]  }
 0x183   :  { %8149 = vmatprep.subr.bf16.mxu1 %v8845_v50 }
 0x184   :  { %8140 = vmatpush3.bf16.msra.mxu0 %v8844_v1  ;;  %v8900_v1 = vld [vmem:[%s13283_s5 + $0xd8] sm:$0xff]  }
 0x185   :  { %8126 = vmatmul.mubr.msk.bf16.vlgmr.msra.gmra.mrb[24].mxu1 %vm66_vm0, %v9787_v12  ;;  %8165 = vmatprep.subr.bf16.mxu0 %v8846_v51 }
 0x186   :  { %8150 = vmatpush3.bf16.msra.mxu1 %v8845_v50  ;;  %8129 = vmatprep.mubr.msk.bf16.mxu1 %vm66_vm0, %v9807_v19  ;;  %v8901_v50 = vld [vmem:[%s13283_s5 + $0xe0] sm:$0xff]  }
 0x187   :  { %8142 = vmatmul.mubr.msk.bf16.vlgmr.msra.gmra.mrb[32].mxu0 %vm66_vm0, %v9732_v27  ;;  %8151 = vmatprep.subr.bf16.mxu1 %v8847_v52 }
 0x188   :  { %8145 = vmatprep.mubr.msk.bf16.mxu0 %vm66_vm0, %v9749_v48  ;;  %8166 = vmatpush3.bf16.msra.mxu0 %v8846_v51  ;;  %v8902_v51 = vld [vmem:[%s13283_s5 + $0xe8] sm:$0xff]  }
 0x189   :  { %8167 = vmatprep.subr.bf16.mxu0 %v8848_v10 }
 0x18a   :  { %8152 = vmatpush3.bf16.msra.mxu1 %v8847_v52  ;;  %v8904_v52 = vld [vmem:[%s13283_s5 + $0xf8] sm:$0xff]  }
 0x18b   :  { %8153 = vmatprep.subr.bf16.mxu1 %v8849_v28 }
 0x18c   :  { %8168 = vmatpush3.bf16.msra.mxu0 %v8848_v10 }
 0x18d   :  { %8130 = vmatmul.mubr.msk.bf16.gmra.mrb[28].mxu1 %vm66_vm0, %v9820_v39  ;;  %8169 = vmatprep.subr.bf16.mxu0 %v8850_v59 }
 0x18e   :  { %8154 = vmatpush3.bf16.msra.mxu1 %v8849_v28  ;;  %8157 = vmatprep.mubr.msk.bf16.mxu1 %vm66_vm0, %v9777_v3 }
 0x18f   :  { %8146 = vmatmul.mubr.msk.bf16.gmra.mrb[36].mxu0 %vm66_vm0, %v9762_v56  ;;  %8155 = vmatprep.subr.bf16.mxu1 %v8851_v29 }
 0x190   :  { %8170 = vmatpush3.bf16.msra.mxu0 %v8850_v59  ;;  %8173 = vmatprep.mubr.msk.bf16.mxu0 %vm66_vm0, %v9722_v6 }
 0x191   :  { %8171 = vmatprep.subr.bf16.mxu0 %v8852_v53 }
 0x192   :  { %8156 = vmatpush3.bf16.msra.mxu1 %v8851_v29 }
 0x193   :  { %8181 = vmatprep.subr.bf16.mxu1 %v8853_v57 }
 0x194   :  { %8172 = vmatpush3.bf16.msra.mxu0 %v8852_v53 }
 0x195   :  { %8158 = vmatmul.mubr.msk.bf16.vlgmr.msra.gmra.mrb[32].mxu1 %vm66_vm0, %v9787_v12  ;;  %8197 = vmatprep.subr.bf16.mxu0 %v8854_v58 }
 0x196   :  { %8161 = vmatprep.mubr.msk.bf16.mxu1 %vm66_vm0, %v9807_v19  ;;  %8182 = vmatpush3.bf16.msra.mxu1 %v8853_v57 }
 0x197   :  { %8174 = vmatmul.mubr.msk.bf16.vlgmr.msra.gmra.mrb[40].mxu0 %vm66_vm0, %v9732_v27  ;;  %8183 = vmatprep.subr.bf16.mxu1 %v8855_v60 }
 0x198   :  { %8177 = vmatprep.mubr.msk.bf16.mxu0 %vm66_vm0, %v9749_v48  ;;  %8198 = vmatpush3.bf16.msra.mxu0 %v8854_v58 }
 0x199   :  { %8199 = vmatprep.subr.bf16.mxu0 %v8856_v11 }
 0x19a   :  { %8184 = vmatpush3.bf16.msra.mxu1 %v8855_v60 }
 0x19b   :  { %8185 = vmatprep.subr.bf16.mxu1 %v8857_v61 }
 0x19c   :  { %8200 = vmatpush3.bf16.msra.mxu0 %v8856_v11 }
 0x19d   :  { %8162 = vmatmul.mubr.msk.bf16.gmra.mrb[36].mxu1 %vm66_vm0, %v9820_v39  ;;  %8201 = vmatprep.subr.bf16.mxu0 %v8858_v62 }
 0x19e   :  { %8186 = vmatpush3.bf16.msra.mxu1 %v8857_v61  ;;  %8189 = vmatprep.mubr.msk.bf16.mxu1 %vm66_vm0, %v9777_v3 }
 0x19f   :  { %8178 = vmatmul.mubr.msk.bf16.gmra.mrb[44].mxu0 %vm66_vm0, %v9762_v56  ;;  %8187 = vmatprep.subr.bf16.mxu1 %v8859_v44 }
 0x1a0   :  { %8202 = vmatpush3.bf16.msra.mxu0 %v8858_v62  ;;  %8205 = vmatprep.mubr.msk.bf16.mxu0 %vm66_vm0, %v9722_v6 }
 0x1a1   :  { %8203 = vmatprep.subr.bf16.mxu0 %v8860_v23 }
 0x1a2   :  { %8188 = vmatpush3.bf16.msra.mxu1 %v8859_v44 }
 0x1a3   :  { %8213 = vmatprep.subr.bf16.mxu1 %v8861_v2 }
 0x1a4   :  { %8204 = vmatpush3.bf16.msra.mxu0 %v8860_v23 }
 0x1a5   :  { %8190 = vmatmul.mubr.msk.bf16.vlgmr.msra.gmra.mrb[40].mxu1 %vm66_vm0, %v9787_v12  ;;  %8229 = vmatprep.subr.bf16.mxu0 %v8862_v37 }
 0x1a6   :  { %8193 = vmatprep.mubr.msk.bf16.mxu1 %vm66_vm0, %v9807_v19  ;;  %8214 = vmatpush3.bf16.msra.mxu1 %v8861_v2 }
 0x1a7   :  { %8206 = vmatmul.mubr.msk.bf16.vlgmr.msra.gmra.mrb[48].mxu0 %vm66_vm0, %v9732_v27  ;;  %8215 = vmatprep.subr.bf16.mxu1 %v8863_v4 }
 0x1a8   :  { %8209 = vmatprep.mubr.msk.bf16.mxu0 %vm66_vm0, %v9749_v48  ;;  %8230 = vmatpush3.bf16.msra.mxu0 %v8862_v37 }
 0x1a9   :  { %8231 = vmatprep.subr.bf16.mxu0 %v8864_v17 }
 0x1aa   :  { %8216 = vmatpush3.bf16.msra.mxu1 %v8863_v4 }
 0x1ab   :  { %8217 = vmatprep.subr.bf16.mxu1 %v8865_v5 }
 0x1ac   :  { %8232 = vmatpush3.bf16.msra.mxu0 %v8864_v17 }
 0x1ad   :  { %8194 = vmatmul.mubr.msk.bf16.gmra.mrb[44].mxu1 %vm66_vm0, %v9820_v39  ;;  %8233 = vmatprep.subr.bf16.mxu0 %v8866_v7 }
 0x1ae   :  { %8218 = vmatpush3.bf16.msra.mxu1 %v8865_v5  ;;  %8221 = vmatprep.mubr.msk.bf16.mxu1 %vm66_vm0, %v9777_v3 }
 0x1af   :  { %8210 = vmatmul.mubr.msk.bf16.gmra.mrb[52].mxu0 %vm66_vm0, %v9762_v56  ;;  %8219 = vmatprep.subr.bf16.mxu1 %v8867_v8 }
 0x1b0   :  { %8234 = vmatpush3.bf16.msra.mxu0 %v8866_v7  ;;  %8237 = vmatprep.mubr.msk.bf16.mxu0 %vm66_vm0, %v9722_v6 }
 0x1b1   :  { %8235 = vmatprep.subr.bf16.mxu0 %v8868_v9 }
 0x1b2   :  { %8220 = vmatpush3.bf16.msra.mxu1 %v8867_v8 }
 0x1b3   :  { %8245 = vmatprep.subr.bf16.mxu1 %v8869_v35 }
 0x1b4   :  { %8236 = vmatpush3.bf16.msra.mxu0 %v8868_v9 }
 0x1b5   :  { %8222 = vmatmul.mubr.msk.bf16.vlgmr.msra.gmra.mrb[48].mxu1 %vm66_vm0, %v9787_v12  ;;  %8261 = vmatprep.subr.bf16.mxu0 %v8870_v13 }
 0x1b6   :  { %8225 = vmatprep.mubr.msk.bf16.mxu1 %vm66_vm0, %v9807_v19  ;;  %8246 = vmatpush3.bf16.msra.mxu1 %v8869_v35 }
 0x1b7   :  { %8238 = vmatmul.mubr.msk.bf16.vlgmr.msra.gmra.mrb[56].mxu0 %vm66_vm0, %v9732_v27  ;;  %8247 = vmatprep.subr.bf16.mxu1 %v8871_v14 }
 0x1b8   :  { %8241 = vmatprep.mubr.msk.bf16.mxu0 %vm66_vm0, %v9749_v48  ;;  %8262 = vmatpush3.bf16.msra.mxu0 %v8870_v13 }
 0x1b9   :  { %8263 = vmatprep.subr.bf16.mxu0 %v8872_v15 }
 0x1ba   :  { %8248 = vmatpush3.bf16.msra.mxu1 %v8871_v14 }
 0x1bb   :  { %8249 = vmatprep.subr.bf16.mxu1 %v8873_v45 }
 0x1bc   :  { %8264 = vmatpush3.bf16.msra.mxu0 %v8872_v15 }
 0x1bd   :  { %8226 = vmatmul.mubr.msk.bf16.gmra.mrb[52].mxu1 %vm66_vm0, %v9820_v39  ;;  %8265 = vmatprep.subr.bf16.mxu0 %v8874_v21 }
 0x1be   :  { %8250 = vmatpush3.bf16.msra.mxu1 %v8873_v45  ;;  %8253 = vmatprep.mubr.msk.bf16.mxu1 %vm66_vm0, %v9777_v3 }
 0x1bf   :  { %8242 = vmatmul.mubr.msk.bf16.gmra.mrb[60].mxu0 %vm66_vm0, %v9762_v56  ;;  %8251 = vmatprep.subr.bf16.mxu1 %v8875_v18 }
 0x1c0   :  { %8266 = vmatpush3.bf16.msra.mxu0 %v8874_v21  ;;  %8269 = vmatprep.mubr.msk.bf16.mxu0 %vm66_vm0, %v9722_v6 }
 0x1c1   :  { %8267 = vmatprep.subr.bf16.mxu0 %v8876_v47 }
 0x1c2   :  { %8252 = vmatpush3.bf16.msra.mxu1 %v8875_v18 }
 0x1c3   :  { %8277 = vmatprep.subr.bf16.mxu1 %v8877_v54 }
 0x1c4   :  { %8268 = vmatpush3.bf16.msra.mxu0 %v8876_v47 }
 0x1c5   :  { %8254 = vmatmul.mubr.msk.bf16.vlgmr.msra.gmra.mrb[56].mxu1 %vm66_vm0, %v9787_v12  ;;  %8293 = vmatprep.subr.bf16.mxu0 %v8878_v22 }
 0x1c6   :  { %8257 = vmatprep.mubr.msk.bf16.mxu1 %vm66_vm0, %v9807_v19  ;;  %8278 = vmatpush3.bf16.msra.mxu1 %v8877_v54 }
 0x1c7   :  { %8270 = vmatmul.mubr.msk.bf16.vlgmr.msra.gmra.mrb[64].mxu0 %vm66_vm0, %v9732_v27  ;;  %8279 = vmatprep.subr.bf16.mxu1 %v8879_v25 }
 0x1c8   :  { %8273 = vmatprep.mubr.msk.bf16.mxu0 %vm66_vm0, %v9749_v48  ;;  %8294 = vmatpush3.bf16.msra.mxu0 %v8878_v22 }
 0x1c9   :  { %8295 = vmatprep.subr.bf16.mxu0 %v8880_v16 }
 0x1ca   :  { %8280 = vmatpush3.bf16.msra.mxu1 %v8879_v25 }
 0x1cb   :  { %8281 = vmatprep.subr.bf16.mxu1 %v8881_v63 }
 0x1cc   :  { %8296 = vmatpush3.bf16.msra.mxu0 %v8880_v16 }
 0x1cd   :  { %8258 = vmatmul.mubr.msk.bf16.gmra.mrb[60].mxu1 %vm66_vm0, %v9820_v39  ;;  %8297 = vmatprep.subr.bf16.mxu0 %v8882_v26 }
 0x1ce   :  { %8282 = vmatpush3.bf16.msra.mxu1 %v8881_v63  ;;  %8285 = vmatprep.mubr.msk.bf16.mxu1 %vm66_vm0, %v9777_v3 }
 0x1cf   :  { %8274 = vmatmul.mubr.msk.bf16.gmra.mrb[68].mxu0 %vm66_vm0, %v9762_v56  ;;  %8283 = vmatprep.subr.bf16.mxu1 %v8883_v30 }
 0x1d0   :  { %8298 = vmatpush3.bf16.msra.mxu0 %v8882_v26  ;;  %8301 = vmatprep.mubr.msk.bf16.mxu0 %vm66_vm0, %v9722_v6 }
 0x1d1   :  { %8299 = vmatprep.subr.bf16.mxu0 %v8884_v31 }
 0x1d2   :  { %8284 = vmatpush3.bf16.msra.mxu1 %v8883_v30 }
 0x1d3   :  { %8309 = vmatprep.subr.bf16.mxu1 %v8885_v43 }
 0x1d4   :  { %8300 = vmatpush3.bf16.msra.mxu0 %v8884_v31 }
 0x1d5   :  { %8286 = vmatmul.mubr.msk.bf16.vlgmr.msra.gmra.mrb[64].mxu1 %vm66_vm0, %v9787_v12  ;;  %8325 = vmatprep.subr.bf16.mxu0 %v8886_v55 }
 0x1d6   :  { %8289 = vmatprep.mubr.msk.bf16.mxu1 %vm66_vm0, %v9807_v19  ;;  %8310 = vmatpush3.bf16.msra.mxu1 %v8885_v43 }
 0x1d7   :  { %8302 = vmatmul.mubr.msk.bf16.vlgmr.msra.gmra.mrb[72].mxu0 %vm66_vm0, %v9732_v27  ;;  %8311 = vmatprep.subr.bf16.mxu1 %v8887_v32 }
 0x1d8   :  { %8305 = vmatprep.mubr.msk.bf16.mxu0 %vm66_vm0, %v9749_v48  ;;  %8326 = vmatpush3.bf16.msra.mxu0 %v8886_v55 }
 0x1d9   :  { %8327 = vmatprep.subr.bf16.mxu0 %v8888_v33 }
 0x1da   :  { %8312 = vmatpush3.bf16.msra.mxu1 %v8887_v32 }
 0x1db   :  { %8313 = vmatprep.subr.bf16.mxu1 %v8889_v34 }
 0x1dc   :  { %8328 = vmatpush3.bf16.msra.mxu0 %v8888_v33 }
 0x1dd   :  { %8290 = vmatmul.mubr.msk.bf16.gmra.mrb[68].mxu1 %vm66_vm0, %v9820_v39  ;;  %8329 = vmatprep.subr.bf16.mxu0 %v8890_v20 }
 0x1de   :  { %8314 = vmatpush3.bf16.msra.mxu1 %v8889_v34  ;;  %8317 = vmatprep.mubr.msk.bf16.mxu1 %vm66_vm0, %v9777_v3 }
 0x1df   :  { %8306 = vmatmul.mubr.msk.bf16.gmra.mrb[76].mxu0 %vm66_vm0, %v9762_v56  ;;  %8315 = vmatprep.subr.bf16.mxu1 %v8891_v38 }
 0x1e0   :  { %8330 = vmatpush3.bf16.msra.mxu0 %v8890_v20  ;;  %8333 = vmatprep.mubr.msk.bf16.mxu0 %vm66_vm0, %v9722_v6 }
 0x1e1   :  { %8331 = vmatprep.subr.bf16.mxu0 %v8892_v0 }
 0x1e2   :  { %8316 = vmatpush3.bf16.msra.mxu1 %v8891_v38 }
 0x1e3   :  { %8341 = vmatprep.subr.bf16.mxu1 %v8893_v40 }
 0x1e4   :  { %8332 = vmatpush3.bf16.msra.mxu0 %v8892_v0 }
 0x1e5   :  { %8318 = vmatmul.mubr.msk.bf16.vlgmr.msra.gmra.mrb[72].mxu1 %vm66_vm0, %v9787_v12  ;;  %8357 = vmatprep.subr.bf16.mxu0 %v8894_v41 }
 0x1e6   :  { %8321 = vmatprep.mubr.msk.bf16.mxu1 %vm66_vm0, %v9807_v19  ;;  %8342 = vmatpush3.bf16.msra.mxu1 %v8893_v40 }
 0x1e7   :  { %8334 = vmatmul.mubr.msk.bf16.vlgmr.msra.gmra.mrb[80].mxu0 %vm66_vm0, %v9732_v27  ;;  %8343 = vmatprep.subr.bf16.mxu1 %v8895_v42 }
 0x1e8   :  { %8337 = vmatprep.mubr.msk.bf16.mxu0 %vm66_vm0, %v9749_v48  ;;  %8358 = vmatpush3.bf16.msra.mxu0 %v8894_v41 }
 0x1e9   :  { %8359 = vmatprep.subr.bf16.mxu0 %v8896_v46 }
 0x1ea   :  { %8344 = vmatpush3.bf16.msra.mxu1 %v8895_v42 }
 0x1eb   :  { %8345 = vmatprep.subr.bf16.mxu1 %v8897_v24 }
 0x1ec   :  { %8360 = vmatpush3.bf16.msra.mxu0 %v8896_v46 }
 0x1ed   :  { %8322 = vmatmul.mubr.msk.bf16.gmra.mrb[76].mxu1 %vm66_vm0, %v9820_v39  ;;  %8361 = vmatprep.subr.bf16.mxu0 %v8898_v36 }
 0x1ee   :  { %8346 = vmatpush3.bf16.msra.mxu1 %v8897_v24  ;;  %8349 = vmatprep.mubr.msk.bf16.mxu1 %vm66_vm0, %v9777_v3 }
 0x1ef   :  { %8338 = vmatmul.mubr.msk.bf16.gmra.mrb[84].mxu0 %vm66_vm0, %v9762_v56  ;;  %8347 = vmatprep.subr.bf16.mxu1 %v8899_v49 }
 0x1f0   :  { %8362 = vmatpush3.bf16.msra.mxu0 %v8898_v36  ;;  %8365 = vmatprep.mubr.msk.bf16.mxu0 %vm66_vm0, %v9722_v6  ;;  %v8903_v6 = vld [vmem:[%s13283_s5 + $0xf0] sm:$0xff]  }
 0x1f1   :  { %8363 = vmatprep.subr.bf16.mxu0 %v8900_v1 }
 0x1f2   :  { %8348 = vmatpush3.bf16.msra.mxu1 %v8899_v49 }
 0x1f3   :  { %8373 = vmatprep.subr.bf16.mxu1 %v8901_v50 }
 0x1f4   :  { %8364 = vmatpush3.bf16.msra.mxu0 %v8900_v1 }
 0x1f5   :  { %8350 = vmatmul.mubr.msk.bf16.vlgmr.msra.gmra.mrb[80].mxu1 %vm66_vm0, %v9787_v12 }
 0x1f6   :  { %8353 = vmatprep.mubr.msk.bf16.mxu1 %vm66_vm0, %v9807_v19  ;;  %8374 = vmatpush3.bf16.msra.mxu1 %v8901_v50 }
 0x1f7   :  { %8366 = vmatmul.mubr.msk.bf16.vlgmr.msra.gmra.mrb[88].mxu0 %vm66_vm0, %v9732_v27  ;;  %8375 = vmatprep.subr.bf16.mxu1 %v8902_v51 }
 0x1f8   :  { %8369 = vmatprep.mubr.msk.bf16.mxu0 %vm66_vm0, %v9749_v48 }
 0x1fa   :  { %8376 = vmatpush3.bf16.msra.mxu1 %v8902_v51 }
 0x1fb   :  { %8377 = vmatprep.subr.bf16.mxu1 %v8903_v6 }
 0x1fd   :  { %8354 = vmatmul.mubr.msk.bf16.gmra.mrb[84].mxu1 %vm66_vm0, %v9820_v39 }
 0x1fe   :  { %8378 = vmatpush3.bf16.msra.mxu1 %v8903_v6  ;;  %8381 = vmatprep.mubr.msk.bf16.mxu1 %vm66_vm0, %v9777_v3 }
 0x1ff   :  { %8370 = vmatmul.mubr.msk.bf16.gmra.mrb[92].mxu0 %vm66_vm0, %v9762_v56  ;;  %8379 = vmatprep.subr.bf16.mxu1 %v8904_v52 }
 0x202   :  { %8380 = vmatpush3.bf16.msra.mxu1 %v8904_v52 }
 0x205   :  { %8382 = vmatmul.mubr.msk.bf16.vlgmr.msra.gmra.mrb[88].mxu1 %vm66_vm0, %v9787_v12 }
 0x206   :  { %8385 = vmatprep.mubr.msk.bf16.mxu1 %vm66_vm0, %v9807_v19 }
 0x20d   :  { %8386 = vmatmul.mubr.msk.bf16.gmra.mrb[92].mxu1 %vm66_vm0, %v9820_v39 }
 0x218   :  { %v10228_v27 = vpop.f32.mrb[0].mxu0 }
 0x219   :  { %v462_v48 = vpop.f32.mrb[1].mxu0 }
 0x21a   :  { %v10230_v10 = vpop.f32.mrb[2].mxu0 }
 0x21b   :  { %v465_v56 = vpop.f32.mrb[3].mxu0 }
 0x21c   :  { %v2680_v28 = vpack.c.bf16 %v465_v56, %v462_v48 }
 0x21e   :  { %8397 = vmatprep.mubr.msk.bf16.mxu0 %vm2744_vm1, %v2680_v28 }
 0x220   :  { %v10235_v12 = vpop.f32.mrb[4].mxu0 }
 0x221   :  { %v10237_v59 = vpop.f32.mrb[5].mxu0 }
 0x222   :  { %v10239_v19 = vpop.f32.mrb[6].mxu0 }
 0x223   :  { %v10243_v29 = vpop.f32.mrb[7].mxu0 }
 0x228   :  { %v10247_v57 = vpop.f32.mrb[0].mxu1  ;;  %v10249_v58 = vpop.f32.mrb[8].mxu0 }
 0x229   :  { %v563_v60 = vpop.f32.mrb[1].mxu1  ;;  %v10251_v11 = vpop.f32.mrb[9].mxu0 }
 0x22a   :  { %v10253_v61 = vpop.f32.mrb[2].mxu1  ;;  %v10255_v62 = vpop.f32.mrb[10].mxu0 }
 0x22b   :  { %v566_v2 = vpop.f32.mrb[3].mxu1  ;;  %v10261_v37 = vpop.f32.mrb[11].mxu0 }
 0x22c   :  { %v2684_v4 = vpack.c.bf16 %v566_v2, %v563_v60 }
 0x22e   :  { %8413 = vmatprep.mubr.msk.bf16.mxu1 %vm2744_vm1, %v2684_v4 }
 0x230   :  { %v10266_v5 = vpop.f32.mrb[4].mxu1  ;;  %v10268_v7 = vpop.f32.mrb[12].mxu0 }
 0x231   :  { %v10270_v8 = vpop.f32.mrb[5].mxu1  ;;  %v10272_v9 = vpop.f32.mrb[13].mxu0 }
 0x232   :  { %v10274_v35 = vpop.f32.mrb[6].mxu1  ;;  %v10276_v13 = vpop.f32.mrb[14].mxu0 }
 0x233   :  { %v10282_v45 = vpop.f32.mrb[7].mxu1  ;;  %v10284_v21 = vpop.f32.mrb[15].mxu0 }
 0x238   :  { %v10290_v54 = vpop.f32.mrb[8].mxu1 }
 0x239   :  { %v10292_v22 = vpop.f32.mrb[16].mxu0  ;;  %v10294_v25 = vpop.f32.mrb[9].mxu1 }
 0x23a   :  { %v10296_v16 = vpop.f32.mrb[17].mxu0  ;;  %v10298_v63 = vpop.f32.mrb[10].mxu1 }
 0x23b   :  { %v10302_v30 = vpop.f32.mrb[18].mxu0  ;;  %v10304_v31 = vpop.f32.mrb[11].mxu1 }
 0x23c   :  { %v10310_v32 = vpop.f32.mrb[19].mxu0 }
 0x240   :  { %v10314_v34 = vpop.f32.mrb[12].mxu1 }
 0x241   :  { %v10316_v20 = vpop.f32.mrb[20].mxu0  ;;  %v10318_v38 = vpop.f32.mrb[13].mxu1 }
 0x242   :  { %v10320_v0 = vpop.f32.mrb[21].mxu0  ;;  %v10322_v40 = vpop.f32.mrb[14].mxu1 }
 0x243   :  { %v10326_v42 = vpop.f32.mrb[22].mxu0  ;;  %v10328_v46 = vpop.f32.mrb[15].mxu1 }
 0x244   :  { %v10334_v49 = vpop.f32.mrb[23].mxu0 }
 0x248   :  { %v10338_v50 = vpop.f32.mrb[16].mxu1 }
 0x249   :  { %v10340_v51 = vpop.f32.mrb[17].mxu1 }
 0x24a   :  { %v10342_v6 = vpop.f32.mrb[24].mxu0  ;;  %v10344_v52 = vpop.f32.mrb[18].mxu1 }
 0x24b   :  { %13406 = vst [vmem:[#allocation2_spill] sm:$0xff] %v10342_v6  ;;  %v10346_v48 = vpop.f32.mrb[25].mxu0  ;;  %v10350_v28 = vpop.f32.mrb[19].mxu1 }
 0x24c   :  { %v10352_v60 = vpop.f32.mrb[26].mxu0 }
 0x24d   :  { %13407 = vst [vmem:[#allocation3_spill] sm:$0xff] %v10352_v60  ;;  %v10358_v24 = vpop.f32.mrb[27].mxu0 }
 0x250   :  { %v10362_v43 = vpop.f32.mrb[20].mxu1 }
 0x251   :  { %13408 = vst [vmem:[#allocation4_spill] sm:$0xff] %v10362_v43  ;;  %v10364_v41 = vpop.f32.mrb[21].mxu1 }
 0x252   :  { %13409 = vst [vmem:[#allocation5_spill] sm:$0xff] %v10364_v41  ;;  %v10366_v56 = vpop.f32.mrb[28].mxu0  ;;  %v10368_v36 = vpop.f32.mrb[22].mxu1 }
 0x253   :  { %13410 = vst [vmem:[#allocation6_spill] sm:$0xff] %v10366_v56  ;;  %13411 = vst [vmem:[#allocation7_spill] sm:$0xff] %v10368_v36  ;;  %v10370_v26 = vpop.f32.mrb[29].mxu0  ;;  %v10374_v33 = vpop.f32.mrb[23].mxu1 }
 0x254   :  { %13412 = vst [vmem:[#allocation8_spill] sm:$0xff] %v10370_v26  ;;  %13413 = vst [vmem:[#allocation9_spill] sm:$0xff] %v10374_v33  ;;  %v10376_v4 = vpop.f32.mrb[30].mxu0 }
 0x255   :  { %13414 = vst [vmem:[#allocation10_spill] sm:$0xff] %v10376_v4  ;;  %v10382_v47 = vpop.f32.mrb[31].mxu0 }
 0x256   :  { %13415 = vst [vmem:[#allocation11_spill] sm:$0xff] %v10382_v47 }
 0x258   :  { %v10386_v55 = vpop.f32.mrb[24].mxu1 }
 0x259   :  { %13416 = vst [vmem:[#allocation12_spill] sm:$0xff] %v10386_v55  ;;  %v10388_v14 = vpop.f32.mrb[25].mxu1 }
 0x25a   :  { %13417 = vst [vmem:[#allocation13_spill] sm:$0xff] %v10388_v14  ;;  %v8143_v2 = vpop.f32.mrb[32].mxu0  ;;  %v10390_v18 = vpop.f32.mrb[26].mxu1 }
 0x25b   :  { %13418 = vst [vmem:[#allocation14_spill] sm:$0xff] %v10390_v18  ;;  %v1250_v44 = vpop.f32.mrb[33].mxu0  ;;  %v10394_v1 = vpop.f32.mrb[27].mxu1 }
 0x25c   :  { %13419 = vst [vmem:[#allocation15_spill] sm:$0xff] %v10394_v1  ;;  %v8144_v39 = vpop.f32.mrb[34].mxu0 }
 0x25d   :  { %v2713_v53 = vpack.c.bf16 %v8144_v39, %v8143_v2  ;;  %v1253_v3 = vpop.f32.mrb[35].mxu0 }
 0x25e   :  { %v2712_v23 = vpack.c.bf16 %v1253_v3, %v1250_v44 }
 0x25f   :  { %v2761_v18 = vsel %vm2744_vm1, %v2713_v53, 0 }
 0x260   :  { %v2758_v56 = vsel %vm2744_vm1, %v2712_v23, 0  ;;  %8775 = vmatprep.subr.msk.bf16.mxu0 %vm2744_vm1, %v2712_v23  ;;  %v10400_v4 = vpop.f32.mrb[28].mxu1 }
 0x261   :  { %13420 = vst [vmem:[#allocation16_spill] sm:$0xff] %v10400_v4  ;;  %8390 = vmatpush3.bf16.xpose.msra.mxu0 %v2758_v56  ;;  %v10402_v26 = vpop.f32.mrb[29].mxu1 }
 0x262   :  { %13421 = vst [vmem:[#allocation17_spill] sm:$0xff] %v10402_v26  ;;  %v8147_v47 = vpop.f32.mrb[36].mxu0  ;;  %8776 = vmatprep.subr.msk.bf16.mxu0 %vm2744_vm1, %v2713_v53  ;;  %v10405_v17 = vpop.f32.mrb[30].mxu1 }
 0x263   :  { %13422 = vst [vmem:[#allocation18_spill] sm:$0xff] %v10405_v17  ;;  %v1266_v55 = vpop.f32.mrb[37].mxu0  ;;  %v10409_v2 = vpop.f32.mrb[31].mxu1 }
 0x264   :  { %v8148_v3 = vpop.f32.mrb[38].mxu0 }
 0x265   :  { %v2715_v23 = vpack.c.bf16 %v8148_v3, %v8147_v47  ;;  %v1269_v15 = vpop.f32.mrb[39].mxu0 }
 0x266   :  { %v2714_v56 = vpack.c.bf16 %v1269_v15, %v1266_v55 }
 0x268   :  { %v8159_v6 = vpop.f32.mrb[32].mxu1  ;;  %v2764_v53 = vsel %vm2744_vm1, %v2714_v56, 0 }
 0x269   :  { %8392 = vmatpush3.bf16.xpose.msra.mxu0 %v2761_v18  ;;  %v1339_v60 = vpop.f32.mrb[33].mxu1 }
 0x26a   :  { %v8175_v14 = vpop.f32.mrb[40].mxu0  ;;  %8777 = vmatprep.subr.msk.bf16.mxu0 %vm2744_vm1, %v2714_v56  ;;  %v8160_v1 = vpop.f32.mrb[34].mxu1 }
 0x26b   :  { %v1428_v43 = vpop.f32.mrb[41].mxu0  ;;  %v2717_v39 = vpack.c.bf16 %v8160_v1, %v8159_v6  ;;  %v1342_v4 = vpop.f32.mrb[35].mxu1 }
 0x26c   :  { %v8176_v17 = vpop.f32.mrb[42].mxu0  ;;  %v2716_v36 = vpack.c.bf16 %v1342_v4, %v1339_v60 }
 0x26d   :  { %v2721_v41 = vpack.c.bf16 %v8176_v17, %v8175_v14  ;;  %v1431_v33 = vpop.f32.mrb[43].mxu0 }
 0x26e   :  { %v2847_v47 = vsel %vm2744_vm1, %v2716_v36, 0  ;;  %v2720_v3 = vpack.c.bf16 %v1431_v33, %v1428_v43  ;;  %8779 = vmatprep.subr.msk.bf16.mxu1 %vm2744_vm1, %v2716_v36  ;;  %v2850_v36 = vsel %vm2744_vm1, %v2717_v39, 0 }
 0x26f   :  { %8406 = vmatpush3.bf16.xpose.msra.mxu1 %v2847_v47  ;;  %v2767_v47 = vsel %vm2744_vm1, %v2715_v23, 0 }
 0x270   :  { %v8163_v15 = vpop.f32.mrb[36].mxu1  ;;  %8780 = vmatprep.subr.msk.bf16.mxu1 %vm2744_vm1, %v2717_v39 }
 0x271   :  { %8394 = vmatpush3.bf16.xpose.msra.mxu0 %v2764_v53  ;;  %v1355_v18 = vpop.f32.mrb[37].mxu1 }
 0x272   :  { %v8179_v55 = vpop.f32.mrb[44].mxu0  ;;  %8778 = vmatprep.subr.msk.bf16.mxu0 %vm2744_vm1, %v2715_v23  ;;  %v8164_v1 = vpop.f32.mrb[38].mxu1 }
 0x273   :  { %v1444_v6 = vpop.f32.mrb[45].mxu0  ;;  %v2719_v17 = vpack.c.bf16 %v8164_v1, %v8163_v15  ;;  %v1358_v14 = vpop.f32.mrb[39].mxu1 }
 0x274   :  { %v8180_v60 = vpop.f32.mrb[46].mxu0  ;;  %v2718_v4 = vpack.c.bf16 %v1358_v14, %v1355_v18 }
 0x275   :  { %v10420_v43 = vpack.c.bf16 %v8180_v60, %v8179_v55  ;;  %v1447_v33 = vpop.f32.mrb[47].mxu0 }
 0x276   :  { %v2722_v56 = vpack.c.bf16 %v1447_v33, %v1444_v6  ;;  %v2853_v23 = vsel %vm2744_vm1, %v2718_v4, 0 }
 0x277   :  { %8408 = vmatpush3.bf16.xpose.msra.mxu1 %v2850_v36  ;;  %v2936_v36 = vsel %vm2744_vm1, %v2720_v3, 0 }
 0x278   :  { %v8191_v53 = vpop.f32.mrb[40].mxu1  ;;  %8781 = vmatprep.subr.msk.bf16.mxu1 %vm2744_vm1, %v2718_v4 }
 0x279   :  { %8396 = vmatpush3.bf16.xpose.msra.mxu0 %v2767_v47  ;;  %v1517_v44 = vpop.f32.mrb[41].mxu1  ;;  %v13423_v47 = vpack.c.bf16 %v10230_v10, %v10228_v27 }
 0x27a   :  { %v8207_v26 = vpop.f32.mrb[48].mxu0  ;;  %8783 = vmatprep.subr.msk.bf16.mxu0 %vm2744_vm1, %v2720_v3  ;;  %v8192_v15 = vpop.f32.mrb[42].mxu1 }
 0x27b   :  { %v1606_v1 = vpop.f32.mrb[49].mxu0  ;;  %v10426_v18 = vpack.c.bf16 %v8192_v15, %v8191_v53  ;;  %v1520_v55 = vpop.f32.mrb[43].mxu1 }
 0x27c   :  { %v8208_v14 = vpop.f32.mrb[50].mxu0  ;;  %v2724_v60 = vpack.c.bf16 %v1520_v55, %v1517_v44 }
 0x27d   :  { %v10428_v39 = vpack.c.bf16 %v8208_v14, %v8207_v26  ;;  %v1609_v6 = vpop.f32.mrb[51].mxu0  ;;  %v13424_v26 = vpack.c.bf16 %v10243_v29, %v10237_v59  ;;  %v2856_v59 = vsel %vm2744_vm1, %v2719_v17, 0 }
 0x27e   :  { %v10431_v33 = vpack.c.bf16 %v1609_v6, %v1606_v1 }
 0x27f   :  { %8410 = vmatpush3.bf16.xpose.msra.mxu1 %v2853_v23  ;;  %v2939_v23 = vsel %vm2744_vm1, %v2721_v41, 0 }
 0x280   :  { %8398 = vmatmul.mubr.msk.bf16.vlgmr.msra.gmra.mrb[96].mxu0 %vm2744_vm1, %v13423_v47  ;;  %v8195_v53 = vpop.f32.mrb[44].mxu1  ;;  %8782 = vmatprep.subr.msk.bf16.mxu1 %vm2744_vm1, %v2719_v17 }
 0x281   :  { %8401 = vmatprep.mubr.msk.bf16.mxu0 %vm2744_vm1, %v13424_v26  ;;  %8422 = vmatpush3.bf16.xpose.msra.mxu0 %v2936_v36  ;;  %v1533_v44 = vpop.f32.mrb[45].mxu1  ;;  %v13425_v36 = vpack.c.bf16 %v10239_v19, %v10235_v12 }
 0x282   :  { %v8211_v4 = vpop.f32.mrb[52].mxu0  ;;  %8784 = vmatprep.subr.msk.bf16.mxu0 %vm2744_vm1, %v2721_v41  ;;  %v8196_v15 = vpop.f32.mrb[46].mxu1 }
 0x283   :  { %v1622_v3 = vpop.f32.mrb[53].mxu0  ;;  %v10444_v1 = vpack.c.bf16 %v8196_v15, %v8195_v53  ;;  %v1536_v27 = vpop.f32.mrb[47].mxu1  ;;  %v13426_v53 = vpack.c.bf16 %v10261_v37, %v10251_v11  ;;  %v13427_v37 = vpack.c.bf16 %v10253_v61, %v10247_v57 }
 0x284   :  { %v8212_v10 = vpop.f32.mrb[54].mxu0  ;;  %v10446_v55 = vpack.c.bf16 %v1536_v27, %v1533_v44 }
 0x285   :  { %v10448_v14 = vpack.c.bf16 %v8212_v10, %v8211_v4  ;;  %v1625_v6 = vpop.f32.mrb[55].mxu0  ;;  %v3025_v10 = vsel %vm2744_vm1, %v2724_v60, 0 }
 0x286   :  { %v10451_v29 = vpack.c.bf16 %v1625_v6, %v1622_v3  ;;  %v13428_v6 = vpack.c.bf16 %v10282_v45, %v10270_v8 }
 0x287   :  { %8412 = vmatpush3.bf16.xpose.msra.mxu1 %v2856_v59  ;;  %v2942_v59 = vsel %vm2744_vm1, %v2722_v56, 0 }
 0x288   :  { %8402 = vmatmul.mubr.msk.bf16.gmra.mrb[100].mxu0 %vm2744_vm1, %v13425_v36  ;;  %v8223_v47 = vpop.f32.mrb[48].mxu1  ;;  %8787 = vmatprep.subr.msk.bf16.mxu1 %vm2744_vm1, %v2724_v60 }
 0x289   :  { %8424 = vmatpush3.bf16.xpose.msra.mxu0 %v2939_v23  ;;  %8429 = vmatprep.mubr.msk.bf16.mxu0 %vm2744_vm1, %v13426_v53  ;;  %v1695_v17 = vpop.f32.mrb[49].mxu1 }
 0x28a   :  { %v8239_v26 = vpop.f32.mrb[56].mxu0  ;;  %8785 = vmatprep.subr.msk.bf16.mxu0 %vm2744_vm1, %v2722_v56  ;;  %v8224_v44 = vpop.f32.mrb[50].mxu1 }
 0x28b   :  { %v1784_v41 = vpop.f32.mrb[57].mxu0  ;;  %v10464_v4 = vpack.c.bf16 %v8224_v44, %v8223_v47  ;;  %v1698_v12 = vpop.f32.mrb[51].mxu1 }
 0x28c   :  { %v8240_v19 = vpop.f32.mrb[58].mxu0  ;;  %v10466_v15 = vpack.c.bf16 %v1698_v12, %v1695_v17  ;;  %v13430_v12 = vpack.c.bf16 %v10304_v31, %v10294_v25 }
 0x28d   :  { %v10468_v3 = vpack.c.bf16 %v8240_v19, %v8239_v26  ;;  %v1787_v27 = vpop.f32.mrb[59].mxu0  ;;  %v3028_v26 = vsel %vm2744_vm1, %v10426_v18, 0  ;;  %v2945_v19 = vsel %vm2744_vm1, %v10420_v43, 0 }
 0x28e   :  { %v10471_v11 = vpack.c.bf16 %v1787_v27, %v1784_v41  ;;  %8414 = vmatmul.mubr.msk.bf16.vlgmr.msra.gmra.mrb[96].mxu1 %vm2744_vm1, %v13427_v37  ;;  %v13429_v41 = vpack.c.bf16 %v10274_v35, %v10266_v5 }
 0x28f   :  { %8417 = vmatprep.mubr.msk.bf16.mxu1 %vm2744_vm1, %v13428_v6  ;;  %8438 = vmatpush3.bf16.xpose.msra.mxu1 %v3025_v10  ;;  %v13450_v6 = vld [vmem:[#allocation9_spill] sm:$0xff] }
 0x290   :  { %v8227_v23 = vpop.f32.mrb[52].mxu1  ;;  %8788 = vmatprep.subr.msk.bf16.mxu1 %vm2744_vm1, %v10426_v18 }
 0x291   :  { %8426 = vmatpush3.bf16.xpose.msra.mxu0 %v2942_v59  ;;  %v1711_v60 = vpop.f32.mrb[53].mxu1 }
 0x292   :  { %v8243_v36 = vpop.f32.mrb[60].mxu0  ;;  %8786 = vmatprep.subr.msk.bf16.mxu0 %vm2744_vm1, %v10420_v43  ;;  %v8228_v57 = vpop.f32.mrb[54].mxu1 }
 0x293   :  { %v1800_v61 = vpop.f32.mrb[61].mxu0  ;;  %v10486_v47 = vpack.c.bf16 %v8228_v57, %v8227_v23  ;;  %v1714_v8 = vpop.f32.mrb[55].mxu1  ;;  %v3031_v23 = vsel %vm2744_vm1, %v10446_v55, 0  ;;  %v13431_v57 = vpack.c.bf16 %v10255_v62, %v10249_v58 }
 0x294   :  { %v8244_v45 = vpop.f32.mrb[62].mxu0  ;;  %v10488_v53 = vpack.c.bf16 %v1714_v8, %v1711_v60  ;;  %v13432_v8 = vpack.c.bf16 %v10284_v21, %v10272_v9  ;;  %v13451_v60 = vld [vmem:[#allocation5_spill] sm:$0xff] }
 0x295   :  { %v10490_v17 = vpack.c.bf16 %v8244_v45, %v8243_v36  ;;  %v1803_v56 = vpop.f32.mrb[63].mxu0  ;;  %v3114_v36 = vsel %vm2744_vm1, %v10431_v33, 0 }
 0x296   :  { %v10494_v44 = vpack.c.bf16 %v1803_v56, %v1800_v61  ;;  %8418 = vmatmul.mubr.msk.bf16.gmra.mrb[100].mxu1 %vm2744_vm1, %v13429_v41 }
 0x297   :  { %8440 = vmatpush3.bf16.xpose.msra.mxu1 %v3028_v26  ;;  %8445 = vmatprep.mubr.msk.bf16.mxu1 %vm2744_vm1, %v13430_v12  ;;  %v3034_v12 = vsel %vm2744_vm1, %v10444_v1, 0 }
 0x298   :  { %v8255_v27 = vpop.f32.mrb[56].mxu1  ;;  %8789 = vmatprep.subr.msk.bf16.mxu1 %vm2744_vm1, %v10446_v55 }
 0x299   :  { %8428 = vmatpush3.bf16.xpose.msra.mxu0 %v2945_v19  ;;  %v1873_v18 = vpop.f32.mrb[57].mxu1 }
 0x29a   :  { %v10508_v10 = vpop.f32.mrb[64].mxu0  ;;  %8791 = vmatprep.subr.msk.bf16.mxu0 %vm2744_vm1, %v10431_v33  ;;  %v8256_v5 = vpop.f32.mrb[58].mxu1 }
 0x29b   :  { %v10512_v35 = vpop.f32.mrb[65].mxu0  ;;  %v10514_v25 = vpack.c.bf16 %v8256_v5, %v8255_v27  ;;  %v1876_v31 = vpop.f32.mrb[59].mxu1  ;;  %v3117_v27 = vsel %vm2744_vm1, %v10428_v39, 0 }
 0x29c   :  { %v10516_v37 = vpop.f32.mrb[66].mxu0  ;;  %v10518_v43 = vpack.c.bf16 %v1876_v31, %v1873_v18  ;;  %v13433_v18 = vpack.c.bf16 %v10276_v13, %v10268_v7 }
 0x29d   :  { %v10522_v59 = vpop.f32.mrb[67].mxu0  ;;  %v3384_v19 = vsel %vm2744_vm1, %v10514_v25, 0 }
 0x29e   :  { %v3381_v9 = vsel %vm2744_vm1, %v10518_v43, 0 }
 0x29f   :  { %8442 = vmatpush3.bf16.xpose.msra.mxu1 %v3031_v23 }
 0x2a0   :  { %8430 = vmatmul.mubr.msk.bf16.vlgmr.msra.gmra.mrb[104].mxu0 %vm2744_vm1, %v13431_v57  ;;  %v8259_v61 = vpop.f32.mrb[60].mxu1  ;;  %8790 = vmatprep.subr.msk.bf16.mxu1 %vm2744_vm1, %v10444_v1  ;;  %v13434_v1 = vpack.c.bf16 %v10310_v32, %v10296_v16  ;;  %v13437_v32 = vpack.c.bf16 %v10322_v40, %v10314_v34  ;;  %v13439_v16 = vpack.c.bf16 %v10302_v30, %v10292_v22 }
 0x2a1   :  { %8433 = vmatprep.mubr.msk.bf16.mxu0 %vm2744_vm1, %v13432_v8  ;;  %8454 = vmatpush3.bf16.xpose.msra.mxu0 %v3114_v36  ;;  %v1889_v55 = vpop.f32.mrb[61].mxu1  ;;  %v3203_v8 = vsel %vm2744_vm1, %v10466_v15, 0 }
 0x2a2   :  { %v10540_v45 = vpop.f32.mrb[68].mxu0  ;;  %8792 = vmatprep.subr.msk.bf16.mxu0 %vm2744_vm1, %v10428_v39  ;;  %v8260_v33 = vpop.f32.mrb[62].mxu1 }
 0x2a3   :  { %v10544_v58 = vpop.f32.mrb[69].mxu0  ;;  %v10546_v62 = vpack.c.bf16 %v8260_v33, %v8259_v61  ;;  %v1892_v56 = vpop.f32.mrb[63].mxu1  ;;  %v13435_v33 = vpack.c.bf16 %v10298_v63, %v10290_v54 }
 0x2a4   :  { %v10548_v26 = vpop.f32.mrb[70].mxu0  ;;  %v10550_v41 = vpack.c.bf16 %v1892_v56, %v1889_v55  ;;  %v13436_v56 = vpack.c.bf16 %v10328_v46, %v10318_v38  ;;  %v13438_v55 = vpack.c.bf16 %v10350_v28, %v10340_v51  ;;  %v3292_v28 = vsel %vm2744_vm1, %v10471_v11, 0 }
 0x2a5   :  { %v10554_v21 = vpop.f32.mrb[71].mxu0  ;;  %v3212_v46 = vsel %vm2744_vm1, %v10486_v47, 0 }
 0x2a7   :  { %8444 = vmatpush3.bf16.xpose.msra.mxu1 %v3034_v12  ;;  %v3120_v12 = vsel %vm2744_vm1, %v10451_v29, 0 }
 0x2a8   :  { %8434 = vmatmul.mubr.msk.bf16.gmra.mrb[108].mxu0 %vm2744_vm1, %v13433_v18  ;;  %v10566_v5 = vpop.f32.mrb[64].mxu1  ;;  %8795 = vmatprep.subr.msk.bf16.mxu1 %vm2744_vm1, %v10466_v15 }
 0x2a9   :  { %8456 = vmatpush3.bf16.xpose.msra.mxu0 %v3117_v27  ;;  %8461 = vmatprep.mubr.msk.bf16.mxu0 %vm2744_vm1, %v13434_v1  ;;  %v10574_v31 = vpop.f32.mrb[65].mxu1  ;;  %v13443_v1 = vpack.c.bf16 %v10326_v42, %v10316_v20 }
 0x2aa   :  { %v10576_v23 = vpop.f32.mrb[72].mxu0  ;;  %8793 = vmatprep.subr.msk.bf16.mxu0 %vm2744_vm1, %v10451_v29  ;;  %v10580_v7 = vpop.f32.mrb[66].mxu1 }
 0x2ab   :  { %v10582_v13 = vpop.f32.mrb[73].mxu0  ;;  %v10586_v36 = vpop.f32.mrb[67].mxu1 }
 0x2ac   :  { %v10588_v57 = vpop.f32.mrb[74].mxu0 }
 0x2ad   :  { %v10594_v61 = vpop.f32.mrb[75].mxu0 }
 0x2ae   :  { %8446 = vmatmul.mubr.msk.bf16.vlgmr.msra.gmra.mrb[104].mxu1 %vm2744_vm1, %v13435_v33 }
 0x2af   :  { %8449 = vmatprep.mubr.msk.bf16.mxu1 %vm2744_vm1, %v13436_v56  ;;  %8470 = vmatpush3.bf16.xpose.msra.mxu1 %v3203_v8  ;;  %v3206_v56 = vsel %vm2744_vm1, %v10464_v4, 0  ;;  %v3123_v8 = vsel %vm2744_vm1, %v10448_v14, 0 }
 0x2b0   :  { %v10610_v27 = vpop.f32.mrb[68].mxu1  ;;  %8796 = vmatprep.subr.msk.bf16.mxu1 %vm2744_vm1, %v10464_v4 }
 0x2b1   :  { %8458 = vmatpush3.bf16.xpose.msra.mxu0 %v3120_v12  ;;  %v10614_v15 = vpop.f32.mrb[69].mxu1  ;;  %v3209_v12 = vsel %vm2744_vm1, %v10488_v53, 0 }
 0x2b2   :  { %v10616_v54 = vpop.f32.mrb[76].mxu0  ;;  %8794 = vmatprep.subr.msk.bf16.mxu0 %vm2744_vm1, %v10448_v14  ;;  %v10620_v63 = vpop.f32.mrb[70].mxu1 }
 0x2b3   :  { %v10622_v38 = vpop.f32.mrb[77].mxu0  ;;  %v10626_v29 = vpop.f32.mrb[71].mxu1 }
 0x2b4   :  { %v10628_v18 = vpop.f32.mrb[78].mxu0 }
 0x2b5   :  { %v10634_v33 = vpop.f32.mrb[79].mxu0 }
 0x2b6   :  { %8450 = vmatmul.mubr.msk.bf16.gmra.mrb[108].mxu1 %vm2744_vm1, %v13437_v32 }
 0x2b7   :  { %8472 = vmatpush3.bf16.xpose.msra.mxu1 %v3206_v56  ;;  %8477 = vmatprep.mubr.msk.bf16.mxu1 %vm2744_vm1, %v13438_v55 }
 0x2b8   :  { %v10650_v39 = vpop.f32.mrb[72].mxu1  ;;  %8797 = vmatprep.subr.msk.bf16.mxu1 %vm2744_vm1, %v10488_v53  ;;  %v13440_v53 = vpack.c.bf16 %v10334_v49, %v10320_v0 }
 0x2b9   :  { %8460 = vmatpush3.bf16.xpose.msra.mxu0 %v3123_v8  ;;  %v10654_v4 = vpop.f32.mrb[73].mxu1 }
 0x2ba   :  { %v10656_v34 = vpop.f32.mrb[80].mxu0  ;;  %8799 = vmatprep.subr.msk.bf16.mxu0 %vm2744_vm1, %v10471_v11  ;;  %v10660_v40 = vpop.f32.mrb[74].mxu1  ;;  %v3295_v11 = vsel %vm2744_vm1, %v10468_v3, 0 }
 0x2bb   :  { %v10662_v51 = vpop.f32.mrb[81].mxu0  ;;  %v10666_v14 = vpop.f32.mrb[75].mxu1 }
 0x2bc   :  { %v10668_v32 = vpop.f32.mrb[82].mxu0 }
 0x2bd   :  { %v10674_v56 = vpop.f32.mrb[83].mxu0 }
 0x2bf   :  { %8474 = vmatpush3.bf16.xpose.msra.mxu1 %v3209_v12 }
 0x2c0   :  { %8462 = vmatmul.mubr.msk.bf16.vlgmr.msra.gmra.mrb[112].mxu0 %vm2744_vm1, %v13439_v16  ;;  %v10686_v55 = vpop.f32.mrb[76].mxu1  ;;  %8798 = vmatprep.subr.msk.bf16.mxu1 %vm2744_vm1, %v10486_v47  ;;  %v13444_v47 = vpack.c.bf16 %v10358_v24, %v10346_v48  ;;  %v3298_v48 = vsel %vm2744_vm1, %v10494_v44, 0 }
 0x2c1   :  { %8465 = vmatprep.mubr.msk.bf16.mxu0 %vm2744_vm1, %v13440_v53  ;;  %8486 = vmatpush3.bf16.xpose.msra.mxu0 %v3292_v28  ;;  %v10694_v12 = vpop.f32.mrb[77].mxu1 }
 0x2c2   :  { %v10696_v8 = vpop.f32.mrb[84].mxu0  ;;  %8800 = vmatprep.subr.msk.bf16.mxu0 %vm2744_vm1, %v10468_v3  ;;  %v10700_v22 = vpop.f32.mrb[78].mxu1  ;;  %v13449_v3 = vpack.c.bf16 %v10344_v52, %v10338_v50 }
 0x2c3   :  { %13441 = vst [vmem:[#allocation19_spill] sm:$0xff] %v10696_v8  ;;  %v10702_v30 = vpop.f32.mrb[85].mxu0  ;;  %v10706_v16 = vpop.f32.mrb[79].mxu1  ;;  %v13452_v8 = vpack.c.bf16 %v13450_v6, %v13451_v60 }
 0x2c4   :  { %v10708_v0 = vpop.f32.mrb[86].mxu0 }
 0x2c5   :  { %13442 = vst [vmem:[#allocation20_spill] sm:$0xff] %v10708_v0  ;;  %v10714_v53 = vpop.f32.mrb[87].mxu0  ;;  %v13473_v0 = vld [vmem:[#allocation6_spill] sm:$0xff] }
 0x2c7   :  { %8476 = vmatpush3.bf16.xpose.msra.mxu1 %v3212_v46 }
 0x2c8   :  { %8466 = vmatmul.mubr.msk.bf16.gmra.mrb[116].mxu0 %vm2744_vm1, %v13443_v1  ;;  %v10726_v49 = vpop.f32.mrb[80].mxu1  ;;  %8803 = vmatprep.subr.msk.bf16.mxu1 %vm2744_vm1, %v10518_v43 }
 0x2c9   :  { %8488 = vmatpush3.bf16.xpose.msra.mxu0 %v3295_v11  ;;  %8493 = vmatprep.mubr.msk.bf16.mxu0 %vm2744_vm1, %v13444_v47  ;;  %v10734_v46 = vpop.f32.mrb[81].mxu1 }
 0x2ca   :  { %v10736_v28 = vpop.f32.mrb[88].mxu0  ;;  %8801 = vmatprep.subr.msk.bf16.mxu0 %vm2744_vm1, %v10494_v44  ;;  %v10740_v20 = vpop.f32.mrb[82].mxu1  ;;  %v13458_v44 = vld [vmem:[#allocation4_spill] sm:$0xff] }
 0x2cb   :  { %13445 = vst [vmem:[#allocation21_spill] sm:$0xff] %v10736_v28  ;;  %v10742_v42 = vpop.f32.mrb[89].mxu0  ;;  %v10746_v1 = vpop.f32.mrb[83].mxu1 }
 0x2cc   :  { %13446 = vst [vmem:[#allocation22_spill] sm:$0xff] %v10742_v42  ;;  %v10748_v11 = vpop.f32.mrb[90].mxu0 }
 0x2cd   :  { %13447 = vst [vmem:[#allocation23_spill] sm:$0xff] %v10748_v11  ;;  %v10754_v47 = vpop.f32.mrb[91].mxu0  ;;  %v13457_v11 = vld [vmem:[#allocation7_spill] sm:$0xff] }
 0x2ce   :  { %13448 = vst [vmem:[#allocation24_spill] sm:$0xff] %v10754_v47  ;;  %8478 = vmatmul.mubr.msk.bf16.vlgmr.msra.gmra.mrb[112].mxu1 %vm2744_vm1, %v13449_v3  ;;  %v13459_v42 = vpack.c.bf16 %v13457_v11, %v13458_v44  ;;  %v13460_v47 = vld [vmem:[#allocation15_spill] sm:$0xff]  ;;  %v13461_v3 = vld [vmem:[#allocation13_spill] sm:$0xff] }
 0x2cf   :  { %8481 = vmatprep.mubr.msk.bf16.mxu1 %vm2744_vm1, %v13452_v8  ;;  %8502 = vmatpush3.bf16.xpose.msra.mxu1 %v3381_v9  ;;  %v8905_v8 = vld [vmem:[%s13285_s6] sm:$0xff]   ;;  %v8906_v44 = vld [vmem:[%s13285_s6 + $0x8] sm:$0xff]  }
 0x2d0   :  { %v10770_v24 = vpop.f32.mrb[84].mxu1  ;;  %8804 = vmatprep.subr.msk.bf16.mxu1 %vm2744_vm1, %v10514_v25  ;;  %v3301_v25 = vsel %vm2744_vm1, %v10490_v17, 0 }
 0x2d1   :  { %8490 = vmatpush3.bf16.xpose.msra.mxu0 %v3298_v48  ;;  %v10774_v43 = vpop.f32.mrb[85].mxu1 }
 0x2d2   :  { %v10776_v50 = vpop.f32.mrb[92].mxu0  ;;  %8802 = vmatprep.subr.msk.bf16.mxu0 %vm2744_vm1, %v10490_v17  ;;  %v10780_v52 = vpop.f32.mrb[86].mxu1  ;;  %v3387_v17 = vsel %vm2744_vm1, %v10550_v41, 0 }
 0x2d3   :  { %13453 = vst [vmem:[#allocation9_spill] sm:$0xff] %v10776_v50  ;;  %v10782_v6 = vpop.f32.mrb[93].mxu0  ;;  %v10786_v60 = vpop.f32.mrb[87].mxu1  ;;  %v13462_v50 = vpack.c.bf16 %v13460_v47, %v13461_v3  ;;  %v13466_v3 = vld [vmem:[#allocation3_spill] sm:$0xff] }
 0x2d4   :  { %13454 = vst [vmem:[#allocation5_spill] sm:$0xff] %v10782_v6  ;;  %v10788_v9 = vpop.f32.mrb[94].mxu0 }
 0x2d5   :  { %13455 = vst [vmem:[#allocation25_spill] sm:$0xff] %v10788_v9  ;;  %v10794_v48 = vpop.f32.mrb[95].mxu0 }
 0x2d6   :  { %13456 = vst [vmem:[#allocation26_spill] sm:$0xff] %v10794_v48  ;;  %8482 = vmatmul.mubr.msk.bf16.gmra.mrb[116].mxu1 %vm2744_vm1, %v13459_v42 }
 0x2d7   :  { %8504 = vmatpush3.bf16.xpose.msra.mxu1 %v3384_v19  ;;  %8509 = vmatprep.mubr.msk.bf16.mxu1 %vm2744_vm1, %v13462_v50  ;;  %v13469_v19 = vld [vmem:[#allocation11_spill] sm:$0xff]  ;;  %v13470_v50 = vld [vmem:[#allocation8_spill] sm:$0xff] }
 0x2d8   :  { %v10813_v9 = vpop.f32.mrb[88].mxu1  ;;  %8805 = vmatprep.subr.msk.bf16.mxu1 %vm2744_vm1, %v10550_v41  ;;  %v13471_v48 = vpack.c.bf16 %v13469_v19, %v13470_v50  ;;  %v13484_v50 = vld [vmem:[#allocation16_spill] sm:$0xff] }
 0x2d9   :  { %13463 = vst [vmem:[#allocation7_spill] sm:$0xff] %v10813_v9  ;;  %8492 = vmatpush3.bf16.xpose.msra.mxu0 %v3301_v25  ;;  %v10817_v42 = vpop.f32.mrb[89].mxu1  ;;  %v13467_v25 = vld [vmem:[#allocation2_spill] sm:$0xff] }
 0x2da   :  { %13464 = vst [vmem:[#allocation4_spill] sm:$0xff] %v10817_v42  ;;  %v10819_v11 = vpop.f32.mrb[90].mxu1  ;;  %8517 = vmatprep.subr.bf16.mxu0 %v8905_v8  ;;  %v13468_v28 = vpack.c.bf16 %v13466_v3, %v13467_v25  ;;  %v3390_v25 = vsel %vm2744_vm1, %v10546_v62, 0 }
 0x2db   :  { %13465 = vst [vmem:[#allocation15_spill] sm:$0xff] %v10819_v11  ;;  %v10823_v47 = vpop.f32.mrb[91].mxu1  ;;  %v13472_v11 = vld [vmem:[#allocation10_spill] sm:$0xff] }
 0x2dc   :  { %v13474_v42 = vpack.c.bf16 %v13472_v11, %v13473_v0  ;;  %v13479_v0 = vld [vmem:[#allocation17_spill] sm:$0xff]  ;;  %v13483_v11 = vld [vmem:[#allocation18_spill] sm:$0xff] }
 0x2df   :  { %8506 = vmatpush3.bf16.xpose.msra.mxu1 %v3387_v17 }
 0x2e0   :  { %8494 = vmatmul.mubr.msk.bf16.vlgmr.msra.gmra.mrb[120].mxu0 %vm2744_vm1, %v13468_v28  ;;  %v10836_v6 = vpop.f32.mrb[92].mxu1  ;;  %8806 = vmatprep.subr.msk.bf16.mxu1 %vm2744_vm1, %v10546_v62  ;;  %v8907_v62 = vld [vmem:[%s13285_s6 + $0x10] sm:$0xff]  }
 0x2e1   :  { %8497 = vmatprep.mubr.msk.bf16.mxu0 %vm2744_vm1, %v13471_v48  ;;  %v2665_v41 = vpop.f32.mrb[93].mxu1  ;;  %8518 = vmatpush3.bf16.msra.mxu0 %v8905_v8  ;;  %v13475_v8 = vpack.c.bf16 %v10522_v59, %v10512_v35  ;;  %v13477_v48 = vld [vmem:[#allocation12_spill] sm:$0xff]  ;;  %v13481_v35 = vpack.c.bf16 %v10516_v37, %v10508_v10  ;;  %v13482_v59 = vpack.c.bf16 %v10554_v21, %v10544_v58  ;;  %v8910_v58 = vld [vmem:[%s13285_s6 + $0x28] sm:$0xff]  }
 0x2e2   :  { %v10844_v9 = vpop.f32.mrb[94].mxu1  ;;  %8527 = vmatprep.subr.bf16.mxu0 %v8906_v44  ;;  %v13487_v10 = vpack.c.bf16 %v10548_v26, %v10540_v45  ;;  %v13488_v37 = vpack.c.bf16 %v10586_v36, %v10574_v31  ;;  %v13489_v21 = vpack.c.bf16 %v10620_v63, %v10610_v27  ;;  %v8909_v45 = vld [vmem:[%s13285_s6 + $0x20] sm:$0xff]   ;;  %v13490_v26 = vpack.c.bf16 %v10666_v14, %v10654_v4  ;;  %v8912_v27 = vld [vmem:[%s13285_s6 + $0x38] sm:$0xff]   ;;  %v13506_v4 = vld [vmem:[#allocation4_spill] sm:$0xff] }
 0x2e3   :  { %v4192_v17 = vpack.c.bf16 %v10844_v9, %v10836_v6  ;;  %v2668_v3 = vpop.f32.mrb[95].mxu1  ;;  %v8908_v6 = vld [vmem:[%s13285_s6 + $0x18] sm:$0xff]   ;;  %v13476_v9 = vld [vmem:[#allocation14_spill] sm:$0xff]  ;;  %v13491_v31 = vpack.c.bf16 %v10580_v7, %v10566_v5  ;;  %v13492_v36 = vpack.c.bf16 %v10594_v61, %v10582_v13  ;;  %v8911_v5 = vld [vmem:[%s13285_s6 + $0x30] sm:$0xff]   ;;  %v13494_v7 = vpack.c.bf16 %v10706_v16, %v10694_v12 }
 0x2e4   :  { %v4191_v28 = vpack.c.bf16 %v2668_v3, %v2665_v41  ;;  %v13478_v19 = vpack.c.bf16 %v13476_v9, %v13477_v48  ;;  %v13485_v41 = vpack.c.bf16 %v13483_v11, %v13484_v50  ;;  %v13495_v13 = vpack.c.bf16 %v10588_v57, %v10576_v23  ;;  %v13514_v12 = vld [vmem:[#allocation15_spill] sm:$0xff] }
 0x2e5   :  { %v13497_v61 = vpack.c.bf16 %v10700_v22, %v10686_v55  ;;  %v13498_v63 = vpack.c.bf16 %v10746_v1, %v10734_v46  ;;  %v13499_v23 = vpack.c.bf16 %v10628_v18, %v10616_v54  ;;  %v13500_v57 = vpack.c.bf16 %v10674_v56, %v10662_v51  ;;  %v13508_v51 = vld [vmem:[#allocation20_spill] sm:$0xff]  ;;  %v13512_v55 = vld [vmem:[#allocation22_spill] sm:$0xff]  ;;  %v13515_v22 = vld [vmem:[#allocation7_spill] sm:$0xff] }
 0x2e6   :  { %v13503_v54 = vpack.c.bf16 %v10668_v32, %v10656_v34  ;;  %v13504_v18 = vpack.c.bf16 %v10714_v53, %v10702_v30  ;;  %v13509_v34 = vld [vmem:[#allocation19_spill] sm:$0xff]  ;;  %v13511_v32 = vld [vmem:[#allocation24_spill] sm:$0xff]  ;;  %v13516_v30 = vpack.c.bf16 %v13514_v12, %v13515_v22  ;;  %v13520_v46 = vld [vmem:[#allocation26_spill] sm:$0xff] }
 0x2e7   :  { %8508 = vmatpush3.bf16.xpose.msra.mxu1 %v3390_v25  ;;  %v13510_v14 = vpack.c.bf16 %v13508_v51, %v13509_v34  ;;  %v13513_v56 = vpack.c.bf16 %v13511_v32, %v13512_v55  ;;  %v13517_v16 = vld [vmem:[#allocation23_spill] sm:$0xff] }
 0x2e8   :  { %8498 = vmatmul.mubr.msk.bf16.gmra.mrb[124].mxu0 %vm2744_vm1, %v13474_v42  ;;  %8725 = vmatprep.subr.bf16.mxu1 %v8906_v44  ;;  %v13480_v42 = vpack.c.bf16 %v10409_v2, %v13479_v0  ;;  %v13486_v2 = vpack.c.bf16 %v10626_v29, %v10614_v15  ;;  %v13493_v15 = vpack.c.bf16 %v10660_v40, %v10650_v39 }
 0x2e9   :  { %8519 = vmatprep.mubr.msk.bf16.mxu0 %vm2744_vm1, %v13475_v8  ;;  %v13496_v39 = vpack.c.bf16 %v10634_v33, %v10622_v38  ;;  %v13501_v38 = vpack.c.bf16 %v10740_v20, %v10726_v49  ;;  %v13502_v29 = vpack.c.bf16 %v10786_v60, %v10774_v43  ;;  %v13505_v33 = vpack.c.bf16 %v10780_v52, %v10770_v24  ;;  %v13518_v49 = vld [vmem:[#allocation21_spill] sm:$0xff] }
 0x2ea   :  { %v13507_v40 = vpack.c.bf16 %v10823_v47, %v13506_v4  ;;  %v13519_v53 = vpack.c.bf16 %v13517_v16, %v13518_v49  ;;  %v13521_v20 = vld [vmem:[#allocation5_spill] sm:$0xff] }
 0x2eb   :  { %v13522_v1 = vpack.c.bf16 %v13520_v46, %v13521_v20  ;;  %v13523_v24 = vld [vmem:[#allocation25_spill] sm:$0xff] }
 0x2ec   :  { %v13524_v43 = vld [vmem:[#allocation9_spill] sm:$0xff] }
 0x2ed   :  { %v13525_v52 = vpack.c.bf16 %v13523_v24, %v13524_v43 }
 0x2ee   :  { %8510 = vmatmul.mubr.msk.bf16.vlgmr.msra.gmra.mrb[120].mxu1 %vm2744_vm1, %v13478_v19 }
 0x2ef   :  { %8513 = vmatprep.mubr.msk.bf16.mxu1 %vm2744_vm1, %v13480_v42  ;;  %8726 = vmatpush3.bf16.msra.mxu1 %v8906_v44 }
 0x2f0   :  { %8520 = vmatmul.mubr.msk.bf16.vlgmr.msra.gmra.mrb[128].mxu0 %vm2744_vm1, %v13481_v35  ;;  %8547 = vmatprep.subr.bf16.mxu1 %v8908_v6 }
 0x2f1   :  { %8523 = vmatprep.mubr.msk.bf16.mxu0 %vm2744_vm1, %v13482_v59  ;;  %8528 = vmatpush3.bf16.msra.mxu0 %v8906_v44 }
 0x2f2   :  { %8537 = vmatprep.subr.bf16.mxu0 %v8907_v62 }
 0x2f6   :  { %8514 = vmatmul.mubr.msk.bf16.gmra.mrb[124].mxu1 %vm2744_vm1, %v13485_v41 }
 0x2f7   :  { %8533 = vmatprep.mubr.msk.bf16.mxu1 %vm2744_vm1, %v13486_v2 }
 0x2f8   :  { %8524 = vmatmul.mubr.msk.bf16.gmra.mrb[132].mxu0 %vm2744_vm1, %v13487_v10 }
 0x2f9   :  { %8529 = vmatprep.mubr.msk.bf16.mxu0 %vm2744_vm1, %v13488_v37 }
 0x2fe   :  { %8534 = vmatmul.mubr.msk.bf16.vlgmr.msra.gmra.mrb[128].mxu1 %vm2744_vm1, %v13489_v21 }
 0x2ff   :  { %8549 = vmatprep.mubr.msk.bf16.mxu1 %vm2744_vm1, %v13490_v26  ;;  %8548 = vmatpush3.bf16.msra.mxu1 %v8908_v6 }
 0x300   :  { %8530 = vmatmul.mubr.msk.bf16.vlgmr.msra.gmra.mrb[136].mxu0 %vm2744_vm1, %v13491_v31  ;;  %8567 = vmatprep.subr.bf16.mxu1 %v8910_v58 }
 0x301   :  { %8539 = vmatprep.mubr.msk.bf16.mxu0 %vm2744_vm1, %v13492_v36  ;;  %8538 = vmatpush3.bf16.msra.mxu0 %v8907_v62 }
 0x302   :  { %8557 = vmatprep.subr.bf16.mxu0 %v8909_v45 }
 0x306   :  { %8550 = vmatmul.mubr.msk.bf16.vlgmr.msra.gmra.mrb[132].mxu1 %vm2744_vm1, %v13493_v15 }
 0x307   :  { %8553 = vmatprep.mubr.msk.bf16.mxu1 %vm2744_vm1, %v13494_v7  ;;  %8568 = vmatpush3.bf16.msra.mxu1 %v8910_v58 }
 0x308   :  { %8540 = vmatmul.mubr.msk.bf16.vlgmr.msra.gmra.mrb[140].mxu0 %vm2744_vm1, %v13495_v13  ;;  %8587 = vmatprep.subr.bf16.mxu1 %v8912_v27 }
 0x309   :  { %8543 = vmatprep.mubr.msk.bf16.mxu0 %vm2744_vm1, %v13496_v39  ;;  %8558 = vmatpush3.bf16.msra.mxu0 %v8909_v45 }
 0x30a   :  { %8577 = vmatprep.subr.bf16.mxu0 %v8911_v5 }
 0x30e   :  { %8554 = vmatmul.mubr.msk.bf16.gmra.mrb[136].mxu1 %vm2744_vm1, %v13497_v61 }
 0x30f   :  { %8569 = vmatprep.mubr.msk.bf16.mxu1 %vm2744_vm1, %v13498_v63 }
 0x310   :  { %8544 = vmatmul.mubr.msk.bf16.gmra.mrb[144].mxu0 %vm2744_vm1, %v13499_v23 }
 0x311   :  { %8559 = vmatprep.mubr.msk.bf16.mxu0 %vm2744_vm1, %v13500_v57 }
 0x316   :  { %8570 = vmatmul.mubr.msk.bf16.vlgmr.msra.gmra.mrb[140].mxu1 %vm2744_vm1, %v13501_v38 }
 0x317   :  { %8573 = vmatprep.mubr.msk.bf16.mxu1 %vm2744_vm1, %v13502_v29  ;;  %8588 = vmatpush3.bf16.msra.mxu1 %v8912_v27 }
 0x318   :  { %8560 = vmatmul.mubr.msk.bf16.vlgmr.msra.gmra.mrb[148].mxu0 %vm2744_vm1, %v13503_v54 }
 0x319   :  { %8563 = vmatprep.mubr.msk.bf16.mxu0 %vm2744_vm1, %v13504_v18  ;;  %8578 = vmatpush3.bf16.msra.mxu0 %v8911_v5 }
 0x31e   :  { %8574 = vmatmul.mubr.msk.bf16.gmra.mrb[144].mxu1 %vm2744_vm1, %v13505_v33 }
 0x31f   :  { %8589 = vmatprep.mubr.msk.bf16.mxu1 %vm2744_vm1, %v13507_v40 }
 0x320   :  { %8564 = vmatmul.mubr.msk.bf16.gmra.mrb[152].mxu0 %vm2744_vm1, %v13510_v14 }
 0x321   :  { %8579 = vmatprep.mubr.msk.bf16.mxu0 %vm2744_vm1, %v13513_v56 }
 0x326   :  { %8590 = vmatmul.mubr.msk.bf16.vlgmr.msra.gmra.mrb[148].mxu1 %vm2744_vm1, %v13516_v30 }
 0x327   :  { %8593 = vmatprep.mubr.msk.bf16.mxu1 %vm2744_vm1, %v4191_v28 }
 0x328   :  { %8580 = vmatmul.mubr.msk.bf16.vlgmr.msra.gmra.mrb[156].mxu0 %vm2744_vm1, %v13519_v53 }
 0x329   :  { %8583 = vmatprep.mubr.msk.bf16.mxu0 %vm2744_vm1, %v13522_v1 }
 0x32e   :  { %8594 = vmatmul.mubr.msk.bf16.gmra.mrb[152].mxu1 %vm2744_vm1, %v4192_v17 }
 0x330   :  { %8584 = vmatmul.mubr.msk.bf16.gmra.mrb[160].mxu0 %vm2744_vm1, %v13525_v52 }
 0x353   :  { %v11006_v60 = vpop.f32.mrb[96].mxu0 }
 0x354   :  { %v11008_v47 = vpop.f32.mrb[97].mxu0  ;;  %v3463_v44 = vsel %vm66_vm0, %v11006_v60, -inf }
 0x355   :  { %3464 = vmax.xlane.f32.xlu0 %v3463_v44  ;;  %v11012_v3 = vpop.f32.mrb[98].mxu0  ;;  %v3457_v59 = vsel %vm66_vm0, %v11008_v47, -inf }
 0x356   :  { %v11014_v28 = vpop.f32.mrb[99].mxu0  ;;  %v3466_v17 = vsel %vm66_vm0, %v11012_v3, -inf }
 0x357   :  { %3467 = vmax.xlane.f32.xlu1 %v3466_v17  ;;  %v3460_v11 = vsel %vm66_vm0, %v11014_v28, -inf }
 0x35b   :  { %v11018_v25 = vpop.f32.mrb[100].mxu0 }
 0x35c   :  { %v11020_v8 = vpop.f32.mrb[101].mxu0  ;;  %v3475_v21 = vsel %vm66_vm0, %v11018_v25, -inf }
 0x35d   :  { %v11022_v6 = vpop.f32.mrb[102].mxu0  ;;  %v3469_v7 = vsel %vm66_vm0, %v11020_v8, -inf }
 0x35e   :  { %v11024_v9 = vpop.f32.mrb[103].mxu0  ;;  %v3478_v45 = vsel %vm66_vm0, %v11022_v6, -inf }
 0x35f   :  { %v3472_v13 = vsel %vm66_vm0, %v11024_v9, -inf }
 0x361   :  { %v11026_v48 = vpop.f32.mrb[96].mxu1 }
 0x362   :  { %v11028_v19 = vpop.f32.mrb[97].mxu1  ;;  %v3487_v62 = vsel %vm66_vm0, %v11026_v48, -inf }
 0x363   :  { %3488 = vmax.xlane.f32.xlu0 %v3487_v62  ;;  %v11032_v0 = vpop.f32.mrb[98].mxu1  ;;  %v3481_v2 = vsel %vm66_vm0, %v11028_v19, -inf }
 0x364   :  { %v11034_v42 = vpop.f32.mrb[99].mxu1  ;;  %v3490_v35 = vsel %vm66_vm0, %v11032_v0, -inf }
 0x365   :  { %3491 = vmax.xlane.f32.xlu1 %v3490_v35  ;;  %v3484_v58 = vsel %vm66_vm0, %v11034_v42, -inf }
 0x367   :  { %3458 = vmax.xlane.f32.xlu0 %v3457_v59 }
 0x369   :  { %3461 = vmax.xlane.f32.xlu1 %v3460_v11  ;;  %v11042_v50 = vpop.f32.mrb[100].mxu1 }
 0x36a   :  { %v11044_v41 = vpop.f32.mrb[101].mxu1  ;;  %v3499_v26 = vsel %vm66_vm0, %v11042_v50, -inf }
 0x36b   :  { %3482 = vmax.xlane.f32.xlu0 %v3481_v2  ;;  %v11048_v10 = vpop.f32.mrb[102].mxu1  ;;  %v3493_v39 = vsel %vm66_vm0, %v11044_v41, -inf }
 0x36c   :  { %v11050_v37 = vpop.f32.mrb[103].mxu1  ;;  %v3502_v27 = vsel %vm66_vm0, %v11048_v10, -inf }
 0x36d   :  { %3485 = vmax.xlane.f32.xlu1 %v3484_v58  ;;  %v3496_v23 = vsel %vm66_vm0, %v11050_v37, -inf }
 0x36f   :  { %3476 = vmax.xlane.f32.xlu0 %v3475_v21 }
 0x371   :  { %3479 = vmax.xlane.f32.xlu1 %v3478_v45 }
 0x373   :  { %v11060_v31 = vpop.f32.mrb[104].mxu0  ;;  %3500 = vmax.xlane.f32.xlu0 %v3499_v26 }
 0x374   :  { %v11062_v36 = vpop.f32.mrb[105].mxu0  ;;  %v3511_v29 = vsel %vm66_vm0, %v11060_v31, -inf }
 0x375   :  { %v11066_v15 = vpop.f32.mrb[106].mxu0  ;;  %3503 = vmax.xlane.f32.xlu1 %v3502_v27  ;;  %v3505_v14 = vsel %vm66_vm0, %v11062_v36, -inf }
 0x376   :  { %v11068_v5 = vpop.f32.mrb[107].mxu0  ;;  %v3514_v54 = vsel %vm66_vm0, %v11066_v15, -inf }
 0x377   :  { %3470 = vmax.xlane.f32.xlu0 %v3469_v7  ;;  %v3508_v32 = vsel %vm66_vm0, %v11068_v5, -inf }
 0x379   :  { %3473 = vmax.xlane.f32.xlu1 %v3472_v13 }
 0x37b   :  { %v11076_v61 = vpop.f32.mrb[108].mxu0  ;;  %3494 = vmax.xlane.f32.xlu0 %v3493_v39 }
 0x37c   :  { %v11078_v63 = vpop.f32.mrb[109].mxu0  ;;  %v3523_v49 = vsel %vm66_vm0, %v11076_v61, -inf }
 0x37d   :  { %v11082_v57 = vpop.f32.mrb[110].mxu0  ;;  %3497 = vmax.xlane.f32.xlu1 %v3496_v23  ;;  %v3517_v44 = vsel %vm66_vm0, %v11078_v63, -inf }
 0x37e   :  { %v11084_v38 = vpop.f32.mrb[111].mxu0  ;;  %v3526_v53 = vsel %vm66_vm0, %v11082_v57, -inf }
 0x37f   :  { %3512 = vmax.xlane.f32.xlu0 %v3511_v29  ;;  %v3520_v17 = vsel %vm66_vm0, %v11084_v38, -inf }
 0x381   :  { %3515 = vmax.xlane.f32.xlu1 %v3514_v54  ;;  %v11090_v18 = vpop.f32.mrb[104].mxu1 }
 0x382   :  { %v11092_v33 = vpop.f32.mrb[105].mxu1  ;;  %v3535_v4 = vsel %vm66_vm0, %v11090_v18, -inf }
 0x383   :  { %3536 = vmax.xlane.f32.xlu0 %v3535_v4  ;;  %v11096_v40 = vpop.f32.mrb[106].mxu1  ;;  %v3529_v12 = vsel %vm66_vm0, %v11092_v33, -inf }
 0x384   :  { %v11098_v51 = vpop.f32.mrb[107].mxu1  ;;  %v3538_v34 = vsel %vm66_vm0, %v11096_v40, -inf }
 0x385   :  { %3539 = vmax.xlane.f32.xlu1 %v3538_v34  ;;  %v3532_v16 = vsel %vm66_vm0, %v11098_v51, -inf }
 0x387   :  { %3506 = vmax.xlane.f32.xlu0 %v3505_v14 }
 0x389   :  { %3509 = vmax.xlane.f32.xlu1 %v3508_v32  ;;  %v11106_v55 = vpop.f32.mrb[108].mxu1 }
 0x38a   :  { %v11108_v56 = vpop.f32.mrb[109].mxu1  ;;  %v3547_v46 = vsel %vm66_vm0, %v11106_v55, -inf }
 0x38b   :  { %3530 = vmax.xlane.f32.xlu0 %v3529_v12  ;;  %v11112_v22 = vpop.f32.mrb[110].mxu1  ;;  %v3541_v62 = vsel %vm66_vm0, %v11108_v56, -inf }
 0x38c   :  { %v11114_v30 = vpop.f32.mrb[111].mxu1  ;;  %v3550_v24 = vsel %vm66_vm0, %v11112_v22, -inf }
 0x38d   :  { %3533 = vmax.xlane.f32.xlu1 %v3532_v16  ;;  %v3544_v11 = vsel %vm66_vm0, %v11114_v30, -inf }
 0x38f   :  { %3524 = vmax.xlane.f32.xlu0 %v3523_v49 }
 0x391   :  { %3527 = vmax.xlane.f32.xlu1 %v3526_v53 }
 0x393   :  { %v11124_v20 = vpop.f32.mrb[112].mxu0  ;;  %3548 = vmax.xlane.f32.xlu0 %v3547_v46 }
 0x394   :  { %v11126_v1 = vpop.f32.mrb[113].mxu0  ;;  %v3559_v21 = vsel %vm66_vm0, %v11124_v20, -inf }
 0x395   :  { %v11130_v43 = vpop.f32.mrb[114].mxu0  ;;  %3551 = vmax.xlane.f32.xlu1 %v3550_v24  ;;  %v3553_v29 = vsel %vm66_vm0, %v11126_v1, -inf }
 0x396   :  { %v11132_v52 = vpop.f32.mrb[115].mxu0  ;;  %v3562_v45 = vsel %vm66_vm0, %v11130_v43, -inf }
 0x397   :  { %3518 = vmax.xlane.f32.xlu0 %v3517_v44  ;;  %v3556_v54 = vsel %vm66_vm0, %v11132_v52, -inf }
 0x399   :  { %3521 = vmax.xlane.f32.xlu1 %v3520_v17 }
 0x39b   :  { %v11140_v35 = vpop.f32.mrb[116].mxu0  ;;  %3542 = vmax.xlane.f32.xlu0 %v3541_v62 }
 0x39c   :  { %v11142_v59 = vpop.f32.mrb[117].mxu0  ;;  %v3571_v49 = vsel %vm66_vm0, %v11140_v35, -inf }
 0x39d   :  { %v11146_v2 = vpop.f32.mrb[118].mxu0  ;;  %3545 = vmax.xlane.f32.xlu1 %v3544_v11 }
 0x39e   :  { %v11148_v58 = vpop.f32.mrb[119].mxu0  ;;  %v3574_v53 = vsel %vm66_vm0, %v11146_v2, -inf }
 0x39f   :  { %3560 = vmax.xlane.f32.xlu0 %v3559_v21  ;;  %v3565_v21 = vsel %vm66_vm0, %v11142_v59, -inf }
 0x3a1   :  { %3563 = vmax.xlane.f32.xlu1 %v3562_v45  ;;  %v11154_v26 = vpop.f32.mrb[112].mxu1  ;;  %v3568_v45 = vsel %vm66_vm0, %v11148_v58, -inf }
 0x3a2   :  { %13526 = vst [vmem:[#allocation13_spill] sm:$0xff] %v11154_v26  ;;  %v11156_v27 = vpop.f32.mrb[113].mxu1  ;;  %v3583_v7 = vsel %vm66_vm0, %v11154_v26, -inf }
 0x3a3   :  { %13527 = vst [vmem:[#allocation3_spill] sm:$0xff] %v11156_v27  ;;  %3584 = vmax.xlane.f32.xlu0 %v3583_v7  ;;  %v11160_v13 = vpop.f32.mrb[114].mxu1  ;;  %v3577_v14 = vsel %vm66_vm0, %v11156_v27, -inf }
 0x3a4   :  { %13528 = vst [vmem:[#allocation2_spill] sm:$0xff] %v11160_v13  ;;  %v11162_v39 = vpop.f32.mrb[115].mxu1  ;;  %v3586_v23 = vsel %vm66_vm0, %v11160_v13, -inf }
 0x3a5   :  { %13529 = vst [vmem:[#allocation11_spill] sm:$0xff] %v11162_v39  ;;  %3587 = vmax.xlane.f32.xlu1 %v3586_v23  ;;  %v3580_v16 = vsel %vm66_vm0, %v11162_v39, -inf }
 0x3a7   :  { %3554 = vmax.xlane.f32.xlu0 %v3553_v29 }
 0x3a9   :  { %3557 = vmax.xlane.f32.xlu1 %v3556_v54  ;;  %v11170_v4 = vpop.f32.mrb[116].mxu1 }
 0x3aa   :  { %13530 = vst [vmem:[#allocation8_spill] sm:$0xff] %v11170_v4  ;;  %v11172_v34 = vpop.f32.mrb[117].mxu1  ;;  %v3595_v46 = vsel %vm66_vm0, %v11170_v4, -inf }
 0x3ab   :  { %13531 = vst [vmem:[#allocation10_spill] sm:$0xff] %v11172_v34  ;;  %3578 = vmax.xlane.f32.xlu0 %v3577_v14  ;;  %v11176_v32 = vpop.f32.mrb[118].mxu1  ;;  %v3589_v7 = vsel %vm66_vm0, %v11172_v34, -inf }
 0x3ac   :  { %13532 = vst [vmem:[#allocation6_spill] sm:$0xff] %v11176_v32  ;;  %v11178_v12 = vpop.f32.mrb[119].mxu1  ;;  %v3598_v17 = vsel %vm66_vm0, %v11176_v32, -inf }
 0x3ad   :  { %13533 = vst [vmem:[#allocation14_spill] sm:$0xff] %v11178_v12  ;;  %3581 = vmax.xlane.f32.xlu1 %v3580_v16  ;;  %v3592_v54 = vsel %vm66_vm0, %v11178_v12, -inf }
 0x3af   :  { %3572 = vmax.xlane.f32.xlu0 %v3571_v49 }
 0x3b1   :  { %3575 = vmax.xlane.f32.xlu1 %v3574_v53 }
 0x3b3   :  { %v11188_v24 = vpop.f32.mrb[120].mxu0  ;;  %3596 = vmax.xlane.f32.xlu0 %v3595_v46 }
 0x3b4   :  { %v11190_v44 = vpop.f32.mrb[121].mxu0  ;;  %v3607_v49 = vsel %vm66_vm0, %v11188_v24, -inf }
 0x3b5   :  { %v11194_v62 = vpop.f32.mrb[122].mxu0  ;;  %3599 = vmax.xlane.f32.xlu1 %v3598_v17  ;;  %v3601_v34 = vsel %vm66_vm0, %v11190_v44, -inf }
 0x3b6   :  { %v11196_v11 = vpop.f32.mrb[123].mxu0  ;;  %v3610_v53 = vsel %vm66_vm0, %v11194_v62, -inf }
 0x3b7   :  { %13534 = vst [vmem:[#allocation12_spill] sm:$0xff] %v11196_v11  ;;  %3566 = vmax.xlane.f32.xlu0 %v3565_v21 }
 0x3b9   :  { %3569 = vmax.xlane.f32.xlu1 %v3568_v45 }
 0x3bb   :  { %v11204_v23 = vpop.f32.mrb[124].mxu0  ;;  %3590 = vmax.xlane.f32.xlu0 %v3589_v7 }
 0x3bc   :  { %13535 = vst [vmem:[#allocation17_spill] sm:$0xff] %v11204_v23  ;;  %v11206_v29 = vpop.f32.mrb[125].mxu0  ;;  %v3619_v39 = vsel %vm66_vm0, %v11204_v23, -inf }
 0x3bd   :  { %v11210_v14 = vpop.f32.mrb[126].mxu0  ;;  %3593 = vmax.xlane.f32.xlu1 %v3592_v54 }
 0x3be   :  { %13536 = vst [vmem:[#allocation18_spill] sm:$0xff] %v11210_v14  ;;  %v11212_v16 = vpop.f32.mrb[127].mxu0 }
 0x3bf   :  { %3608 = vmax.xlane.f32.xlu0 %v3607_v49 }
 0x3c1   :  { %3611 = vmax.xlane.f32.xlu1 %v3610_v53  ;;  %v11218_v46 = vpop.f32.mrb[120].mxu1 }
 0x3c2   :  { %13537 = vst [vmem:[#allocation16_spill] sm:$0xff] %v11218_v46  ;;  %v11220_v17 = vpop.f32.mrb[121].mxu1  ;;  %v3631_v21 = vsel %vm66_vm0, %v11218_v46, -inf }
 0x3c3   :  { %13538 = vst [vmem:[#allocation4_spill] sm:$0xff] %v11220_v17  ;;  %v8521_v45 = vpop.f32.mrb[128].mxu0  ;;  %3632 = vmax.xlane.f32.xlu0 %v3631_v21  ;;  %v11224_v7 = vpop.f32.mrb[122].mxu1  ;;  %v3604_v21 = vsel %vm66_vm0, %v11196_v11, -inf }
 0x3c4   :  { %13539 = vst [vmem:[#allocation20_spill] sm:$0xff] %v11224_v7  ;;  %v4261_v54 = vpop.f32.mrb[129].mxu0  ;;  %v11226_v32 = vpop.f32.mrb[123].mxu1  ;;  %v3634_v49 = vsel %vm66_vm0, %v11224_v7, -inf }
 0x3c5   :  { %13540 = vst [vmem:[#allocation19_spill] sm:$0xff] %v11226_v32  ;;  %v8522_v4 = vpop.f32.mrb[130].mxu0  ;;  %3635 = vmax.xlane.f32.xlu1 %v3634_v49  ;;  %v3625_v49 = vsel %vm66_vm0, %v11220_v17, -inf }
 0x3c6   :  { %v4906_v53 = vpack.c.bf16 %v8522_v4, %v8521_v45  ;;  %v4264_v12 = vpop.f32.mrb[131].mxu0 }
 0x3c7   :  { %v4905_v13 = vpack.c.bf16 %v4264_v12, %v4261_v54  ;;  %3602 = vmax.xlane.f32.xlu0 %v3601_v34  ;;  %v3628_v54 = vsel %vm66_vm0, %v11226_v32, -inf }
 0x3c9   :  { %8597 = vmatprep.subr.bf16.mxu0 %v4905_v13  ;;  %3605 = vmax.xlane.f32.xlu1 %v3604_v21  ;;  %v11234_v46 = vpop.f32.mrb[124].mxu1 }
 0x3ca   :  { %13541 = vst [vmem:[#allocation24_spill] sm:$0xff] %v11234_v46  ;;  %8598 = vmatpush3.bf16.msra.mxu0 %v4905_v13  ;;  %v11236_v26 = vpop.f32.mrb[125].mxu1  ;;  %v3643_v32 = vsel %vm66_vm0, %v11234_v46, -inf }
 0x3cb   :  { %v8525_v4 = vpop.f32.mrb[132].mxu0  ;;  %8599 = vmatprep.subr.bf16.mxu0 %v4906_v53  ;;  %3626 = vmax.xlane.f32.xlu0 %v3625_v49  ;;  %v11240_v45 = vpop.f32.mrb[126].mxu1  ;;  %v3622_v49 = vsel %vm66_vm0, %v11210_v14, -inf }
 0x3cc   :  { %13542 = vst [vmem:[#allocation22_spill] sm:$0xff] %v11240_v45  ;;  %v4277_v12 = vpop.f32.mrb[133].mxu0  ;;  %v11242_v34 = vpop.f32.mrb[127].mxu1 }
 0x3cd   :  { %13543 = vst [vmem:[#allocation15_spill] sm:$0xff] %v11242_v34  ;;  %v8526_v21 = vpop.f32.mrb[134].mxu0  ;;  %3629 = vmax.xlane.f32.xlu1 %v3628_v54 }
 0x3ce   :  { %v4908_v7 = vpack.c.bf16 %v8526_v21, %v8525_v4  ;;  %v4280_v13 = vpop.f32.mrb[135].mxu0  ;;  %8600 = vmatpush3.bf16.msra.mxu0 %v4906_v53 }
 0x3cf   :  { %v4907_v17 = vpack.c.bf16 %v4280_v13, %v4277_v12  ;;  %3620 = vmax.xlane.f32.xlu0 %v3619_v39  ;;  %v3646_v39 = vsel %vm66_vm0, %v11240_v45, -inf }
 0x3d1   :  { %8601 = vmatprep.subr.bf16.mxu0 %v4907_v17  ;;  %3623 = vmax.xlane.f32.xlu1 %v3622_v49  ;;  %v8535_v27 = vpop.f32.mrb[128].mxu1 }
 0x3d2   :  { %8602 = vmatpush3.bf16.msra.mxu0 %v4907_v17  ;;  %v4360_v11 = vpop.f32.mrb[129].mxu1  ;;  %v3613_v17 = vsel %vm66_vm0, %v11206_v29, -inf }
 0x3d3   :  { %v8531_v54 = vpop.f32.mrb[136].mxu0  ;;  %8603 = vmatprep.subr.bf16.mxu0 %v4908_v7  ;;  %3644 = vmax.xlane.f32.xlu0 %v3643_v32  ;;  %v8536_v53 = vpop.f32.mrb[130].mxu1  ;;  %v3616_v32 = vsel %vm66_vm0, %v11212_v16, -inf }
 0x3d4   :  { %v4344_v4 = vpop.f32.mrb[137].mxu0  ;;  %v4912_v21 = vpack.c.bf16 %v8536_v53, %v8535_v27  ;;  %v4363_v23 = vpop.f32.mrb[131].mxu1 }
 0x3d5   :  { %v8532_v12 = vpop.f32.mrb[138].mxu0  ;;  %v4911_v13 = vpack.c.bf16 %v4363_v23, %v4360_v11  ;;  %3647 = vmax.xlane.f32.xlu1 %v3646_v39  ;;  %v3637_v11 = vsel %vm66_vm0, %v11236_v26, -inf }
 0x3d6   :  { %v4910_v49 = vpack.c.bf16 %v8532_v12, %v8531_v54  ;;  %v4347_v14 = vpop.f32.mrb[139].mxu0  ;;  %8604 = vmatpush3.bf16.msra.mxu0 %v4908_v7 }
 0x3d7   :  { %v4909_v46 = vpack.c.bf16 %v4347_v14, %v4344_v4  ;;  %3614 = vmax.xlane.f32.xlu0 %v3613_v17  ;;  %v3640_v4 = vsel %vm66_vm0, %v11242_v34, -inf }
 0x3d9   :  { %8613 = vmatprep.subr.bf16.mxu1 %v4909_v46  ;;  %3617 = vmax.xlane.f32.xlu1 %v3616_v32  ;;  %v8551_v27 = vpop.f32.mrb[132].mxu1 }
 0x3da   :  { %8614 = vmatpush3.bf16.msra.mxu1 %v4909_v46  ;;  %v4510_v53 = vpop.f32.mrb[133].mxu1 }
 0x3db   :  { %v8541_v23 = vpop.f32.mrb[140].mxu0  ;;  %8615 = vmatprep.subr.bf16.mxu1 %v4910_v49  ;;  %3638 = vmax.xlane.f32.xlu0 %v3637_v11  ;;  %v8552_v7 = vpop.f32.mrb[134].mxu1 }
 0x3dc   :  { %v4427_v54 = vpop.f32.mrb[141].mxu0  ;;  %v11260_v39 = vpack.c.bf16 %v8552_v7, %v8551_v27  ;;  %v4513_v14 = vpop.f32.mrb[135].mxu1 }
 0x3dd   :  { %v8542_v12 = vpop.f32.mrb[142].mxu0  ;;  %v11264_v17 = vpack.c.bf16 %v4513_v14, %v4510_v53  ;;  %3641 = vmax.xlane.f32.xlu1 %v3640_v4 }
 0x3de   :  { %13544 = vst [vmem:[#allocation7_spill] sm:$0xff] %v11260_v39  ;;  %v11266_v46 = vpack.c.bf16 %v8542_v12, %v8541_v23  ;;  %v4430_v32 = vpop.f32.mrb[143].mxu0  ;;  %8616 = vmatpush3.bf16.msra.mxu1 %v4910_v49 }
 0x3df   :  { %v11268_v45 = vpack.c.bf16 %v4430_v32, %v4427_v54  ;;  %8617 = vmatprep.subr.bf16.mxu1 %v4911_v13 }
 0x3e0   :  { %13545 = vst [vmem:[#allocation23_spill] sm:$0xff] %v11266_v46 }
 0x3e1   :  { %13546 = vst [vmem:[#allocation21_spill] sm:$0xff] %v11268_v45  ;;  %8629 = vmatprep.subr.bf16.mxu0 %v11268_v45  ;;  %v8555_v11 = vpop.f32.mrb[136].mxu1 }
 0x3e2   :  { %8618 = vmatpush3.bf16.msra.mxu1 %v4911_v13  ;;  %v3465_v27 = vpop.xlane.xlu0 %3464  ;;  %v4526_v7 = vpop.f32.mrb[137].mxu1 }
 0x3e3   :  { %v3651_v39 = vsub.f32 %v11006_v60, %v3465_v27  ;;  %v8545_v34 = vpop.f32.mrb[144].mxu0  ;;  %8619 = vmatprep.subr.bf16.mxu1 %v4912_v21  ;;  %v8556_v53 = vpop.f32.mrb[138].mxu1 }
 0x3e4   :  { %v3468_v14 = vpop.xlane.xlu1 %3467  ;;  %v4443_v4 = vpop.f32.mrb[145].mxu0  ;;  %v11272_v23 = vpack.c.bf16 %v8556_v53, %v8555_v11 }
 0x3e5   :  { %v3717_v12 = vmul.f32 1.442695, %v3651_v39  ;;  %v3652_v49 = vsub.f32 %v11012_v3, %v3468_v14  ;;  %v8546_v54 = vpop.f32.mrb[146].mxu0  ;;  %v4529_v32 = vpop.f32.mrb[139].mxu1 }
 0x3e6   :  { %13547 = vst [vmem:[#allocation26_spill] sm:$0xff] %v11272_v23  ;;  %v11275_v46 = vpack.c.bf16 %v8546_v54, %v8545_v34  ;;  %v4446_v45 = vpop.f32.mrb[147].mxu0  ;;  %v11277_v13 = vpack.c.bf16 %v4529_v32, %v4526_v7  ;;  %8620 = vmatpush3.bf16.msra.mxu1 %v4912_v21 }
 0x3e7   :  { %8973 = vpow2.f32 %v3717_v12  ;;  %v3719_v60 = vmul.f32 1.442695, %v3652_v49  ;;  %v11279_v27 = vpack.c.bf16 %v4446_v45, %v4443_v4  ;;  %8645 = vmatprep.subr.bf16.mxu1 %v11264_v17 }
 0x3e8   :  { %13548 = vst [vmem:[#allocation5_spill] sm:$0xff] %v11275_v46  ;;  %13549 = vst [vmem:[#allocation25_spill] sm:$0xff] %v11277_v13 }
 0x3e9   :  { %13550 = vst [vmem:[#allocation9_spill] sm:$0xff] %v11279_v27  ;;  %8975 = vpow2.f32 %v3719_v60  ;;  %v8571_v11 = vpop.f32.mrb[140].mxu1 }
 0x3ea   :  { %v4676_v53 = vpop.f32.mrb[141].mxu1 }
 0x3eb   :  { %v8561_v39 = vpop.f32.mrb[148].mxu0  ;;  %v8572_v23 = vpop.f32.mrb[142].mxu1 }
 0x3ec   :  { %v4593_v3 = vpop.f32.mrb[149].mxu0  ;;  %v11282_v14 = vpack.c.bf16 %v8572_v23, %v8571_v11  ;;  %v4679_v34 = vpop.f32.mrb[143].mxu1 }
 0x3ed   :  { %v8562_v54 = vpop.f32.mrb[150].mxu0  ;;  %v11284_v46 = vpack.c.bf16 %v4679_v34, %v4676_v53 }
 0x3ee   :  { %13551 = vst [vmem:[#allocation27_spill] sm:$0xff] %v11282_v14  ;;  %v11286_v7 = vpack.c.bf16 %v8562_v54, %v8561_v39  ;;  %v4596_v21 = vpop.f32.mrb[151].mxu0 }
 0x3ef   :  { %13552 = vst [vmem:[#allocation28_spill] sm:$0xff] %v11284_v46  ;;  %v11288_v12 = vpack.c.bf16 %v4596_v21, %v4593_v3 }
 0x3f0   :  { %13553 = vst [vmem:[#allocation29_spill] sm:$0xff] %v11286_v7  ;;  %v3489_v45 = vpop.xlane.xlu0 %3488 }
 0x3f1   :  { %13554 = vst [vmem:[#allocation30_spill] sm:$0xff] %v11288_v12  ;;  %v11290_v4 = vpop.eup %8973  ;;  %v3659_v49 = vsub.f32 %v11026_v48, %v3489_v45  ;;  %v8575_v32 = vpop.f32.mrb[144].mxu1 }
 0x3f2   :  { %v3847_v60 = vsel %vm66_vm0, %v11290_v4, 0.0  ;;  %v3492_v23 = vpop.xlane.xlu1 %3491  ;;  %v4692_v11 = vpop.f32.mrb[145].mxu1 }
 0x3f3   :  { %v11295_v14 = vpop.eup %8975  ;;  %v3733_v53 = vmul.f32 1.442695, %v3659_v49  ;;  %v8565_v34 = vpop.f32.mrb[152].mxu0  ;;  %3848 = vadd.xlane.f32.xlu0 %v3847_v60  ;;  %v3660_v39 = vsub.f32 %v11032_v0, %v3492_v23 }
 0x3f4   :  { %v8576_v3 = vpop.f32.mrb[146].mxu1  ;;  %v4609_v54 = vpop.f32.mrb[153].mxu0  ;;  %v3850_v48 = vsel %vm66_vm0, %v11295_v14, 0.0 }
 0x3f5   :  { %v11298_v21 = vpack.c.bf16 %v8576_v3, %v8575_v32  ;;  %v4695_v45 = vpop.f32.mrb[147].mxu1  ;;  %8977 = vpow2.f32 %v3733_v53  ;;  %v3735_v7 = vmul.f32 1.442695, %v3660_v39  ;;  %v8566_v46 = vpop.f32.mrb[154].mxu0  ;;  %3851 = vadd.xlane.f32.xlu1 %v3850_v48 }
 0x3f6   :  { %v11302_v12 = vpack.c.bf16 %v4695_v45, %v4692_v11  ;;  %v3459_v13 = vpop.xlane.xlu0 %3458  ;;  %v11304_v49 = vpack.c.bf16 %v8566_v46, %v8565_v34  ;;  %v4612_v60 = vpop.f32.mrb[155].mxu0 }
 0x3f7   :  { %13555 = vst [vmem:[#allocation31_spill] sm:$0xff] %v11298_v21  ;;  %v3649_v0 = vsub.f32 %v11008_v47, %v3459_v13  ;;  %v3462_v23 = vpop.xlane.xlu1 %3461  ;;  %8979 = vpow2.f32 %v3735_v7  ;;  %v11307_v32 = vpack.c.bf16 %v4612_v60, %v4609_v54 }
 0x3f8   :  { %13556 = vst [vmem:[#allocation32_spill] sm:$0xff] %v11302_v12  ;;  %v3650_v3 = vsub.f32 %v11014_v28, %v3462_v23 }
 0x3f9   :  { %v3713_v21 = vmul.f32 1.442695, %v3649_v0  ;;  %v8591_v39 = vpop.f32.mrb[148].mxu1 }
 0x3fa   :  { %v3715_v27 = vmul.f32 1.442695, %v3650_v3  ;;  %v3483_v53 = vpop.xlane.xlu0 %3482  ;;  %v4842_v45 = vpop.f32.mrb[149].mxu1 }
 0x3fb   :  { %8981 = vpow2.f32 %v3713_v21  ;;  %v3657_v11 = vsub.f32 %v11028_v19, %v3483_v53  ;;  %v3486_v48 = vpop.xlane.xlu1 %3485  ;;  %v8581_v46 = vpop.f32.mrb[156].mxu0 }
 0x3fc   :  { %8983 = vpow2.f32 %v3715_v27  ;;  %v3658_v34 = vsub.f32 %v11034_v42, %v3486_v48  ;;  %v8592_v47 = vpop.f32.mrb[150].mxu1  ;;  %v4759_v7 = vpop.f32.mrb[157].mxu0 }
 0x3fd   :  { %v3729_v13 = vmul.f32 1.442695, %v3657_v11  ;;  %v11312_v54 = vpack.c.bf16 %v8592_v47, %v8591_v39  ;;  %v4845_v60 = vpop.f32.mrb[151].mxu1  ;;  %v8582_v0 = vpop.f32.mrb[158].mxu0 }
 0x3fe   :  { %v3731_v28 = vmul.f32 1.442695, %v3658_v34  ;;  %v11314_v23 = vpack.c.bf16 %v4845_v60, %v4842_v45  ;;  %v3477_v3 = vpop.xlane.xlu0 %3476  ;;  %v11316_v21 = vpack.c.bf16 %v8582_v0, %v8581_v46  ;;  %v4762_v19 = vpop.f32.mrb[159].mxu0 }
 0x3ff   :  { %13557 = vst [vmem:[#allocation33_spill] sm:$0xff] %v11312_v54  ;;  %8985 = vpow2.f32 %v3729_v13  ;;  %v3655_v27 = vsub.f32 %v11018_v25, %v3477_v3  ;;  %v3480_v53 = vpop.xlane.xlu1 %3479  ;;  %v11319_v12 = vpop.eup %8977  ;;  %v11321_v42 = vpack.c.bf16 %v4762_v19, %v4759_v7 }
 0x400   :  { %13558 = vst [vmem:[#allocation34_spill] sm:$0xff] %v11314_v23  ;;  %13559 = vst [vmem:[#allocation35_spill] sm:$0xff] %v11316_v21  ;;  %8987 = vpow2.f32 %v3731_v28  ;;  %v3656_v39 = vsub.f32 %v11022_v6, %v3480_v53  ;;  %v3871_v48 = vsel %vm66_vm0, %v11319_v12, 0.0 }
 0x401   :  { %13560 = vst [vmem:[#allocation36_spill] sm:$0xff] %v11321_v42  ;;  %v3725_v11 = vmul.f32 1.442695, %v3655_v27  ;;  %v11326_v45 = vpop.eup %8979  ;;  %v8595_v47 = vpop.f32.mrb[152].mxu1  ;;  %3872 = vadd.xlane.f32.xlu0 %v3871_v48 }
 0x402   :  { %v3727_v34 = vmul.f32 1.442695, %v3656_v39  ;;  %v3501_v46 = vpop.xlane.xlu0 %3500  ;;  %v4858_v60 = vpop.f32.mrb[153].mxu1  ;;  %v3874_v7 = vsel %vm66_vm0, %v11326_v45, 0.0 }
 0x403   :  { %8989 = vpow2.f32 %v3725_v11  ;;  %v3663_v25 = vsub.f32 %v11042_v50, %v3501_v46  ;;  %v3504_v13 = vpop.xlane.xlu1 %3503  ;;  %v8585_v6 = vpop.f32.mrb[160].mxu0  ;;  %3875 = vadd.xlane.f32.xlu1 %v3874_v7 }
 0x404   :  { %8991 = vpow2.f32 %v3727_v34  ;;  %v3664_v28 = vsub.f32 %v11048_v10, %v3504_v13  ;;  %v8596_v0 = vpop.f32.mrb[154].mxu1  ;;  %v4775_v27 = vpop.f32.mrb[161].mxu0 }
 0x405   :  { %v11332_v3 = vpop.eup %8981  ;;  %v3741_v19 = vmul.f32 1.442695, %v3663_v25  ;;  %v11334_v53 = vpack.c.bf16 %v8596_v0, %v8595_v47  ;;  %v4861_v39 = vpop.f32.mrb[155].mxu1 }
 0x406   :  { %v11336_v11 = vpop.eup %8983  ;;  %v3743_v50 = vmul.f32 1.442695, %v3664_v28  ;;  %v8586_v48 = vpop.f32.mrb[162].mxu0  ;;  %v11338_v46 = vpack.c.bf16 %v4861_v39, %v4858_v60  ;;  %v3841_v34 = vsel %vm66_vm0, %v11332_v3, 0.0 }
 0x407   :  { %13561 = vst [vmem:[#allocation37_spill] sm:$0xff] %v11334_v53  ;;  %v3471_v54 = vpop.xlane.xlu0 %3470  ;;  %8993 = vpow2.f32 %v3741_v19  ;;  %v11342_v10 = vpack.c.bf16 %v8586_v48, %v8585_v6  ;;  %v4778_v13 = vpop.f32.mrb[163].mxu0  ;;  %3842 = vadd.xlane.f32.xlu0 %v3841_v34  ;;  %v3844_v7 = vsel %vm66_vm0, %v11336_v11, 0.0 }
 0x408   :  { %13562 = vst [vmem:[#allocation38_spill] sm:$0xff] %v11338_v46  ;;  %v3653_v25 = vsub.f32 %v11020_v8, %v3471_v54  ;;  %v3474_v47 = vpop.xlane.xlu1 %3473  ;;  %8995 = vpow2.f32 %v3743_v50  ;;  %v11347_v28 = vpack.c.bf16 %v4778_v13, %v4775_v27  ;;  %3845 = vadd.xlane.f32.xlu1 %v3844_v7 }
 0x409   :  { %13563 = vst [vmem:[#allocation39_spill] sm:$0xff] %v11342_v10  ;;  %v3654_v60 = vsub.f32 %v11024_v9, %v3474_v47  ;;  %v11350_v0 = vpop.eup %8985 }
 0x40a   :  { %13564 = vst [vmem:[#allocation40_spill] sm:$0xff] %v11347_v28  ;;  %v3721_v39 = vmul.f32 1.442695, %v3653_v25  ;;  %v11352_v19 = vpop.eup %8987  ;;  %v3865_v8 = vsel %vm66_vm0, %v11350_v0, 0.0 }
 0x40b   :  { %v3723_v6 = vmul.f32 1.442695, %v3654_v60  ;;  %v3495_v48 = vpop.xlane.xlu0 %3494  ;;  %3866 = vadd.xlane.f32.xlu0 %v3865_v8  ;;  %v3868_v27 = vsel %vm66_vm0, %v11352_v19, 0.0 }
 0x40c   :  { %8997 = vpow2.f32 %v3721_v39  ;;  %v3661_v54 = vsub.f32 %v11044_v41, %v3495_v48  ;;  %v3498_v50 = vpop.xlane.xlu1 %3497  ;;  %3869 = vadd.xlane.f32.xlu1 %v3868_v27 }
 0x40d   :  { %8999 = vpow2.f32 %v3723_v6  ;;  %v3662_v9 = vsub.f32 %v11050_v37, %v3498_v50  ;;  %v11360_v34 = vpop.eup %8989 }
 0x40e   :  { %v3737_v13 = vmul.f32 1.442695, %v3661_v54  ;;  %v11362_v25 = vpop.eup %8991  ;;  %v3859_v60 = vsel %vm66_vm0, %v11360_v34, 0.0 }
 0x40f   :  { %v3739_v47 = vmul.f32 1.442695, %v3662_v9  ;;  %v3513_v7 = vpop.xlane.xlu0 %3512  ;;  %3860 = vadd.xlane.f32.xlu0 %v3859_v60  ;;  %v3862_v6 = vsel %vm66_vm0, %v11362_v25, 0.0 }
 0x410   :  { %9001 = vpow2.f32 %v3737_v13  ;;  %v3667_v41 = vsub.f32 %v11060_v31, %v3513_v7  ;;  %v3516_v39 = vpop.xlane.xlu1 %3515  ;;  %3863 = vadd.xlane.f32.xlu1 %v3862_v6 }
 0x411   :  { %9003 = vpow2.f32 %v3739_v47  ;;  %v3668_v37 = vsub.f32 %v11066_v15, %v3516_v39  ;;  %v11370_v48 = vpop.eup %8993 }
 0x412   :  { %v3749_v8 = vmul.f32 1.442695, %v3667_v41  ;;  %v11372_v54 = vpop.eup %8995  ;;  %v3883_v9 = vsel %vm66_vm0, %v11370_v48, 0.0 }
 0x413   :  { %v3751_v50 = vmul.f32 1.442695, %v3668_v37  ;;  %v3537_v27 = vpop.xlane.xlu0 %3536  ;;  %3884 = vadd.xlane.f32.xlu0 %v3883_v9  ;;  %v3886_v47 = vsel %vm66_vm0, %v11372_v54, 0.0 }
 0x414   :  { %9005 = vpow2.f32 %v3749_v8  ;;  %v3675_v31 = vsub.f32 %v11090_v18, %v3537_v27  ;;  %v3540_v13 = vpop.xlane.xlu1 %3539  ;;  %3887 = vadd.xlane.f32.xlu1 %v3886_v47 }
 0x415   :  { %9007 = vpow2.f32 %v3751_v50  ;;  %v3676_v15 = vsub.f32 %v11096_v40, %v3540_v13 }
 0x416   :  { %v11380_v7 = vpop.eup %8997  ;;  %v3765_v60 = vmul.f32 1.442695, %v3675_v31 }
 0x417   :  { %v11382_v41 = vpop.eup %8999  ;;  %v3767_v39 = vmul.f32 1.442695, %v3676_v15  ;;  %v3507_v6 = vpop.xlane.xlu0 %3506  ;;  %v3853_v37 = vsel %vm66_vm0, %v11380_v7, 0.0 }
 0x418   :  { %9009 = vpow2.f32 %v3765_v60  ;;  %v3665_v18 = vsub.f32 %v11062_v36, %v3507_v6  ;;  %3854 = vadd.xlane.f32.xlu0 %v3853_v37  ;;  %v3510_v8 = vpop.xlane.xlu1 %3509  ;;  %v3856_v50 = vsel %vm66_vm0, %v11382_v41, 0.0 }
 0x419   :  { %9011 = vpow2.f32 %v3767_v39  ;;  %v3666_v40 = vsub.f32 %v11068_v5, %v3510_v8  ;;  %3857 = vadd.xlane.f32.xlu1 %v3856_v50 }
 0x41a   :  { %v11390_v27 = vpop.eup %9001  ;;  %v3745_v9 = vmul.f32 1.442695, %v3665_v18 }
 0x41b   :  { %v11392_v31 = vpop.eup %9003  ;;  %v3747_v13 = vmul.f32 1.442695, %v3666_v40  ;;  %v3531_v47 = vpop.xlane.xlu0 %3530  ;;  %v3877_v15 = vsel %vm66_vm0, %v11390_v27, 0.0 }
 0x41c   :  { %9013 = vpow2.f32 %v3745_v9  ;;  %v3673_v36 = vsub.f32 %v11092_v33, %v3531_v47  ;;  %3878 = vadd.xlane.f32.xlu0 %v3877_v15  ;;  %v3534_v60 = vpop.xlane.xlu1 %3533  ;;  %v3880_v39 = vsel %vm66_vm0, %v11392_v31, 0.0 }
 0x41d   :  { %9015 = vpow2.f32 %v3747_v13  ;;  %v3674_v5 = vsub.f32 %v11098_v51, %v3534_v60  ;;  %3881 = vadd.xlane.f32.xlu1 %v3880_v39 }
 0x41e   :  { %v11400_v6 = vpop.eup %9005  ;;  %v3761_v37 = vmul.f32 1.442695, %v3673_v36 }
 0x41f   :  { %v11402_v18 = vpop.eup %9007  ;;  %v3763_v8 = vmul.f32 1.442695, %v3674_v5  ;;  %v3525_v50 = vpop.xlane.xlu0 %3524  ;;  %v3895_v40 = vsel %vm66_vm0, %v11400_v6, 0.0 }
 0x420   :  { %9017 = vpow2.f32 %v3761_v37  ;;  %v3671_v33 = vsub.f32 %v11076_v61, %v3525_v50  ;;  %3896 = vadd.xlane.f32.xlu0 %v3895_v40  ;;  %v3528_v9 = vpop.xlane.xlu1 %3527  ;;  %v3898_v13 = vsel %vm66_vm0, %v11402_v18, 0.0 }
 0x421   :  { %9019 = vpow2.f32 %v3763_v8  ;;  %v3672_v51 = vsub.f32 %v11082_v57, %v3528_v9  ;;  %3899 = vadd.xlane.f32.xlu1 %v3898_v13 }
 0x422   :  { %v11410_v47 = vpop.eup %9009  ;;  %v3757_v15 = vmul.f32 1.442695, %v3671_v33 }
 0x423   :  { %v11412_v36 = vpop.eup %9011  ;;  %v3759_v60 = vmul.f32 1.442695, %v3672_v51  ;;  %v11414_v39 = vpop.xlane.xlu0 %3548  ;;  %v3919_v61 = vsel %vm66_vm0, %v11410_v47, 0.0 }
 0x424   :  { %9021 = vpow2.f32 %v3757_v15  ;;  %3920 = vadd.xlane.f32.xlu0 %v3919_v61  ;;  %v11418_v5 = vpop.xlane.xlu1 %3551  ;;  %v3922_v37 = vsel %vm66_vm0, %v11412_v36, 0.0 }
 0x425   :  { %9023 = vpow2.f32 %v3759_v60  ;;  %3923 = vadd.xlane.f32.xlu1 %v3922_v37 }
 0x426   :  { %v11422_v57 = vpop.eup %9013 }
 0x427   :  { %v11424_v8 = vpop.eup %9015  ;;  %v3519_v50 = vpop.xlane.xlu0 %3518  ;;  %v3889_v40 = vsel %vm66_vm0, %v11422_v57, 0.0 }
 0x428   :  { %v3669_v33 = vsub.f32 %v11078_v63, %v3519_v50  ;;  %3890 = vadd.xlane.f32.xlu0 %v3889_v40  ;;  %v3522_v9 = vpop.xlane.xlu1 %3521  ;;  %v3892_v13 = vsel %vm66_vm0, %v11424_v8, 0.0 }
 0x429   :  { %v3670_v51 = vsub.f32 %v11084_v38, %v3522_v9  ;;  %3893 = vadd.xlane.f32.xlu1 %v3892_v13 }
 0x42a   :  { %v11432_v15 = vpop.eup %9017  ;;  %v3753_v60 = vmul.f32 1.442695, %v3669_v33 }
 0x42b   :  { %v11434_v61 = vpop.eup %9019  ;;  %v3755_v37 = vmul.f32 1.442695, %v3670_v51  ;;  %v3543_v53 = vpop.xlane.xlu0 %3542  ;;  %v3913_v46 = vsel %vm66_vm0, %v11432_v15, 0.0 }
 0x42c   :  { %9025 = vpow2.f32 %v3753_v60  ;;  %v3677_v63 = vsub.f32 %v11108_v56, %v3543_v53  ;;  %3914 = vadd.xlane.f32.xlu0 %v3913_v46  ;;  %v3546_v50 = vpop.xlane.xlu1 %3545  ;;  %v3916_v40 = vsel %vm66_vm0, %v11434_v61, 0.0 }
 0x42d   :  { %9027 = vpow2.f32 %v3755_v37  ;;  %v3678_v38 = vsub.f32 %v11114_v30, %v3546_v50  ;;  %3917 = vadd.xlane.f32.xlu1 %v3916_v40 }
 0x42e   :  { %v11442_v33 = vpop.eup %9021  ;;  %v3769_v9 = vmul.f32 1.442695, %v3677_v63 }
 0x42f   :  { %v11444_v13 = vpop.eup %9023  ;;  %v3771_v51 = vmul.f32 1.442695, %v3678_v38  ;;  %v3561_v10 = vpop.xlane.xlu0 %3560  ;;  %v3907_v60 = vsel %vm66_vm0, %v11442_v33, 0.0 }
 0x430   :  { %9029 = vpow2.f32 %v3769_v9  ;;  %v3683_v56 = vsub.f32 %v11124_v20, %v3561_v10  ;;  %3908 = vadd.xlane.f32.xlu0 %v3907_v60  ;;  %v3564_v53 = vpop.xlane.xlu1 %3563  ;;  %v3910_v46 = vsel %vm66_vm0, %v11444_v13, 0.0 }
 0x431   :  { %9031 = vpow2.f32 %v3771_v51  ;;  %v3684_v30 = vsub.f32 %v11130_v43, %v3564_v53  ;;  %3911 = vadd.xlane.f32.xlu1 %v3910_v46 }
 0x432   :  { %v3781_v37 = vmul.f32 1.442695, %v3683_v56 }
 0x433   :  { %v3783_v63 = vmul.f32 1.442695, %v3684_v30  ;;  %v11452_v50 = vpop.xlane.xlu0 %3584 }
 0x434   :  { %9033 = vpow2.f32 %v3781_v37  ;;  %v11454_v40 = vpop.xlane.xlu1 %3587 }
 0x435   :  { %9035 = vpow2.f32 %v3783_v63 }
 0x436   :  { %v11456_v38 = vpop.eup %9025 }
 0x437   :  { %v11458_v20 = vpop.eup %9027  ;;  %v3555_v10 = vpop.xlane.xlu0 %3554  ;;  %v3901_v9 = vsel %vm66_vm0, %v11456_v38, 0.0 }
 0x438   :  { %v3681_v51 = vsub.f32 %v11126_v1, %v3555_v10  ;;  %3902 = vadd.xlane.f32.xlu0 %v3901_v9  ;;  %v3558_v43 = vpop.xlane.xlu1 %3557  ;;  %v3904_v60 = vsel %vm66_vm0, %v11458_v20, 0.0 }
 0x439   :  { %v3682_v56 = vsub.f32 %v11132_v52, %v3558_v43  ;;  %3905 = vadd.xlane.f32.xlu1 %v3904_v60 }
 0x43a   :  { %v11466_v53 = vpop.eup %9029  ;;  %v3777_v46 = vmul.f32 1.442695, %v3681_v51 }
 0x43b   :  { %13565 = vst [vmem:[#allocation41_spill] sm:$0xff] %v11466_v53  ;;  %v11468_v30 = vpop.eup %9031  ;;  %v3779_v37 = vmul.f32 1.442695, %v3682_v56  ;;  %v11470_v63 = vpop.xlane.xlu0 %3578  ;;  %v3925_v28 = vsel %vm66_vm0, %v11466_v53, 0.0 }
 0x43c   :  { %13566 = vst [vmem:[#allocation42_spill] sm:$0xff] %v11468_v30  ;;  %9037 = vpow2.f32 %v3777_v46  ;;  %3926 = vadd.xlane.f32.xlu0 %v3925_v28  ;;  %v11474_v1 = vpop.xlane.xlu1 %3581  ;;  %v3928_v10 = vsel %vm66_vm0, %v11468_v30, 0.0 }
 0x43d   :  { %9039 = vpow2.f32 %v3779_v37  ;;  %3929 = vadd.xlane.f32.xlu1 %v3928_v10 }
 0x43e   :  { %v11478_v52 = vpop.eup %9033 }
 0x43f   :  { %13567 = vst [vmem:[#allocation43_spill] sm:$0xff] %v11478_v52  ;;  %v11480_v9 = vpop.eup %9035  ;;  %v3573_v51 = vpop.xlane.xlu0 %3572  ;;  %v3943_v43 = vsel %vm66_vm0, %v11478_v52, 0.0 }
 0x440   :  { %13568 = vst [vmem:[#allocation44_spill] sm:$0xff] %v11480_v9  ;;  %v3687_v60 = vsub.f32 %v11140_v35, %v3573_v51  ;;  %3944 = vadd.xlane.f32.xlu0 %v3943_v43  ;;  %v3576_v56 = vpop.xlane.xlu1 %3575  ;;  %v3946_v28 = vsel %vm66_vm0, %v11480_v9, 0.0 }
 0x441   :  { %v3688_v46 = vsub.f32 %v11146_v2, %v3576_v56  ;;  %3947 = vadd.xlane.f32.xlu1 %v3946_v28 }
 0x442   :  { %v3789_v37 = vmul.f32 1.442695, %v3687_v60 }
 0x443   :  { %v3791_v10 = vmul.f32 1.442695, %v3688_v46  ;;  %v11488_v21 = vpop.xlane.xlu0 %3596 }
 0x444   :  { %9041 = vpow2.f32 %v3789_v37  ;;  %v11490_v23 = vpop.xlane.xlu1 %3599 }
 0x445   :  { %9043 = vpow2.f32 %v3791_v10 }
 0x446   :  { %v11492_v30 = vpop.eup %9037 }
 0x447   :  { %13569 = vst [vmem:[#allocation45_spill] sm:$0xff] %v11492_v30  ;;  %v11494_v52 = vpop.eup %9039  ;;  %v3567_v35 = vpop.xlane.xlu0 %3566  ;;  %v3937_v51 = vsel %vm66_vm0, %v11492_v30, 0.0 }
 0x448   :  { %13570 = vst [vmem:[#allocation46_spill] sm:$0xff] %v11494_v52  ;;  %v3685_v43 = vsub.f32 %v11142_v59, %v3567_v35  ;;  %3938 = vadd.xlane.f32.xlu0 %v3937_v51  ;;  %v3570_v2 = vpop.xlane.xlu1 %3569  ;;  %v3940_v60 = vsel %vm66_vm0, %v11494_v52, 0.0 }
 0x449   :  { %v3686_v56 = vsub.f32 %v11148_v58, %v3570_v2  ;;  %3941 = vadd.xlane.f32.xlu1 %v3940_v60 }
 0x44a   :  { %v3785_v28 = vmul.f32 1.442695, %v3685_v43 }
 0x44b   :  { %v3787_v46 = vmul.f32 1.442695, %v3686_v56  ;;  %v11502_v37 = vpop.xlane.xlu0 %3590 }
 0x44c   :  { %9045 = vpow2.f32 %v3785_v28  ;;  %v11504_v10 = vpop.xlane.xlu1 %3593 }
 0x44d   :  { %9047 = vpow2.f32 %v3787_v46 }
 0x44e   :  { %v11506_v9 = vpop.eup %9041 }
 0x44f   :  { %13571 = vst [vmem:[#allocation47_spill] sm:$0xff] %v11506_v9  ;;  %v11508_v30 = vpop.eup %9043  ;;  %v3609_v59 = vpop.xlane.xlu0 %3608  ;;  %v3955_v35 = vsel %vm66_vm0, %v11506_v9, 0.0 }
 0x450   :  { %13572 = vst [vmem:[#allocation48_spill] sm:$0xff] %v11508_v30  ;;  %v3699_v51 = vsub.f32 %v11188_v24, %v3609_v59  ;;  %3956 = vadd.xlane.f32.xlu0 %v3955_v35  ;;  %v3612_v58 = vpop.xlane.xlu1 %3611  ;;  %v3958_v43 = vsel %vm66_vm0, %v11508_v30, 0.0  ;;  %v3679_v24 = vsub.f32 %v11106_v55, %v11414_v39  ;;  %v3680_v35 = vsub.f32 %v11112_v22, %v11418_v5  ;;  %v13575_v39 = vld [vmem:[#allocation3_spill] sm:$0xff] }
 0x451   :  { %v3700_v2 = vsub.f32 %v11194_v62, %v3612_v58  ;;  %3959 = vadd.xlane.f32.xlu1 %v3958_v43  ;;  %v3689_v9 = vsub.f32 %v13575_v39, %v11470_v63  ;;  %v13576_v5 = vld [vmem:[#allocation11_spill] sm:$0xff] }
 0x452   :  { %v3813_v60 = vmul.f32 1.442695, %v3699_v51  ;;  %v3773_v55 = vmul.f32 1.442695, %v3679_v24  ;;  %v3775_v22 = vmul.f32 1.442695, %v3680_v35  ;;  %v3690_v53 = vsub.f32 %v13576_v5, %v11474_v1 }
 0x453   :  { %v3815_v56 = vmul.f32 1.442695, %v3700_v2  ;;  %v11516_v28 = vpop.xlane.xlu0 %3632  ;;  %v13578_v24 = vld [vmem:[#allocation13_spill] sm:$0xff]  ;;  %v13579_v35 = vld [vmem:[#allocation2_spill] sm:$0xff] }
 0x454   :  { %9049 = vpow2.f32 %v3813_v60  ;;  %v11518_v46 = vpop.xlane.xlu1 %3635  ;;  %v13574_v60 = vld [vmem:[#allocation12_spill] sm:$0xff]  ;;  %v3692_v1 = vsub.f32 %v13579_v35, %v11454_v40  ;;  %v13582_v5 = vld [vmem:[#allocation18_spill] sm:$0xff] }
 0x455   :  { %9051 = vpow2.f32 %v3815_v56 }
 0x456   :  { %v11520_v52 = vpop.eup %9045 }
 0x457   :  { %13573 = vst [vmem:[#allocation49_spill] sm:$0xff] %v11520_v52  ;;  %v11524_v59 = vpop.eup %9047  ;;  %v3603_v62 = vpop.xlane.xlu0 %3602  ;;  %v3949_v51 = vsel %vm66_vm0, %v11520_v52, 0.0 }
 0x458   :  { %v3697_v58 = vsub.f32 %v11190_v44, %v3603_v62  ;;  %3950 = vadd.xlane.f32.xlu0 %v3949_v51  ;;  %v3606_v43 = vpop.xlane.xlu1 %3605  ;;  %v3952_v2 = vsel %vm66_vm0, %v11524_v59, 0.0  ;;  %v3691_v51 = vsub.f32 %v13578_v24, %v11452_v50  ;;  %v3799_v50 = vmul.f32 1.442695, %v3692_v1 }
 0x459   :  { %v3698_v56 = vsub.f32 %v13574_v60, %v3606_v43  ;;  %3953 = vadd.xlane.f32.xlu1 %v3952_v2  ;;  %v3793_v43 = vmul.f32 1.442695, %v3689_v9 }
 0x45a   :  { %v3809_v30 = vmul.f32 1.442695, %v3697_v58  ;;  %v3795_v58 = vmul.f32 1.442695, %v3690_v53  ;;  %v13581_v53 = vld [vmem:[#allocation17_spill] sm:$0xff] }
 0x45b   :  { %v3811_v52 = vmul.f32 1.442695, %v3698_v56  ;;  %v11538_v42 = vpop.xlane.xlu0 %3626  ;;  %v3797_v56 = vmul.f32 1.442695, %v3691_v51 }
 0x45c   :  { %9053 = vpow2.f32 %v3809_v30  ;;  %v11540_v44 = vpop.xlane.xlu1 %3629 }
 0x45d   :  { %9055 = vpow2.f32 %v3811_v52 }
 0x45e   :  { %v11542_v62 = vpop.eup %9049  ;;  %9057 = vpow2.f32 %v3773_v55 }
 0x45f   :  { %13577 = vst [vmem:[#allocation12_spill] sm:$0xff] %v11542_v62  ;;  %v11546_v63 = vpop.eup %9051  ;;  %9059 = vpow2.f32 %v3775_v22  ;;  %v3621_v2 = vpop.xlane.xlu0 %3620  ;;  %v3991_v30 = vsel %vm66_vm0, %v11542_v62, 0.0 }
 0x460   :  { %3992 = vadd.xlane.f32.xlu0 %v3991_v30  ;;  %v3624_v52 = vpop.xlane.xlu1 %3623  ;;  %v3994_v60 = vsel %vm66_vm0, %v11546_v63, 0.0  ;;  %9061 = vpow2.f32 %v3793_v43  ;;  %v3703_v39 = vsub.f32 %v13581_v53, %v3621_v2 }
 0x461   :  { %3995 = vadd.xlane.f32.xlu1 %v3994_v60  ;;  %9063 = vpow2.f32 %v3795_v58  ;;  %v3704_v24 = vsub.f32 %v13582_v5, %v3624_v52  ;;  %v13583_v52 = vld [vmem:[#allocation10_spill] sm:$0xff] }
 0x462   :  { %9065 = vpow2.f32 %v3797_v56  ;;  %v3693_v56 = vsub.f32 %v13583_v52, %v11502_v37  ;;  %v13584_v5 = vld [vmem:[#allocation14_spill] sm:$0xff]  ;;  %v13585_v37 = vld [vmem:[#allocation8_spill] sm:$0xff] }
 0x463   :  { %v11554_v9 = vpop.xlane.xlu0 %3644  ;;  %9067 = vpow2.f32 %v3799_v50  ;;  %v3821_v50 = vmul.f32 1.442695, %v3703_v39  ;;  %v3694_v62 = vsub.f32 %v13584_v5, %v11504_v10  ;;  %v3695_v39 = vsub.f32 %v13585_v37, %v11488_v21  ;;  %v13589_v37 = vld [vmem:[#allocation16_spill] sm:$0xff] }
 0x464   :  { %v11556_v55 = vpop.xlane.xlu1 %3647  ;;  %v3801_v10 = vmul.f32 1.442695, %v3693_v56  ;;  %v13587_v56 = vld [vmem:[#allocation4_spill] sm:$0xff] }
 0x465   :  { %v3805_v21 = vmul.f32 1.442695, %v3695_v39  ;;  %v3707_v39 = vsub.f32 %v13589_v37, %v11516_v28 }
 0x466   :  { %v11558_v40 = vpop.eup %9053 }
 0x467   :  { %13580 = vst [vmem:[#allocation3_spill] sm:$0xff] %v11558_v40  ;;  %v11561_v22 = vpop.eup %9055  ;;  %v3615_v35 = vpop.xlane.xlu0 %3614  ;;  %v3985_v51 = vsel %vm66_vm0, %v11558_v40, 0.0  ;;  %v3823_v40 = vmul.f32 1.442695, %v3704_v24  ;;  %v13586_v24 = vld [vmem:[#allocation6_spill] sm:$0xff] }
 0x468   :  { %v11566_v43 = vpop.eup %9057  ;;  %v3701_v1 = vsub.f32 %v11206_v29, %v3615_v35  ;;  %3986 = vadd.xlane.f32.xlu0 %v3985_v51  ;;  %v3618_v58 = vpop.xlane.xlu1 %3617  ;;  %v3988_v30 = vsel %vm66_vm0, %v11561_v22, 0.0 }
 0x469   :  { %v11571_v60 = vpop.eup %9059  ;;  %v3702_v2 = vsub.f32 %v11212_v16, %v3618_v58  ;;  %3989 = vadd.xlane.f32.xlu1 %v3988_v30  ;;  %v3931_v35 = vsel %vm66_vm0, %v11566_v43, 0.0  ;;  %v3803_v30 = vmul.f32 1.442695, %v3694_v62  ;;  %v13588_v62 = vld [vmem:[#allocation19_spill] sm:$0xff] }
 0x46a   :  { %v3817_v53 = vmul.f32 1.442695, %v3701_v1  ;;  %v11580_v51 = vpop.eup %9061  ;;  %v3934_v16 = vsel %vm66_vm0, %v11571_v60, 0.0  ;;  %v3696_v1 = vsub.f32 %v13586_v24, %v11490_v23 }
 0x46b   :  { %v3819_v29 = vmul.f32 1.442695, %v3702_v2  ;;  %v11584_v58 = vpop.eup %9063  ;;  %v3961_v2 = vsel %vm66_vm0, %v11580_v51, 0.0 }
 0x46c   :  { %9069 = vpow2.f32 %v3817_v53  ;;  %3932 = vadd.xlane.f32.xlu0 %v3931_v35  ;;  %v11592_v52 = vpop.eup %9065  ;;  %v3964_v53 = vsel %vm66_vm0, %v11584_v58, 0.0  ;;  %v3807_v23 = vmul.f32 1.442695, %v3696_v1 }
 0x46d   :  { %9071 = vpow2.f32 %v3819_v29  ;;  %3935 = vadd.xlane.f32.xlu1 %v3934_v16  ;;  %v11596_v5 = vpop.eup %9067  ;;  %v3967_v29 = vsel %vm66_vm0, %v11592_v52, 0.0 }
 0x46e   :  { %9073 = vpow2.f32 %v3821_v50  ;;  %v3705_v50 = vsub.f32 %v13587_v56, %v11538_v42  ;;  %v3970_v35 = vsel %vm66_vm0, %v11596_v5, 0.0  ;;  %v3642_v56 = vpop.xlane.xlu1 %3641 }
 0x46f   :  { %9075 = vpow2.f32 %v3823_v40  ;;  %v3706_v40 = vsub.f32 %v13588_v62, %v11540_v44  ;;  %v13590_v44 = vld [vmem:[#allocation20_spill] sm:$0xff]  ;;  %v13591_v62 = vld [vmem:[#allocation15_spill] sm:$0xff] }
 0x470   :  { %3962 = vadd.xlane.f32.xlu0 %v3961_v2  ;;  %9077 = vpow2.f32 %v3801_v10  ;;  %v3825_v42 = vmul.f32 1.442695, %v3705_v50  ;;  %v3708_v24 = vsub.f32 %v13590_v44, %v11518_v46  ;;  %v3829_v50 = vmul.f32 1.442695, %v3707_v39  ;;  %v13594_v39 = vld [vmem:[#allocation24_spill] sm:$0xff] }
 0x471   :  { %3965 = vadd.xlane.f32.xlu1 %v3964_v53  ;;  %9079 = vpow2.f32 %v3803_v30  ;;  %v3827_v1 = vmul.f32 1.442695, %v3706_v40  ;;  %v3639_v30 = vpop.xlane.xlu0 %3638  ;;  %v3710_v40 = vsub.f32 %v13591_v62, %v3642_v56 }
 0x472   :  { %9081 = vpow2.f32 %v3805_v21  ;;  %v3831_v46 = vmul.f32 1.442695, %v3708_v24  ;;  %v13595_v24 = vld [vmem:[#allocation22_spill] sm:$0xff] }
 0x473   :  { %9083 = vpow2.f32 %v3807_v23  ;;  %v3709_v23 = vsub.f32 %v11236_v26, %v3639_v30  ;;  %v3711_v26 = vsub.f32 %v13594_v39, %v11554_v9  ;;  %v3835_v30 = vmul.f32 1.442695, %v3710_v40 }
 0x474   :  { %3968 = vadd.xlane.f32.xlu0 %v3967_v29  ;;  %9085 = vpow2.f32 %v3825_v42 }
 0x475   :  { %3971 = vadd.xlane.f32.xlu1 %v3970_v35  ;;  %9087 = vpow2.f32 %v3827_v1  ;;  %v3833_v42 = vmul.f32 1.442695, %v3709_v23  ;;  %v3712_v1 = vsub.f32 %v13595_v24, %v11556_v55 }
 0x476   :  { %v11606_v16 = vpop.eup %9069  ;;  %9089 = vpow2.f32 %v3829_v50  ;;  %v3837_v50 = vmul.f32 1.442695, %v3711_v26 }
 0x477   :  { %v11610_v10 = vpop.eup %9071  ;;  %v3997_v2 = vsel %vm66_vm0, %v11606_v16, 0.0  ;;  %9091 = vpow2.f32 %v3831_v46  ;;  %v3839_v9 = vmul.f32 1.442695, %v3712_v1 }
 0x478   :  { %v11616_v53 = vpop.eup %9073  ;;  %3998 = vadd.xlane.f32.xlu0 %v3997_v2  ;;  %v4000_v21 = vsel %vm66_vm0, %v11610_v10, 0.0  ;;  %9093 = vpow2.f32 %v3833_v42 }
 0x479   :  { %v11620_v28 = vpop.eup %9075  ;;  %4001 = vadd.xlane.f32.xlu1 %v4000_v21  ;;  %v4003_v29 = vsel %vm66_vm0, %v11616_v53, 0.0  ;;  %9095 = vpow2.f32 %v3835_v30 }
 0x47a   :  { %v11626_v35 = vpop.eup %9077  ;;  %v4006_v37 = vsel %vm66_vm0, %v11620_v28, 0.0  ;;  %9097 = vpow2.f32 %v3837_v50 }
 0x47b   :  { %13592 = vst [vmem:[#allocation11_spill] sm:$0xff] %v11626_v35  ;;  %v11630_v44 = vpop.eup %9079  ;;  %v3973_v2 = vsel %vm66_vm0, %v11626_v35, 0.0  ;;  %9099 = vpow2.f32 %v3839_v9 }
 0x47c   :  { %4004 = vadd.xlane.f32.xlu0 %v4003_v29  ;;  %13593 = vst [vmem:[#allocation13_spill] sm:$0xff] %v11630_v44  ;;  %v11638_v56 = vpop.eup %9081  ;;  %v3976_v21 = vsel %vm66_vm0, %v11630_v44, 0.0 }
 0x47d   :  { %4007 = vadd.xlane.f32.xlu1 %v4006_v37  ;;  %13596 = vst [vmem:[#allocation2_spill] sm:$0xff] %v11638_v56  ;;  %v11642_v62 = vpop.eup %9083  ;;  %v3979_v55 = vsel %vm66_vm0, %v11638_v56, 0.0 }
 0x47e   :  { %13597 = vst [vmem:[#allocation17_spill] sm:$0xff] %v11642_v62  ;;  %v11646_v23 = vpop.eup %9085  ;;  %v3982_v46 = vsel %vm66_vm0, %v11642_v62, 0.0 }
 0x47f   :  { %13598 = vst [vmem:[#allocation18_spill] sm:$0xff] %v11646_v23  ;;  %v11650_v40 = vpop.eup %9087  ;;  %v4009_v29 = vsel %vm66_vm0, %v11646_v23, 0.0 }
 0x480   :  { %3974 = vadd.xlane.f32.xlu0 %v3973_v2  ;;  %13599 = vst [vmem:[#allocation10_spill] sm:$0xff] %v11650_v40  ;;  %v11654_v37 = vpop.eup %9089  ;;  %v4012_v39 = vsel %vm66_vm0, %v11650_v40, 0.0  ;;  %v3849_v1 = vpop.xlane.xlu0 %3848 }
 0x481   :  { %3977 = vadd.xlane.f32.xlu1 %v3976_v21  ;;  %13600 = vst [vmem:[#allocation14_spill] sm:$0xff] %v11654_v37  ;;  %v11658_v26 = vpop.eup %9091  ;;  %v4015_v42 = vsel %vm66_vm0, %v11654_v37, 0.0 }
 0x482   :  { %13601 = vst [vmem:[#allocation8_spill] sm:$0xff] %v11658_v26  ;;  %v11662_v24 = vpop.eup %9093  ;;  %v4018_v30 = vsel %vm66_vm0, %v11658_v26, 0.0  ;;  %v3852_v21 = vpop.xlane.xlu1 %3851 }
 0x483   :  { %13602 = vst [vmem:[#allocation6_spill] sm:$0xff] %v11662_v24  ;;  %v11666_v2 = vpop.eup %9095  ;;  %v4021_v50 = vsel %vm66_vm0, %v11662_v24, 0.0  ;;  %9101 = vrcp.f32 %v3852_v21 }
 0x484   :  { %3980 = vadd.xlane.f32.xlu0 %v3979_v55  ;;  %13603 = vst [vmem:[#allocation4_spill] sm:$0xff] %v11666_v2  ;;  %v11670_v9 = vpop.eup %9097  ;;  %9103 = vrcp.f32 %v3849_v1 }
 0x485   :  { %3983 = vadd.xlane.f32.xlu1 %v3982_v46  ;;  %13604 = vst [vmem:[#allocation19_spill] sm:$0xff] %v11670_v9  ;;  %v4024_v46 = vsel %vm66_vm0, %v11666_v2, 0.0 }
 0x488   :  { %4010 = vadd.xlane.f32.xlu0 %v4009_v29  ;;  %v11674_v29 = vpop.eup %9099 }
 0x489   :  { %4013 = vadd.xlane.f32.xlu1 %v4012_v39  ;;  %13605 = vst [vmem:[#allocation16_spill] sm:$0xff] %v11674_v29 }
 0x48c   :  { %4016 = vadd.xlane.f32.xlu0 %v4015_v42  ;;  %v4027_v42 = vsel %vm66_vm0, %v11670_v9, 0.0 }
 0x48d   :  { %4019 = vadd.xlane.f32.xlu1 %v4018_v30  ;;  %v4030_v30 = vsel %vm66_vm0, %v11674_v29, 0.0  ;;  %v9102_v37 = vpop.eup %9101 }
 0x48e   :  { %v3873_v55 = vpop.xlane.xlu0 %3872  ;;  %v9104_v21 = vpop.eup %9103  ;;  %v4100_v29 = vmul.f32 %v9102_v37, %v11295_v14 }
 0x490   :  { %4022 = vadd.xlane.f32.xlu0 %v4021_v50  ;;  %v3876_v39 = vpop.xlane.xlu1 %3875 }
 0x491   :  { %4025 = vadd.xlane.f32.xlu1 %v4024_v46 }
 0x494   :  { %4028 = vadd.xlane.f32.xlu0 %v4027_v42  ;;  %v3843_v24 = vpop.xlane.xlu0 %3842 }
 0x495   :  { %4031 = vadd.xlane.f32.xlu1 %v4030_v30  ;;  %9105 = vrcp.f32 %v3843_v24  ;;  %v3846_v50 = vpop.xlane.xlu1 %3845 }
 0x496   :  { %9107 = vrcp.f32 %v3846_v50 }
 0x497   :  { %9109 = vrcp.f32 %v3876_v39 }
 0x498   :  { %9111 = vrcp.f32 %v3873_v55  ;;  %v3867_v2 = vpop.xlane.xlu0 %3866 }
 0x499   :  { %9113 = vrcp.f32 %v3867_v2  ;;  %v3870_v46 = vpop.xlane.xlu1 %3869  ;;  %v4099_v2 = vmul.f32 %v9104_v21, %v11290_v4  ;;  %v13606_v4 = vld [vmem:[#allocation21_spill] sm:$0xff] }
 0x49a   :  { %9115 = vrcp.f32 %v3870_v46  ;;  %v13610_v21 = vld [vmem:[#allocation5_spill] sm:$0xff] }
 0x49b   :  { %v4874_v56 = vpack.c.bf16 %v4100_v29, %v4099_v2 }
 0x49c   :  { %v3861_v26 = vpop.xlane.xlu0 %3860 }
 0x49d   :  { %v3864_v9 = vpop.xlane.xlu1 %3863 }
 0x49e   :  { %9117 = vrcp.f32 %v3864_v9 }
 0x49f   :  { %v9106_v42 = vpop.eup %9105  ;;  %9119 = vrcp.f32 %v3861_v26 }
 0x4a0   :  { %v9108_v40 = vpop.eup %9107  ;;  %v3885_v1 = vpop.xlane.xlu0 %3884  ;;  %v4097_v24 = vmul.f32 %v9106_v42, %v11332_v3  ;;  %v13611_v42 = vld [vmem:[#allocation25_spill] sm:$0xff] }
 0x4a1   :  { %v9110_v23 = vpop.eup %9109  ;;  %v3888_v30 = vpop.xlane.xlu1 %3887  ;;  %v4098_v39 = vmul.f32 %v9108_v40, %v11336_v11 }
 0x4a2   :  { %v9112_v55 = vpop.eup %9111  ;;  %v4108_v44 = vmul.f32 %v9110_v23, %v11326_v45  ;;  %v13607_v23 = vld [vmem:[#allocation23_spill] sm:$0xff] }
 0x4a3   :  { %v9114_v50 = vpop.eup %9113  ;;  %v4873_v46 = vpack.c.bf16 %v4098_v39, %v4097_v24  ;;  %v4107_v40 = vmul.f32 %v9112_v55, %v11319_v12  ;;  %v13608_v12 = vld [vmem:[#allocation9_spill] sm:$0xff] }
 0x4a4   :  { %v9116_v62 = vpop.eup %9115  ;;  %v4105_v3 = vmul.f32 %v9114_v50, %v11350_v0  ;;  %v13609_v0 = vld [vmem:[#allocation7_spill] sm:$0xff] }
 0x4a5   :  { %v3855_v35 = vpop.xlane.xlu0 %3854  ;;  %8605 = vmatprep.mubr.msk.bf16.mxu0 %vm66_vm0, %v4873_v46  ;;  %v4106_v11 = vmul.f32 %v9116_v62, %v11352_v19  ;;  %v4878_v45 = vpack.c.bf16 %v4108_v44, %v4107_v40 }
 0x4a6   :  { %9121 = vrcp.f32 %v3855_v35  ;;  %v3858_v14 = vpop.xlane.xlu1 %3857  ;;  %8606 = vmatmul.mubr.msk.bf16.vlgmr.msra.gmra.mrb[164].mxu0 %vm66_vm0, %v4874_v56 }
 0x4a7   :  { %9123 = vrcp.f32 %v3858_v14  ;;  %8630 = vmatpush3.bf16.msra.mxu0 %v13606_v4  ;;  %v4877_v37 = vpack.c.bf16 %v4106_v11, %v4105_v3  ;;  %v13612_v11 = vld [vmem:[#allocation26_spill] sm:$0xff] }
 0x4a8   :  { %9125 = vrcp.f32 %v3888_v30  ;;  %8631 = vmatprep.subr.bf16.mxu0 %v13607_v23  ;;  %v9118_v44 = vpop.eup %9117 }
 0x4a9   :  { %9127 = vrcp.f32 %v3885_v1  ;;  %v3879_v35 = vpop.xlane.xlu0 %3878  ;;  %8621 = vmatprep.mubr.msk.bf16.mxu1 %vm66_vm0, %v4877_v37  ;;  %v9120_v62 = vpop.eup %9119 }
 0x4aa   :  { %9129 = vrcp.f32 %v3879_v35  ;;  %v3882_v26 = vpop.xlane.xlu1 %3881  ;;  %8622 = vmatmul.mubr.msk.bf16.vlgmr.msra.gmra.mrb[156].mxu1 %vm66_vm0, %v4878_v45  ;;  %v4103_v50 = vmul.f32 %v9120_v62, %v11360_v34  ;;  %v13614_v35 = vld [vmem:[#allocation28_spill] sm:$0xff] }
 0x4ab   :  { %9131 = vrcp.f32 %v3882_v26  ;;  %8632 = vmatpush3.bf16.msra.mxu0 %v13607_v23  ;;  %8646 = vmatpush3.bf16.msra.mxu1 %v11264_v17  ;;  %v4104_v17 = vmul.f32 %v9118_v44, %v11362_v25  ;;  %v13613_v25 = vld [vmem:[#allocation30_spill] sm:$0xff] }
 0x4ac   :  { %8633 = vmatprep.subr.bf16.mxu0 %v13608_v12  ;;  %8647 = vmatprep.subr.bf16.mxu1 %v13609_v0 }
 0x4ad   :  { %v3897_v19 = vpop.xlane.xlu0 %3896 }
 0x4ae   :  { %v3900_v56 = vpop.xlane.xlu1 %3899 }
 0x4af   :  { %8634 = vmatpush3.bf16.msra.mxu0 %v13608_v12  ;;  %8648 = vmatpush3.bf16.msra.mxu1 %v13609_v0  ;;  %9133 = vrcp.f32 %v3900_v56 }
 0x4b0   :  { %v9122_v9 = vpop.eup %9121  ;;  %8635 = vmatprep.subr.bf16.mxu0 %v13610_v21  ;;  %8649 = vmatprep.subr.bf16.mxu1 %v13611_v42  ;;  %9135 = vrcp.f32 %v3897_v19 }
 0x4b1   :  { %v9124_v29 = vpop.eup %9123  ;;  %v3921_v1 = vpop.xlane.xlu0 %3920  ;;  %v4101_v39 = vmul.f32 %v9122_v9, %v11380_v7  ;;  %v4876_v7 = vpack.c.bf16 %v4104_v17, %v4103_v50 }
 0x4b2   :  { %v9126_v30 = vpop.eup %9125  ;;  %v3924_v24 = vpop.xlane.xlu1 %3923  ;;  %v4102_v55 = vmul.f32 %v9124_v29, %v11382_v41 }
 0x4b3   :  { %v9128_v2 = vpop.eup %9127  ;;  %8636 = vmatpush3.bf16.msra.mxu0 %v13610_v21  ;;  %8650 = vmatpush3.bf16.msra.mxu1 %v13611_v42  ;;  %v4112_v41 = vmul.f32 %v9126_v30, %v11372_v54 }
 0x4b4   :  { %v9130_v46 = vpop.eup %9129  ;;  %v4875_v14 = vpack.c.bf16 %v4102_v55, %v4101_v39  ;;  %8651 = vmatprep.subr.bf16.mxu1 %v13612_v11  ;;  %8661 = vmatprep.subr.bf16.mxu0 %v13613_v25  ;;  %v4111_v45 = vmul.f32 %v9128_v2, %v11370_v48 }
 0x4b5   :  { %v9132_v3 = vpop.eup %9131  ;;  %v3891_v40 = vpop.xlane.xlu0 %3890  ;;  %v4109_v34 = vmul.f32 %v9130_v46, %v11390_v27 }
 0x4b6   :  { %9137 = vrcp.f32 %v3891_v40  ;;  %v3894_v4 = vpop.xlane.xlu1 %3893  ;;  %8609 = vmatprep.mubr.msk.bf16.mxu0 %vm66_vm0, %v4875_v14  ;;  %v4110_v37 = vmul.f32 %v9132_v3, %v11392_v31  ;;  %v4880_v26 = vpack.c.bf16 %v4112_v41, %v4111_v45 }
 0x4b7   :  { %9139 = vrcp.f32 %v3894_v4  ;;  %8610 = vmatmul.mubr.msk.bf16.gmra.mrb[168].mxu0 %vm66_vm0, %v4876_v7  ;;  %8652 = vmatpush3.bf16.msra.mxu1 %v13612_v11  ;;  %v13617_v7 = vld [vmem:[#allocation32_spill] sm:$0xff] }
 0x4b8   :  { %9141 = vrcp.f32 %v3924_v24  ;;  %v4879_v23 = vpack.c.bf16 %v4110_v37, %v4109_v34  ;;  %8677 = vmatprep.subr.bf16.mxu1 %v13614_v35 }
 0x4b9   :  { %9143 = vrcp.f32 %v3921_v1  ;;  %v3915_v54 = vpop.xlane.xlu0 %3914  ;;  %v9134_v27 = vpop.eup %9133 }
 0x4ba   :  { %9145 = vrcp.f32 %v3915_v54  ;;  %v3918_v12 = vpop.xlane.xlu1 %3917  ;;  %8625 = vmatprep.mubr.msk.bf16.mxu1 %vm66_vm0, %v4879_v23  ;;  %v9136_v31 = vpop.eup %9135  ;;  %v4116_v19 = vmul.f32 %v9134_v27, %v11402_v18  ;;  %v13619_v54 = vld [vmem:[#allocation36_spill] sm:$0xff] }
 0x4bb   :  { %9147 = vrcp.f32 %v3918_v12  ;;  %8626 = vmatmul.mubr.msk.bf16.gmra.mrb[160].mxu1 %vm66_vm0, %v4880_v26  ;;  %v4115_v42 = vmul.f32 %v9136_v31, %v11400_v6  ;;  %v13621_v12 = vld [vmem:[#allocation42_spill] sm:$0xff] }
 0x4bc   :  { %v13622_v31 = vld [vmem:[#allocation34_spill] sm:$0xff] }
 0x4bd   :  { %v3909_v44 = vpop.xlane.xlu0 %3908  ;;  %v4882_v24 = vpack.c.bf16 %v4116_v19, %v4115_v42 }
 0x4be   :  { %v3912_v56 = vpop.xlane.xlu1 %3911 }
 0x4bf   :  { %9149 = vrcp.f32 %v3912_v56  ;;  %v13623_v56 = vld [vmem:[#allocation44_spill] sm:$0xff] }
 0x4c0   :  { %v9138_v0 = vpop.eup %9137  ;;  %9151 = vrcp.f32 %v3909_v44 }
 0x4c1   :  { %v9140_v48 = vpop.eup %9139  ;;  %v4113_v9 = vmul.f32 %v9138_v0, %v11422_v57 }
 0x4c2   :  { %v9142_v62 = vpop.eup %9141  ;;  %v4114_v29 = vmul.f32 %v9140_v48, %v11424_v8 }
 0x4c3   :  { %v9144_v21 = vpop.eup %9143  ;;  %v4124_v39 = vmul.f32 %v9142_v62, %v11412_v36  ;;  %v13615_v36 = vld [vmem:[#allocation29_spill] sm:$0xff] }
 0x4c4   :  { %v9146_v1 = vpop.eup %9145  ;;  %v4881_v17 = vpack.c.bf16 %v4114_v29, %v4113_v9  ;;  %v4123_v2 = vmul.f32 %v9144_v21, %v11410_v47  ;;  %v13616_v47 = vld [vmem:[#allocation27_spill] sm:$0xff]  ;;  %v13624_v21 = vld [vmem:[#allocation45_spill] sm:$0xff] }
 0x4c5   :  { %v9148_v30 = vpop.eup %9147  ;;  %v3903_v55 = vpop.xlane.xlu0 %3902  ;;  %v4121_v57 = vmul.f32 %v9146_v1, %v11432_v15  ;;  %v13625_v1 = vld [vmem:[#allocation46_spill] sm:$0xff] }
 0x4c6   :  { %9153 = vrcp.f32 %v3903_v55  ;;  %v3906_v18 = vpop.xlane.xlu1 %3905  ;;  %8637 = vmatprep.mubr.msk.bf16.mxu0 %vm66_vm0, %v4881_v17  ;;  %v4122_v8 = vmul.f32 %v9148_v30, %v11434_v61  ;;  %v4886_v50 = vpack.c.bf16 %v4124_v39, %v4123_v2  ;;  %v13626_v30 = vld [vmem:[#allocation43_spill] sm:$0xff]  ;;  %v13628_v2 = vld [vmem:[#allocation40_spill] sm:$0xff] }
 0x4c7   :  { %9155 = vrcp.f32 %v3906_v18  ;;  %8638 = vmatmul.mubr.msk.bf16.vlgmr.msra.gmra.mrb[164].mxu0 %vm66_vm0, %v4882_v24 }
 0x4c8   :  { %8662 = vmatpush3.bf16.msra.mxu0 %v13613_v25  ;;  %v4885_v6 = vpack.c.bf16 %v4122_v8, %v4121_v57  ;;  %v13627_v8 = vld [vmem:[#allocation35_spill] sm:$0xff] }
 0x4c9   :  { %8663 = vmatprep.subr.bf16.mxu0 %v13615_v36  ;;  %v3927_v46 = vpop.xlane.xlu0 %3926  ;;  %v9150_v15 = vpop.eup %9149 }
 0x4ca   :  { %9157 = vrcp.f32 %v3927_v46  ;;  %v3930_v14 = vpop.xlane.xlu1 %3929  ;;  %8653 = vmatprep.mubr.msk.bf16.mxu1 %vm66_vm0, %v4885_v6  ;;  %v9152_v61 = vpop.eup %9151  ;;  %v4120_v41 = vmul.f32 %v9150_v15, %v11444_v13  ;;  %v13629_v15 = vld [vmem:[#allocation39_spill] sm:$0xff] }
 0x4cb   :  { %9159 = vrcp.f32 %v3930_v14  ;;  %8654 = vmatmul.mubr.msk.bf16.vlgmr.msra.gmra.mrb[156].mxu1 %vm66_vm0, %v4886_v50  ;;  %v4119_v37 = vmul.f32 %v9152_v61, %v11442_v33  ;;  %v13620_v33 = vld [vmem:[#allocation41_spill] sm:$0xff]  ;;  %v13630_v61 = vld [vmem:[#allocation48_spill] sm:$0xff] }
 0x4cc   :  { %8664 = vmatpush3.bf16.msra.mxu0 %v13615_v36  ;;  %8678 = vmatpush3.bf16.msra.mxu1 %v13614_v35  ;;  %v13618_v35 = vld [vmem:[#allocation31_spill] sm:$0xff] }
 0x4cd   :  { %8665 = vmatprep.subr.bf16.mxu0 %v11307_v32  ;;  %8679 = vmatprep.subr.bf16.mxu1 %v13616_v47  ;;  %v3945_v25 = vpop.xlane.xlu0 %3944  ;;  %v4884_v26 = vpack.c.bf16 %v4120_v41, %v4119_v37 }
 0x4ce   :  { %v3948_v40 = vpop.xlane.xlu1 %3947 }
 0x4cf   :  { %9161 = vrcp.f32 %v3948_v40 }
 0x4d0   :  { %v9154_v3 = vpop.eup %9153  ;;  %8666 = vmatpush3.bf16.msra.mxu0 %v11307_v32  ;;  %8680 = vmatpush3.bf16.msra.mxu1 %v13616_v47  ;;  %9163 = vrcp.f32 %v3945_v25 }
 0x4d1   :  { %v9156_v11 = vpop.eup %9155  ;;  %8667 = vmatprep.subr.bf16.mxu0 %v11304_v49  ;;  %8681 = vmatprep.subr.bf16.mxu1 %v13617_v7  ;;  %v4117_v4 = vmul.f32 %v9154_v3, %v11456_v38 }
 0x4d2   :  { %v4118_v34 = vmul.f32 %v9156_v11, %v11458_v20  ;;  %v13631_v11 = vld [vmem:[#allocation49_spill] sm:$0xff] }
 0x4d4   :  { %v9158_v45 = vpop.eup %9157  ;;  %8668 = vmatpush3.bf16.msra.mxu0 %v11304_v49  ;;  %8682 = vmatpush3.bf16.msra.mxu1 %v13617_v7  ;;  %v4883_v32 = vpack.c.bf16 %v4118_v34, %v4117_v4  ;;  %v13632_v7 = vld [vmem:[#allocation47_spill] sm:$0xff] }
 0x4d5   :  { %v9160_v23 = vpop.eup %9159  ;;  %8683 = vmatprep.subr.bf16.mxu1 %v13618_v35  ;;  %8693 = vmatprep.subr.bf16.mxu0 %v13619_v54  ;;  %v3939_v13 = vpop.xlane.xlu0 %3938  ;;  %v4125_v20 = vmul.f32 %v9158_v45, %v13620_v33 }
 0x4d6   :  { %9165 = vrcp.f32 %v3939_v13  ;;  %v3942_v38 = vpop.xlane.xlu1 %3941  ;;  %8641 = vmatprep.mubr.msk.bf16.mxu0 %vm66_vm0, %v4883_v32  ;;  %v4126_v27 = vmul.f32 %v9160_v23, %v13621_v12 }
 0x4d7   :  { %9167 = vrcp.f32 %v3942_v38  ;;  %8642 = vmatmul.mubr.msk.bf16.gmra.mrb[168].mxu0 %vm66_vm0, %v4884_v26 }
 0x4d8   :  { %8684 = vmatpush3.bf16.msra.mxu1 %v13618_v35  ;;  %v4887_v49 = vpack.c.bf16 %v4126_v27, %v4125_v20  ;;  %v13633_v27 = vld [vmem:[#allocation3_spill] sm:$0xff] }
 0x4d9   :  { %8709 = vmatprep.subr.bf16.mxu1 %v13622_v31  ;;  %v9162_v0 = vpop.eup %9161 }
 0x4da   :  { %8657 = vmatprep.mubr.msk.bf16.mxu1 %vm66_vm0, %v4887_v49  ;;  %v9164_v48 = vpop.eup %9163  ;;  %v4132_v62 = vmul.f32 %v9162_v0, %v13623_v56 }
 0x4db   :  { %v4131_v24 = vmul.f32 %v9164_v48, %v13626_v30  ;;  %v13634_v48 = vld [vmem:[#allocation12_spill] sm:$0xff] }
 0x4dd   :  { %v3957_v9 = vpop.xlane.xlu0 %3956  ;;  %v4890_v55 = vpack.c.bf16 %v4132_v62, %v4131_v24 }
 0x4de   :  { %v3960_v29 = vpop.xlane.xlu1 %3959 }
 0x4df   :  { %9169 = vrcp.f32 %v3960_v29 }
 0x4e0   :  { %v9166_v19 = vpop.eup %9165  ;;  %9171 = vrcp.f32 %v3957_v9 }
 0x4e1   :  { %v9168_v44 = vpop.eup %9167  ;;  %v4129_v42 = vmul.f32 %v9166_v19, %v13624_v21 }
 0x4e2   :  { %v4130_v17 = vmul.f32 %v9168_v44, %v13625_v1 }
 0x4e4   :  { %v4889_v39 = vpack.c.bf16 %v4130_v17, %v4129_v42 }
 0x4e5   :  { %v3951_v18 = vpop.xlane.xlu0 %3950 }
 0x4e6   :  { %9173 = vrcp.f32 %v3951_v18  ;;  %v3954_v57 = vpop.xlane.xlu1 %3953  ;;  %8669 = vmatprep.mubr.msk.bf16.mxu0 %vm66_vm0, %v4889_v39 }
 0x4e7   :  { %9175 = vrcp.f32 %v3954_v57  ;;  %8670 = vmatmul.mubr.msk.bf16.vlgmr.msra.gmra.mrb[164].mxu0 %vm66_vm0, %v4890_v55 }
 0x4e8   :  { %8694 = vmatpush3.bf16.msra.mxu0 %v13619_v54 }
 0x4e9   :  { %8695 = vmatprep.subr.bf16.mxu0 %v13627_v8  ;;  %v9170_v6 = vpop.eup %9169 }
 0x4ea   :  { %v9172_v50 = vpop.eup %9171  ;;  %v4136_v3 = vmul.f32 %v9170_v6, %v13630_v61 }
 0x4eb   :  { %v4135_v41 = vmul.f32 %v9172_v50, %v13632_v7 }
 0x4ec   :  { %8696 = vmatpush3.bf16.msra.mxu0 %v13627_v8 }
 0x4ed   :  { %8697 = vmatprep.subr.bf16.mxu0 %v13628_v2  ;;  %v3993_v14 = vpop.xlane.xlu0 %3992  ;;  %v4892_v37 = vpack.c.bf16 %v4136_v3, %v4135_v41 }
 0x4ee   :  { %v3996_v47 = vpop.xlane.xlu1 %3995 }
 0x4ef   :  { %9177 = vrcp.f32 %v3996_v47 }
 0x4f0   :  { %v9174_v36 = vpop.eup %9173  ;;  %8698 = vmatpush3.bf16.msra.mxu0 %v13628_v2  ;;  %9179 = vrcp.f32 %v3993_v14 }
 0x4f1   :  { %v9176_v46 = vpop.eup %9175  ;;  %8699 = vmatprep.subr.bf16.mxu0 %v13629_v15  ;;  %v4133_v25 = vmul.f32 %v9174_v36, %v13631_v11 }
 0x4f2   :  { %v4134_v40 = vmul.f32 %v9176_v46, %v11524_v59 }
 0x4f4   :  { %8700 = vmatpush3.bf16.msra.mxu0 %v13629_v15  ;;  %v4891_v4 = vpack.c.bf16 %v4134_v40, %v4133_v25 }
 0x4f5   :  { %v3987_v34 = vpop.xlane.xlu0 %3986 }
 0x4f6   :  { %9181 = vrcp.f32 %v3987_v34  ;;  %v3990_v45 = vpop.xlane.xlu1 %3989  ;;  %8673 = vmatprep.mubr.msk.bf16.mxu0 %vm66_vm0, %v4891_v4  ;;  %v13637_v34 = vld [vmem:[#allocation11_spill] sm:$0xff] }
 0x4f7   :  { %9183 = vrcp.f32 %v3990_v45  ;;  %8674 = vmatmul.mubr.msk.bf16.gmra.mrb[168].mxu0 %vm66_vm0, %v4892_v37  ;;  %v13638_v45 = vld [vmem:[#allocation13_spill] sm:$0xff] }
 0x4f9   :  { %v3933_v32 = vpop.xlane.xlu0 %3932  ;;  %v9178_v35 = vpop.eup %9177 }
 0x4fa   :  { %9185 = vrcp.f32 %v3933_v32  ;;  %v3936_v23 = vpop.xlane.xlu1 %3935  ;;  %v9180_v13 = vpop.eup %9179  ;;  %v4148_v33 = vmul.f32 %v9178_v35, %v11546_v63 }
 0x4fb   :  { %9187 = vrcp.f32 %v3936_v23  ;;  %v4147_v19 = vmul.f32 %v9180_v13, %v13634_v48  ;;  %v13640_v13 = vld [vmem:[#allocation2_spill] sm:$0xff] }
 0x4fc   :  { %v13642_v48 = vld [vmem:[#allocation18_spill] sm:$0xff] }
 0x4fd   :  { %v3963_v59 = vpop.xlane.xlu0 %3962  ;;  %v4898_v9 = vpack.c.bf16 %v4148_v33, %v4147_v19 }
 0x4fe   :  { %9189 = vrcp.f32 %v3963_v59  ;;  %v3966_v54 = vpop.xlane.xlu1 %3965 }
 0x4ff   :  { %9191 = vrcp.f32 %v3966_v54 }
 0x500   :  { %v9182_v26 = vpop.eup %9181 }
 0x501   :  { %v9184_v38 = vpop.eup %9183  ;;  %v3969_v20 = vpop.xlane.xlu0 %3968  ;;  %v4145_v49 = vmul.f32 %v9182_v26, %v13633_v27 }
 0x502   :  { %9193 = vrcp.f32 %v3969_v20  ;;  %v3972_v12 = vpop.xlane.xlu1 %3971  ;;  %v4146_v0 = vmul.f32 %v9184_v38, %v11561_v22  ;;  %v13641_v38 = vld [vmem:[#allocation17_spill] sm:$0xff] }
 0x503   :  { %9195 = vrcp.f32 %v3972_v12 }
 0x504   :  { %v9186_v44 = vpop.eup %9185  ;;  %v4897_v56 = vpack.c.bf16 %v4146_v0, %v4145_v49 }
 0x505   :  { %v9188_v62 = vpop.eup %9187  ;;  %v3999_v29 = vpop.xlane.xlu0 %3998  ;;  %v4127_v63 = vmul.f32 %v9186_v44, %v11566_v43  ;;  %v13643_v44 = vld [vmem:[#allocation10_spill] sm:$0xff] }
 0x506   :  { %9197 = vrcp.f32 %v3999_v29  ;;  %v4002_v21 = vpop.xlane.xlu1 %4001  ;;  %8701 = vmatprep.mubr.msk.bf16.mxu0 %vm66_vm0, %v4897_v56  ;;  %v4128_v42 = vmul.f32 %v9188_v62, %v11571_v60 }
 0x507   :  { %9199 = vrcp.f32 %v4002_v21  ;;  %8702 = vmatmul.mubr.msk.bf16.vlgmr.msra.gmra.mrb[164].mxu0 %vm66_vm0, %v4898_v9  ;;  %v13644_v21 = vld [vmem:[#allocation14_spill] sm:$0xff] }
 0x508   :  { %v9190_v22 = vpop.eup %9189  ;;  %v4888_v1 = vpack.c.bf16 %v4128_v42, %v4127_v63  ;;  %v13645_v42 = vld [vmem:[#allocation8_spill] sm:$0xff] }
 0x509   :  { %v9192_v17 = vpop.eup %9191  ;;  %v4005_v30 = vpop.xlane.xlu0 %4004  ;;  %v4137_v39 = vmul.f32 %v9190_v22, %v11580_v51 }
 0x50a   :  { %9201 = vrcp.f32 %v4005_v30  ;;  %v4008_v24 = vpop.xlane.xlu1 %4007  ;;  %8658 = vmatmul.mubr.msk.bf16.gmra.mrb[160].mxu1 %vm66_vm0, %v4888_v1  ;;  %v4138_v55 = vmul.f32 %v9192_v17, %v11584_v58 }
 0x50b   :  { %9203 = vrcp.f32 %v4008_v24  ;;  %v13646_v24 = vld [vmem:[#allocation6_spill] sm:$0xff] }
 0x50c   :  { %v9194_v18 = vpop.eup %9193  ;;  %v4893_v43 = vpack.c.bf16 %v4138_v55, %v4137_v39  ;;  %v13647_v55 = vld [vmem:[#allocation4_spill] sm:$0xff] }
 0x50d   :  { %v9196_v57 = vpop.eup %9195  ;;  %v3975_v60 = vpop.xlane.xlu0 %3974  ;;  %v4139_v8 = vmul.f32 %v9194_v18, %v11592_v52 }
 0x50e   :  { %v4140_v2 = vmul.f32 %v9196_v57, %v11596_v5  ;;  %9205 = vrcp.f32 %v3975_v60  ;;  %v3978_v6 = vpop.xlane.xlu1 %3977  ;;  %8685 = vmatprep.mubr.msk.bf16.mxu1 %vm66_vm0, %v4893_v43  ;;  %v13635_v5 = vld [vmem:[#allocation33_spill] sm:$0xff] }
 0x50f   :  { %9207 = vrcp.f32 %v3978_v6  ;;  %v13649_v6 = vld [vmem:[#allocation16_spill] sm:$0xff] }
 0x510   :  { %v9198_v50 = vpop.eup %9197  ;;  %v4894_v36 = vpack.c.bf16 %v4140_v2, %v4139_v8  ;;  %v13648_v8 = vld [vmem:[#allocation19_spill] sm:$0xff] }
 0x511   :  { %v9200_v46 = vpop.eup %9199  ;;  %v3981_v51 = vpop.xlane.xlu0 %3980  ;;  %v4149_v14 = vmul.f32 %v9198_v50, %v11606_v16 }
 0x512   :  { %9209 = vrcp.f32 %v3981_v51  ;;  %v3984_v58 = vpop.xlane.xlu1 %3983  ;;  %8686 = vmatmul.mubr.msk.bf16.vlgmr.msra.gmra.mrb[156].mxu1 %vm66_vm0, %v4894_v36  ;;  %v4150_v47 = vmul.f32 %v9200_v46, %v11610_v10  ;;  %v13636_v10 = vld [vmem:[#allocation38_spill] sm:$0xff] }
 0x513   :  { %9211 = vrcp.f32 %v3984_v58  ;;  %8710 = vmatpush3.bf16.msra.mxu1 %v13622_v31  ;;  %v11825_v46 = vld [vmem:[%s13286_s7] ss:$0 sm:$0xff] }
 0x514   :  { %v9202_v52 = vpop.eup %9201  ;;  %8711 = vmatprep.subr.bf16.mxu1 %v13635_v5  ;;  %v4899_v15 = vpack.c.bf16 %v4150_v47, %v4149_v14 }
 0x515   :  { %v9204_v61 = vpop.eup %9203  ;;  %v4011_v3 = vpop.xlane.xlu0 %4010  ;;  %v4151_v25 = vmul.f32 %v9202_v52, %v11616_v53 }
 0x516   :  { %9213 = vrcp.f32 %v4011_v3  ;;  %v4014_v11 = vpop.xlane.xlu1 %4013  ;;  %8705 = vmatprep.mubr.msk.bf16.mxu0 %vm66_vm0, %v4899_v15  ;;  %v4152_v40 = vmul.f32 %v9204_v61, %v11620_v28  ;;  %v13639_v28 = vld [vmem:[#allocation37_spill] sm:$0xff]  ;;  %v9389_v15 = vld [vmem:[%s13279_s0] sm:$0xff] }
 0x517   :  { %9215 = vrcp.f32 %v4014_v11  ;;  %8712 = vmatpush3.bf16.msra.mxu1 %v13635_v5 }
 0x518   :  { %v9206_v16 = vpop.eup %9205  ;;  %8713 = vmatprep.subr.bf16.mxu1 %v13636_v10  ;;  %v4900_v31 = vpack.c.bf16 %v4152_v40, %v4151_v25  ;;  %v9390_v25 = vld [vmem:[%s13279_s0 + $0x10] sm:$0xff] }
 0x519   :  { %v9208_v7 = vpop.eup %9207  ;;  %v4017_v41 = vpop.xlane.xlu0 %4016  ;;  %v4141_v37 = vmul.f32 %v9206_v16, %v13637_v34  ;;  %v9391_v16 = vld [vmem:[%s13279_s0 + $0x8] sm:$0xff] }
 0x51a   :  { %9217 = vrcp.f32 %v4017_v41  ;;  %v4020_v4 = vpop.xlane.xlu1 %4019  ;;  %8706 = vmatmul.mubr.msk.bf16.gmra.mrb[168].mxu0 %vm66_vm0, %v4900_v31  ;;  %v4142_v32 = vmul.f32 %v9208_v7, %v13638_v45  ;;  %v9392_v7 = vld [vmem:[%s13279_s0 + $0x18] sm:$0xff] }
 0x51b   :  { %9219 = vrcp.f32 %v4020_v4  ;;  %8714 = vmatpush3.bf16.msra.mxu1 %v13636_v10 }
 0x51c   :  { %v9210_v53 = vpop.eup %9209  ;;  %8715 = vmatprep.subr.bf16.mxu1 %v13639_v28  ;;  %v4895_v23 = vpack.c.bf16 %v4142_v32, %v4141_v37 }
 0x51d   :  { %v9212_v59 = vpop.eup %9211  ;;  %v4023_v35 = vpop.xlane.xlu0 %4022  ;;  %v4143_v26 = vmul.f32 %v9210_v53, %v13640_v13 }
 0x51e   :  { %9221 = vrcp.f32 %v4023_v35  ;;  %v4026_v54 = vpop.xlane.xlu1 %4025  ;;  %8689 = vmatprep.mubr.msk.bf16.mxu1 %vm66_vm0, %v4895_v23  ;;  %v4144_v33 = vmul.f32 %v9212_v59, %v13641_v38  ;;  %v9393_v35 = vld [vmem:[%s13279_s0 + $0x20] sm:$0xff]  ;;  %v9394_v38 = vld [vmem:[%s13279_s0 + $0x30] sm:$0xff] }
 0x51f   :  { %9223 = vrcp.f32 %v4026_v54  ;;  %8716 = vmatpush3.bf16.msra.mxu1 %v13639_v28 }
 0x520   :  { %v9214_v20 = vpop.eup %9213  ;;  %v4896_v12 = vpack.c.bf16 %v4144_v33, %v4143_v26 }
 0x521   :  { %v9216_v27 = vpop.eup %9215  ;;  %v4029_v49 = vpop.xlane.xlu0 %4028  ;;  %v4153_v19 = vmul.f32 %v9214_v20, %v13642_v48  ;;  %v9395_v20 = vld [vmem:[%s13279_s0 + $0x28] sm:$0xff] }
 0x522   :  { %9225 = vrcp.f32 %v4029_v49  ;;  %v4032_v0 = vpop.xlane.xlu1 %4031  ;;  %8690 = vmatmul.mubr.msk.bf16.gmra.mrb[160].mxu1 %vm66_vm0, %v4896_v12  ;;  %v4154_v56 = vmul.f32 %v9216_v27, %v13643_v44  ;;  %v9396_v49 = vld [vmem:[%s13279_s0 + $0x38] sm:$0xff] }
 0x523   :  { %9227 = vrcp.f32 %v4032_v0 }
 0x524   :  { %v9218_v62 = vpop.eup %9217  ;;  %v4901_v9 = vpack.c.bf16 %v4154_v56, %v4153_v19 }
 0x525   :  { %v9220_v29 = vpop.eup %9219  ;;  %v4155_v63 = vmul.f32 %v9218_v62, %v13644_v21 }
 0x526   :  { %v4156_v22 = vmul.f32 %v9220_v29, %v13645_v42  ;;  %8717 = vmatprep.mubr.msk.bf16.mxu1 %vm66_vm0, %v4901_v9  ;;  %v9397_v42 = vld [vmem:[%s13279_s0 + $0x40] sm:$0xff] }
 0x528   :  { %v9222_v1 = vpop.eup %9221  ;;  %v4902_v17 = vpack.c.bf16 %v4156_v22, %v4155_v63 }
 0x529   :  { %v9224_v30 = vpop.eup %9223  ;;  %v4157_v39 = vmul.f32 %v9222_v1, %v13646_v24 }
 0x52a   :  { %8718 = vmatmul.mubr.msk.bf16.vlgmr.msra.gmra.mrb[156].mxu1 %vm66_vm0, %v4902_v17  ;;  %v4158_v18 = vmul.f32 %v9224_v30, %v13647_v55  ;;  %v9398_v30 = vld [vmem:[%s13279_s0 + $0x50] sm:$0xff] }
 0x52c   :  { %v9226_v43 = vpop.eup %9225  ;;  %v4903_v57 = vpack.c.bf16 %v4158_v18, %v4157_v39  ;;  %v9399_v39 = vld [vmem:[%s13279_s0 + $0x48] sm:$0xff] }
 0x52d   :  { %v9228_v60 = vpop.eup %9227  ;;  %v4159_v2 = vmul.f32 %v9226_v43, %v13648_v8  ;;  %v9400_v43 = vld [vmem:[%s13279_s0 + $0x58] sm:$0xff] }
 0x52e   :  { %8721 = vmatprep.mubr.msk.bf16.mxu1 %vm66_vm0, %v4903_v57  ;;  %v4160_v50 = vmul.f32 %v9228_v60, %v13649_v6 }
 0x530   :  { %v4904_v36 = vpack.c.bf16 %v4160_v50, %v4159_v2 }
 0x532   :  { %8722 = vmatmul.mubr.msk.bf16.gmra.mrb[160].mxu1 %vm66_vm0, %v4904_v36 }
 0x5da   :  { %v8703_v51 = vpop.f32.mrb[164].mxu0 }
 0x5db   :  { %v5445_v58 = vpop.f32.mrb[165].mxu0  ;;  %v5610_v14 = vadd.f32 %v8703_v51, %v11825_v46 }
 0x5dc   :  { %v5608_v47 = vadd.f32 %v11825_v46, %v5445_v58  ;;  %v8704_v52 = vpop.f32.mrb[166].mxu0 }
 0x5dd   :  { %v5448_v5 = vpop.f32.mrb[167].mxu0  ;;  %v5611_v3 = vadd.f32 %v8704_v52, %v11825_v46  ;;  %v11839_v40 = vadd.f32 %v9390_v25, %v5610_v14  ;;  %v9401_v14 = vld [vmem:[%s13279_s0 + $0x60] sm:$0xff]  ;;  %v9403_v25 = vld [vmem:[%s13279_s0 + $0x68] sm:$0xff] }
 0x5de   :  { %v11832_v61 = vadd.f32 %v9389_v15, %v5608_v47  ;;  %v5609_v11 = vadd.f32 %v11825_v46, %v5448_v5 }
 0x5df   :  { %13651 = vst [vmem:[#allocation15_spill] sm:$0xff] %v11839_v40  ;;  %v11851_v41 = vadd.f32 %v9392_v7, %v5611_v3  ;;  %v5648_v34 = vsel %vm66_vm0, %v11839_v40, 0.0  ;;  %v9402_v3 = vld [vmem:[%s13279_s0 + $0x70] sm:$0xff] }
 0x5e0   :  { %13650 = vst [vmem:[#allocation20_spill] sm:$0xff] %v11832_v61  ;;  %v11844_v10 = vadd.f32 %v9391_v16, %v5609_v11  ;;  %v5642_v31 = vsel %vm66_vm0, %v11832_v61, 0.0 }
 0x5e1   :  { %5643 = vadd.xlane.f32.xlu0 %v5642_v31  ;;  %13653 = vst [vmem:[#allocation22_spill] sm:$0xff] %v11851_v41  ;;  %v5651_v37 = vsel %vm66_vm0, %v11851_v41, 0.0 }
 0x5e2   :  { %13652 = vst [vmem:[#allocation24_spill] sm:$0xff] %v11844_v10  ;;  %v5645_v4 = vsel %vm66_vm0, %v11844_v10, 0.0 }
 0x5e3   :  { %5646 = vadd.xlane.f32.xlu1 %v5645_v4 }
 0x5e5   :  { %5649 = vadd.xlane.f32.xlu0 %v5648_v34 }
 0x5e7   :  { %5652 = vadd.xlane.f32.xlu1 %v5651_v37 }
 0x5ed   :  { %v8707_v45 = vpop.f32.mrb[168].mxu0 }
 0x5ee   :  { %v5461_v32 = vpop.f32.mrb[169].mxu0  ;;  %v5614_v53 = vadd.f32 %v8707_v45, %v11825_v46 }
 0x5ef   :  { %v5612_v28 = vadd.f32 %v11825_v46, %v5461_v32  ;;  %v8708_v23 = vpop.f32.mrb[170].mxu0 }
 0x5f0   :  { %v5464_v59 = vpop.f32.mrb[171].mxu0  ;;  %v5615_v13 = vadd.f32 %v8708_v23, %v11825_v46  ;;  %v11871_v33 = vadd.f32 %v9394_v38, %v5614_v53 }
 0x5f1   :  { %v11864_v54 = vadd.f32 %v9393_v35, %v5612_v28  ;;  %v5613_v26 = vadd.f32 %v11825_v46, %v5464_v59 }
 0x5f2   :  { %13655 = vst [vmem:[#allocation23_spill] sm:$0xff] %v11871_v33  ;;  %v11883_v0 = vadd.f32 %v9396_v49, %v5615_v13  ;;  %v5660_v19 = vsel %vm66_vm0, %v11871_v33, 0.0 }
 0x5f3   :  { %13654 = vst [vmem:[#allocation21_spill] sm:$0xff] %v11864_v54  ;;  %v11876_v12 = vadd.f32 %v9395_v20, %v5613_v26  ;;  %v5654_v27 = vsel %vm66_vm0, %v11864_v54, 0.0 }
 0x5f4   :  { %5655 = vadd.xlane.f32.xlu0 %v5654_v27  ;;  %13657 = vst [vmem:[#allocation7_spill] sm:$0xff] %v11883_v0  ;;  %v5663_v44 = vsel %vm66_vm0, %v11883_v0, 0.0 }
 0x5f5   :  { %13656 = vst [vmem:[#allocation9_spill] sm:$0xff] %v11876_v12  ;;  %v5657_v48 = vsel %vm66_vm0, %v11876_v12, 0.0 }
 0x5f6   :  { %5658 = vadd.xlane.f32.xlu1 %v5657_v48 }
 0x5f8   :  { %5661 = vadd.xlane.f32.xlu0 %v5660_v19 }
 0x5fa   :  { %5664 = vadd.xlane.f32.xlu1 %v5663_v44 }
 0x5fd   :  { %v8719_v56 = vpop.f32.mrb[156].mxu1 }
 0x5fe   :  { %v5522_v62 = vpop.f32.mrb[157].mxu1  ;;  %v5618_v9 = vadd.f32 %v8719_v56, %v11825_v46 }
 0x5ff   :  { %v5616_v29 = vadd.f32 %v11825_v46, %v5522_v62  ;;  %v8720_v21 = vpop.f32.mrb[158].mxu1 }
 0x600   :  { %v5525_v63 = vpop.f32.mrb[159].mxu1  ;;  %v5619_v1 = vadd.f32 %v8720_v21, %v11825_v46  ;;  %v11903_v24 = vadd.f32 %v9398_v30, %v5618_v9 }
 0x601   :  { %v11896_v22 = vadd.f32 %v9397_v42, %v5616_v29  ;;  %v5617_v17 = vadd.f32 %v11825_v46, %v5525_v63 }
 0x602   :  { %13659 = vst [vmem:[#allocation25_spill] sm:$0xff] %v11903_v24  ;;  %v11915_v57 = vadd.f32 %v9400_v43, %v5619_v1  ;;  %v5672_v51 = vsel %vm66_vm0, %v11903_v24, 0.0 }
 0x603   :  { %13658 = vst [vmem:[#allocation5_spill] sm:$0xff] %v11896_v22  ;;  %v11908_v55 = vadd.f32 %v9399_v39, %v5617_v17  ;;  %v5666_v18 = vsel %vm66_vm0, %v11896_v22, 0.0 }
 0x604   :  { %5667 = vadd.xlane.f32.xlu0 %v5666_v18  ;;  %13661 = vst [vmem:[#allocation30_spill] sm:$0xff] %v11915_v57  ;;  %v5675_v15 = vsel %vm66_vm0, %v11915_v57, 0.0 }
 0x605   :  { %13660 = vst [vmem:[#allocation26_spill] sm:$0xff] %v11908_v55  ;;  %v8723_v60 = vpop.f32.mrb[160].mxu1  ;;  %v5669_v8 = vsel %vm66_vm0, %v11908_v55, 0.0 }
 0x606   :  { %5670 = vadd.xlane.f32.xlu1 %v5669_v8  ;;  %v5538_v2 = vpop.f32.mrb[161].mxu1  ;;  %v5622_v6 = vadd.f32 %v8723_v60, %v11825_v46 }
 0x607   :  { %v5620_v50 = vadd.f32 %v11825_v46, %v5538_v2  ;;  %v8724_v36 = vpop.f32.mrb[162].mxu1 }
 0x608   :  { %5673 = vadd.xlane.f32.xlu0 %v5672_v51  ;;  %v5541_v58 = vpop.f32.mrb[163].mxu1  ;;  %v5623_v52 = vadd.f32 %v8724_v36, %v11825_v46  ;;  %v11935_v11 = vadd.f32 %v9402_v3, %v5622_v6  ;;  %v8913_v3 = vld [vmem:[%s13287_s10] ss:$8 sps:$4 sm:$0xff]  }
 0x609   :  { %v11926_v47 = vadd.f32 %v9401_v14, %v5620_v50  ;;  %v5621_v5 = vadd.f32 %v11825_v46, %v5541_v58  ;;  %v9404_v46 = vld [vmem:[%s13279_s0 + $0x78] sm:$0xff] }
 0x60a   :  { %5676 = vadd.xlane.f32.xlu1 %v5675_v15  ;;  %13663 = vst [vmem:[#allocation29_spill] sm:$0xff] %v11935_v11  ;;  %v11947_v7 = vadd.f32 %v9404_v46, %v5623_v52  ;;  %v5684_v34 = vsel %vm66_vm0, %v11935_v11, 0.0 }
 0x60b   :  { %13662 = vst [vmem:[#allocation28_spill] sm:$0xff] %v11926_v47  ;;  %v11940_v16 = vadd.f32 %v9403_v25, %v5621_v5  ;;  %v5678_v31 = vsel %vm66_vm0, %v11926_v47, 0.0  ;;  %v8915_v5 = vld [vmem:[%s13287_s10 + $0x4] ss:$8 sps:$4 sm:$0xff]  }
 0x60c   :  { %5679 = vadd.xlane.f32.xlu0 %v5678_v31  ;;  %13665 = vst [vmem:[#allocation32_spill] sm:$0xff] %v11947_v7  ;;  %v5687_v37 = vsel %vm66_vm0, %v11947_v7, 0.0  ;;  %5986 = vmatprep.subr.bf16.mxu0 %v8915_v5  ;;  %v8918_v31 = vld [vmem:[%s13287_s10 + $0x14] ss:$8 sps:$4 sm:$0xff]  }
 0x60d   :  { %13664 = vst [vmem:[#allocation27_spill] sm:$0xff] %v11940_v16  ;;  %v5681_v4 = vsel %vm66_vm0, %v11940_v16, 0.0  ;;  %5987 = vmatpush1.bf16.msra.mxu0 %v8913_v3 }
 0x60e   :  { %5682 = vadd.xlane.f32.xlu1 %v5681_v4  ;;  %v8916_v4 = vld [vmem:[%s13287_s10 + $0x10] ss:$8 sps:$4 sm:$0xff]   ;;  %5988 = vmatprep.subr.bf16.mxu0 %v8918_v31 }
 0x610   :  { %5685 = vadd.xlane.f32.xlu0 %v5684_v34 }
 0x611   :  { %5989 = vmatpush1.bf16.msra.mxu0 %v8916_v4 }
 0x612   :  { %5688 = vadd.xlane.f32.xlu1 %v5687_v37 }
 0x66e   :  { %v5644_v45 = vpop.xlane.xlu0 %5643 }
 0x66f   :  { %v5690_v32 = vmul.f32 0.015625, %v5644_v45 }
 0x670   :  { %v5647_v53 = vpop.xlane.xlu1 %5646 }
 0x671   :  { %v11956_v28 = vsub.f32 %v11832_v61, %v5690_v32  ;;  %v5691_v23 = vmul.f32 0.015625, %v5647_v53  ;;  %v8921_v53 = vld [vmem:[%s13287_s10 + $0x24] ss:$8 sps:$4 sm:$0xff]  }
 0x672   :  { %v5650_v59 = vpop.xlane.xlu0 %5649  ;;  %5990 = vmatprep.subr.bf16.mxu0 %v8921_v53 }
 0x673   :  { %v11959_v35 = vsub.f32 %v11844_v10, %v5691_v23  ;;  %v5692_v13 = vmul.f32 0.015625, %v5650_v59  ;;  %v5722_v26 = vmul.f32 %v11956_v28, %v11956_v28 }
 0x674   :  { %v5653_v38 = vpop.xlane.xlu1 %5652 }
 0x675   :  { %v11964_v20 = vsub.f32 %v11839_v40, %v5692_v13  ;;  %v5693_v27 = vmul.f32 0.015625, %v5653_v38  ;;  %v5738_v49 = vsel %vm66_vm0, %v5722_v26, 0.0  ;;  %v5723_v48 = vmul.f32 %v11959_v35, %v11959_v35  ;;  %v8919_v26 = vld [vmem:[%s13287_s10 + $0x20] ss:$8 sps:$4 sm:$0xff]  }
 0x676   :  { %5739 = vadd.xlane.f32.xlu0 %v5738_v49  ;;  %5991 = vmatpush1.bf16.msra.mxu0 %v8919_v26 }
 0x677   :  { %v11970_v19 = vsub.f32 %v11851_v41, %v5693_v27  ;;  %v5741_v44 = vsel %vm66_vm0, %v5723_v48, 0.0  ;;  %v5724_v56 = vmul.f32 %v11964_v20, %v11964_v20 }
 0x678   :  { %5742 = vadd.xlane.f32.xlu1 %v5741_v44 }
 0x679   :  { %v5744_v62 = vsel %vm66_vm0, %v5724_v56, 0.0  ;;  %v5725_v9 = vmul.f32 %v11970_v19, %v11970_v19 }
 0x67a   :  { %5745 = vadd.xlane.f32.xlu0 %v5744_v62  ;;  %v8924_v62 = vld [vmem:[%s13287_s10 + $0x34] ss:$8 sps:$4 sm:$0xff]  }
 0x67b   :  { %v5747_v29 = vsel %vm66_vm0, %v5725_v9, 0.0  ;;  %5992 = vmatprep.subr.bf16.mxu0 %v8924_v62 }
 0x67c   :  { %5748 = vadd.xlane.f32.xlu1 %v5747_v29 }
 0x681   :  { %v5656_v21 = vpop.xlane.xlu0 %5655 }
 0x682   :  { %v5694_v63 = vmul.f32 0.015625, %v5656_v21 }
 0x683   :  { %v5659_v42 = vpop.xlane.xlu1 %5658 }
 0x684   :  { %v11980_v1 = vsub.f32 %v11864_v54, %v5694_v63  ;;  %v5695_v17 = vmul.f32 0.015625, %v5659_v42  ;;  %v8922_v42 = vld [vmem:[%s13287_s10 + $0x30] ss:$8 sps:$4 sm:$0xff]  }
 0x685   :  { %v5662_v30 = vpop.xlane.xlu0 %5661  ;;  %5993 = vmatpush1.bf16.msra.mxu0 %v8922_v42  ;;  %v12079_v42 = vld [vmem:[%s13288_s8] ss:$0 sm:$0xff] }
 0x686   :  { %v11983_v39 = vsub.f32 %v11876_v12, %v5695_v17  ;;  %v5696_v18 = vmul.f32 0.015625, %v5662_v30  ;;  %v5726_v43 = vmul.f32 %v11980_v1, %v11980_v1 }
 0x687   :  { %v5665_v60 = vpop.xlane.xlu1 %5664 }
 0x688   :  { %v11988_v8 = vsub.f32 %v11871_v33, %v5696_v18  ;;  %v5697_v2 = vmul.f32 0.015625, %v5665_v60  ;;  %v5750_v6 = vsel %vm66_vm0, %v5726_v43, 0.0  ;;  %v5727_v50 = vmul.f32 %v11983_v39, %v11983_v39 }
 0x689   :  { %5751 = vadd.xlane.f32.xlu0 %v5750_v6 }
 0x68a   :  { %v11994_v36 = vsub.f32 %v11883_v0, %v5697_v2  ;;  %v5753_v51 = vsel %vm66_vm0, %v5727_v50, 0.0  ;;  %v5728_v58 = vmul.f32 %v11988_v8, %v11988_v8 }
 0x68b   :  { %5754 = vadd.xlane.f32.xlu1 %v5753_v51 }
 0x68c   :  { %v5756_v14 = vsel %vm66_vm0, %v5728_v58, 0.0  ;;  %v5729_v52 = vmul.f32 %v11994_v36, %v11994_v36 }
 0x68d   :  { %5757 = vadd.xlane.f32.xlu0 %v5756_v14  ;;  %v9405_v14 = vmov 0  }
 0x68e   :  { %v5759_v15 = vsel %vm66_vm0, %v5729_v52, 0.0  ;;  %6018 = vmatprep.mubr.bf16.mxu0 %v9405_v14 }
 0x68f   :  { %5760 = vadd.xlane.f32.xlu1 %v5759_v15 }
 0x691   :  { %v5668_v25 = vpop.xlane.xlu0 %5667 }
 0x692   :  { %v5698_v46 = vmul.f32 0.015625, %v5668_v25 }
 0x693   :  { %v5671_v34 = vpop.xlane.xlu1 %5670 }
 0x694   :  { %v12016_v37 = vsub.f32 %v11896_v22, %v5698_v46  ;;  %v5699_v45 = vmul.f32 0.015625, %v5671_v34 }
 0x695   :  { %v5674_v32 = vpop.xlane.xlu0 %5673 }
 0x696   :  { %v12022_v23 = vsub.f32 %v11908_v55, %v5699_v45  ;;  %v5700_v59 = vmul.f32 0.015625, %v5674_v32  ;;  %v5730_v13 = vmul.f32 %v12016_v37, %v12016_v37 }
 0x697   :  { %v5677_v38 = vpop.xlane.xlu1 %5676 }
 0x698   :  { %v12030_v27 = vsub.f32 %v11903_v24, %v5700_v59  ;;  %v5701_v49 = vmul.f32 0.015625, %v5677_v38  ;;  %v5762_v48 = vsel %vm66_vm0, %v5730_v13, 0.0  ;;  %v5731_v44 = vmul.f32 %v12022_v23, %v12022_v23 }
 0x699   :  { %5763 = vadd.xlane.f32.xlu0 %v5762_v48  ;;  %v5680_v56 = vpop.xlane.xlu0 %5679 }
 0x69a   :  { %v12039_v9 = vsub.f32 %v11915_v57, %v5701_v49  ;;  %v5702_v29 = vmul.f32 0.015625, %v5680_v56  ;;  %v5765_v21 = vsel %vm66_vm0, %v5731_v44, 0.0  ;;  %v5732_v63 = vmul.f32 %v12030_v27, %v12030_v27 }
 0x69b   :  { %5766 = vadd.xlane.f32.xlu1 %v5765_v21  ;;  %v5683_v17 = vpop.xlane.xlu1 %5682 }
 0x69c   :  { %v12048_v30 = vsub.f32 %v11926_v47, %v5702_v29  ;;  %v5703_v18 = vmul.f32 0.015625, %v5683_v17  ;;  %v5768_v43 = vsel %vm66_vm0, %v5732_v63, 0.0  ;;  %v5733_v60 = vmul.f32 %v12039_v9, %v12039_v9 }
 0x69d   :  { %5769 = vadd.xlane.f32.xlu0 %v5768_v43  ;;  %v5686_v2 = vpop.xlane.xlu0 %5685  ;;  %v12085_v43 = vld [vmem:[%s13289_s9] ss:$0 sm:$0xff] }
 0x69e   :  { %v12054_v6 = vsub.f32 %v11940_v16, %v5703_v18  ;;  %v5704_v50 = vmul.f32 0.015625, %v5686_v2  ;;  %v5771_v51 = vsel %vm66_vm0, %v5733_v60, 0.0  ;;  %v5734_v58 = vmul.f32 %v12048_v30, %v12048_v30 }
 0x69f   :  { %5772 = vadd.xlane.f32.xlu1 %v5771_v51  ;;  %v5689_v52 = vpop.xlane.xlu1 %5688 }
 0x6a0   :  { %v12061_v5 = vsub.f32 %v11935_v11, %v5704_v50  ;;  %v5705_v15 = vmul.f32 0.015625, %v5689_v52  ;;  %v5774_v3 = vsel %vm66_vm0, %v5734_v58, 0.0  ;;  %v5735_v25 = vmul.f32 %v12054_v6, %v12054_v6 }
 0x6a1   :  { %5775 = vadd.xlane.f32.xlu0 %v5774_v3 }
 0x6a2   :  { %v12067_v31 = vsub.f32 %v11947_v7, %v5705_v15  ;;  %v5777_v46 = vsel %vm66_vm0, %v5735_v25, 0.0  ;;  %v5736_v4 = vmul.f32 %v12061_v5, %v12061_v5 }
 0x6a3   :  { %5778 = vadd.xlane.f32.xlu1 %v5777_v46 }
 0x6a4   :  { %v5780_v34 = vsel %vm66_vm0, %v5736_v4, 0.0  ;;  %v5737_v45 = vmul.f32 %v12067_v31, %v12067_v31 }
 0x6a5   :  { %5781 = vadd.xlane.f32.xlu0 %v5780_v34 }
 0x6a6   :  { %v5783_v32 = vsel %vm66_vm0, %v5737_v45, 0.0 }
 0x6a7   :  { %5784 = vadd.xlane.f32.xlu1 %v5783_v32 }
 0x703   :  { %v5740_v53 = vpop.xlane.xlu0 %5739 }
 0x704   :  { %v5786_v59 = vmul.f32 0.015625, %v5740_v53 }
 0x705   :  { %v5743_v13 = vpop.xlane.xlu1 %5742 }
 0x706   :  { %v5802_v26 = vadd.f32 1e-05, %v5786_v59  ;;  %v5787_v38 = vmul.f32 0.015625, %v5743_v13 }
 0x707   :  { %v5746_v49 = vpop.xlane.xlu0 %5745 }
 0x708   :  { %9229 = vrsqrt.f32 %v5802_v26  ;;  %v5803_v48 = vadd.f32 1e-05, %v5787_v38  ;;  %v5788_v44 = vmul.f32 0.015625, %v5746_v49 }
 0x709   :  { %v5749_v56 = vpop.xlane.xlu1 %5748 }
 0x70a   :  { %9231 = vrsqrt.f32 %v5803_v48  ;;  %v5804_v62 = vadd.f32 1e-05, %v5788_v44  ;;  %v5789_v29 = vmul.f32 0.015625, %v5749_v56 }
 0x70c   :  { %9233 = vrsqrt.f32 %v5804_v62  ;;  %v5805_v21 = vadd.f32 1e-05, %v5789_v29 }
 0x70e   :  { %9235 = vrsqrt.f32 %v5805_v21 }
 0x712   :  { %v9230_v63 = vpop.eup %9229 }
 0x713   :  { %v5834_v17 = vmul.f32 %v9230_v63, %v11956_v28 }
 0x714   :  { %v9232_v18 = vpop.eup %9231 }
 0x715   :  { %v5856_v60 = vmul.f32 %v12079_v42, %v5834_v17  ;;  %v5835_v2 = vmul.f32 %v9232_v18, %v11959_v35 }
 0x716   :  { %v9234_v50 = vpop.eup %9233  ;;  %v5752_v51 = vpop.xlane.xlu0 %5751 }
 0x717   :  { %v5857_v58 = vmul.f32 %v12079_v42, %v5835_v2  ;;  %v5790_v52 = vmul.f32 0.015625, %v5752_v51  ;;  %v5878_v3 = vadd.f32 %v12085_v43, %v5856_v60  ;;  %v5836_v28 = vmul.f32 %v9234_v50, %v11964_v20 }
 0x718   :  { %v9236_v15 = vpop.eup %9235  ;;  %v5755_v25 = vpop.xlane.xlu1 %5754 }
 0x719   :  { %v5879_v46 = vadd.f32 %v12085_v43, %v5857_v58  ;;  %v5837_v4 = vmul.f32 %v9236_v15, %v11970_v19  ;;  %v5806_v34 = vadd.f32 1e-05, %v5790_v52  ;;  %v5791_v45 = vmul.f32 0.015625, %v5755_v25 }
 0x71a   :  { %v5758_v32 = vpop.xlane.xlu0 %5757  ;;  %v5858_v20 = vmul.f32 %v12079_v42, %v5836_v28 }
 0x71b   :  { %9237 = vrsqrt.f32 %v5806_v34  ;;  %v5807_v35 = vadd.f32 1e-05, %v5791_v45  ;;  %v5792_v53 = vmul.f32 0.015625, %v5758_v32  ;;  %v5894_v59 = vpack.c.bf16 %v5879_v46, %v5878_v3 }
 0x71c   :  { %v5761_v13 = vpop.xlane.xlu1 %5760  ;;  %v5859_v26 = vmul.f32 %v12079_v42, %v5837_v4  ;;  %v5880_v44 = vadd.f32 %v12085_v43, %v5858_v20 }
 0x71d   :  { %9239 = vrsqrt.f32 %v5807_v35  ;;  %v5808_v38 = vadd.f32 1e-05, %v5792_v53  ;;  %v5793_v49 = vmul.f32 0.015625, %v5761_v13  ;;  %7556 = vmatmul.mubr.msk.bf16.vlgmr.msra.gmra.mrb[172].mxu0 %vm66_vm0, %v5894_v59 }
 0x71e   :  { %6028 = vmatprep.mubr.bf16.mxu0 %v9405_v14  ;;  %v5881_v48 = vadd.f32 %v12085_v43, %v5859_v26 }
 0x71f   :  { %9241 = vrsqrt.f32 %v5808_v38  ;;  %v5809_v19 = vadd.f32 1e-05, %v5793_v49 }
 0x720   :  { %v5895_v56 = vpack.c.bf16 %v5881_v48, %v5880_v44 }
 0x721   :  { %9243 = vrsqrt.f32 %v5809_v19 }
 0x725   :  { %v9238_v62 = vpop.eup %9237  ;;  %7557 = vmatmul.mubr.msk.bf16.gmra.mrb[176].mxu0 %vm66_vm0, %v5895_v56 }
 0x726   :  { %v5838_v29 = vmul.f32 %v9238_v62, %v11980_v1  ;;  %v5764_v21 = vpop.xlane.xlu0 %5763  ;;  %6038 = vmatprep.mubr.bf16.mxu0 %v9405_v14 }
 0x727   :  { %v9240_v63 = vpop.eup %9239  ;;  %v5794_v17 = vmul.f32 0.015625, %v5764_v21 }
 0x728   :  { %v5839_v18 = vmul.f32 %v9240_v63, %v11983_v39  ;;  %v5767_v60 = vpop.xlane.xlu1 %5766  ;;  %v5860_v2 = vmul.f32 %v12079_v42, %v5838_v29 }
 0x729   :  { %v9242_v50 = vpop.eup %9241  ;;  %v5810_v51 = vadd.f32 1e-05, %v5794_v17  ;;  %v5795_v58 = vmul.f32 0.015625, %v5767_v60 }
 0x72a   :  { %v5770_v52 = vpop.xlane.xlu0 %5769  ;;  %v5861_v15 = vmul.f32 %v12079_v42, %v5839_v18  ;;  %v5840_v25 = vmul.f32 %v9242_v50, %v11988_v8  ;;  %v5882_v39 = vadd.f32 %v12085_v43, %v5860_v2 }
 0x72b   :  { %v9244_v3 = vpop.eup %9243  ;;  %9245 = vrsqrt.f32 %v5810_v51  ;;  %v5811_v28 = vadd.f32 1e-05, %v5795_v58  ;;  %v5796_v1 = vmul.f32 0.015625, %v5770_v52 }
 0x72c   :  { %v5841_v46 = vmul.f32 %v9244_v3, %v11994_v36  ;;  %v5773_v4 = vpop.xlane.xlu1 %5772  ;;  %v5883_v34 = vadd.f32 %v12085_v43, %v5861_v15  ;;  %v5862_v8 = vmul.f32 %v12079_v42, %v5840_v25 }
 0x72d   :  { %9247 = vrsqrt.f32 %v5811_v28  ;;  %v5812_v45 = vadd.f32 1e-05, %v5796_v1  ;;  %v5797_v32 = vmul.f32 0.015625, %v5773_v4 }
 0x72e   :  { %v5776_v35 = vpop.xlane.xlu0 %5775  ;;  %v5896_v53 = vpack.c.bf16 %v5883_v34, %v5882_v39  ;;  %v5863_v59 = vmul.f32 %v12079_v42, %v5841_v46  ;;  %v5884_v56 = vadd.f32 %v12085_v43, %v5862_v8 }
 0x72f   :  { %9249 = vrsqrt.f32 %v5812_v45  ;;  %v5813_v13 = vadd.f32 1e-05, %v5797_v32  ;;  %v5798_v26 = vmul.f32 0.015625, %v5776_v35 }
 0x730   :  { %v5779_v38 = vpop.xlane.xlu1 %5778  ;;  %7558 = vmatmul.mubr.msk.bf16.gmra.mrb[180].mxu0 %vm66_vm0, %v5896_v53  ;;  %v5885_v49 = vadd.f32 %v12085_v43, %v5863_v59 }
 0x731   :  { %9251 = vrsqrt.f32 %v5813_v13  ;;  %v5799_v36 = vmul.f32 0.015625, %v5779_v38  ;;  %6048 = vmatprep.mubr.bf16.mxu0 %v9405_v14  ;;  %v5814_v20 = vadd.f32 1e-05, %v5798_v26 }
 0x732   :  { %v5782_v48 = vpop.xlane.xlu0 %5781  ;;  %v5897_v63 = vpack.c.bf16 %v5885_v49, %v5884_v56  ;;  %v8931_v56 = vld [vmem:[%s13290_s12 + $0x58] sm:$0xff]  }
 0x733   :  { %v5815_v19 = vadd.f32 1e-05, %v5799_v36  ;;  %v5800_v18 = vmul.f32 0.015625, %v5782_v48  ;;  %v8926_v48 = vld [vmem:[%s13290_s12] sm:$0xff]  }
 0x734   :  { %v5785_v44 = vpop.xlane.xlu1 %5784 }
 0x735   :  { %v9246_v62 = vpop.eup %9245  ;;  %9253 = vrsqrt.f32 %v5815_v19  ;;  %v5801_v29 = vmul.f32 0.015625, %v5785_v44  ;;  %v5816_v15 = vadd.f32 1e-05, %v5800_v18  ;;  %v8930_v44 = vld [vmem:[%s13290_s12 + $0x10] sm:$0xff]  }
 0x736   :  { %v5842_v21 = vmul.f32 %v9246_v62, %v12016_v37  ;;  %9255 = vrsqrt.f32 %v5814_v20  ;;  %v8932_v62 = vld [vmem:[%s13290_s12 + $0x18] sm:$0xff]  }
 0x737   :  { %v9248_v17 = vpop.eup %9247  ;;  %v5817_v51 = vadd.f32 1e-05, %v5801_v29  ;;  %v5912_v29 = vlaneseq }
 0x738   :  { %v5843_v60 = vmul.f32 %v9248_v17, %v12022_v23  ;;  %7559 = vmatmul.mubr.msk.bf16.gmra.mrb[184].mxu0 %vm66_vm0, %v5897_v63  ;;  %v5864_v2 = vmul.f32 %v12079_v42, %v5842_v21  ;;  %v8933_v21 = vld [vmem:[%s13290_s12 + $0x60] sm:$0xff]  }
 0x739   :  { %v9250_v50 = vpop.eup %9249  ;;  %6058 = vmatprep.mubr.bf16.mxu0 %v9405_v14  ;;  %9257 = vrsqrt.f32 %v5817_v51  ;;  %v5913_v63 = vshrl.u32 %v5912_v29, 7  ;;  %v8934_v17 = vld [vmem:[%s13290_s12 + $0x20] sm:$0xff]   ;;  %v8935_v51 = vld [vmem:[%s13290_s12 + $0x68] sm:$0xff]  }
 0x73a   :  { %v5865_v58 = vmul.f32 %v12079_v42, %v5843_v60  ;;  %v5844_v37 = vmul.f32 %v9250_v50, %v12030_v27  ;;  %v5886_v28 = vadd.f32 %v12085_v43, %v5864_v2  ;;  %9259 = vrsqrt.f32 %v5816_v15  ;;  %v5910_v60 = vld [vmem:[%s13291_s11] sm:$0x3] }
 0x73b   :  { %v9252_v52 = vpop.eup %9251  ;;  %v5914_v18 = vsub.s32 0, %v5913_v63  ;;  %v5918_v2 = vsub.s32 1, %v5913_v63 }
 0x73c   :  { %v5845_v3 = vmul.f32 %v9252_v52, %v12039_v9  ;;  %v5887_v23 = vadd.f32 %v12085_v43, %v5865_v58  ;;  %v5866_v4 = vmul.f32 %v12079_v42, %v5844_v37 }
 0x73d   :  { %v12182_v50 = vrot.slane %v5910_v60, %v5914_v18  ;;  %v12187_v58 = vrot.slane %v5910_v60, %v5918_v2 }
 0x73e   :  { %v5898_v1 = vpack.c.bf16 %v5887_v23, %v5886_v28  ;;  %v5867_v25 = vmul.f32 %v12079_v42, %v5845_v3  ;;  %v5888_v45 = vadd.f32 %v12085_v43, %v5866_v4  ;;  %v8936_v4 = vld [vmem:[%s13290_s12 + $0x28] sm:$0xff]  }
 0x73f   :  { %v9254_v46 = vpop.eup %9253 }
 0x740   :  { %7560 = vmatmul.mubr.msk.bf16.gmra.mrb[188].mxu0 %vm66_vm0, %v5898_v1  ;;  %v9256_v39 = vpop.eup %9255  ;;  %v5847_v27 = vmul.f32 %v9254_v46, %v12054_v6  ;;  %v5889_v9 = vadd.f32 %v12085_v43, %v5867_v25 }
 0x741   :  { %6068 = vmatprep.mubr.bf16.mxu0 %v9405_v14  ;;  %v5846_v34 = vmul.f32 %v9256_v39, %v12048_v30 }
 0x742   :  { %v5899_v32 = vpack.c.bf16 %v5889_v9, %v5888_v45  ;;  %v5869_v35 = vmul.f32 %v12079_v42, %v5847_v27 }
 0x743   :  { %v9258_v53 = vpop.eup %9257  ;;  %v5868_v59 = vmul.f32 %v12079_v42, %v5846_v34 }
 0x744   :  { %v9260_v13 = vpop.eup %9259  ;;  %v5849_v26 = vmul.f32 %v9258_v53, %v12067_v31  ;;  %v5891_v6 = vadd.f32 %v12085_v43, %v5869_v35 }
 0x745   :  { %v5848_v38 = vmul.f32 %v9260_v13, %v12061_v5  ;;  %v5890_v30 = vadd.f32 %v12085_v43, %v5868_v59  ;;  %v8925_v5 = vld [vmem:[%s13290_s12 + $0x40] sm:$0xff]  }
 0x746   :  { %v5871_v36 = vmul.f32 %v12079_v42, %v5849_v26  ;;  %7941 = vmatprep.subr.bf16.mxu1 %v8925_v5 }
 0x747   :  { %v5900_v8 = vpack.c.bf16 %v5891_v6, %v5890_v30  ;;  %v5870_v49 = vmul.f32 %v12079_v42, %v5848_v38  ;;  %7942 = vmatpush3.bf16.msra.mxu1 %v8926_v48  ;;  %v8928_v42 = vld [vmem:[%s13290_s12 + $0x8] sm:$0xff]  }
 0x748   :  { %7561 = vmatmul.mubr.msk.bf16.gmra.mrb[192].mxu0 %vm66_vm0, %v5899_v32  ;;  %v5893_v20 = vadd.f32 %v12085_v43, %v5871_v36 }
 0x749   :  { %6078 = vmatprep.mubr.bf16.mxu0 %v9405_v14  ;;  %v5892_v19 = vadd.f32 %v12085_v43, %v5870_v49  ;;  %v8929_v43 = vld [vmem:[%s13290_s12 + $0x50] sm:$0xff]  }
 0x74b   :  { %v5901_v31 = vpack.c.bf16 %v5893_v20, %v5892_v19  ;;  %v8937_v20 = vld [vmem:[%s13290_s12 + $0x70] sm:$0xff]  }
 0x750   :  { %7562 = vmatmul.mubr.msk.bf16.gmra.mrb[196].mxu0 %vm66_vm0, %v5900_v8 }
 0x751   :  { %6088 = vmatprep.mubr.bf16.mxu0 %v9405_v14  ;;  %v8927_v14 = vld [vmem:[%s13290_s12 + $0x48] sm:$0xff]  }
 0x752   :  { %7943 = vmatprep.subr.bf16.mxu1 %v8927_v14 }
 0x753   :  { %7944 = vmatpush3.bf16.msra.mxu1 %v8928_v42 }
 0x754   :  { %7945 = vmatprep.subr.bf16.mxu1 %v8929_v43 }
 0x757   :  { %7946 = vmatpush3.bf16.msra.mxu1 %v8930_v44 }
 0x758   :  { %7563 = vmatmul.mubr.msk.bf16.gmra.mrb[200].mxu0 %vm66_vm0, %v5901_v31  ;;  %7947 = vmatprep.subr.bf16.mxu1 %v8931_v56  ;;  %v8938_v31 = vld [vmem:[%s13290_s12 + $0x30] sm:$0xff]  }
 0x75b   :  { %7948 = vmatpush3.bf16.msra.mxu1 %v8932_v62 }
 0x75c   :  { %7949 = vmatprep.subr.bf16.mxu1 %v8933_v21 }
 0x75f   :  { %7950 = vmatpush3.bf16.msra.mxu1 %v8934_v17 }
 0x760   :  { %7951 = vmatprep.subr.bf16.mxu1 %v8935_v51  ;;  %v13388_v51 = vmov -1.0  }
 0x763   :  { %7952 = vmatpush3.bf16.msra.mxu1 %v8936_v4 }
 0x764   :  { %7953 = vmatprep.subr.bf16.mxu1 %v8937_v20 }
 0x767   :  { %7954 = vmatpush3.bf16.msra.mxu1 %v8938_v31 }
 0x7f0   :  { %v6020_v52 = vpop.f32.mrb[172].mxu0 }
 0x7f1   :  { %v6021_v15 = vadd.f32 %v6020_v52, %v12182_v50  ;;  %v6022_v37 = vpop.f32.mrb[173].mxu0 }
 0x7f2   :  { %v6023_v3 = vadd.f32 %v6022_v37, %v12187_v58  ;;  %v6024_v28 = vpop.f32.mrb[174].mxu0 }
 0x7f3   :  { %v6131_v23 = vmul.f32 0.70710677, %v6021_v15  ;;  %v6025_v1 = vadd.f32 %v6024_v28, %v12182_v50  ;;  %v6026_v25 = vpop.f32.mrb[175].mxu0  ;;  %v12232_v17 = vmul.f32 0.5, %v6021_v15 }
 0x7f4   :  { %v6132_v46 = vmul.f32 0.70710677, %v6023_v3  ;;  %v6027_v9 = vadd.f32 %v6026_v25, %v12187_v58  ;;  %v12234_v18 = vmul.f32 0.5, %v6023_v3 }
 0x7f5   :  { %v6227_v39 = vand.u32 2147483647, %v6131_v23  ;;  %v12195_v27 = vmul.f32 0.70710677, %v6025_v1  ;;  %vm6163_vm2 = vcmp.ge.f32.partialorder %v6131_v23, 0.0  ;;  %v12244_v28 = vmul.f32 0.5, %v6025_v1 }
 0x7f6   :  { %v6228_v34 = vand.u32 2147483647, %v6132_v46  ;;  %v12199_v59 = vmul.f32 0.70710677, %v6027_v9  ;;  %vm6164_vm3 = vcmp.ge.f32.partialorder %v6132_v46, 0.0  ;;  %v12242_v52 = vsel %vm6163_vm2, 1.0, %v13388_v51 }
 0x7f7   :  { %v6259_v45 = vmul.f32 0.3275911, %v6227_v39  ;;  %v6229_v35 = vand.u32 2147483647, %v12195_v27  ;;  %v6675_v43 = vsub.f32 0.0, %v6227_v39  ;;  %v12253_v3 = vsel %vm6164_vm3, 1.0, %v13388_v51 }
 0x7f8   :  { %v6260_v32 = vmul.f32 0.3275911, %v6228_v34  ;;  %v6030_v13 = vpop.f32.mrb[176].mxu0  ;;  %v12202_v30 = vand.u32 2147483647, %v12199_v59  ;;  %v6676_v62 = vsub.f32 0.0, %v6228_v34 }
 0x7f9   :  { %v6291_v53 = vadd.f32 1.0, %v6259_v45  ;;  %v6261_v6 = vmul.f32 0.3275911, %v6229_v35  ;;  %v6032_v38 = vpop.f32.mrb[177].mxu0  ;;  %v12212_v5 = vadd.f32 %v6030_v13, %v12182_v50  ;;  %v6677_v29 = vsub.f32 0.0, %v6229_v35 }
 0x7fa   :  { %v6292_v26 = vadd.f32 1.0, %v6260_v32  ;;  %v6034_v8 = vpop.f32.mrb[178].mxu0  ;;  %v6262_v19 = vmul.f32 0.3275911, %v12202_v30  ;;  %v12215_v48 = vadd.f32 %v6032_v38, %v12187_v58  ;;  %v6707_v37 = vmul.f32 %v6675_v43, %v6227_v39 }
 0x7fb   :  { %9261 = vrcp.f32 %v6291_v53  ;;  %v6293_v36 = vadd.f32 1.0, %v6261_v6  ;;  %v6036_v49 = vpop.f32.mrb[179].mxu0  ;;  %v12218_v42 = vadd.f32 %v6034_v8, %v12182_v50  ;;  %v12221_v44 = vmul.f32 0.70710677, %v12212_v5 }
 0x7fc   :  { %9263 = vrcp.f32 %v6292_v26  ;;  %v6294_v14 = vadd.f32 1.0, %v6262_v19  ;;  %v12224_v56 = vmul.f32 0.70710677, %v12215_v48  ;;  %v12255_v4 = vmul.f32 0.5, %v6027_v9 }
 0x7fd   :  { %9265 = vrcp.f32 %v6293_v36  ;;  %v12227_v21 = vand.u32 2147483647, %v12221_v44  ;;  %v12230_v63 = vmul.f32 0.70710677, %v12218_v42  ;;  %v6708_v53 = vmul.f32 %v6676_v62, %v6228_v34 }
 0x7fe   :  { %9267 = vrcp.f32 %v6294_v14  ;;  %v12237_v60 = vand.u32 2147483647, %v12224_v56  ;;  %v6709_v13 = vmul.f32 %v6677_v29, %v6229_v35  ;;  %v12269_v8 = vadd.f32 %v6036_v49, %v12187_v58  ;;  %v8939_v29 = vld [vmem:[%s13290_s12 + $0x78] sm:$0xff]  }
 0x7ff   :  { %v6263_v23 = vmul.f32 0.3275911, %v12227_v21  ;;  %v12259_v32 = vand.u32 2147483647, %v12230_v63  ;;  %v6739_v19 = vmul.f32 1.442695, %v6707_v37  ;;  %7955 = vmatprep.subr.bf16.mxu1 %v8939_v29 }
 0x800   :  { %v6264_v45 = vmul.f32 0.3275911, %v12237_v60  ;;  %vm6165_vm4 = vcmp.ge.f32.partialorder %v12195_v27, 0.0  ;;  %v6678_v31 = vsub.f32 0.0, %v12202_v30  ;;  %v6741_v62 = vmul.f32 1.442695, %v6708_v53 }
 0x801   :  { %v6295_v26 = vadd.f32 1.0, %v6263_v23  ;;  %v6265_v9 = vmul.f32 0.3275911, %v12259_v32  ;;  %vm6166_vm5 = vcmp.ge.f32.partialorder %v12199_v59, 0.0  ;;  %v12287_v23 = vsel %vm6165_vm4, 1.0, %v13388_v51 }
 0x802   :  { %v6296_v38 = vadd.f32 1.0, %v6264_v45  ;;  %v6743_v45 = vmul.f32 1.442695, %v6709_v13  ;;  %vm6167_vm6 = vcmp.ge.f32.partialorder %v12221_v44, 0.0  ;;  %vm6168_vm7 = vcmp.ge.f32.partialorder %v12224_v56, 0.0 }
 0x803   :  { %v12239_v2 = vpop.f32.mrb[180].mxu0  ;;  %9269 = vrcp.f32 %v6295_v26  ;;  %v6297_v14 = vadd.f32 1.0, %v6265_v9  ;;  %v12296_v9 = vsel %vm6166_vm5, 1.0, %v13388_v51  ;;  %vm6169_vm8 = vcmp.ge.f32.partialorder %v12230_v63, 0.0 }
 0x804   :  { %v12247_v25 = vpop.f32.mrb[181].mxu0  ;;  %9271 = vrcp.f32 %v6296_v38 }
 0x805   :  { %v12249_v15 = vpop.eup %9261  ;;  %v12264_v6 = vpop.f32.mrb[182].mxu0  ;;  %9273 = vrcp.f32 %v6297_v14  ;;  %v12305_v14 = vmul.f32 0.5, %v12212_v5  ;;  %v8940_v5 = vld [vmem:[%s13290_s12 + $0x38] sm:$0xff]  }
 0x806   :  { %v12261_v39 = vpop.eup %9263  ;;  %v6387_v1 = vmul.f32 1.0614054, %v12249_v15  ;;  %v12271_v36 = vpop.f32.mrb[183].mxu0  ;;  %9275 = vpow2.f32 %v6739_v19  ;;  %v12308_v19 = vmul.f32 0.5, %v12215_v48  ;;  %7956 = vmatpush3.bf16.msra.mxu1 %v8940_v5  ;;  %v6680_v5 = vsub.f32 0.0, %v12237_v60 }
 0x807   :  { %v6388_v46 = vmul.f32 1.0614054, %v12261_v39  ;;  %v12274_v34 = vpop.eup %9265  ;;  %9277 = vpow2.f32 %v6741_v62  ;;  %v12446_v63 = vadd.f32 %v12264_v6, %v12182_v50 }
 0x808   :  { %v6419_v20 = vadd.f32 -1.4531521, %v6387_v1  ;;  %v6389_v49 = vmul.f32 1.0614054, %v12274_v34  ;;  %v12283_v27 = vpop.eup %9267  ;;  %v12290_v1 = vmul.f32 0.70710677, %v12269_v8  ;;  %9279 = vpow2.f32 %v6743_v45 }
 0x809   :  { %v6420_v35 = vadd.f32 -1.4531521, %v6388_v46  ;;  %v6390_v59 = vmul.f32 1.0614054, %v12283_v27 }
 0x80a   :  { %v6451_v43 = vmul.f32 %v12249_v15, %v6419_v20  ;;  %v6421_v46 = vadd.f32 -1.4531521, %v6389_v49  ;;  %v6710_v20 = vmul.f32 %v6678_v31, %v12202_v30  ;;  %v12311_v49 = vand.u32 2147483647, %v12290_v1 }
 0x80b   :  { %v6452_v37 = vmul.f32 %v12261_v39, %v6420_v35  ;;  %v12292_v53 = vpop.f32.mrb[184].mxu0  ;;  %v6422_v7 = vadd.f32 -1.4531521, %v6390_v59  ;;  %v12324_v59 = vadd.f32 %v12239_v2, %v12182_v50  ;;  %v6679_v2 = vsub.f32 0.0, %v12227_v21 }
 0x80c   :  { %v6483_v26 = vadd.f32 1.4214138, %v6451_v43  ;;  %v6453_v35 = vmul.f32 %v12274_v34, %v6421_v46  ;;  %v12301_v11 = vpop.f32.mrb[185].mxu0  ;;  %v6745_v46 = vmul.f32 1.442695, %v6710_v20  ;;  %vm6170_vm9 = vcmp.ge.f32.partialorder %v12290_v1, 0.0 }
 0x80d   :  { %v6484_v38 = vadd.f32 1.4214138, %v6452_v37  ;;  %v12313_v30 = vpop.f32.mrb[186].mxu0  ;;  %v6454_v29 = vmul.f32 %v12283_v27, %v6422_v7  ;;  %v6266_v48 = vmul.f32 0.3275911, %v12311_v49  ;;  %v6711_v0 = vmul.f32 %v6679_v2, %v12227_v21 }
 0x80e   :  { %v6515_v13 = vmul.f32 %v12249_v15, %v6483_v26  ;;  %v6485_v62 = vadd.f32 1.4214138, %v6453_v35  ;;  %v12316_v37 = vpop.f32.mrb[187].mxu0  ;;  %v12331_v35 = vmul.f32 0.5, %v12218_v42  ;;  %v12344_v24 = vmul.f32 0.70710677, %v12324_v59 }
 0x80f   :  { %v6516_v43 = vmul.f32 %v12261_v39, %v6484_v38  ;;  %v12326_v38 = vpop.eup %9269  ;;  %v6298_v16 = vadd.f32 1.0, %v6266_v48 }
 0x810   :  { %v6547_v31 = vadd.f32 -0.28449672, %v6515_v13  ;;  %v6517_v7 = vmul.f32 %v12274_v34, %v6485_v62  ;;  %v6486_v13 = vadd.f32 1.4214138, %v6454_v29  ;;  %v12333_v51 = vpop.eup %9271  ;;  %vm6171_vm10 = vcmp.ge.f32.partialorder %v12344_v24, 0.0 }
 0x811   :  { %v6548_v26 = vadd.f32 -0.28449672, %v6516_v43  ;;  %v6391_v43 = vmul.f32 1.0614054, %v12326_v38  ;;  %v6392_v29 = vmul.f32 1.0614054, %v12333_v51  ;;  %9281 = vrcp.f32 %v6298_v16 }
 0x812   :  { %v6579_v45 = vmul.f32 %v12249_v15, %v6547_v31  ;;  %v6549_v31 = vadd.f32 -0.28449672, %v6517_v7  ;;  %v6518_v62 = vmul.f32 %v12283_v27, %v6486_v13  ;;  %9283 = vpow2.f32 %v6745_v46 }
 0x813   :  { %v6580_v20 = vmul.f32 %v12261_v39, %v6548_v26  ;;  %v12338_v47 = vpop.f32.mrb[188].mxu0  ;;  %v6423_v42 = vadd.f32 -1.4531521, %v6391_v43  ;;  %v12346_v26 = vpop.eup %9273 }
 0x814   :  { %v6611_v57 = vadd.f32 0.2548296, %v6579_v45  ;;  %v6581_v48 = vmul.f32 %v12274_v34, %v6549_v31  ;;  %v6424_v45 = vadd.f32 -1.4531521, %v6392_v29  ;;  %v12350_v7 = vpop.f32.mrb[189].mxu0  ;;  %v9276_v13 = vpop.eup %9275  ;;  %v6712_v29 = vmul.f32 %v6680_v5, %v12237_v60 }
 0x815   :  { %v6550_v22 = vadd.f32 -0.28449672, %v6518_v62  ;;  %v6455_v43 = vmul.f32 %v12326_v38, %v6423_v42  ;;  %v6393_v16 = vmul.f32 1.0614054, %v12346_v26  ;;  %v12355_v33 = vpop.f32.mrb[190].mxu0  ;;  %v9278_v12 = vpop.eup %9277 }
 0x816   :  { %v6643_v55 = vmul.f32 %v12249_v15, %v6611_v57  ;;  %v6612_v41 = vadd.f32 0.2548296, %v6580_v20  ;;  %v6613_v57 = vadd.f32 0.2548296, %v6581_v48  ;;  %v6456_v15 = vmul.f32 %v12333_v51, %v6424_v45  ;;  %v12358_v46 = vpop.f32.mrb[191].mxu0  ;;  %v9280_v21 = vpop.eup %9279 }
 0x817   :  { %13666 = vst [vmem:[#allocation31_spill] sm:$0xff] %v12358_v46  ;;  %v6487_v31 = vadd.f32 1.4214138, %v6455_v43  ;;  %v6425_v62 = vadd.f32 -1.4531521, %v6393_v16  ;;  %v6582_v20 = vmul.f32 %v12283_v27, %v6550_v22 }
 0x818   :  { %v6803_v54 = vmul.f32 %v9276_v13, %v6643_v55  ;;  %v12362_v42 = vand.u32 2147483647, %v12344_v24  ;;  %v6645_v40 = vmul.f32 %v12274_v34, %v6613_v57  ;;  %v6488_v10 = vadd.f32 1.4214138, %v6456_v15 }
 0x819   :  { %v6681_v55 = vsub.f32 0.0, %v12259_v32  ;;  %v6519_v48 = vmul.f32 %v12326_v38, %v6487_v31  ;;  %v6457_v45 = vmul.f32 %v12346_v26, %v6425_v62  ;;  %v6747_v16 = vmul.f32 1.442695, %v6711_v0 }
 0x81a   :  { %v6835_v2 = vsub.f32 1.0, %v6803_v54  ;;  %v6267_v13 = vmul.f32 0.3275911, %v12362_v42  ;;  %v6805_v43 = vmul.f32 %v9280_v21, %v6645_v40  ;;  %v6520_v54 = vmul.f32 %v12333_v51, %v6488_v10 }
 0x81b   :  { %v12370_v60 = vpop.f32.mrb[192].mxu0  ;;  %v6644_v57 = vmul.f32 %v12261_v39, %v6612_v41  ;;  %v6551_v15 = vadd.f32 -0.28449672, %v6519_v48  ;;  %v6489_v22 = vadd.f32 1.4214138, %v6457_v45  ;;  %v12383_v40 = vpop.eup %9281  ;;  %v12480_v24 = vadd.f32 %v12271_v36, %v12187_v58 }
 0x81c   :  { %13667 = vst [vmem:[#allocation36_spill] sm:$0xff] %v12370_v60  ;;  %v6867_v5 = vmul.f32 %v6835_v2, %v12242_v52  ;;  %v12374_v34 = vpop.f32.mrb[193].mxu0  ;;  %v6299_v61 = vadd.f32 1.0, %v6267_v13  ;;  %v6837_v62 = vsub.f32 1.0, %v6805_v43  ;;  %v6552_v46 = vadd.f32 -0.28449672, %v6520_v54  ;;  %v9284_v41 = vpop.eup %9283 }
 0x81d   :  { %v12377_v31 = vpop.f32.mrb[194].mxu0  ;;  %v6713_v60 = vmul.f32 %v6681_v55, %v12259_v32  ;;  %v6614_v10 = vadd.f32 0.2548296, %v6582_v20  ;;  %v6749_v0 = vmul.f32 1.442695, %v6712_v29  ;;  %v6521_v21 = vmul.f32 %v12346_v26, %v6489_v22 }
 0x81e   :  { %v12381_v52 = vpop.f32.mrb[195].mxu0  ;;  %9285 = vrcp.f32 %v6299_v61  ;;  %v6899_v39 = vadd.f32 1.0, %v6867_v5  ;;  %v6869_v2 = vmul.f32 %v6837_v62, %v12287_v23  ;;  %v6583_v48 = vmul.f32 %v12326_v38, %v6551_v15 }
 0x81f   :  { %9287 = vpow2.f32 %v6747_v16  ;;  %v6804_v45 = vmul.f32 %v9278_v12, %v6644_v57  ;;  %v6553_v13 = vadd.f32 -0.28449672, %v6521_v21  ;;  %v6394_v32 = vmul.f32 1.0614054, %v12383_v40 }
 0x820   :  { %v12391_v55 = vadd.f32 %v12247_v25, %v12187_v58  ;;  %v6901_v20 = vadd.f32 1.0, %v6869_v2  ;;  %v6584_v61 = vmul.f32 %v12333_v51, %v6552_v46  ;;  %v6751_v29 = vmul.f32 1.442695, %v6713_v60 }
 0x821   :  { %v6646_v5 = vmul.f32 %v12283_v27, %v6614_v10  ;;  %9289 = vpow2.f32 %v6749_v0  ;;  %v6426_v23 = vadd.f32 -1.4531521, %v6394_v32  ;;  %v12400_v43 = vmul.f32 %v6899_v39, %v12232_v17 }
 0x822   :  { %v12403_v25 = vmul.f32 %v6901_v20, %v12244_v28  ;;  %v6615_v16 = vadd.f32 0.2548296, %v6583_v48  ;;  %v6682_v54 = vsub.f32 0.0, %v12311_v49  ;;  %v6836_v46 = vsub.f32 1.0, %v6804_v45 }
 0x823   :  { %v12397_v12 = vpop.f32.mrb[196].mxu0  ;;  %13668 = vst [vmem:[#allocation41_spill] sm:$0xff] %v12400_v43  ;;  %v6585_v27 = vmul.f32 %v12346_v26, %v6553_v13  ;;  %v6458_v60 = vmul.f32 %v12383_v40, %v6426_v23  ;;  %v12411_v15 = vmul.f32 0.70710677, %v12391_v55  ;;  %v13669_v28 = vmov -1.0  }
 0x824   :  { %v12406_v57 = vpop.f32.mrb[197].mxu0  ;;  %v12420_v62 = vsel %vm6167_vm6, 1.0, %v13669_v28  ;;  %v6616_v10 = vadd.f32 0.2548296, %v6584_v61  ;;  %9291 = vpow2.f32 %v6751_v29  ;;  %v6806_v21 = vmul.f32 %v9284_v41, %v6646_v5 }
 0x825   :  { %v12413_v22 = vpop.f32.mrb[198].mxu0  ;;  %v12427_v39 = vsel %vm6168_vm7, 1.0, %v13669_v28  ;;  %v12432_v2 = vsel %vm6169_vm8, 1.0, %v13669_v28  ;;  %v6490_v48 = vadd.f32 1.4214138, %v6458_v60  ;;  %v6647_v44 = vmul.f32 %v12326_v38, %v6615_v16 }
 0x826   :  { %v12422_v0 = vpop.f32.mrb[199].mxu0  ;;  %v12436_v45 = vmul.f32 0.5, %v12269_v8  ;;  %v6714_v13 = vmul.f32 %v6682_v54, %v12311_v49  ;;  %v6236_v41 = vand.u32 2147483647, %v12411_v15  ;;  %v6868_v56 = vmul.f32 %v6836_v46, %v12253_v3 }
 0x827   :  { %v6617_v20 = vadd.f32 0.2548296, %v6585_v27  ;;  %v6522_v61 = vmul.f32 %v12383_v40, %v6490_v48  ;;  %v6648_v38 = vmul.f32 %v12333_v51, %v6616_v10  ;;  %v6838_v5 = vsub.f32 1.0, %v6806_v21 }
 0x828   :  { %v12440_v32 = vpop.eup %9285  ;;  %v6268_v49 = vmul.f32 0.3275911, %v6236_v41  ;;  %v12452_v16 = vmul.f32 0.5, %v12324_v59  ;;  %v6683_v3 = vsub.f32 0.0, %v12362_v42  ;;  %v6753_v6 = vmul.f32 1.442695, %v6714_v13 }
 0x829   :  { %v9288_v29 = vpop.eup %9287  ;;  %v6395_v8 = vmul.f32 1.0614054, %v12440_v32  ;;  %v6554_v23 = vadd.f32 -0.28449672, %v6522_v61  ;;  %v6900_v10 = vadd.f32 1.0, %v6868_v56  ;;  %v6649_v17 = vmul.f32 %v12346_v26, %v6617_v20 }
 0x82a   :  { %v6807_v46 = vmul.f32 %v9288_v29, %v6647_v44  ;;  %v6300_v60 = vadd.f32 1.0, %v6268_v49  ;;  %v12463_v21 = vsel %vm6170_vm9, 1.0, %v13669_v28  ;;  %v12466_v59 = vmul.f32 0.70710677, %v12446_v63 }
 0x82b   :  { %v12455_v54 = vpop.f32.mrb[200].mxu0  ;;  %v6427_v27 = vadd.f32 -1.4531521, %v6395_v8  ;;  %v9290_v51 = vpop.eup %9289  ;;  %v6870_v26 = vmul.f32 %v6838_v5, %v12296_v9  ;;  %v6586_v56 = vmul.f32 %v12383_v40, %v6554_v23  ;;  %v6715_v1 = vmul.f32 %v6683_v3, %v12362_v42 }
 0x82c   :  { %13670 = vst [vmem:[#allocation42_spill] sm:$0xff] %v12455_v54  ;;  %v12457_v48 = vpop.f32.mrb[201].mxu0  ;;  %v6808_v44 = vmul.f32 %v9290_v51, %v6648_v38  ;;  %9293 = vrcp.f32 %v6300_v60  ;;  %v6237_v20 = vand.u32 2147483647, %v12466_v59  ;;  %v6839_v49 = vsub.f32 1.0, %v6807_v46 }
 0x82d   :  { %13671 = vst [vmem:[#allocation34_spill] sm:$0xff] %v12457_v48  ;;  %v12468_v61 = vpop.f32.mrb[202].mxu0  ;;  %v6459_v13 = vmul.f32 %v12440_v32, %v6427_v27  ;;  %9295 = vpow2.f32 %v6753_v6  ;;  %v12483_v38 = vmul.f32 %v6900_v10, %v12234_v18  ;;  %v12486_v9 = vsel %vm6171_vm10, 1.0, %v13669_v28 }
 0x82e   :  { %13672 = vst [vmem:[#allocation44_spill] sm:$0xff] %v12468_v61  ;;  %v12472_v29 = vpop.f32.mrb[203].mxu0  ;;  %v9292_v8 = vpop.eup %9291  ;;  %v6269_v5 = vmul.f32 0.3275911, %v6237_v20  ;;  %v6840_v23 = vsub.f32 1.0, %v6808_v44  ;;  %v6684_v42 = vsub.f32 0.0, %v6236_v41  ;;  %v12493_v46 = vadd.f32 %v12292_v53, %v12182_v50 }
 0x82f   :  { %13673 = vst [vmem:[#allocation45_spill] sm:$0xff] %v12472_v29  ;;  %v6491_v61 = vadd.f32 1.4214138, %v6459_v13  ;;  %v6809_v27 = vmul.f32 %v9292_v8, %v6649_v17  ;;  %v12489_v3 = vmul.f32 0.70710677, %v12480_v24  ;;  %v6902_v6 = vadd.f32 1.0, %v6870_v26 }
 0x830   :  { %v6618_v36 = vadd.f32 0.2548296, %v6586_v56  ;;  %v6755_v60 = vmul.f32 1.442695, %v6715_v1  ;;  %v6301_v51 = vadd.f32 1.0, %v6269_v5  ;;  %v6871_v18 = vmul.f32 %v6839_v49, %v12420_v62 }
 0x831   :  { %v6523_v17 = vmul.f32 %v12440_v32, %v6491_v61  ;;  %v12498_v10 = vand.u32 2147483647, %v12489_v3  ;;  %v12502_v44 = vadd.f32 %v12301_v11, %v12187_v58  ;;  %v6841_v13 = vsub.f32 1.0, %v6809_v27 }
 0x832   :  { %v12505_v8 = vmul.f32 0.5, %v12391_v55  ;;  %vm6172_vm11 = vcmp.ge.f32.partialorder %v12411_v15, 0.0  ;;  %9297 = vrcp.f32 %v6301_v51  ;;  %v6872_v53 = vmul.f32 %v6840_v23, %v12427_v39 }
 0x833   :  { %v6716_v26 = vmul.f32 %v6684_v42, %v6236_v41  ;;  %v6270_v62 = vmul.f32 0.3275911, %v12498_v10  ;;  %v12511_v61 = vmul.f32 0.70710677, %v12493_v46  ;;  %v12514_v56 = vmul.f32 %v6902_v6, %v12255_v4 }
 0x834   :  { %v6650_v11 = vmul.f32 %v12383_v40, %v6618_v36  ;;  %9299 = vpow2.f32 %v6755_v60  ;;  %v6685_v1 = vsub.f32 0.0, %v6237_v20  ;;  %v6903_v49 = vadd.f32 1.0, %v6871_v18 }
 0x835   :  { %v6555_v27 = vadd.f32 -0.28449672, %v6523_v17  ;;  %v6302_v5 = vadd.f32 1.0, %v6270_v62  ;;  %v12520_v39 = vmul.f32 0.70710677, %v12502_v44  ;;  %v6873_v41 = vmul.f32 %v6841_v13, %v12432_v2 }
 0x836   :  { %v12517_v55 = vpop.eup %9293  ;;  %v12526_v23 = vsel %vm6172_vm11, 1.0, %v13669_v28  ;;  %v12530_v40 = vand.u32 2147483647, %v12511_v61  ;;  %v6904_v6 = vadd.f32 1.0, %v6872_v53  ;;  %v6757_v36 = vmul.f32 1.442695, %v6716_v26 }
 0x837   :  { %v6396_v4 = vmul.f32 1.0614054, %v12517_v55  ;;  %v9296_v42 = vpop.eup %9295  ;;  %vm6173_vm12 = vcmp.ge.f32.partialorder %v12466_v59, 0.0  ;;  %9301 = vrcp.f32 %v6302_v5  ;;  %v6717_v18 = vmul.f32 %v6685_v1, %v6237_v20 }
 0x838   :  { %v6810_v60 = vmul.f32 %v9296_v42, %v6650_v11  ;;  %v6271_v2 = vmul.f32 0.3275911, %v12530_v40  ;;  %v12535_v15 = vmul.f32 %v6903_v49, %v12305_v14  ;;  %v6587_v17 = vmul.f32 %v12440_v32, %v6555_v27 }
 0x839   :  { %v6428_v51 = vadd.f32 -1.4531521, %v6396_v4  ;;  %v12539_v13 = vmul.f32 0.5, %v12446_v63  ;;  %v12542_v62 = vand.u32 2147483647, %v12520_v39  ;;  %v6905_v53 = vadd.f32 1.0, %v6873_v41 }
 0x83a   :  { %13674 = vst [vmem:[#allocation46_spill] sm:$0xff] %v12535_v15  ;;  %v6303_v5 = vadd.f32 1.0, %v6271_v2  ;;  %v12547_v20 = vadd.f32 %v12313_v30, %v12182_v50  ;;  %v12550_v11 = vmul.f32 %v6904_v6, %v12308_v19  ;;  %9303 = vpow2.f32 %v6757_v36 }
 0x83b   :  { %v6460_v26 = vmul.f32 %v12517_v55, %v6428_v51  ;;  %v12555_v14 = vsel %vm6173_vm12, 1.0, %v13669_v28  ;;  %v6272_v63 = vmul.f32 0.3275911, %v12542_v62  ;;  %v6842_v49 = vsub.f32 1.0, %v6810_v60 }
 0x83c   :  { %13675 = vst [vmem:[#allocation43_spill] sm:$0xff] %v12550_v11  ;;  %v12558_v1 = vpop.eup %9297  ;;  %v6759_v41 = vmul.f32 1.442695, %v6717_v18  ;;  %9305 = vrcp.f32 %v6303_v5  ;;  %v6619_v4 = vadd.f32 0.2548296, %v6587_v17  ;;  %vm6174_vm13 = vcmp.ge.f32.partialorder %v12489_v3, 0.0 }
 0x83d   :  { %v6492_v27 = vadd.f32 1.4214138, %v6460_v26  ;;  %v6397_v30 = vmul.f32 1.0614054, %v12558_v1  ;;  %v6304_v19 = vadd.f32 1.0, %v6272_v63  ;;  %v12563_v6 = vmul.f32 %v6905_v53, %v12331_v35 }
 0x83e   :  { %v9300_v42 = vpop.eup %9299  ;;  %v12566_v59 = vmul.f32 0.5, %v12480_v24  ;;  %v6686_v36 = vsub.f32 0.0, %v12498_v10  ;;  %v12570_v60 = vmul.f32 0.70710677, %v12547_v20  ;;  %v12575_v3 = vadd.f32 %v12316_v37, %v12187_v58 }
 0x83f   :  { %13676 = vst [vmem:[#allocation35_spill] sm:$0xff] %v12563_v6  ;;  %v6524_v51 = vmul.f32 %v12517_v55, %v6492_v27  ;;  %v6429_v18 = vadd.f32 -1.4531521, %v6397_v30  ;;  %9307 = vrcp.f32 %v6304_v19  ;;  %v6874_v2 = vmul.f32 %v6842_v49, %v12463_v21 }
 0x840   :  { %v12579_v35 = vsel %vm6174_vm13, 1.0, %v13669_v28  ;;  %v12582_v24 = vmul.f32 0.5, %v12493_v46  ;;  %v12585_v17 = vand.u32 2147483647, %v12570_v60  ;;  %v6651_v26 = vmul.f32 %v12440_v32, %v6619_v4 }
 0x841   :  { %v12587_v53 = vpop.eup %9301  ;;  %v6461_v5 = vmul.f32 %v12558_v1, %v6429_v18  ;;  %9309 = vpow2.f32 %v6759_v41  ;;  %vm6175_vm14 = vcmp.ge.f32.partialorder %v12511_v61, 0.0  ;;  %v6687_v21 = vsub.f32 0.0, %v12530_v40 }
 0x842   :  { %v6398_v37 = vmul.f32 1.0614054, %v12587_v53  ;;  %v12595_v63 = vmul.f32 0.5, %v12502_v44  ;;  %v6273_v46 = vmul.f32 0.3275911, %v12585_v17  ;;  %v6718_v30 = vmul.f32 %v6686_v36, %v12498_v10 }
 0x843   :  { %v6556_v49 = vadd.f32 -0.28449672, %v6524_v51  ;;  %v6493_v27 = vadd.f32 1.4214138, %v6461_v5  ;;  %v12600_v32 = vmul.f32 0.70710677, %v12575_v3  ;;  %v6811_v6 = vmul.f32 %v9300_v42, %v6651_v26 }
 0x844   :  { %v6906_v4 = vadd.f32 1.0, %v6874_v2  ;;  %v6430_v41 = vadd.f32 -1.4531521, %v6398_v37  ;;  %v12603_v61 = vsel %vm6175_vm14, 1.0, %v13669_v28  ;;  %v6305_v19 = vadd.f32 1.0, %v6273_v46  ;;  %v9304_v18 = vpop.eup %9303 }
 0x845   :  { %v6525_v44 = vmul.f32 %v12558_v1, %v6493_v27  ;;  %v12607_v15 = vand.u32 2147483647, %v12600_v32  ;;  %v12611_v51 = vadd.f32 %v12338_v47, %v12182_v50  ;;  %vm6176_vm15 = vcmp.ge.f32.partialorder %v12520_v39, 0.0 }
 0x846   :  { %v12613_v10 = vpop.eup %9305  ;;  %v6462_v36 = vmul.f32 %v12587_v53, %v6430_v41  ;;  %v6688_v2 = vsub.f32 0.0, %v12542_v62  ;;  %9311 = vrcp.f32 %v6305_v19  ;;  %v6588_v42 = vmul.f32 %v12517_v55, %v6556_v49 }
 0x847   :  { %v6761_v26 = vmul.f32 1.442695, %v6718_v30  ;;  %v6399_v5 = vmul.f32 1.0614054, %v12613_v10  ;;  %v6719_v37 = vmul.f32 %v6687_v21, %v12530_v40  ;;  %v12622_v46 = vmul.f32 %v6906_v4, %v12436_v45 }
 0x848   :  { %v6557_v47 = vadd.f32 -0.28449672, %v6525_v44  ;;  %v6494_v27 = vadd.f32 1.4214138, %v6462_v36  ;;  %v6274_v11 = vmul.f32 0.3275911, %v12607_v15  ;;  %v6720_v45 = vmul.f32 %v6688_v2, %v12542_v62 }
 0x849   :  { %13677 = vst [vmem:[#allocation40_spill] sm:$0xff] %v12622_v46  ;;  %v12625_v41 = vpop.eup %9307  ;;  %v6843_v39 = vsub.f32 1.0, %v6811_v6  ;;  %v6431_v29 = vadd.f32 -1.4531521, %v6399_v5  ;;  %v12628_v19 = vsel %vm6176_vm15, 1.0, %v13669_v28  ;;  %v12638_v6 = vmul.f32 0.5, %v12547_v20 }
 0x84a   :  { %v12631_v49 = vmul.f32 0.70710677, %v12611_v51  ;;  %v6526_v30 = vmul.f32 %v12587_v53, %v6494_v27  ;;  %v6400_v40 = vmul.f32 1.0614054, %v12625_v41  ;;  %v6306_v21 = vadd.f32 1.0, %v6274_v11 }
 0x84b   :  { %v9310_v4 = vpop.eup %9309  ;;  %v6620_v44 = vadd.f32 0.2548296, %v6588_v42  ;;  %v6463_v36 = vmul.f32 %v12613_v10, %v6431_v29  ;;  %v6763_v46 = vmul.f32 1.442695, %v6719_v37  ;;  %v6589_v5 = vmul.f32 %v12558_v1, %v6557_v47 }
 0x84c   :  { %v6432_v48 = vadd.f32 -1.4531521, %v6400_v40  ;;  %9313 = vrcp.f32 %v6306_v21  ;;  %v12643_v27 = vadd.f32 %v12350_v7, %v12187_v58  ;;  %v6558_v54 = vadd.f32 -0.28449672, %v6526_v30 }
 0x84d   :  { %9315 = vpow2.f32 %v6761_v26  ;;  %v6495_v62 = vadd.f32 1.4214138, %v6463_v36  ;;  %v12646_v11 = vand.u32 2147483647, %v12631_v49  ;;  %v6875_v29 = vmul.f32 %v6843_v39, %v12486_v9 }
 0x84e   :  { %v6464_v2 = vmul.f32 %v12625_v41, %v6432_v48  ;;  %v6765_v20 = vmul.f32 1.442695, %v6720_v45  ;;  %vm6177_vm1 = vcmp.ge.f32.partialorder %v12570_v60, 0.0  ;;  %v6652_v42 = vmul.f32 %v12517_v55, %v6620_v44 }
 0x84f   :  { %v6527_v37 = vmul.f32 %v12613_v10, %v6495_v62  ;;  %v6689_v7 = vsub.f32 0.0, %v12585_v17  ;;  %v6275_v47 = vmul.f32 0.3275911, %v12646_v11  ;;  %v6621_v30 = vadd.f32 0.2548296, %v6589_v5 }
 0x850   :  { %v12655_v26 = vpop.eup %9311  ;;  %9317 = vpow2.f32 %v6763_v46  ;;  %v6496_v40 = vadd.f32 1.4214138, %v6464_v2  ;;  %v12658_v9 = vmul.f32 0.70710677, %v12643_v27  ;;  %v6590_v48 = vmul.f32 %v12587_v53, %v6558_v54 }
 0x851   :  { %v6559_v39 = vadd.f32 -0.28449672, %v6527_v37  ;;  %v6401_v45 = vmul.f32 1.0614054, %v12655_v26  ;;  %v6307_v55 = vadd.f32 1.0, %v6275_v47  ;;  %9319 = vpow2.f32 %v6765_v20 }
 0x852   :  { %v6528_v21 = vmul.f32 %v12625_v41, %v6496_v40  ;;  %v12664_v44 = vmul.f32 0.5, %v12575_v3  ;;  %v6690_v36 = vsub.f32 0.0, %v12607_v15  ;;  %v6907_v5 = vadd.f32 1.0, %v6875_v29 }
 0x853   :  { %v6812_v46 = vmul.f32 %v9304_v18, %v6652_v42  ;;  %v6433_v62 = vadd.f32 -1.4531521, %v6401_v45  ;;  %9321 = vrcp.f32 %v6307_v55  ;;  %v6591_v2 = vmul.f32 %v12613_v10, %v6559_v39 }
 0x854   :  { %v6560_v43 = vadd.f32 -0.28449672, %v6528_v21  ;;  %v12671_v54 = vsel %vm6177_vm1, 1.0, %v13669_v28  ;;  %v6721_v37 = vmul.f32 %v6689_v7, %v12585_v17  ;;  %v6653_v20 = vmul.f32 %v12558_v1, %v6621_v30 }
 0x855   :  { %v6622_v3 = vadd.f32 0.2548296, %v6590_v48  ;;  %v6465_v47 = vmul.f32 %v12655_v26, %v6433_v62  ;;  %v12677_v29 = vand.u32 2147483647, %v12658_v9  ;;  %vm6178_vm2 = vcmp.ge.f32.partialorder %v12600_v32, 0.0 }
 0x856   :  { %v12679_v18 = vpop.eup %9313  ;;  %v6592_v42 = vmul.f32 %v12625_v41, %v6560_v43  ;;  %v6722_v60 = vmul.f32 %v6690_v36, %v12607_v15  ;;  %v12685_v40 = vmul.f32 0.5, %v12611_v51  ;;  %v6844_v7 = vsub.f32 1.0, %v6812_v46 }
 0x857   :  { %v9316_v17 = vpop.eup %9315  ;;  %v6497_v1 = vadd.f32 1.4214138, %v6465_v47  ;;  %v6402_v30 = vmul.f32 1.0614054, %v12679_v18  ;;  %v12690_v48 = vadd.f32 %v12355_v33, %v12182_v50  ;;  %v12693_v39 = vmul.f32 %v6907_v5, %v12452_v16 }
 0x858   :  { %v6623_v43 = vadd.f32 0.2548296, %v6591_v2  ;;  %v6767_v45 = vmul.f32 1.442695, %v6721_v37  ;;  %v6276_v55 = vmul.f32 0.3275911, %v12677_v29  ;;  %v6813_v15 = vmul.f32 %v9310_v4, %v6653_v20 }
 0x859   :  { %v6654_v51 = vmul.f32 %v12587_v53, %v6622_v3  ;;  %v6529_v21 = vmul.f32 %v12655_v26, %v6497_v1  ;;  %v6434_v36 = vadd.f32 -1.4531521, %v6402_v30  ;;  %v6624_v62 = vadd.f32 0.2548296, %v6592_v42 }
 0x85a   :  { %v9318_v46 = vpop.eup %9317  ;;  %vm6179_vm3 = vcmp.ge.f32.partialorder %v12631_v49, 0.0  ;;  %v6691_v33 = vsub.f32 0.0, %v12646_v11  ;;  %v6308_v47 = vadd.f32 1.0, %v6276_v55  ;;  %v6876_v16 = vmul.f32 %v6844_v7, %v12526_v23 }
 0x85b   :  { %v6466_v5 = vmul.f32 %v12679_v18, %v6434_v36  ;;  %v6769_v2 = vmul.f32 1.442695, %v6722_v60  ;;  %v12703_v37 = vmul.f32 0.70710677, %v12690_v48  ;;  %v9320_v4 = vpop.eup %9319  ;;  %v6655_v53 = vmul.f32 %v12613_v10, %v6623_v43 }
 0x85c   :  { %v6561_v20 = vadd.f32 -0.28449672, %v6529_v21  ;;  %v12709_v3 = vsel %vm6178_vm2, 1.0, %v13669_v28  ;;  %9323 = vrcp.f32 %v6308_v47  ;;  %v6845_v1 = vsub.f32 1.0, %v6813_v15 }
 0x85d   :  { %v12711_v42 = vpop.eup %9321  ;;  %v6814_v23 = vmul.f32 %v9316_v17, %v6654_v51  ;;  %9325 = vpow2.f32 %v6767_v45  ;;  %v6498_v7 = vadd.f32 1.4214138, %v6466_v5  ;;  %v6656_v60 = vmul.f32 %v12625_v41, %v6624_v62  ;;  %v13678_v51 = vld [vmem:[#allocation31_spill] sm:$0xff] }
 0x85e   :  { %v12717_v30 = vsel %vm6179_vm3, 1.0, %v13669_v28  ;;  %v6403_v10 = vmul.f32 1.0614054, %v12711_v42  ;;  %v6723_v32 = vmul.f32 %v6691_v33, %v12646_v11  ;;  %v6908_v43 = vadd.f32 1.0, %v6876_v16 }
 0x85f   :  { %v6530_v55 = vmul.f32 %v12679_v18, %v6498_v7  ;;  %9327 = vpow2.f32 %v6769_v2  ;;  %v12723_v15 = vand.u32 2147483647, %v12703_v37  ;;  %v6815_v17 = vmul.f32 %v9318_v46, %v6655_v53 }
 0x860   :  { %v6593_v45 = vmul.f32 %v12655_v26, %v6561_v20  ;;  %v6435_v41 = vadd.f32 -1.4531521, %v6403_v10  ;;  %v12728_v49 = vadd.f32 %v13678_v51, %v12187_v58  ;;  %v6877_v21 = vmul.f32 %v6845_v1, %v12555_v14  ;;  %v13679_v20 = vld [vmem:[#allocation36_spill] sm:$0xff] }
 0x861   :  { %v6846_v36 = vsub.f32 1.0, %v6814_v23  ;;  %v12732_v11 = vmul.f32 0.5, %v12643_v27  ;;  %v6277_v62 = vmul.f32 0.3275911, %v12723_v15  ;;  %v6816_v33 = vmul.f32 %v9320_v4, %v6656_v60 }
 0x862   :  { %v6467_v47 = vmul.f32 %v12711_v42, %v6435_v41  ;;  %v6771_v16 = vmul.f32 1.442695, %v6723_v32  ;;  %v6692_v46 = vsub.f32 0.0, %v12677_v29  ;;  %v6562_v5 = vadd.f32 -0.28449672, %v6530_v55 }
 0x863   :  { %v6309_v2 = vadd.f32 1.0, %v6277_v62  ;;  %v12738_v53 = vmul.f32 0.70710677, %v12728_v49  ;;  %v12742_v14 = vadd.f32 %v13679_v20, %v12182_v50  ;;  %v6847_v1 = vsub.f32 1.0, %v6815_v17 }
 0x864   :  { %v6625_v27 = vadd.f32 0.2548296, %v6593_v45  ;;  %v6499_v23 = vadd.f32 1.4214138, %v6467_v47  ;;  %vm6180_vm4 = vcmp.ge.f32.partialorder %v12658_v9, 0.0  ;;  %v12746_v4 = vmul.f32 %v6908_v43, %v12505_v8 }
 0x865   :  { %v6909_v7 = vadd.f32 1.0, %v6877_v21  ;;  %v6878_v60 = vmul.f32 %v6846_v36, %v12579_v35  ;;  %9329 = vrcp.f32 %v6309_v2  ;;  %v6848_v32 = vsub.f32 1.0, %v6816_v33 }
 0x866   :  { %v12749_v10 = vpop.eup %9323  ;;  %v6531_v55 = vmul.f32 %v12711_v42, %v6499_v23  ;;  %v6724_v41 = vmul.f32 %v6692_v46, %v12677_v29  ;;  %v12754_v17 = vand.u32 2147483647, %v12738_v53  ;;  %v6594_v9 = vmul.f32 %v12679_v18, %v6562_v5 }
 0x867   :  { %v9326_v45 = vpop.eup %9325  ;;  %v12758_v8 = vsel %vm6180_vm4, 1.0, %v13669_v28  ;;  %v6404_v43 = vmul.f32 1.0614054, %v12749_v10  ;;  %v12762_v35 = vmul.f32 0.70710677, %v12742_v14  ;;  %v6879_v51 = vmul.f32 %v6847_v1, %v12603_v61 }
 0x868   :  { %v6657_v21 = vmul.f32 %v12655_v26, %v6625_v27  ;;  %9331 = vpow2.f32 %v6771_v16  ;;  %v6278_v29 = vmul.f32 0.3275911, %v12754_v17  ;;  %v12768_v62 = vmul.f32 %v6909_v7, %v12539_v13 }
 0x869   :  { %v9328_v36 = vpop.eup %9327  ;;  %v6910_v33 = vadd.f32 1.0, %v6878_v60  ;;  %v6563_v47 = vadd.f32 -0.28449672, %v6531_v55  ;;  %v6436_v46 = vadd.f32 -1.4531521, %v6404_v43  ;;  %v6880_v5 = vmul.f32 %v6848_v32, %v12628_v19 }
 0x86a   :  { %v6773_v2 = vmul.f32 1.442695, %v6724_v41  ;;  %v12772_v20 = vmul.f32 0.5, %v12690_v48  ;;  %v6310_v23 = vadd.f32 1.0, %v6278_v29  ;;  %v6626_v61 = vadd.f32 0.2548296, %v6594_v9 }
 0x86b   :  { %v6468_v26 = vmul.f32 %v12749_v10, %v6436_v46  ;;  %vm6181_vm5 = vcmp.ge.f32.partialorder %v12703_v37, 0.0  ;;  %v12777_v16 = vand.u32 2147483647, %v12762_v35  ;;  %v6911_v13 = vadd.f32 1.0, %v6879_v51 }
 0x86c   :  { %v6817_v1 = vmul.f32 %v9326_v45, %v6657_v21  ;;  %9333 = vrcp.f32 %v6310_v23  ;;  %v12781_v27 = vadd.f32 %v12374_v34, %v12187_v58  ;;  %v12784_v19 = vmul.f32 %v6910_v33, %v12566_v59 }
 0x86d   :  { %v6595_v48 = vmul.f32 %v12711_v42, %v6563_v47  ;;  %v6500_v7 = vadd.f32 1.4214138, %v6468_v26  ;;  %v6279_v60 = vmul.f32 0.3275911, %v12777_v16  ;;  %v6912_v32 = vadd.f32 1.0, %v6880_v5 }
 0x86e   :  { %9335 = vpow2.f32 %v6773_v2  ;;  %v6693_v55 = vsub.f32 0.0, %v12723_v15  ;;  %v12790_v41 = vmul.f32 0.70710677, %v12781_v27  ;;  %v6658_v34 = vmul.f32 %v12679_v18, %v6626_v61 }
 0x86f   :  { %v12792_v45 = vpop.eup %9329  ;;  %v6532_v9 = vmul.f32 %v12749_v10, %v6500_v7  ;;  %v12799_v59 = vsel %vm6181_vm5, 1.0, %v13669_v28  ;;  %v6311_v43 = vadd.f32 1.0, %v6279_v60  ;;  %v12802_v51 = vmul.f32 %v6911_v13, %v12582_v24 }
 0x870   :  { %v6849_v21 = vsub.f32 1.0, %v6817_v1  ;;  %v6405_v29 = vmul.f32 1.0614054, %v12792_v45  ;;  %v12806_v33 = vand.u32 2147483647, %v12790_v41  ;;  %v12809_v18 = vmul.f32 0.5, %v12728_v49 }
 0x871   :  { %v6627_v47 = vadd.f32 0.2548296, %v6595_v48  ;;  %v6564_v46 = vadd.f32 -0.28449672, %v6532_v9  ;;  %9337 = vrcp.f32 %v6311_v43  ;;  %v12812_v37 = vmul.f32 %v6912_v32, %v12595_v63 }
 0x872   :  { %v9332_v5 = vpop.eup %9331  ;;  %v6437_v2 = vadd.f32 -1.4531521, %v6405_v29  ;;  %v6725_v24 = vmul.f32 %v6693_v55, %v12723_v15  ;;  %v6280_v23 = vmul.f32 0.3275911, %v12806_v33  ;;  %v6818_v61 = vmul.f32 %v9328_v36, %v6658_v34 }
 0x873   :  { %vm6182_vm6 = vcmp.ge.f32.partialorder %v12738_v53, 0.0  ;;  %v6694_v26 = vsub.f32 0.0, %v12754_v17  ;;  %v12820_v13 = vadd.f32 %v12377_v31, %v12182_v50  ;;  %v6881_v49 = vmul.f32 %v6849_v21, %v12671_v54 }
 0x874   :  { %v6469_v1 = vmul.f32 %v12792_v45, %v6437_v2  ;;  %v12825_v63 = vmul.f32 0.5, %v12742_v14  ;;  %v6312_v48 = vadd.f32 1.0, %v6280_v23  ;;  %v6659_v15 = vmul.f32 %v12711_v42, %v6627_v47 }
 0x875   :  { %v6596_v36 = vmul.f32 %v12749_v10, %v6564_v46  ;;  %v12830_v53 = vmul.f32 0.70710677, %v12820_v13  ;;  %v12834_v7 = vadd.f32 %v12381_v52, %v12187_v58  ;;  %v6775_v60 = vmul.f32 1.442695, %v6725_v24 }
 0x876   :  { %v12836_v31 = vpop.eup %9333  ;;  %v6501_v54 = vadd.f32 1.4214138, %v6469_v1  ;;  %v12839_v32 = vsel %vm6182_vm6, 1.0, %v13669_v28  ;;  %9339 = vrcp.f32 %v6312_v48  ;;  %v6850_v14 = vsub.f32 1.0, %v6818_v61 }
 0x877   :  { %v6406_v42 = vmul.f32 1.0614054, %v12836_v31  ;;  %v6726_v55 = vmul.f32 %v6694_v26, %v12754_v17  ;;  %vm6183_vm7 = vcmp.ge.f32.partialorder %v12762_v35, 0.0  ;;  %v6913_v9 = vadd.f32 1.0, %v6881_v49 }
 0x878   :  { %v9336_v34 = vpop.eup %9335  ;;  %v6533_v52 = vmul.f32 %v12792_v45, %v6501_v54  ;;  %v6695_v43 = vsub.f32 0.0, %v12777_v16  ;;  %v12847_v21 = vand.u32 2147483647, %v12830_v53  ;;  %v6819_v29 = vmul.f32 %v9332_v5, %v6659_v15 }
 0x879   :  { %v6628_v47 = vadd.f32 0.2548296, %v6596_v36  ;;  %v6438_v46 = vadd.f32 -1.4531521, %v6406_v42  ;;  %v12850_v2 = vmul.f32 0.70710677, %v12834_v7  ;;  %9341 = vpow2.f32 %v6775_v60 }
 0x87a   :  { %v6565_v24 = vadd.f32 -0.28449672, %v6533_v52  ;;  %v12853_v17 = vsel %vm6183_vm7, 1.0, %v13669_v28  ;;  %v6281_v35 = vmul.f32 0.3275911, %v12847_v21  ;;  %v6882_v61 = vmul.f32 %v6850_v14, %v12709_v3 }
 0x87b   :  { %v12856_v23 = vpop.eup %9337  ;;  %v6470_v26 = vmul.f32 %v12836_v31, %v6438_v46  ;;  %v6777_v49 = vmul.f32 1.442695, %v6726_v55  ;;  %v12861_v5 = vand.u32 2147483647, %v12850_v2  ;;  %v12864_v1 = vmul.f32 %v6913_v9, %v12638_v6 }
 0x87c   :  { %v6407_v48 = vmul.f32 1.0614054, %v12856_v23  ;;  %v6727_v15 = vmul.f32 %v6695_v43, %v12777_v16  ;;  %v6313_v36 = vadd.f32 1.0, %v6281_v35  ;;  %v6851_v54 = vsub.f32 1.0, %v6819_v29 }
 0x87d   :  { %v6660_v60 = vmul.f32 %v12749_v10, %v6628_v47  ;;  %v6502_v42 = vadd.f32 1.4214138, %v6470_v26  ;;  %v6282_v3 = vmul.f32 0.3275911, %v12861_v5  ;;  %v6597_v14 = vmul.f32 %v12792_v45, %v6565_v24 }
 0x87e   :  { %v6439_v55 = vadd.f32 -1.4531521, %v6407_v48  ;;  %9343 = vrcp.f32 %v6313_v36  ;;  %v12873_v52 = vadd.f32 %v12397_v12, %v12182_v50  ;;  %v6914_v6 = vadd.f32 1.0, %v6882_v61 }
 0x87f   :  { %v6534_v9 = vmul.f32 %v12836_v31, %v6502_v42  ;;  %9345 = vpow2.f32 %v6777_v49  ;;  %v6314_v16 = vadd.f32 1.0, %v6282_v3  ;;  %v6779_v29 = vmul.f32 1.442695, %v6727_v15 }
 0x880   :  { %v12876_v43 = vpop.eup %9339  ;;  %v6471_v10 = vmul.f32 %v12856_v23, %v6439_v55  ;;  %vm6184_vm8 = vcmp.ge.f32.partialorder %v12790_v41, 0.0  ;;  %v6696_v47 = vsub.f32 0.0, %v12806_v33  ;;  %v6883_v46 = vmul.f32 %v6851_v54, %v12717_v30 }
 0x881   :  { %v12883_v24 = vmul.f32 0.5, %v12781_v27  ;;  %v6408_v12 = vmul.f32 1.0614054, %v12876_v43  ;;  %9347 = vrcp.f32 %v6314_v16  ;;  %v6820_v35 = vmul.f32 %v9336_v34, %v6660_v60 }
 0x882   :  { %v6629_v61 = vadd.f32 0.2548296, %v6597_v14  ;;  %v6566_v26 = vadd.f32 -0.28449672, %v6534_v9  ;;  %v12887_v49 = vmul.f32 0.70710677, %v12873_v52  ;;  %v12890_v48 = vmul.f32 %v6914_v6, %v12664_v44 }
 0x883   :  { %v6503_v41 = vadd.f32 1.4214138, %v6471_v10  ;;  %v12893_v15 = vsel %vm6184_vm8, 1.0, %v13669_v28  ;;  %v6440_v30 = vadd.f32 -1.4531521, %v6408_v12  ;;  %v9342_v36 = vpop.eup %9341  ;;  %9349 = vpow2.f32 %v6779_v29 }
 0x884   :  { %v6728_v27 = vmul.f32 %v6696_v47, %v12806_v33  ;;  %v12897_v54 = vmul.f32 0.5, %v12820_v13  ;;  %v6697_v34 = vsub.f32 0.0, %v12847_v21  ;;  %vm6185_vm9 = vcmp.ge.f32.partialorder %v12830_v53, 0.0 }
 0x885   :  { %v6472_v60 = vmul.f32 %v12876_v43, %v6440_v30  ;;  %v12903_v44 = vand.u32 2147483647, %v12887_v49  ;;  %v12907_v42 = vadd.f32 %v12406_v57, %v12187_v58  ;;  %v6915_v3 = vadd.f32 1.0, %v6883_v46 }
 0x886   :  { %v6852_v14 = vsub.f32 1.0, %v6820_v35  ;;  %v6661_v33 = vmul.f32 %v12792_v45, %v6629_v61  ;;  %v6598_v13 = vmul.f32 %v12836_v31, %v6566_v26  ;;  %v6535_v55 = vmul.f32 %v12856_v23, %v6503_v41 }
 0x887   :  { %13680 = vst [vmem:[#allocation39_spill] sm:$0xff] %v12907_v42  ;;  %v6504_v6 = vadd.f32 1.4214138, %v6472_v60  ;;  %v12913_v9 = vmul.f32 0.5, %v12834_v7  ;;  %v6283_v53 = vmul.f32 0.3275911, %v12903_v44  ;;  %v6729_v29 = vmul.f32 %v6697_v34, %v12847_v21 }
 0x888   :  { %v12916_v16 = vpop.eup %9343  ;;  %v6781_v10 = vmul.f32 1.442695, %v6728_v27  ;;  %v12919_v57 = vsel %vm6185_vm9, 1.0, %v13669_v28  ;;  %v6698_v45 = vsub.f32 0.0, %v12861_v5  ;;  %v12926_v7 = vmul.f32 0.70710677, %v12907_v42 }
 0x889   :  { %v9346_v47 = vpop.eup %9345  ;;  %v6536_v46 = vmul.f32 %v12876_v43, %v6504_v6  ;;  %v6409_v12 = vmul.f32 1.0614054, %v12916_v16  ;;  %v6315_v35 = vadd.f32 1.0, %v6283_v53  ;;  %v6884_v61 = vmul.f32 %v6852_v14, %v12758_v8 }
 0x88a   :  { %v6821_v26 = vmul.f32 %v9342_v36, %v6661_v33  ;;  %v6630_v41 = vadd.f32 0.2548296, %v6598_v13  ;;  %vm6186_vm10 = vcmp.ge.f32.partialorder %v12850_v2, 0.0  ;;  %v6567_v21 = vadd.f32 -0.28449672, %v6535_v55 }
 0x88b   :  { %v12930_v30 = vpop.eup %9347  ;;  %v6441_v27 = vadd.f32 -1.4531521, %v6409_v12  ;;  %9351 = vrcp.f32 %v6315_v35  ;;  %v6085_v34 = vadd.f32 %v12413_v22, %v12182_v50  ;;  %v12935_v60 = vmul.f32 %v6915_v3, %v12685_v40 }
 0x88c   :  { %v6568_v6 = vadd.f32 -0.28449672, %v6536_v46  ;;  %v6783_v53 = vmul.f32 1.442695, %v6729_v29  ;;  %v6410_v42 = vmul.f32 1.0614054, %v12930_v30  ;;  %9353 = vpow2.f32 %v6781_v10 }
 0x88d   :  { %v6473_v8 = vmul.f32 %v12916_v16, %v6441_v27  ;;  %v6730_v36 = vmul.f32 %v6698_v45, %v12861_v5  ;;  %v12941_v14 = vand.u32 2147483647, %v12926_v7  ;;  %v9350_v33 = vpop.eup %9349  ;;  %v6916_v13 = vadd.f32 1.0, %v6884_v61 }
 0x88e   :  { %v6662_v55 = vmul.f32 %v12836_v31, %v6630_v41  ;;  %v12947_v22 = vsel %vm6186_vm10, 1.0, %v13669_v28  ;;  %v6442_v40 = vadd.f32 -1.4531521, %v6410_v42  ;;  %v6853_v3 = vsub.f32 1.0, %v6821_v26 }
 0x88f   :  { %v6599_v10 = vmul.f32 %v12856_v23, %v6567_v21  ;;  %v6505_v29 = vadd.f32 1.4214138, %v6473_v8  ;;  %v12950_v46 = vmul.f32 0.70710677, %v6085_v34  ;;  %v6600_v5 = vmul.f32 %v12876_v43, %v6568_v6 }
 0x890   :  { %9355 = vpow2.f32 %v6783_v53  ;;  %v6474_v45 = vmul.f32 %v12930_v30, %v6442_v40  ;;  %v6284_v12 = vmul.f32 0.3275911, %v12941_v14  ;;  %v6785_v35 = vmul.f32 1.442695, %v6730_v36 }
 0x891   :  { %v6537_v31 = vmul.f32 %v12916_v16, %v6505_v29  ;;  %v12957_v2 = vmul.f32 0.5, %v12873_v52  ;;  %v6699_v42 = vsub.f32 0.0, %v12903_v44  ;;  %v6822_v61 = vmul.f32 %v9346_v47, %v6662_v55 }
 0x892   :  { %v6506_v26 = vadd.f32 1.4214138, %v6474_v45  ;;  %vm6187_vm11 = vcmp.ge.f32.partialorder %v12887_v49, 0.0  ;;  %v6316_v41 = vadd.f32 1.0, %v6284_v12  ;;  %v6885_v21 = vmul.f32 %v6853_v3, %v12799_v59 }
 0x893   :  { %v6631_v27 = vadd.f32 0.2548296, %v6599_v10  ;;  %v6569_v6 = vadd.f32 -0.28449672, %v6537_v31  ;;  %v6253_v53 = vand.u32 2147483647, %v12950_v46  ;;  %v12966_v52 = vadd.f32 %v12422_v0, %v12187_v58 }
 0x894   :  { %v6632_v8 = vadd.f32 0.2548296, %v6600_v5  ;;  %v6538_v40 = vmul.f32 %v12930_v30, %v6506_v26  ;;  %9357 = vrcp.f32 %v6316_v41  ;;  %v12971_v47 = vmul.f32 %v6916_v13, %v12732_v11 }
 0x895   :  { %v12968_v36 = vpop.eup %9351  ;;  %v6601_v55 = vmul.f32 %v12916_v16, %v6569_v6  ;;  %v6731_v59 = vmul.f32 %v6699_v42, %v12903_v44  ;;  %v6285_v3 = vmul.f32 0.3275911, %v6253_v53  ;;  %v6854_v10 = vsub.f32 1.0, %v6822_v61 }
 0x896   :  { %v6570_v29 = vadd.f32 -0.28449672, %v6538_v40  ;;  %v12978_v5 = vsel %vm6187_vm11, 1.0, %v13669_v28  ;;  %v6411_v0 = vmul.f32 1.0614054, %v12968_v36  ;;  %v9354_v45 = vpop.eup %9353  ;;  %v6917_v12 = vadd.f32 1.0, %v6885_v21 }
 0x897   :  { %9359 = vpow2.f32 %v6785_v35  ;;  %v12981_v31 = vmul.f32 0.5, %v6085_v34  ;;  %v6317_v11 = vadd.f32 1.0, %v6285_v3  ;;  %v6663_v13 = vmul.f32 %v12856_v23, %v6631_v27 }
 0x898   :  { %v6664_v44 = vmul.f32 %v12876_v43, %v6632_v8  ;;  %v6443_v42 = vadd.f32 -1.4531521, %v6411_v0  ;;  %v12986_v61 = vmul.f32 0.70710677, %v12966_v52  ;;  %v6633_v26 = vadd.f32 0.2548296, %v6601_v55 }
 0x899   :  { %v6787_v49 = vmul.f32 1.442695, %v6731_v59  ;;  %9361 = vrcp.f32 %v6317_v11  ;;  %v6964_v41 = vpack.c.bf16 %v12514_v56, %v12483_v38  ;;  %v6886_v35 = vmul.f32 %v6854_v10, %v12839_v32  ;;  %v13681_v32 = vld [vmem:[#allocation41_spill] sm:$0xff]  ;;  %v13683_v59 = vld [vmem:[#allocation42_spill] sm:$0xff] }
 0x89a   :  { %v9356_v6 = vpop.eup %9355  ;;  %v6602_v34 = vmul.f32 %v12930_v30, %v6570_v29  ;;  %v6475_v21 = vmul.f32 %v12968_v36, %v6443_v42  ;;  %vm6188_vm12 = vcmp.ge.f32.partialorder %v12926_v7, 0.0  ;;  %v12995_v23 = vmul.f32 %v6917_v12, %v12772_v20 }
 0x89b   :  { %v6700_v43 = vsub.f32 0.0, %v12941_v14  ;;  %v6701_v27 = vsub.f32 0.0, %v6253_v53  ;;  %v6254_v8 = vand.u32 2147483647, %v12986_v61  ;;  %7146 = vmatprep.mubr.bf16.mxu1 %v6964_v41  ;;  %v6823_v40 = vmul.f32 %v9350_v33, %v6663_v13 }
 0x89c   :  { %v6824_v38 = vmul.f32 %v9354_v45, %v6664_v44  ;;  %v6507_v56 = vadd.f32 1.4214138, %v6475_v21  ;;  %v13682_v55 = vpack.c.bf16 %v12403_v25, %v13681_v32  ;;  %v13004_v3 = vadd.f32 %v13683_v59, %v12182_v50  ;;  %v13684_v21 = vld [vmem:[#allocation34_spill] sm:$0xff] }
 0x89d   :  { %v6665_v20 = vmul.f32 %v12916_v16, %v6633_v26  ;;  %9363 = vpow2.f32 %v6787_v49  ;;  %v13008_v7 = vsel %vm6188_vm12, 1.0, %v13669_v28  ;;  %v6286_v10 = vmul.f32 0.3275911, %v6254_v8 }
 0x89e   :  { %7147 = vmatmul.mubr.bf16.vlgmr.msra.gmra.mrb[164].mxu1 %v13682_v55  ;;  %v13010_v29 = vpop.eup %9357  ;;  %v6918_v33 = vadd.f32 1.0, %v6886_v35  ;;  %v6634_v0 = vadd.f32 0.2548296, %v6602_v34  ;;  %v6539_v45 = vmul.f32 %v12968_v36, %v6507_v56  ;;  %v13014_v25 = vmul.f32 0.70710677, %v13004_v3 }
 0x89f   :  { %v6412_v12 = vmul.f32 1.0614054, %v13010_v29  ;;  %v6732_v11 = vmul.f32 %v6700_v43, %v12941_v14  ;;  %v6733_v13 = vmul.f32 %v6701_v27, %v6253_v53  ;;  %v6318_v16 = vadd.f32 1.0, %v6286_v10 }
 0x8a0   :  { %v6855_v44 = vsub.f32 1.0, %v6823_v40  ;;  %v6856_v42 = vsub.f32 1.0, %v6824_v38  ;;  %v6571_v26 = vadd.f32 -0.28449672, %v6539_v45  ;;  %v13019_v49 = vand.u32 2147483647, %v13014_v25 }
 0x8a1   :  { %v9360_v41 = vpop.eup %9359  ;;  %v6825_v35 = vmul.f32 %v9356_v6, %v6665_v20  ;;  %v6444_v34 = vadd.f32 -1.4531521, %v6412_v12  ;;  %9365 = vrcp.f32 %v6318_v16  ;;  %v13023_v56 = vadd.f32 %v13684_v21, %v12187_v58 }
 0x8a2   :  { %v6666_v32 = vmul.f32 %v12930_v30, %v6634_v0  ;;  %v6603_v14 = vmul.f32 %v12968_v36, %v6571_v26  ;;  %vm6189_vm13 = vcmp.ge.f32.partialorder %v12950_v46, 0.0  ;;  %v6287_v53 = vmul.f32 0.3275911, %v13019_v49 }
 0x8a3   :  { %v13029_v43 = vpop.eup %9361  ;;  %v6476_v27 = vmul.f32 %v13010_v29, %v6444_v34  ;;  %v6789_v40 = vmul.f32 1.442695, %v6732_v11  ;;  %v6791_v6 = vmul.f32 1.442695, %v6733_v13  ;;  %v6702_v38 = vsub.f32 0.0, %v6254_v8 }
 0x8a4   :  { %v6887_v55 = vmul.f32 %v6855_v44, %v12853_v17  ;;  %v6635_v59 = vadd.f32 0.2548296, %v6603_v14  ;;  %v6413_v20 = vmul.f32 1.0614054, %v13029_v43  ;;  %v6319_v10 = vadd.f32 1.0, %v6287_v53 }
 0x8a5   :  { %v6888_v30 = vmul.f32 %v6856_v42, %v12893_v15  ;;  %v6857_v0 = vsub.f32 1.0, %v6825_v35  ;;  %v6508_v45 = vadd.f32 1.4214138, %v6476_v27  ;;  %v13036_v12 = vmul.f32 0.70710677, %v13023_v56 }
 0x8a6   :  { %v6826_v16 = vmul.f32 %v9360_v41, %v6666_v32  ;;  %v6667_v26 = vmul.f32 %v12968_v36, %v6635_v59  ;;  %v6445_v34 = vadd.f32 -1.4531521, %v6413_v20  ;;  %9367 = vrcp.f32 %v6319_v10  ;;  %v13685_v41 = vld [vmem:[#allocation44_spill] sm:$0xff] }
 0x8a7   :  { %v9364_v11 = vpop.eup %9363  ;;  %v13040_v13 = vmul.f32 %v6918_v33, %v12809_v18  ;;  %v6540_v17 = vmul.f32 %v13010_v29, %v6508_v45  ;;  %v6734_v44 = vmul.f32 %v6702_v38, %v6254_v8  ;;  %v13044_v21 = vand.u32 2147483647, %v13036_v12 }
 0x8a8   :  { %v6919_v15 = vadd.f32 1.0, %v6887_v55  ;;  %9369 = vpow2.f32 %v6789_v40  ;;  %v6477_v42 = vmul.f32 %v13029_v43, %v6445_v34  ;;  %v13049_v35 = vadd.f32 %v13685_v41, %v12182_v50 }
 0x8a9   :  { %v6920_v36 = vadd.f32 1.0, %v6888_v30  ;;  %v6827_v32 = vmul.f32 %v9364_v11, %v6667_v26  ;;  %v6572_v14 = vadd.f32 -0.28449672, %v6540_v17  ;;  %v6288_v18 = vmul.f32 0.3275911, %v13044_v21 }
 0x8aa   :  { %v6889_v33 = vmul.f32 %v6857_v0, %v12919_v57  ;;  %v6858_v53 = vsub.f32 1.0, %v6826_v16  ;;  %v6509_v8 = vadd.f32 1.4214138, %v6477_v42  ;;  %9371 = vpow2.f32 %v6791_v6  ;;  %v13686_v6 = vld [vmem:[#allocation45_spill] sm:$0xff]  ;;  %v13687_v42 = vld [vmem:[#allocation43_spill] sm:$0xff] }
 0x8ab   :  { %v13053_v27 = vpop.eup %9365  ;;  %v6604_v40 = vmul.f32 %v13010_v29, %v6572_v14  ;;  %v6793_v38 = vmul.f32 1.442695, %v6734_v44  ;;  %v6320_v55 = vadd.f32 1.0, %v6288_v18  ;;  %v13057_v59 = vmul.f32 0.70710677, %v13049_v35 }
 0x8ac   :  { %v13062_v50 = vsel %vm6189_vm13, 1.0, %v13669_v28  ;;  %v6541_v20 = vmul.f32 %v13029_v43, %v6509_v8  ;;  %v6414_v57 = vmul.f32 1.0614054, %v13053_v27  ;;  %v13068_v10 = vadd.f32 %v13686_v6, %v12187_v58 }
 0x8ad   :  { %v13071_v30 = vmul.f32 %v6919_v15, %v12825_v63  ;;  %v6859_v0 = vsub.f32 1.0, %v6827_v32  ;;  %v6636_v45 = vadd.f32 0.2548296, %v6604_v40  ;;  %9373 = vrcp.f32 %v6320_v55  ;;  %v13690_v55 = vld [vmem:[#allocation35_spill] sm:$0xff] }
 0x8ae   :  { %v13074_v16 = vmul.f32 %v6920_v36, %v12883_v24  ;;  %v6890_v46 = vmul.f32 %v6858_v53, %v12947_v22  ;;  %v6573_v26 = vadd.f32 -0.28449672, %v6541_v20  ;;  %v6446_v34 = vadd.f32 -1.4531521, %v6414_v57  ;;  %v13688_v22 = vld [vmem:[#allocation40_spill] sm:$0xff] }
 0x8af   :  { %v6921_v11 = vadd.f32 1.0, %v6889_v33  ;;  %9375 = vpow2.f32 %v6793_v38  ;;  %v6703_v17 = vsub.f32 0.0, %v13019_v49  ;;  %v13079_v58 = vand.u32 2147483647, %v13057_v59  ;;  %v13689_v38 = vld [vmem:[#allocation46_spill] sm:$0xff] }
 0x8b0   :  { %v13081_v44 = vpop.eup %9367  ;;  %v6605_v63 = vmul.f32 %v13029_v43, %v6573_v26  ;;  %v6478_v15 = vmul.f32 %v13053_v27, %v6446_v34  ;;  %v13086_v24 = vmul.f32 0.70710677, %v13068_v10  ;;  %v6966_v41 = vpack.c.bf16 %v13688_v22, %v13687_v42 }
 0x8b1   :  { %v6891_v36 = vmul.f32 %v6859_v0, %v12978_v5  ;;  %v6668_v32 = vmul.f32 %v13010_v29, %v6636_v45  ;;  %v6415_v14 = vmul.f32 1.0614054, %v13081_v44  ;;  %v6289_v18 = vmul.f32 0.3275911, %v13079_v58 }
 0x8b2   :  { %v9370_v33 = vpop.eup %9369  ;;  %v6922_v53 = vadd.f32 1.0, %v6890_v46  ;;  %v6637_v8 = vadd.f32 0.2548296, %v6605_v63  ;;  %v6510_v40 = vadd.f32 1.4214138, %v6478_v15  ;;  %7154 = vmatprep.mubr.bf16.mxu1 %v6966_v41  ;;  %v6965_v20 = vpack.c.bf16 %v13690_v55, %v13689_v38 }
 0x8b3   :  { %v6447_v57 = vadd.f32 -1.4531521, %v6415_v14  ;;  %v6735_v6 = vmul.f32 %v6703_v17, %v13019_v49  ;;  %v6704_v26 = vsub.f32 0.0, %v13044_v21  ;;  %v6321_v5 = vadd.f32 1.0, %v6289_v18 }
 0x8b4   :  { %v9372_v0 = vpop.eup %9371  ;;  %v13099_v29 = vmul.f32 %v6921_v11, %v12897_v54  ;;  %v6669_v45 = vmul.f32 %v13029_v43, %v6637_v8  ;;  %v6542_v46 = vmul.f32 %v13053_v27, %v6510_v40  ;;  %v13104_v34 = vand.u32 2147483647, %v13086_v24  ;;  %7155 = vmatmul.mubr.bf16.gmra.mrb[168].mxu1 %v6965_v20 }
 0x8b5   :  { %v6923_v63 = vadd.f32 1.0, %v6891_v36  ;;  %v6828_v15 = vmul.f32 %v9370_v33, %v6668_v32  ;;  %v6479_v42 = vmul.f32 %v13081_v44, %v6447_v57  ;;  %9377 = vrcp.f32 %v6321_v5 }
 0x8b6   :  { %v13108_v49 = vmul.f32 %v6922_v53, %v12913_v9  ;;  %v6829_v17 = vmul.f32 %v9372_v0, %v6669_v45  ;;  %vm6190_vm14 = vcmp.ge.f32.partialorder %v12986_v61, 0.0  ;;  %v6574_v54 = vadd.f32 -0.28449672, %v6542_v46 }
 0x8b7   :  { %v6290_v43 = vmul.f32 0.3275911, %v13104_v34  ;;  %v13112_v11 = vpop.eup %9373  ;;  %v6511_v22 = vadd.f32 1.4214138, %v6479_v42  ;;  %v6795_v41 = vmul.f32 1.442695, %v6735_v6  ;;  %v6736_v14 = vmul.f32 %v6704_v26, %v13044_v21 }
 0x8b8   :  { %v6968_v36 = vpack.c.bf16 %v12784_v19, %v12746_v4  ;;  %v6861_v32 = vsub.f32 1.0, %v6829_v17  ;;  %v6606_v18 = vmul.f32 %v13053_v27, %v6574_v54  ;;  %v6416_v9 = vmul.f32 1.0614054, %v13112_v11 }
 0x8b9   :  { %v6322_v33 = vadd.f32 1.0, %v6290_v43  ;;  %v9376_v53 = vpop.eup %9375  ;;  %v13120_v8 = vmul.f32 %v6923_v63, %v12957_v2  ;;  %v6860_v40 = vsub.f32 1.0, %v6828_v15  ;;  %v6543_v38 = vmul.f32 %v13081_v44, %v6511_v22  ;;  %v13691_v43 = vld [vmem:[#allocation39_spill] sm:$0xff] }
 0x8ba   :  { %7162 = vmatprep.mubr.bf16.mxu1 %v6968_v36  ;;  %v6967_v21 = vpack.c.bf16 %v12768_v62, %v12693_v39  ;;  %v6893_v55 = vmul.f32 %v6861_v32, %v13062_v50  ;;  %v6638_v4 = vadd.f32 0.2548296, %v6606_v18  ;;  %v6448_v19 = vadd.f32 -1.4531521, %v6416_v9 }
 0x8bb   :  { %9379 = vrcp.f32 %v6322_v33  ;;  %v6575_v20 = vadd.f32 -0.28449672, %v6543_v38  ;;  %v6705_v57 = vsub.f32 0.0, %v13079_v58  ;;  %v6970_v6 = vpack.c.bf16 %v12890_v48, %v12812_v37 }
 0x8bc   :  { %v6969_v2 = vpack.c.bf16 %v12864_v1, %v12802_v51  ;;  %v6925_v26 = vadd.f32 1.0, %v6893_v55  ;;  %v6670_v5 = vmul.f32 %v13053_v27, %v6638_v4  ;;  %v6480_v0 = vmul.f32 %v13112_v11, %v6448_v19  ;;  %7163 = vmatmul.mubr.bf16.gmra.mrb[172].mxu1 %v6967_v21 }
 0x8bd   :  { %v6972_v39 = vpack.c.bf16 %v13040_v13, %v12971_v47  ;;  %v6892_v62 = vmul.f32 %v6860_v40, %v13008_v7  ;;  %v6607_v50 = vmul.f32 %v13081_v44, %v6575_v20  ;;  %7170 = vmatprep.mubr.bf16.mxu1 %v6970_v6  ;;  %v6971_v37 = vpack.c.bf16 %v12995_v23, %v12935_v60 }
 0x8be   :  { %v6974_v51 = vpack.c.bf16 %v13108_v49, %v13074_v16  ;;  %v13142_v1 = vmul.f32 %v6925_v26, %v12981_v31  ;;  %v6830_v48 = vmul.f32 %v9376_v53, %v6670_v5  ;;  %v6512_v27 = vadd.f32 1.4214138, %v6480_v0 }
 0x8bf   :  { %v6973_v45 = vpack.c.bf16 %v13099_v29, %v13071_v30  ;;  %v9378_v47 = vpop.eup %9377  ;;  %9381 = vpow2.f32 %v6795_v41  ;;  %v6797_v7 = vmul.f32 1.442695, %v6736_v14  ;;  %v6737_v13 = vmul.f32 %v6705_v57, %v13079_v58 }
 0x8c0   :  { %v6706_v46 = vsub.f32 0.0, %v13104_v34  ;;  %v6862_v63 = vsub.f32 1.0, %v6830_v48  ;;  %v6544_v60 = vmul.f32 %v13112_v11, %v6512_v27  ;;  %v6417_v23 = vmul.f32 1.0614054, %v9378_v47 }
 0x8c1   :  { %v6975_v31 = vpack.c.bf16 %v13142_v1, %v13120_v8  ;;  %v6924_v16 = vadd.f32 1.0, %v6892_v62  ;;  %v6222_v15 = vsel %vm6190_vm14, 1.0, %v13669_v28  ;;  %v6639_v49 = vadd.f32 0.2548296, %v6607_v50 }
 0x8c2   :  { %v6894_v42 = vmul.f32 %v6862_v63, %v6222_v15  ;;  %v6576_v17 = vadd.f32 -0.28449672, %v6544_v60  ;;  %v6449_v54 = vadd.f32 -1.4531521, %v6417_v23  ;;  %v6124_v58 = vmul.f32 0.5, %v13691_v43 }
 0x8c3   :  { %v6126_v22 = vmul.f32 0.5, %v12966_v52  ;;  %9383 = vpow2.f32 %v6797_v7  ;;  %v6799_v41 = vmul.f32 1.442695, %v6737_v13  ;;  %v6738_v9 = vmul.f32 %v6706_v46, %v13104_v34 }
 0x8c4   :  { %v6926_v36 = vadd.f32 1.0, %v6894_v42  ;;  %v6608_v32 = vmul.f32 %v13112_v11, %v6576_v17  ;;  %v6481_v18 = vmul.f32 %v9378_v47, %v6449_v54  ;;  %7171 = vmatmul.mubr.bf16.gmra.mrb[176].mxu1 %v6969_v2  ;;  %v6956_v33 = vmul.f32 %v6924_v16, %v6124_v58 }
 0x8c5   :  { %v9380_v14 = vpop.eup %9379  ;;  %7178 = vmatprep.mubr.bf16.mxu1 %v6972_v39  ;;  %v6671_v40 = vmul.f32 %v13081_v44, %v6639_v49  ;;  %9385 = vpow2.f32 %v6799_v41  ;;  %v6801_v4 = vmul.f32 1.442695, %v6738_v9  ;;  %vm6191_vm15 = vcmp.ge.f32.partialorder %v13014_v25, 0.0 }
 0x8c6   :  { %v6418_v61 = vmul.f32 1.0614054, %v9380_v14  ;;  %v6958_v53 = vmul.f32 %v6926_v36, %v6126_v22  ;;  %v6513_v38 = vadd.f32 1.4214138, %v6481_v18  ;;  %v6640_v21 = vadd.f32 0.2548296, %v6608_v32 }
 0x8c7   :  { %9387 = vpow2.f32 %v6801_v4  ;;  %v6223_v13 = vsel %vm6191_vm15, 1.0, %v13669_v28  ;;  %vm6193_vm1 = vcmp.ge.f32.partialorder %v13057_v59, 0.0  ;;  %vm6192_vm2 = vcmp.ge.f32.partialorder %v13036_v12, 0.0 }
 0x8c8   :  { %v6450_v52 = vadd.f32 -1.4531521, %v6418_v61  ;;  %v6545_v55 = vmul.f32 %v9378_v47, %v6513_v38  ;;  %v6976_v19 = vpack.c.bf16 %v6958_v53, %v6956_v33  ;;  %v6672_v34 = vmul.f32 %v13112_v11, %v6640_v21 }
 0x8c9   :  { %v9382_v20 = vpop.eup %9381  ;;  %v6225_v25 = vsel %vm6193_vm1, 1.0, %v13669_v28  ;;  %v6224_v15 = vsel %vm6192_vm2, 1.0, %v13669_v28  ;;  %vm6194_vm3 = vcmp.ge.f32.partialorder %v13086_v24, 0.0  ;;  %v6127_v49 = vmul.f32 0.5, %v13004_v3 }
 0x8ca   :  { %v6482_v57 = vmul.f32 %v9380_v14, %v6450_v52  ;;  %v6831_v6 = vmul.f32 %v9382_v20, %v6671_v40  ;;  %v6577_v26 = vadd.f32 -0.28449672, %v6545_v55  ;;  %v6129_v17 = vmul.f32 0.5, %v13049_v35  ;;  %v13693_v40 = vld [vmem:[#allocation24_spill] sm:$0xff] }
 0x8cb   :  { %v6226_v43 = vsel %vm6194_vm3, 1.0, %v13669_v28  ;;  %v6128_v24 = vmul.f32 0.5, %v13023_v56  ;;  %v13181_v28 = vld [vmem:[%s13292_s13] ss:$0 sm:$0xff] }
 0x8cc   :  { %v6514_v2 = vadd.f32 1.4214138, %v6482_v57  ;;  %v6609_v5 = vmul.f32 %v9378_v47, %v6577_v26  ;;  %7179 = vmatmul.mubr.bf16.gmra.mrb[180].mxu1 %v6971_v37  ;;  %v6863_v44 = vsub.f32 1.0, %v6831_v6  ;;  %v13694_v6 = vld [vmem:[#allocation15_spill] sm:$0xff] }
 0x8cd   :  { %v9384_v0 = vpop.eup %9383  ;;  %7186 = vmatprep.mubr.bf16.mxu1 %v6974_v51 }
 0x8ce   :  { %v6546_v39 = vmul.f32 %v9380_v14, %v6514_v2  ;;  %v6641_v62 = vadd.f32 0.2548296, %v6609_v5  ;;  %v6832_v50 = vmul.f32 %v9384_v0, %v6672_v34  ;;  %v6895_v63 = vmul.f32 %v6863_v44, %v6223_v13  ;;  %v13695_v2 = vld [vmem:[#allocation22_spill] sm:$0xff] }
 0x8cf   :  { %v9386_v7 = vpop.eup %9385 }
 0x8d0   :  { %v6578_v48 = vadd.f32 -0.28449672, %v6546_v39  ;;  %v6673_v27 = vmul.f32 %v9378_v47, %v6641_v62  ;;  %v6864_v37 = vsub.f32 1.0, %v6832_v50  ;;  %v6927_v16 = vadd.f32 1.0, %v6895_v63  ;;  %v13697_v63 = vld [vmem:[#allocation9_spill] sm:$0xff] }
 0x8d1   :  { %v9388_v23 = vpop.eup %9387 }
 0x8d2   :  { %v6610_v46 = vmul.f32 %v9380_v14, %v6578_v48  ;;  %v6833_v11 = vmul.f32 %v9386_v7, %v6673_v27  ;;  %v6896_v59 = vmul.f32 %v6864_v37, %v6224_v15  ;;  %v6959_v29 = vmul.f32 %v6927_v16, %v6127_v49  ;;  %v13696_v7 = vld [vmem:[#allocation21_spill] sm:$0xff]  ;;  %v13698_v15 = vld [vmem:[#allocation23_spill] sm:$0xff] }
 0x8d4   :  { %v6642_v60 = vadd.f32 0.2548296, %v6610_v46  ;;  %v6865_v51 = vsub.f32 1.0, %v6833_v11  ;;  %7187 = vmatmul.mubr.bf16.gmra.mrb[184].mxu1 %v6973_v45  ;;  %v6928_v58 = vadd.f32 1.0, %v6896_v59 }
 0x8d5   :  { %7194 = vmatprep.mubr.bf16.mxu1 %v6976_v19 }
 0x8d6   :  { %v6674_v47 = vmul.f32 %v9380_v14, %v6642_v60  ;;  %v6897_v42 = vmul.f32 %v6865_v51, %v6225_v25  ;;  %v6130_v14 = vmul.f32 0.5, %v13068_v10  ;;  %v6960_v36 = vmul.f32 %v6928_v58, %v6128_v24  ;;  %v13692_v10 = vld [vmem:[#allocation20_spill] sm:$0xff] }
 0x8d8   :  { %v6834_v12 = vmul.f32 %v9388_v23, %v6674_v47  ;;  %v6929_v54 = vadd.f32 1.0, %v6897_v42 }
 0x8da   :  { %v6866_v30 = vsub.f32 1.0, %v6834_v12  ;;  %v6961_v45 = vmul.f32 %v6929_v54, %v6129_v17  ;;  %v13699_v12 = vld [vmem:[#allocation7_spill] sm:$0xff] }
 0x8dc   :  { %v6898_v22 = vmul.f32 %v6866_v30, %v6226_v43  ;;  %7195 = vmatmul.mubr.bf16.gmra.mrb[188].mxu1 %v6975_v31  ;;  %v6977_v41 = vpack.c.bf16 %v6961_v45, %v6959_v29 }
 0x8de   :  { %v6930_v3 = vadd.f32 1.0, %v6898_v22  ;;  %v13700_v22 = vld [vmem:[#allocation5_spill] sm:$0xff] }
 0x8e0   :  { %v6962_v35 = vmul.f32 %v6930_v3, %v6130_v14  ;;  %v13701_v14 = vld [vmem:[#allocation26_spill] sm:$0xff] }
 0x8e2   :  { %v6978_v32 = vpack.c.bf16 %v6962_v35, %v6960_v36 }
 0x8e4   :  { %7202 = vmatprep.mubr.bf16.mxu1 %v6978_v32 }
 0x8e5   :  { %7203 = vmatmul.mubr.bf16.gmra.mrb[192].mxu1 %v6977_v41 }
 0x971   :  { %v7957_v18 = vpop.f32.mrb[164].mxu1 }
 0x972   :  { %v7958_v9 = vpop.f32.mrb[165].mxu1 }
 0x973   :  { %v7959_v8 = vadd.f32 %v7958_v9, %v7957_v18  ;;  %v7960_v1 = vpop.f32.mrb[166].mxu1 }
 0x974   :  { %v7961_v31 = vpop.f32.mrb[167].mxu1 }
 0x975   :  { %v7149_v56 = vadd.f32 %v7959_v8, %v13181_v28  ;;  %v7962_v61 = vadd.f32 %v7961_v31, %v7960_v1  ;;  %v13702_v31 = vld [vmem:[#allocation25_spill] sm:$0xff] }
 0x977   :  { %v7211_v33 = vadd.f32 %v7149_v56, %v13692_v10  ;;  %v7152_v53 = vadd.f32 %v7962_v61, %v13181_v28  ;;  %v13703_v10 = vld [vmem:[#allocation30_spill] sm:$0xff] }
 0x979   :  { %7227 = vst.msk [vmem:[%s13293_s14] sm:$0xff] %vm66_vm0, %v7211_v33  ;;  %v7212_v38 = vadd.f32 %v7152_v53, %v13693_v40 }
 0x97b   :  { %7228 = vst.msk [vmem:[%s13293_s14 + $0x8] sm:$0xff] %vm66_vm0, %v7212_v38 }
 0x987   :  { %v7963_v21 = vpop.f32.mrb[168].mxu1 }
 0x988   :  { %v7964_v52 = vpop.f32.mrb[169].mxu1 }
 0x989   :  { %v7965_v55 = vadd.f32 %v7964_v52, %v7963_v21  ;;  %v7966_v4 = vpop.f32.mrb[170].mxu1 }
 0x98a   :  { %v7967_v19 = vpop.f32.mrb[171].mxu1 }
 0x98b   :  { %v7157_v20 = vadd.f32 %v7965_v55, %v13181_v28  ;;  %v7968_v57 = vadd.f32 %v7967_v19, %v7966_v4  ;;  %v13704_v19 = vld [vmem:[#allocation28_spill] sm:$0xff] }
 0x98d   :  { %v7213_v26 = vadd.f32 %v7157_v20, %v13694_v6  ;;  %v7160_v34 = vadd.f32 %v7968_v57, %v13181_v28  ;;  %v13705_v6 = vld [vmem:[#allocation27_spill] sm:$0xff] }
 0x98f   :  { %7229 = vst.msk [vmem:[%s13293_s14 + $0x10] sm:$0xff] %vm66_vm0, %v7213_v26  ;;  %v7214_v5 = vadd.f32 %v7160_v34, %v13695_v2  ;;  %v7969_v0 = vpop.f32.mrb[172].mxu1 }
 0x990   :  { %v7970_v39 = vpop.f32.mrb[173].mxu1 }
 0x991   :  { %7230 = vst.msk [vmem:[%s13293_s14 + $0x18] sm:$0xff] %vm66_vm0, %v7214_v5  ;;  %v7971_v44 = vadd.f32 %v7970_v39, %v7969_v0  ;;  %v7972_v62 = vpop.f32.mrb[174].mxu1 }
 0x992   :  { %v7973_v50 = vpop.f32.mrb[175].mxu1 }
 0x993   :  { %v7165_v48 = vadd.f32 %v7971_v44, %v13181_v28  ;;  %v7974_v27 = vadd.f32 %v7973_v50, %v7972_v62  ;;  %v13706_v50 = vld [vmem:[#allocation29_spill] sm:$0xff] }
 0x995   :  { %v7215_v13 = vadd.f32 %v7165_v48, %v13696_v7  ;;  %v7168_v46 = vadd.f32 %v7974_v27, %v13181_v28  ;;  %v13707_v7 = vld [vmem:[#allocation32_spill] sm:$0xff] }
 0x997   :  { %7231 = vst.msk [vmem:[%s13293_s14 + $0x20] sm:$0xff] %vm66_vm0, %v7215_v13  ;;  %v7216_v11 = vadd.f32 %v7168_v46, %v13697_v63  ;;  %v7975_v37 = vpop.f32.mrb[176].mxu1 }
 0x998   :  { %v7976_v60 = vpop.f32.mrb[177].mxu1 }
 0x999   :  { %7232 = vst.msk [vmem:[%s13293_s14 + $0x28] sm:$0xff] %vm66_vm0, %v7216_v11  ;;  %v7977_v51 = vadd.f32 %v7976_v60, %v7975_v37  ;;  %v7978_v25 = vpop.f32.mrb[178].mxu1 }
 0x99a   :  { %v7979_v47 = vpop.f32.mrb[179].mxu1 }
 0x99b   :  { %v7173_v23 = vadd.f32 %v7977_v51, %v13181_v28  ;;  %v7980_v16 = vadd.f32 %v7979_v47, %v7978_v25 }
 0x99d   :  { %v7217_v42 = vadd.f32 %v7173_v23, %v13698_v15  ;;  %v7176_v59 = vadd.f32 %v7980_v16, %v13181_v28 }
 0x99f   :  { %7233 = vst.msk [vmem:[%s13293_s14 + $0x30] sm:$0xff] %vm66_vm0, %v7217_v42  ;;  %v7218_v49 = vadd.f32 %v7176_v59, %v13699_v12  ;;  %v7981_v17 = vpop.f32.mrb[180].mxu1 }
 0x9a0   :  { %v7982_v54 = vpop.f32.mrb[181].mxu1 }
 0x9a1   :  { %7234 = vst.msk [vmem:[%s13293_s14 + $0x38] sm:$0xff] %vm66_vm0, %v7218_v49  ;;  %v7983_v30 = vadd.f32 %v7982_v54, %v7981_v17  ;;  %v7984_v29 = vpop.f32.mrb[182].mxu1 }
 0x9a2   :  { %v7985_v45 = vpop.f32.mrb[183].mxu1 }
 0x9a3   :  { %v7181_v43 = vadd.f32 %v7983_v30, %v13181_v28  ;;  %v7986_v58 = vadd.f32 %v7985_v45, %v7984_v29 }
 0x9a5   :  { %v7219_v41 = vadd.f32 %v7181_v43, %v13700_v22  ;;  %v7184_v24 = vadd.f32 %v7986_v58, %v13181_v28 }
 0x9a7   :  { %7235 = vst.msk [vmem:[%s13293_s14 + $0x40] sm:$0xff] %vm66_vm0, %v7219_v41  ;;  %v7220_v3 = vadd.f32 %v7184_v24, %v13701_v14  ;;  %v7987_v36 = vpop.f32.mrb[184].mxu1 }
 0x9a8   :  { %v7988_v35 = vpop.f32.mrb[185].mxu1 }
 0x9a9   :  { %7236 = vst.msk [vmem:[%s13293_s14 + $0x48] sm:$0xff] %vm66_vm0, %v7220_v3  ;;  %v7989_v32 = vadd.f32 %v7988_v35, %v7987_v36  ;;  %v7990_v18 = vpop.f32.mrb[186].mxu1 }
 0x9aa   :  { %v7991_v9 = vpop.f32.mrb[187].mxu1 }
 0x9ab   :  { %v7189_v8 = vadd.f32 %v7989_v32, %v13181_v28  ;;  %v7992_v1 = vadd.f32 %v7991_v9, %v7990_v18 }
 0x9ad   :  { %v7221_v56 = vadd.f32 %v7189_v8, %v13702_v31  ;;  %v7192_v61 = vadd.f32 %v7992_v1, %v13181_v28 }
 0x9af   :  { %7237 = vst.msk [vmem:[%s13293_s14 + $0x50] sm:$0xff] %vm66_vm0, %v7221_v56  ;;  %v7222_v33 = vadd.f32 %v7192_v61, %v13703_v10  ;;  %v7993_v53 = vpop.f32.mrb[188].mxu1 }
 0x9b0   :  { %v7994_v40 = vpop.f32.mrb[189].mxu1 }
 0x9b1   :  { %7238 = vst.msk [vmem:[%s13293_s14 + $0x58] sm:$0xff] %vm66_vm0, %v7222_v33  ;;  %v7995_v38 = vadd.f32 %v7994_v40, %v7993_v53  ;;  %v7996_v21 = vpop.f32.mrb[190].mxu1 }
 0x9b2   :  { %v7997_v52 = vpop.f32.mrb[191].mxu1 }
 0x9b3   :  { %v7197_v55 = vadd.f32 %v7995_v38, %v13181_v28  ;;  %v7998_v4 = vadd.f32 %v7997_v52, %v7996_v21 }
 0x9b5   :  { %v7223_v20 = vadd.f32 %v7197_v55, %v13704_v19  ;;  %v7200_v57 = vadd.f32 %v7998_v4, %v13181_v28 }
 0x9b7   :  { %7239 = vst.msk [vmem:[%s13293_s14 + $0x60] sm:$0xff] %vm66_vm0, %v7223_v20  ;;  %v7224_v26 = vadd.f32 %v7200_v57, %v13705_v6 }
 0x9b8   :  { %v7999_v34 = vpop.f32.mrb[192].mxu1 }
 0x9b9   :  { %v8000_v2 = vpop.f32.mrb[193].mxu1  ;;  %7240 = vst.msk [vmem:[%s13293_s14 + $0x68] sm:$0xff] %vm66_vm0, %v7224_v26 }
 0x9ba   :  { %v8001_v5 = vadd.f32 %v8000_v2, %v7999_v34  ;;  %v8002_v0 = vpop.f32.mrb[194].mxu1 }
 0x9bb   :  { %v8003_v39 = vpop.f32.mrb[195].mxu1 }
 0x9bc   :  { %v7205_v44 = vadd.f32 %v8001_v5, %v13181_v28  ;;  %v8004_v62 = vadd.f32 %v8003_v39, %v8002_v0 }
 0x9be   :  { %v7225_v48 = vadd.f32 %v7205_v44, %v13706_v50  ;;  %v7208_v27 = vadd.f32 %v8004_v62, %v13181_v28 }
 0x9c0   :  { %7241 = vst.msk [vmem:[%s13293_s14 + $0x70] sm:$0xff] %vm66_vm0, %v7225_v48  ;;  %v7226_v13 = vadd.f32 %v7208_v27, %v13707_v7 }
 0x9c2   :  { %7242 = vst.msk [vmem:[%s13293_s14 + $0x78] sm:$0xff] %vm66_vm0, %v7226_v13 }

</bundles_post_ra>
